<compile_context>
chip_gen: v5e
topology: v5e:2x2
jax: 0.10.0
libtpu: 0.0.40
codegen_flags: <defaults>
</compile_context>

<pallas_src>
import functools

import jax
import jax.numpy as jnp
from jax import lax
from jax.experimental import pallas as pl
from jax.experimental.pallas import tpu as pltpu


def _fused_lstm_fc_kernel(x_ref,      # (seq*bpad, in)    time-major, batch padded
                          w_in_ref,   # (in, 8H)          layer-1 input proj (combined cols)
                          b_ref,      # (1, 8H)           combined biases
                          w_rec_ref,  # (2H, 8H)          fused recurrent weights
                          w_fc_ref,   # (H, out_pad)
                          b_fc_ref,   # (1, out_pad)
                          out_ref,    # (seq*bpad, out_pad)
                          xproj_ref,  # scratch (seq*bpad, 8H)
                          h2acc_ref,  # scratch (seq*bpad, H)
                          *, seq, bpad, hidden):
    h = hidden
    f32 = jnp.float32

    # ---- Hoist weights / biases out of the recurrence (read once). ----
    w_rec = w_rec_ref[...]
    b_full = b_ref[...].astype(f32)

    # ---- Layer-1 input projection + biases for ALL steps: one pre-loop MXU op. ----
    xproj_ref[...] = (
        jnp.dot(x_ref[...], w_in_ref[...], preferred_element_type=f32) + b_full)

    def combined_cell(gates, c_comb):
        # gate column layout: [i1 i2 | f1 f2 | o1 o2 | g1 g2], each block `hidden` wide.
        sg = jax.nn.sigmoid(gates[:, :6 * h])   # ONE EUP pass: i/f/o of BOTH layers
        gg = jnp.tanh(gates[:, 6 * h:])         # ONE EUP pass: g of BOTH layers
        i_c = sg[:, 0:2 * h]
        f_c = sg[:, 2 * h:4 * h]
        o_c = sg[:, 4 * h:6 * h]
        c_new = f_c * c_comb + i_c * gg
        h_new = o_c * jnp.tanh(c_new)           # ONE EUP pass: tanh(c) of BOTH cells
        return h_new, c_new                     # = [h1_t | h2_{t-1}], [c1_t | c2_{t-1}]

    # ---- Prologue (t = 0): layer-1 only; its recurrent term is zero (h1_{-1}=0).
    zeros_h = jnp.zeros((bpad, h), f32)
    h_comb, c_comb = combined_cell(xproj_ref[0:bpad, :],
                                   jnp.zeros((bpad, 2 * h), f32))
    # Layer 2 has not run yet: its state entering step 0 must be zero.
    h_comb = jnp.concatenate([h_comb[:, :h], zeros_h], axis=-1)
    c_comb = jnp.concatenate([c_comb[:, :h], zeros_h], axis=-1)

    # ---- Pipelined recurrence: iteration t does layer-1 step t and layer-2 step t-1.
    # h_comb = [h1_{t-1} | h2_{t-2}] is exactly the LHS of the fused matmul.
    for t in range(1, seq + 1):
        addend = (xproj_ref[t * bpad:(t + 1) * bpad, :] if t < seq else b_full)
        gates = addend + jnp.dot(h_comb.astype(w_rec.dtype), w_rec,
                                 preferred_element_type=f32)
        h_comb, c_comb = combined_cell(gates, c_comb)
        h2acc_ref[(t - 1) * bpad:t * bpad, :] = h_comb[:, h:]   # h2_{t-1}, tile-aligned

    # ---- Post-loop fc head: one matmul + one lane-dense store. ----
    out_ref[...] = (
        jnp.dot(h2acc_ref[...].astype(w_fc_ref.dtype), w_fc_ref[...],
                preferred_element_type=f32)
        + b_fc_ref[...])


def beyond_sight_lstm_forward(x, params, *, matmul_dtype=jnp.float32):
    """x: (batch, seq, input) f32 -> (batch, seq, output) f32 (PyTorch LSTM semantics)."""
    batch, seq, in_dim = x.shape
    hidden = params["weight_hh_l0"].shape[1]
    out_size = params["fc_weight"].shape[0]
    f32 = jnp.float32
    H = hidden

    bpad = ((batch + 7) // 8) * 8            # full f32 sublane tile per step
    out_pad = ((out_size + 127) // 128) * 128  # lane-dense output store

    def gate_blocks(w):  # PyTorch (4H, X), rows [i;f;g;o] -> (X, H) right-multiply blocks
        w = w.astype(f32)
        return {"i": w[0:H].T, "f": w[H:2 * H].T, "g": w[2 * H:3 * H].T, "o": w[3 * H:4 * H].T}

    def bias_blocks(b):
        b = b.astype(f32)
        return {"i": b[0:H], "f": b[H:2 * H], "g": b[2 * H:3 * H], "o": b[3 * H:4 * H]}

    wi1 = gate_blocks(params["weight_ih_l0"])
    wh1 = gate_blocks(params["weight_hh_l0"])
    wi2 = gate_blocks(params["weight_ih_l1"])
    wh2 = gate_blocks(params["weight_hh_l1"])
    b1 = bias_blocks(params["bias_ih_l0"] + params["bias_hh_l0"])
    b2 = bias_blocks(params["bias_ih_l1"] + params["bias_hh_l1"])

    zin = jnp.zeros((in_dim, H), f32)
    zh = jnp.zeros((H, H), f32)
    order = ("i", "f", "o", "g")   # sigmoid gates first, tanh gate last

    # Combined gate column layout: [i1 i2 f1 f2 o1 o2 g1 g2]
    w_in = jnp.concatenate([blk for g in order for blk in (wi1[g], zin)], axis=1)
    b_full = jnp.concatenate([blk for g in order for blk in (b1[g], b2[g])]).reshape(1, -1)
    w_rec_top = jnp.concatenate([blk for g in order for blk in (wh1[g], wi2[g])], axis=1)
    w_rec_bot = jnp.concatenate([blk for g in order for blk in (zh, wh2[g])], axis=1)
    w_rec = jnp.concatenate([w_rec_top, w_rec_bot], axis=0)          # (2H, 8H)

    w_fc = jnp.zeros((H, out_pad), f32).at[:, :out_size].set(params["fc_weight"].T.astype(f32))
    b_fc = jnp.zeros((1, out_pad), f32).at[:, :out_size].set(params["fc_bias"].astype(f32))

    # time-major, batch padded to bpad, flattened rows (sublane-tile aligned per step)
    x_tm = jnp.transpose(x.astype(f32), (1, 0, 2))
    x_tm = jnp.pad(x_tm, ((0, 0), (0, bpad - batch), (0, 0)))
    x_flat = x_tm.reshape(seq * bpad, in_dim)

    # Optional bf16 MXU operands (recommended for production); f32 by default.
    w_in = w_in.astype(matmul_dtype)
    w_rec = w_rec.astype(matmul_dtype)
    w_fc = w_fc.astype(matmul_dtype)
    x_flat = x_flat.astype(matmul_dtype)

    vmem = pl.BlockSpec(memory_space=pltpu.MemorySpace.VMEM)
    kernel = functools.partial(_fused_lstm_fc_kernel, seq=seq, bpad=bpad, hidden=H)

    out_flat = pl.pallas_call(
        kernel,
        out_shape=jax.ShapeDtypeStruct((seq * bpad, out_pad), f32),
        in_specs=[vmem] * 6,
        out_specs=vmem,
        scratch_shapes=[
            pltpu.VMEM((seq * bpad, 8 * H), f32),   # xproj (all steps, combined gate cols)
            pltpu.VMEM((seq * bpad, H), f32),       # h2 accumulator
        ],
    )(x_flat, w_in, b_full, w_rec, w_fc, b_fc)

    out = out_flat.reshape(seq, bpad, out_pad)[:, :batch, :out_size]
    return jnp.transpose(out, (1, 0, 2))


def reference_forward(x, params):
    """Pure-JAX reference matching torch.nn.LSTM(batch_first, 2 layers) + nn.Linear."""
    hidden = params["weight_hh_l0"].shape[1]

    def lstm_layer(xs, w_ih, w_hh, b_ih, b_hh):
        def step(carry, x_t):
            h, c = carry
            gates = x_t @ w_ih.T + h @ w_hh.T + b_ih + b_hh
            i = jax.nn.sigmoid(gates[:, :hidden])
            f = jax.nn.sigmoid(gates[:, hidden:2 * hidden])
            g = jnp.tanh(gates[:, 2 * hidden:3 * hidden])
            o = jax.nn.sigmoid(gates[:, 3 * hidden:])
            c = f * c + i * g
            h = o * jnp.tanh(c)
            return (h, c), h
        b = xs.shape[1]
        h0 = jnp.zeros((b, hidden), jnp.float32)
        c0 = jnp.zeros((b, hidden), jnp.float32)
        _, hs = lax.scan(step, (h0, c0), xs)
        return hs

    xs = jnp.transpose(x, (1, 0, 2)).astype(jnp.float32)
    h1 = lstm_layer(xs, params["weight_ih_l0"], params["weight_hh_l0"],
                    params["bias_ih_l0"], params["bias_hh_l0"])
    h2 = lstm_layer(h1, params["weight_ih_l1"], params["weight_hh_l1"],
                    params["bias_ih_l1"], params["bias_hh_l1"])
    out = h2 @ params["fc_weight"].T + params["fc_bias"]
    return jnp.transpose(out, (1, 0, 2))


if __name__ == "__main__":
    # Shapes implied by the module: input=62, hidden=128, output=62, 2 layers.
    batch, seq = 2, 8
    input_size, hidden_size, output_size = 62, 128, 62

    key = jax.random.PRNGKey(0)
    keys = jax.random.split(key, 11)
    bound = 1.0 / jnp.sqrt(jnp.float32(hidden_size))

    def u(k, shape):
        return jax.random.uniform(k, shape, jnp.float32, -bound, bound)

    params = {
        "weight_ih_l0": u(keys[0], (4 * hidden_size, input_size)),
        "weight_hh_l0": u(keys[1], (4 * hidden_size, hidden_size)),
        "bias_ih_l0":   u(keys[2], (4 * hidden_size,)),
        "bias_hh_l0":   u(keys[3], (4 * hidden_size,)),
        "weight_ih_l1": u(keys[4], (4 * hidden_size, hidden_size)),
        "weight_hh_l1": u(keys[5], (4 * hidden_size, hidden_size)),
        "bias_ih_l1":   u(keys[6], (4 * hidden_size,)),
        "bias_hh_l1":   u(keys[7], (4 * hidden_size,)),
        "fc_weight":    u(keys[8], (output_size, hidden_size)),
        "fc_bias":      u(keys[9], (output_size,)),
    }

    x = jax.random.normal(keys[10], (batch, seq, input_size), jnp.float32)

    fwd = jax.jit(beyond_sight_lstm_forward)
    out = jax.block_until_ready(fwd(x, params))
    ref = jax.block_until_ready(reference_forward(x, params))

    assert out.shape == (batch, seq, output_size), out.shape
    assert jnp.all(jnp.isfinite(out)), "non-finite output"
    err = float(jnp.max(jnp.abs(out - ref)))
    assert err < 1e-2, f"mismatch vs reference: max abs err {err}"
    print("KERNEL_OK")
</pallas_src>

<mosaic_0001>
module attributes {stable_mosaic.version = 11 : i64} {
  func.func @_fused_lstm_fc_kernel(%arg0: memref<64x62xf32, #tpu.memory_space<vmem>>, %arg1: memref<62x1024xf32, #tpu.memory_space<vmem>>, %arg2: memref<1x1024xf32, #tpu.memory_space<vmem>>, %arg3: memref<256x1024xf32, #tpu.memory_space<vmem>>, %arg4: memref<128x128xf32, #tpu.memory_space<vmem>>, %arg5: memref<1x128xf32, #tpu.memory_space<vmem>>, %arg6: memref<64x128xf32, #tpu.memory_space<vmem>>, %arg7: memref<64x1024xf32, #tpu.memory_space<vmem>>, %arg8: memref<64x128xf32, #tpu.memory_space<vmem>>) attributes {dimension_semantics = [], scalar_prefetch = 0 : i64, scratch_operands = 2 : i64, tpu.core_type = #tpu.core_type<tc>} {
    %c0 = arith.constant 0 : index
    %c0_0 = arith.constant 0 : index
    %0 = vector.load %arg3[%c0, %c0_0] : memref<256x1024xf32, #tpu.memory_space<vmem>>, vector<256x1024xf32>
    %c0_1 = arith.constant 0 : index
    %c0_2 = arith.constant 0 : index
    %1 = vector.load %arg2[%c0_1, %c0_2] : memref<1x1024xf32, #tpu.memory_space<vmem>>, vector<1x1024xf32>
    %c0_3 = arith.constant 0 : index
    %c0_4 = arith.constant 0 : index
    %2 = vector.load %arg0[%c0_3, %c0_4] : memref<64x62xf32, #tpu.memory_space<vmem>>, vector<64x62xf32>
    %c0_5 = arith.constant 0 : index
    %c0_6 = arith.constant 0 : index
    %3 = vector.load %arg1[%c0_5, %c0_6] : memref<62x1024xf32, #tpu.memory_space<vmem>>, vector<62x1024xf32>
    %cst = arith.constant dense<0.000000e+00> : vector<64x1024xf32>
    %4 = tpu.matmul %2, %3, %cst {dimension_numbers = #tpu.dot_dimension_numbers<[1], [0], [0], [1], [0, 0, 1, 1], [], []>} : vector<64x62xf32>, vector<62x1024xf32>, vector<64x1024xf32> -> vector<64x1024xf32>
    %5 = vector.broadcast %1 : vector<1x1024xf32> to vector<64x1024xf32>
    %6 = arith.addf %4, %5 : vector<64x1024xf32>
    %c0_7 = arith.constant 0 : index
    %c0_8 = arith.constant 0 : index
    %7 = vector.load %arg7[%c0_7, %c0_8] : memref<64x1024xf32, #tpu.memory_space<vmem>>, vector<64x1024xf32>
    tpu.vector_store %arg7[%c0_7, %c0_8], %6 {strides = array<i32>} : memref<64x1024xf32, #tpu.memory_space<vmem>>, vector<64x1024xf32>,
    %cst_9 = arith.constant 0.000000e+00 : f32
    %8 = vector.broadcast %cst_9 : f32 to vector<8x128xf32>
    %c0_10 = arith.constant 0 : index
    %c0_11 = arith.constant 0 : index
    %9 = vector.load %arg7[%c0_10, %c0_11] : memref<64x1024xf32, #tpu.memory_space<vmem>>, vector<8x1024xf32>
    %cst_12 = arith.constant 0.000000e+00 : f32
    %10 = vector.broadcast %cst_12 : f32 to vector<8x256xf32>
    %11 = vector.extract_strided_slice %9 {offsets = [0, 0], sizes = [8, 768], strides = [1, 1]} : vector<8x1024xf32> to vector<8x768xf32>
    %12 = arith.negf %11 : vector<8x768xf32>
    %13 = math.exp %12 : vector<8x768xf32>
    %cst_13 = arith.constant 1.000000e+00 : f32
    %14 = vector.broadcast %cst_13 : f32 to vector<8x768xf32>
    %15 = arith.addf %14, %13 : vector<8x768xf32>
    %16 = arith.divf %14, %15 : vector<8x768xf32>
    %17 = vector.extract_strided_slice %9 {offsets = [0, 768], sizes = [8, 256], strides = [1, 1]} : vector<8x1024xf32> to vector<8x256xf32>
    %18 = math.tanh %17 : vector<8x256xf32>
    %19 = vector.extract_strided_slice %16 {offsets = [0, 0], sizes = [8, 256], strides = [1, 1]} : vector<8x768xf32> to vector<8x256xf32>
    %20 = vector.extract_strided_slice %16 {offsets = [0, 256], sizes = [8, 256], strides = [1, 1]} : vector<8x768xf32> to vector<8x256xf32>
    %21 = vector.extract_strided_slice %16 {offsets = [0, 512], sizes = [8, 256], strides = [1, 1]} : vector<8x768xf32> to vector<8x256xf32>
    %22 = arith.mulf %20, %10 : vector<8x256xf32>
    %23 = arith.mulf %19, %18 : vector<8x256xf32>
    %24 = arith.addf %22, %23 : vector<8x256xf32>
    %25 = math.tanh %24 : vector<8x256xf32>
    %26 = arith.mulf %21, %25 : vector<8x256xf32>
    %27 = vector.extract_strided_slice %26 {offsets = [0, 0], sizes = [8, 128], strides = [1, 1]} : vector<8x256xf32> to vector<8x128xf32>
    %28 = tpu.concatenate %27, %8 in 1 : vector<8x128xf32>, vector<8x128xf32> -> vector<8x256xf32>
    %29 = vector.extract_strided_slice %24 {offsets = [0, 0], sizes = [8, 128], strides = [1, 1]} : vector<8x256xf32> to vector<8x128xf32>
    %30 = tpu.concatenate %29, %8 in 1 : vector<8x128xf32>, vector<8x128xf32> -> vector<8x256xf32>
    %c8 = arith.constant 8 : index
    %c0_14 = arith.constant 0 : index
    %31 = vector.load %arg7[%c8, %c0_14] : memref<64x1024xf32, #tpu.memory_space<vmem>>, vector<8x1024xf32>
    %cst_15 = arith.constant dense<0.000000e+00> : vector<8x1024xf32>
    %32 = tpu.matmul %28, %0, %cst_15 {dimension_numbers = #tpu.dot_dimension_numbers<[1], [0], [0], [1], [0, 0, 1, 1], [], []>} : vector<8x256xf32>, vector<256x1024xf32>, vector<8x1024xf32> -> vector<8x1024xf32>
    %33 = arith.addf %31, %32 : vector<8x1024xf32>
    %34 = vector.extract_strided_slice %33 {offsets = [0, 0], sizes = [8, 768], strides = [1, 1]} : vector<8x1024xf32> to vector<8x768xf32>
    %35 = arith.negf %34 : vector<8x768xf32>
    %36 = math.exp %35 : vector<8x768xf32>
    %cst_16 = arith.constant 1.000000e+00 : f32
    %37 = vector.broadcast %cst_16 : f32 to vector<8x768xf32>
    %38 = arith.addf %37, %36 : vector<8x768xf32>
    %39 = arith.divf %37, %38 : vector<8x768xf32>
    %40 = vector.extract_strided_slice %33 {offsets = [0, 768], sizes = [8, 256], strides = [1, 1]} : vector<8x1024xf32> to vector<8x256xf32>
    %41 = math.tanh %40 : vector<8x256xf32>
    %42 = vector.extract_strided_slice %39 {offsets = [0, 0], sizes = [8, 256], strides = [1, 1]} : vector<8x768xf32> to vector<8x256xf32>
    %43 = vector.extract_strided_slice %39 {offsets = [0, 256], sizes = [8, 256], strides = [1, 1]} : vector<8x768xf32> to vector<8x256xf32>
    %44 = vector.extract_strided_slice %39 {offsets = [0, 512], sizes = [8, 256], strides = [1, 1]} : vector<8x768xf32> to vector<8x256xf32>
    %45 = arith.mulf %43, %30 : vector<8x256xf32>
    %46 = arith.mulf %42, %41 : vector<8x256xf32>
    %47 = arith.addf %45, %46 : vector<8x256xf32>
    %48 = math.tanh %47 : vector<8x256xf32>
    %49 = arith.mulf %44, %48 : vector<8x256xf32>
    %50 = vector.extract_strided_slice %49 {offsets = [0, 128], sizes = [8, 128], strides = [1, 1]} : vector<8x256xf32> to vector<8x128xf32>
    %c0_17 = arith.constant 0 : index
    %c0_18 = arith.constant 0 : index
    %51 = vector.load %arg8[%c0_17, %c0_18] : memref<64x128xf32, #tpu.memory_space<vmem>>, vector<8x128xf32>
    tpu.vector_store %arg8[%c0_17, %c0_18], %50 {strides = array<i32>} : memref<64x128xf32, #tpu.memory_space<vmem>>, vector<8x128xf32>,
    %c16 = arith.constant 16 : index
    %c0_19 = arith.constant 0 : index
    %52 = vector.load %arg7[%c16, %c0_19] : memref<64x1024xf32, #tpu.memory_space<vmem>>, vector<8x1024xf32>
    %cst_20 = arith.constant dense<0.000000e+00> : vector<8x1024xf32>
    %53 = tpu.matmul %49, %0, %cst_20 {dimension_numbers = #tpu.dot_dimension_numbers<[1], [0], [0], [1], [0, 0, 1, 1], [], []>} : vector<8x256xf32>, vector<256x1024xf32>, vector<8x1024xf32> -> vector<8x1024xf32>
    %54 = arith.addf %52, %53 : vector<8x1024xf32>
    %55 = vector.extract_strided_slice %54 {offsets = [0, 0], sizes = [8, 768], strides = [1, 1]} : vector<8x1024xf32> to vector<8x768xf32>
    %56 = arith.negf %55 : vector<8x768xf32>
    %57 = math.exp %56 : vector<8x768xf32>
    %cst_21 = arith.constant 1.000000e+00 : f32
    %58 = vector.broadcast %cst_21 : f32 to vector<8x768xf32>
    %59 = arith.addf %58, %57 : vector<8x768xf32>
    %60 = arith.divf %58, %59 : vector<8x768xf32>
    %61 = vector.extract_strided_slice %54 {offsets = [0, 768], sizes = [8, 256], strides = [1, 1]} : vector<8x1024xf32> to vector<8x256xf32>
    %62 = math.tanh %61 : vector<8x256xf32>
    %63 = vector.extract_strided_slice %60 {offsets = [0, 0], sizes = [8, 256], strides = [1, 1]} : vector<8x768xf32> to vector<8x256xf32>
    %64 = vector.extract_strided_slice %60 {offsets = [0, 256], sizes = [8, 256], strides = [1, 1]} : vector<8x768xf32> to vector<8x256xf32>
    %65 = vector.extract_strided_slice %60 {offsets = [0, 512], sizes = [8, 256], strides = [1, 1]} : vector<8x768xf32> to vector<8x256xf32>
    %66 = arith.mulf %64, %47 : vector<8x256xf32>
    %67 = arith.mulf %63, %62 : vector<8x256xf32>
    %68 = arith.addf %66, %67 : vector<8x256xf32>
    %69 = math.tanh %68 : vector<8x256xf32>
    %70 = arith.mulf %65, %69 : vector<8x256xf32>
    %71 = vector.extract_strided_slice %70 {offsets = [0, 128], sizes = [8, 128], strides = [1, 1]} : vector<8x256xf32> to vector<8x128xf32>
    %c8_22 = arith.constant 8 : index
    %c0_23 = arith.constant 0 : index
    %72 = vector.load %arg8[%c8_22, %c0_23] : memref<64x128xf32, #tpu.memory_space<vmem>>, vector<8x128xf32>
    tpu.vector_store %arg8[%c8_22, %c0_23], %71 {strides = array<i32>} : memref<64x128xf32, #tpu.memory_space<vmem>>, vector<8x128xf32>,
    %c24 = arith.constant 24 : index
    %c0_24 = arith.constant 0 : index
    %73 = vector.load %arg7[%c24, %c0_24] : memref<64x1024xf32, #tpu.memory_space<vmem>>, vector<8x1024xf32>
    %cst_25 = arith.constant dense<0.000000e+00> : vector<8x1024xf32>
    %74 = tpu.matmul %70, %0, %cst_25 {dimension_numbers = #tpu.dot_dimension_numbers<[1], [0], [0], [1], [0, 0, 1, 1], [], []>} : vector<8x256xf32>, vector<256x1024xf32>, vector<8x1024xf32> -> vector<8x1024xf32>
    %75 = arith.addf %73, %74 : vector<8x1024xf32>
    %76 = vector.extract_strided_slice %75 {offsets = [0, 0], sizes = [8, 768], strides = [1, 1]} : vector<8x1024xf32> to vector<8x768xf32>
    %77 = arith.negf %76 : vector<8x768xf32>
    %78 = math.exp %77 : vector<8x768xf32>
    %cst_26 = arith.constant 1.000000e+00 : f32
    %79 = vector.broadcast %cst_26 : f32 to vector<8x768xf32>
    %80 = arith.addf %79, %78 : vector<8x768xf32>
    %81 = arith.divf %79, %80 : vector<8x768xf32>
    %82 = vector.extract_strided_slice %75 {offsets = [0, 768], sizes = [8, 256], strides = [1, 1]} : vector<8x1024xf32> to vector<8x256xf32>
    %83 = math.tanh %82 : vector<8x256xf32>
    %84 = vector.extract_strided_slice %81 {offsets = [0, 0], sizes = [8, 256], strides = [1, 1]} : vector<8x768xf32> to vector<8x256xf32>
    %85 = vector.extract_strided_slice %81 {offsets = [0, 256], sizes = [8, 256], strides = [1, 1]} : vector<8x768xf32> to vector<8x256xf32>
    %86 = vector.extract_strided_slice %81 {offsets = [0, 512], sizes = [8, 256], strides = [1, 1]} : vector<8x768xf32> to vector<8x256xf32>
    %87 = arith.mulf %85, %68 : vector<8x256xf32>
    %88 = arith.mulf %84, %83 : vector<8x256xf32>
    %89 = arith.addf %87, %88 : vector<8x256xf32>
    %90 = math.tanh %89 : vector<8x256xf32>
    %91 = arith.mulf %86, %90 : vector<8x256xf32>
    %92 = vector.extract_strided_slice %91 {offsets = [0, 128], sizes = [8, 128], strides = [1, 1]} : vector<8x256xf32> to vector<8x128xf32>
    %c16_27 = arith.constant 16 : index
    %c0_28 = arith.constant 0 : index
    %93 = vector.load %arg8[%c16_27, %c0_28] : memref<64x128xf32, #tpu.memory_space<vmem>>, vector<8x128xf32>
    tpu.vector_store %arg8[%c16_27, %c0_28], %92 {strides = array<i32>} : memref<64x128xf32, #tpu.memory_space<vmem>>, vector<8x128xf32>,
    %c32 = arith.constant 32 : index
    %c0_29 = arith.constant 0 : index
    %94 = vector.load %arg7[%c32, %c0_29] : memref<64x1024xf32, #tpu.memory_space<vmem>>, vector<8x1024xf32>
    %cst_30 = arith.constant dense<0.000000e+00> : vector<8x1024xf32>
    %95 = tpu.matmul %91, %0, %cst_30 {dimension_numbers = #tpu.dot_dimension_numbers<[1], [0], [0], [1], [0, 0, 1, 1], [], []>} : vector<8x256xf32>, vector<256x1024xf32>, vector<8x1024xf32> -> vector<8x1024xf32>
    %96 = arith.addf %94, %95 : vector<8x1024xf32>
    %97 = vector.extract_strided_slice %96 {offsets = [0, 0], sizes = [8, 768], strides = [1, 1]} : vector<8x1024xf32> to vector<8x768xf32>
    %98 = arith.negf %97 : vector<8x768xf32>
    %99 = math.exp %98 : vector<8x768xf32>
    %cst_31 = arith.constant 1.000000e+00 : f32
    %100 = vector.broadcast %cst_31 : f32 to vector<8x768xf32>
    %101 = arith.addf %100, %99 : vector<8x768xf32>
    %102 = arith.divf %100, %101 : vector<8x768xf32>
    %103 = vector.extract_strided_slice %96 {offsets = [0, 768], sizes = [8, 256], strides = [1, 1]} : vector<8x1024xf32> to vector<8x256xf32>
    %104 = math.tanh %103 : vector<8x256xf32>
    %105 = vector.extract_strided_slice %102 {offsets = [0, 0], sizes = [8, 256], strides = [1, 1]} : vector<8x768xf32> to vector<8x256xf32>
    %106 = vector.extract_strided_slice %102 {offsets = [0, 256], sizes = [8, 256], strides = [1, 1]} : vector<8x768xf32> to vector<8x256xf32>
    %107 = vector.extract_strided_slice %102 {offsets = [0, 512], sizes = [8, 256], strides = [1, 1]} : vector<8x768xf32> to vector<8x256xf32>
    %108 = arith.mulf %106, %89 : vector<8x256xf32>
    %109 = arith.mulf %105, %104 : vector<8x256xf32>
    %110 = arith.addf %108, %109 : vector<8x256xf32>
    %111 = math.tanh %110 : vector<8x256xf32>
    %112 = arith.mulf %107, %111 : vector<8x256xf32>
    %113 = vector.extract_strided_slice %112 {offsets = [0, 128], sizes = [8, 128], strides = [1, 1]} : vector<8x256xf32> to vector<8x128xf32>
    %c24_32 = arith.constant 24 : index
    %c0_33 = arith.constant 0 : index
    %114 = vector.load %arg8[%c24_32, %c0_33] : memref<64x128xf32, #tpu.memory_space<vmem>>, vector<8x128xf32>
    tpu.vector_store %arg8[%c24_32, %c0_33], %113 {strides = array<i32>} : memref<64x128xf32, #tpu.memory_space<vmem>>, vector<8x128xf32>,
    %c40 = arith.constant 40 : index
    %c0_34 = arith.constant 0 : index
    %115 = vector.load %arg7[%c40, %c0_34] : memref<64x1024xf32, #tpu.memory_space<vmem>>, vector<8x1024xf32>
    %cst_35 = arith.constant dense<0.000000e+00> : vector<8x1024xf32>
    %116 = tpu.matmul %112, %0, %cst_35 {dimension_numbers = #tpu.dot_dimension_numbers<[1], [0], [0], [1], [0, 0, 1, 1], [], []>} : vector<8x256xf32>, vector<256x1024xf32>, vector<8x1024xf32> -> vector<8x1024xf32>
    %117 = arith.addf %115, %116 : vector<8x1024xf32>
    %118 = vector.extract_strided_slice %117 {offsets = [0, 0], sizes = [8, 768], strides = [1, 1]} : vector<8x1024xf32> to vector<8x768xf32>
    %119 = arith.negf %118 : vector<8x768xf32>
    %120 = math.exp %119 : vector<8x768xf32>
    %cst_36 = arith.constant 1.000000e+00 : f32
    %121 = vector.broadcast %cst_36 : f32 to vector<8x768xf32>
    %122 = arith.addf %121, %120 : vector<8x768xf32>
    %123 = arith.divf %121, %122 : vector<8x768xf32>
    %124 = vector.extract_strided_slice %117 {offsets = [0, 768], sizes = [8, 256], strides = [1, 1]} : vector<8x1024xf32> to vector<8x256xf32>
    %125 = math.tanh %124 : vector<8x256xf32>
    %126 = vector.extract_strided_slice %123 {offsets = [0, 0], sizes = [8, 256], strides = [1, 1]} : vector<8x768xf32> to vector<8x256xf32>
    %127 = vector.extract_strided_slice %123 {offsets = [0, 256], sizes = [8, 256], strides = [1, 1]} : vector<8x768xf32> to vector<8x256xf32>
    %128 = vector.extract_strided_slice %123 {offsets = [0, 512], sizes = [8, 256], strides = [1, 1]} : vector<8x768xf32> to vector<8x256xf32>
    %129 = arith.mulf %127, %110 : vector<8x256xf32>
    %130 = arith.mulf %126, %125 : vector<8x256xf32>
    %131 = arith.addf %129, %130 : vector<8x256xf32>
    %132 = math.tanh %131 : vector<8x256xf32>
    %133 = arith.mulf %128, %132 : vector<8x256xf32>
    %134 = vector.extract_strided_slice %133 {offsets = [0, 128], sizes = [8, 128], strides = [1, 1]} : vector<8x256xf32> to vector<8x128xf32>
    %c32_37 = arith.constant 32 : index
    %c0_38 = arith.constant 0 : index
    %135 = vector.load %arg8[%c32_37, %c0_38] : memref<64x128xf32, #tpu.memory_space<vmem>>, vector<8x128xf32>
    tpu.vector_store %arg8[%c32_37, %c0_38], %134 {strides = array<i32>} : memref<64x128xf32, #tpu.memory_space<vmem>>, vector<8x128xf32>,
    %c48 = arith.constant 48 : index
    %c0_39 = arith.constant 0 : index
    %136 = vector.load %arg7[%c48, %c0_39] : memref<64x1024xf32, #tpu.memory_space<vmem>>, vector<8x1024xf32>
    %cst_40 = arith.constant dense<0.000000e+00> : vector<8x1024xf32>
    %137 = tpu.matmul %133, %0, %cst_40 {dimension_numbers = #tpu.dot_dimension_numbers<[1], [0], [0], [1], [0, 0, 1, 1], [], []>} : vector<8x256xf32>, vector<256x1024xf32>, vector<8x1024xf32> -> vector<8x1024xf32>
    %138 = arith.addf %136, %137 : vector<8x1024xf32>
    %139 = vector.extract_strided_slice %138 {offsets = [0, 0], sizes = [8, 768], strides = [1, 1]} : vector<8x1024xf32> to vector<8x768xf32>
    %140 = arith.negf %139 : vector<8x768xf32>
    %141 = math.exp %140 : vector<8x768xf32>
    %cst_41 = arith.constant 1.000000e+00 : f32
    %142 = vector.broadcast %cst_41 : f32 to vector<8x768xf32>
    %143 = arith.addf %142, %141 : vector<8x768xf32>
    %144 = arith.divf %142, %143 : vector<8x768xf32>
    %145 = vector.extract_strided_slice %138 {offsets = [0, 768], sizes = [8, 256], strides = [1, 1]} : vector<8x1024xf32> to vector<8x256xf32>
    %146 = math.tanh %145 : vector<8x256xf32>
    %147 = vector.extract_strided_slice %144 {offsets = [0, 0], sizes = [8, 256], strides = [1, 1]} : vector<8x768xf32> to vector<8x256xf32>
    %148 = vector.extract_strided_slice %144 {offsets = [0, 256], sizes = [8, 256], strides = [1, 1]} : vector<8x768xf32> to vector<8x256xf32>
    %149 = vector.extract_strided_slice %144 {offsets = [0, 512], sizes = [8, 256], strides = [1, 1]} : vector<8x768xf32> to vector<8x256xf32>
    %150 = arith.mulf %148, %131 : vector<8x256xf32>
    %151 = arith.mulf %147, %146 : vector<8x256xf32>
    %152 = arith.addf %150, %151 : vector<8x256xf32>
    %153 = math.tanh %152 : vector<8x256xf32>
    %154 = arith.mulf %149, %153 : vector<8x256xf32>
    %155 = vector.extract_strided_slice %154 {offsets = [0, 128], sizes = [8, 128], strides = [1, 1]} : vector<8x256xf32> to vector<8x128xf32>
    %c40_42 = arith.constant 40 : index
    %c0_43 = arith.constant 0 : index
    %156 = vector.load %arg8[%c40_42, %c0_43] : memref<64x128xf32, #tpu.memory_space<vmem>>, vector<8x128xf32>
    tpu.vector_store %arg8[%c40_42, %c0_43], %155 {strides = array<i32>} : memref<64x128xf32, #tpu.memory_space<vmem>>, vector<8x128xf32>,
    %c56 = arith.constant 56 : index
    %c0_44 = arith.constant 0 : index
    %157 = vector.load %arg7[%c56, %c0_44] : memref<64x1024xf32, #tpu.memory_space<vmem>>, vector<8x1024xf32>
    %cst_45 = arith.constant dense<0.000000e+00> : vector<8x1024xf32>
    %158 = tpu.matmul %154, %0, %cst_45 {dimension_numbers = #tpu.dot_dimension_numbers<[1], [0], [0], [1], [0, 0, 1, 1], [], []>} : vector<8x256xf32>, vector<256x1024xf32>, vector<8x1024xf32> -> vector<8x1024xf32>
    %159 = arith.addf %157, %158 : vector<8x1024xf32>
    %160 = vector.extract_strided_slice %159 {offsets = [0, 0], sizes = [8, 768], strides = [1, 1]} : vector<8x1024xf32> to vector<8x768xf32>
    %161 = arith.negf %160 : vector<8x768xf32>
    %162 = math.exp %161 : vector<8x768xf32>
    %cst_46 = arith.constant 1.000000e+00 : f32
    %163 = vector.broadcast %cst_46 : f32 to vector<8x768xf32>
    %164 = arith.addf %163, %162 : vector<8x768xf32>
    %165 = arith.divf %163, %164 : vector<8x768xf32>
    %166 = vector.extract_strided_slice %159 {offsets = [0, 768], sizes = [8, 256], strides = [1, 1]} : vector<8x1024xf32> to vector<8x256xf32>
    %167 = math.tanh %166 : vector<8x256xf32>
    %168 = vector.extract_strided_slice %165 {offsets = [0, 0], sizes = [8, 256], strides = [1, 1]} : vector<8x768xf32> to vector<8x256xf32>
    %169 = vector.extract_strided_slice %165 {offsets = [0, 256], sizes = [8, 256], strides = [1, 1]} : vector<8x768xf32> to vector<8x256xf32>
    %170 = vector.extract_strided_slice %165 {offsets = [0, 512], sizes = [8, 256], strides = [1, 1]} : vector<8x768xf32> to vector<8x256xf32>
    %171 = arith.mulf %169, %152 : vector<8x256xf32>
    %172 = arith.mulf %168, %167 : vector<8x256xf32>
    %173 = arith.addf %171, %172 : vector<8x256xf32>
    %174 = math.tanh %173 : vector<8x256xf32>
    %175 = arith.mulf %170, %174 : vector<8x256xf32>
    %176 = vector.extract_strided_slice %175 {offsets = [0, 128], sizes = [8, 128], strides = [1, 1]} : vector<8x256xf32> to vector<8x128xf32>
    %c48_47 = arith.constant 48 : index
    %c0_48 = arith.constant 0 : index
    %177 = vector.load %arg8[%c48_47, %c0_48] : memref<64x128xf32, #tpu.memory_space<vmem>>, vector<8x128xf32>
    tpu.vector_store %arg8[%c48_47, %c0_48], %176 {strides = array<i32>} : memref<64x128xf32, #tpu.memory_space<vmem>>, vector<8x128xf32>,
    %cst_49 = arith.constant dense<0.000000e+00> : vector<8x1024xf32>
    %178 = tpu.matmul %175, %0, %cst_49 {dimension_numbers = #tpu.dot_dimension_numbers<[1], [0], [0], [1], [0, 0, 1, 1], [], []>} : vector<8x256xf32>, vector<256x1024xf32>, vector<8x1024xf32> -> vector<8x1024xf32>
    %179 = vector.broadcast %1 : vector<1x1024xf32> to vector<8x1024xf32>
    %180 = arith.addf %179, %178 : vector<8x1024xf32>
    %181 = vector.extract_strided_slice %180 {offsets = [0, 0], sizes = [8, 768], strides = [1, 1]} : vector<8x1024xf32> to vector<8x768xf32>
    %182 = arith.negf %181 : vector<8x768xf32>
    %183 = math.exp %182 : vector<8x768xf32>
    %cst_50 = arith.constant 1.000000e+00 : f32
    %184 = vector.broadcast %cst_50 : f32 to vector<8x768xf32>
    %185 = arith.addf %184, %183 : vector<8x768xf32>
    %186 = arith.divf %184, %185 : vector<8x768xf32>
    %187 = vector.extract_strided_slice %180 {offsets = [0, 768], sizes = [8, 256], strides = [1, 1]} : vector<8x1024xf32> to vector<8x256xf32>
    %188 = math.tanh %187 : vector<8x256xf32>
    %189 = vector.extract_strided_slice %186 {offsets = [0, 0], sizes = [8, 256], strides = [1, 1]} : vector<8x768xf32> to vector<8x256xf32>
    %190 = vector.extract_strided_slice %186 {offsets = [0, 256], sizes = [8, 256], strides = [1, 1]} : vector<8x768xf32> to vector<8x256xf32>
    %191 = vector.extract_strided_slice %186 {offsets = [0, 512], sizes = [8, 256], strides = [1, 1]} : vector<8x768xf32> to vector<8x256xf32>
    %192 = arith.mulf %190, %173 : vector<8x256xf32>
    %193 = arith.mulf %189, %188 : vector<8x256xf32>
    %194 = arith.addf %192, %193 : vector<8x256xf32>
    %195 = math.tanh %194 : vector<8x256xf32>
    %196 = arith.mulf %191, %195 : vector<8x256xf32>
    %197 = vector.extract_strided_slice %196 {offsets = [0, 128], sizes = [8, 128], strides = [1, 1]} : vector<8x256xf32> to vector<8x128xf32>
    %c56_51 = arith.constant 56 : index
    %c0_52 = arith.constant 0 : index
    %198 = vector.load %arg8[%c56_51, %c0_52] : memref<64x128xf32, #tpu.memory_space<vmem>>, vector<8x128xf32>
    tpu.vector_store %arg8[%c56_51, %c0_52], %197 {strides = array<i32>} : memref<64x128xf32, #tpu.memory_space<vmem>>, vector<8x128xf32>,
    %c0_53 = arith.constant 0 : index
    %c0_54 = arith.constant 0 : index
    %199 = vector.load %arg8[%c0_53, %c0_54] : memref<64x128xf32, #tpu.memory_space<vmem>>, vector<64x128xf32>
    %c0_55 = arith.constant 0 : index
    %c0_56 = arith.constant 0 : index
    %200 = vector.load %arg4[%c0_55, %c0_56] : memref<128x128xf32, #tpu.memory_space<vmem>>, vector<128x128xf32>
    %cst_57 = arith.constant dense<0.000000e+00> : vector<64x128xf32>
    %201 = tpu.matmul %199, %200, %cst_57 {dimension_numbers = #tpu.dot_dimension_numbers<[1], [0], [0], [1], [0, 0, 1, 1], [], []>} : vector<64x128xf32>, vector<128x128xf32>, vector<64x128xf32> -> vector<64x128xf32>
    %c0_58 = arith.constant 0 : index
    %c0_59 = arith.constant 0 : index
    %202 = vector.load %arg5[%c0_58, %c0_59] : memref<1x128xf32, #tpu.memory_space<vmem>>, vector<1x128xf32>
    %203 = vector.broadcast %202 : vector<1x128xf32> to vector<64x128xf32>
    %204 = arith.addf %201, %203 : vector<64x128xf32>
    %c0_60 = arith.constant 0 : index
    %c0_61 = arith.constant 0 : index
    %205 = vector.load %arg6[%c0_60, %c0_61] : memref<64x128xf32, #tpu.memory_space<vmem>>, vector<64x128xf32>
    tpu.vector_store %arg6[%c0_60, %c0_61], %204 {strides = array<i32>} : memref<64x128xf32, #tpu.memory_space<vmem>>, vector<64x128xf32>,
    return
  }
}

</mosaic_0001>

<bundles_post_ra>
// kernel: custom-call.2
= control target key start
LH: loop header
LB: loop body
LE: loop exit
PB: predicated region body
PF: predicated region fallthrough
CT: control target
= control target key end

     0   :  { %s6_s0 = inlined_call_operand.vmem [shape: f32[1024], index: 0, kind: output, shape index: {}]  }

// kernel: beyond_sight_lstm_forward.1
= control target key start
LH: loop header
LB: loop body
LE: loop exit
PB: predicated region body
PF: predicated region fallthrough
CT: control target
= control target key end

     0   :  { %vm394_vm0 = vcmask 1045504   ;;  %vm369_vm1 = vcmask 506880   ;;  %s14059_s1 = inlined_call_operand.vmem [shape: f32[62,1024], index: 1, kind: input, shape index: {}]   ;;  %s14060_s0 = inlined_call_operand.vmem [shape: f32[64,62], index: 0, kind: input, shape index: {}]   ;;  %s14061_s3 = inlined_call_operand.vmem [shape: f32[256,1024], index: 3, kind: input, shape index: {}]   ;;  %s14062_s2 = inlined_call_operand.vmem [shape: f32[1,1024], index: 2, kind: input, shape index: {}]   ;;  %s14063_s4 = inlined_call_operand.vmem [shape: f32[128,128], index: 4, kind: input, shape index: {}]   ;;  %s14064_s5 = inlined_call_operand.vmem [shape: f32[1,128], index: 5, kind: input, shape index: {}]   ;;  %s14065_s6 = inlined_call_operand.vmem [shape: f32[64,128], index: 6, kind: output, shape index: {}]  }
   0x1   :  { %v344_v0 = vld [vmem:[%s14059_s1 + $0x1c0] sm:$0x3f]  ;;  %v5760_v8 = vld [vmem:[%s14060_s0 + $0x18] sm:$0xff]  ;;  %v346_v9 = vld [vmem:[%s14059_s1 + $0x1d0] sm:$0x3f] }
   0x2   :  { %v336_v1 = vld [vmem:[%s14059_s1 + $0x180] sm:$0xff]  ;;  %4548 = vmatpush.msk.msra.mxu2 %vm394_vm0, %v344_v0  ;;  %4428 = vmatpush.msk.msra.mxu1 %vm394_vm0, %v344_v0  ;;  %v338_v11 = vld [vmem:[%s14059_s1 + $0x190] sm:$0xff]  ;;  %v5795_v16 = vld [vmem:[%s14060_s0 + $0x8] sm:$0xff] }
   0x3   :  { %v328_v2 = vld [vmem:[%s14059_s1 + $0x140] sm:$0xff]  ;;  %4549 = vmatpush.msk.msra.mxu3 %vm394_vm0, %v344_v0  ;;  %v330_v12 = vld [vmem:[%s14059_s1 + $0x150] sm:$0xff]  ;;  %v5813_v20 = vld [vmem:[%s14060_s0 + $0x28] sm:$0xff] }
   0x4   :  { %4550 = vmatpush.msra.mxu2 %v336_v1  ;;  %428 = vmatpush.msra.mxu1 %v336_v1  ;;  %v320_v3 = vld [vmem:[%s14059_s1 + $0x100] sm:$0xff]  ;;  %v322_v13 = vld [vmem:[%s14059_s1 + $0x110] sm:$0xff]  ;;  %v5874_v33 = vld [vmem:[%s14060_s0 + $0x38] sm:$0xff] }
   0x5   :  { %4551 = vmatpush.msra.mxu3 %v336_v1  ;;  %v312_v4 = vld [vmem:[%s14059_s1 + $0xc0] sm:$0xff]  ;;  %v314_v15 = vld [vmem:[%s14059_s1 + $0xd0] sm:$0xff]  ;;  %v345_v40 = vld [vmem:[%s14059_s1 + $0x1c8] sm:$0x3f] }
   0x6   :  { %4552 = vmatpush.msra.mxu2 %v328_v2  ;;  %429 = vmatpush.msra.mxu1 %v328_v2  ;;  %v304_v5 = vld [vmem:[%s14059_s1 + $0x80] sm:$0xff]  ;;  %v306_v17 = vld [vmem:[%s14059_s1 + $0x90] sm:$0xff]  ;;  %v347_v41 = vld [vmem:[%s14059_s1 + $0x1d8] sm:$0x3f] }
   0x7   :  { %4553 = vmatpush.msra.mxu3 %v328_v2  ;;  %v296_v6 = vld [vmem:[%s14059_s1 + $0x40] sm:$0xff]  ;;  %v298_v18 = vld [vmem:[%s14059_s1 + $0x50] sm:$0xff]  ;;  %v337_v42 = vld [vmem:[%s14059_s1 + $0x188] sm:$0xff] }
   0x8   :  { %4554 = vmatpush.msra.mxu2 %v320_v3  ;;  %430 = vmatpush.msra.mxu1 %v320_v3  ;;  %v288_v7 = vld [vmem:[%s14059_s1] sm:$0xff]  ;;  %v290_v19 = vld [vmem:[%s14059_s1 + $0x10] sm:$0xff]  ;;  %v339_v43 = vld [vmem:[%s14059_s1 + $0x198] sm:$0xff] }
   0x9   :  { %4555 = vmatpush.msra.mxu3 %v320_v3  ;;  %v5768_v10 = vld [vmem:[%s14060_s0] sm:$0xff]  ;;  %v5818_v21 = vld [vmem:[%s14060_s0 + $0x10] sm:$0xff]  ;;  %v329_v44 = vld [vmem:[%s14059_s1 + $0x148] sm:$0xff] }
   0xa   :  { %4556 = vmatpush.msra.mxu2 %v312_v4  ;;  %431 = vmatpush.msra.mxu1 %v312_v4  ;;  %v5787_v14 = vld [vmem:[%s14060_s0 + $0x20] sm:$0xff]  ;;  %v5853_v29 = vld [vmem:[%s14060_s0 + $0x30] sm:$0xff]  ;;  %v331_v45 = vld [vmem:[%s14059_s1 + $0x158] sm:$0xff] }
   0xb   :  { %4557 = vmatpush.msra.mxu3 %v312_v4  ;;  %v348_v22 = vld [vmem:[%s14059_s1 + $0x1e0] sm:$0x3f]  ;;  %v350_v31 = vld [vmem:[%s14059_s1 + $0x1f0] sm:$0x3f]  ;;  %v321_v46 = vld [vmem:[%s14059_s1 + $0x108] sm:$0xff] }
   0xc   :  { %4558 = vmatpush.msra.mxu2 %v304_v5  ;;  %432 = vmatpush.msra.mxu1 %v304_v5  ;;  %v340_v23 = vld [vmem:[%s14059_s1 + $0x1a0] sm:$0xff]  ;;  %v342_v32 = vld [vmem:[%s14059_s1 + $0x1b0] sm:$0xff]  ;;  %v323_v47 = vld [vmem:[%s14059_s1 + $0x118] sm:$0xff] }
   0xd   :  { %4559 = vmatpush.msra.mxu3 %v304_v5  ;;  %4464 = vmatpush.msk.msra.mxu0 %vm394_vm0, %v348_v22  ;;  %v332_v24 = vld [vmem:[%s14059_s1 + $0x160] sm:$0xff]  ;;  %v334_v34 = vld [vmem:[%s14059_s1 + $0x170] sm:$0xff]  ;;  %v313_v48 = vld [vmem:[%s14059_s1 + $0xc8] sm:$0xff] }
   0xe   :  { %4560 = vmatpush.msra.mxu2 %v296_v6  ;;  %433 = vmatpush.msra.mxu1 %v296_v6  ;;  %v324_v25 = vld [vmem:[%s14059_s1 + $0x120] sm:$0xff]  ;;  %v326_v35 = vld [vmem:[%s14059_s1 + $0x130] sm:$0xff]  ;;  %v315_v49 = vld [vmem:[%s14059_s1 + $0xd8] sm:$0xff] }
   0xf   :  { %4561 = vmatpush.msra.mxu3 %v296_v6  ;;  %592 = vmatpush.msra.mxu0 %v340_v23  ;;  %v316_v26 = vld [vmem:[%s14059_s1 + $0xe0] sm:$0xff]  ;;  %v318_v36 = vld [vmem:[%s14059_s1 + $0xf0] sm:$0xff]  ;;  %v305_v50 = vld [vmem:[%s14059_s1 + $0x88] sm:$0xff] }
  0x10   :  { %4562 = vmatpush.msra.mxu2 %v288_v7  ;;  %434 = vmatpush.msra.mxu1 %v288_v7  ;;  %v308_v27 = vld [vmem:[%s14059_s1 + $0xa0] sm:$0xff]  ;;  %v310_v37 = vld [vmem:[%s14059_s1 + $0xb0] sm:$0xff]  ;;  %v307_v51 = vld [vmem:[%s14059_s1 + $0x98] sm:$0xff] }
  0x11   :  { %4432 = vmatmul.msk.f32.vlgmr.msra.gmra.mxu2 %vm369_vm1, %v5760_v8  ;;  %4429 = vmatmul.msk.f32.vlgmr.msra.gmra.mxu1 %vm369_vm1, %v5768_v10  ;;  %v300_v28 = vld [vmem:[%s14059_s1 + $0x60] sm:$0xff]  ;;  %v302_v38 = vld [vmem:[%s14059_s1 + $0x70] sm:$0xff]  ;;  %v297_v52 = vld [vmem:[%s14059_s1 + $0x48] sm:$0xff] }
  0x12   :  { %4446 = vmatpush.msk.msrb.mxu2 %vm394_vm0, %v346_v9  ;;  %4563 = vmatpush.msra.mxu3 %v288_v7  ;;  %v292_v30 = vld [vmem:[%s14059_s1 + $0x20] sm:$0xff]  ;;  %v294_v39 = vld [vmem:[%s14059_s1 + $0x30] sm:$0xff]  ;;  %v299_v53 = vld [vmem:[%s14059_s1 + $0x58] sm:$0xff] }
  0x13   :  { %593 = vmatpush.msra.mxu0 %v332_v24  ;;  %4435 = vmatmul.msk.f32.vlgmr.msra.gmra.mxu3 %vm369_vm1, %v5853_v29  ;;  %v289_v54 = vld [vmem:[%s14059_s1 + $0x8] sm:$0xff]  ;;  %v291_v55 = vld [vmem:[%s14059_s1 + $0x18] sm:$0xff]  ;;  %v127_v24 = vld [vmem:[%s14061_s3 + $0x340] sm:$0xff] }
  0x14   :  { %510 = vmatpush.msrb.mxu2 %v338_v11  ;;  %4437 = vmatpush.msk.msrb.mxu1 %vm394_vm0, %v345_v40  ;;  %v349_v56 = vld [vmem:[%s14059_s1 + $0x1e8] sm:$0x3f]  ;;  %v351_v57 = vld [vmem:[%s14059_s1 + $0x1f8] sm:$0x3f] }
  0x15   :  { %594 = vmatpush.msra.mxu0 %v324_v25  ;;  %4455 = vmatpush.msk.msrb.mxu3 %vm394_vm0, %v347_v41  ;;  %v341_v59 = vld [vmem:[%s14059_s1 + $0x1a8] sm:$0xff]  ;;  %v343_v60 = vld [vmem:[%s14059_s1 + $0x1b8] sm:$0xff]  ;;  %v255_v25 = vld [vmem:[%s14061_s3 + $0x740] sm:$0xff] }
  0x16   :  { %511 = vmatpush.msrb.mxu2 %v330_v12  ;;  %469 = vmatpush.msrb.mxu1 %v337_v42  ;;  %v333_v61 = vld [vmem:[%s14059_s1 + $0x168] sm:$0xff]  ;;  %v335_v62 = vld [vmem:[%s14059_s1 + $0x178] sm:$0xff]  ;;  %v95_v42 = vld [vmem:[%s14061_s3 + $0x240] sm:$0xff] }
  0x17   :  { %595 = vmatpush.msra.mxu0 %v316_v26  ;;  %551 = vmatpush.msrb.mxu3 %v339_v43  ;;  %v325_v63 = vld [vmem:[%s14059_s1 + $0x128] sm:$0xff]  ;;  %v327_v0 = vld [vmem:[%s14059_s1 + $0x138] sm:$0xff]  ;;  %v223_v43 = vld [vmem:[%s14061_s3 + $0x640] sm:$0xff] }
  0x18   :  { %512 = vmatpush.msrb.mxu2 %v322_v13  ;;  %470 = vmatpush.msrb.mxu1 %v329_v44  ;;  %v317_v1 = vld [vmem:[%s14059_s1 + $0xe8] sm:$0xff]  ;;  %v319_v2 = vld [vmem:[%s14059_s1 + $0xf8] sm:$0xff]  ;;  %v143_v13 = vld [vmem:[%s14061_s3 + $0x3c0] sm:$0xff] }
  0x19   :  { %4433 = vmatmul.msk.f32.gmra.mxu2 %vm369_vm1, %v5787_v14  ;;  %4430 = vmatmul.msk.f32.gmra.mxu1 %vm369_vm1, %v5795_v16  ;;  %v309_v4 = vld [vmem:[%s14059_s1 + $0xa8] sm:$0xff]  ;;  %v311_v5 = vld [vmem:[%s14059_s1 + $0xb8] sm:$0xff] }
  0x1a   :  { %513 = vmatpush.msrb.mxu2 %v314_v15  ;;  %596 = vmatpush.msra.mxu0 %v308_v27  ;;  %v301_v6 = vld [vmem:[%s14059_s1 + $0x68] sm:$0xff]  ;;  %v303_v7 = vld [vmem:[%s14059_s1 + $0x78] sm:$0xff]  ;;  %v271_v15 = vld [vmem:[%s14061_s3 + $0x7c0] sm:$0xff] }
  0x1b   :  { %4436 = vmatmul.msk.f32.gmra.mxu3 %vm369_vm1, %v5874_v33  ;;  %471 = vmatpush.msrb.mxu1 %v321_v46  ;;  %v293_v9 = vld [vmem:[%s14059_s1 + $0x28] sm:$0xff]  ;;  %v295_v11 = vld [vmem:[%s14059_s1 + $0x38] sm:$0xff]  ;;  %v87_v46 = vld [vmem:[%s14061_s3 + $0x200] sm:$0xff] }
  0x1c   :  { %514 = vmatpush.msrb.mxu2 %v306_v17  ;;  %597 = vmatpush.msra.mxu0 %v300_v28  ;;  %v144_v17 = vld [vmem:[%s14061_s3 + $0x3c8] sm:$0xff]  ;;  %v119_v28 = vld [vmem:[%s14061_s3 + $0x300] sm:$0xff] }
  0x1d   :  { %552 = vmatpush.msrb.mxu3 %v331_v45  ;;  %472 = vmatpush.msrb.mxu1 %v313_v48  ;;  %v136_v22 = vld [vmem:[%s14061_s3 + $0x388] sm:$0xff] }
  0x1e   :  { %515 = vmatpush.msrb.mxu2 %v298_v18  ;;  %598 = vmatpush.msra.mxu0 %v292_v30  ;;  %v135_v18 = vld [vmem:[%s14061_s3 + $0x380] sm:$0xff]  ;;  %v264_v23 = vld [vmem:[%s14061_s3 + $0x788] sm:$0xff] }
  0x1f   :  { %4465 = vmatmul.msk.f32.vlgmr.msra.gmra.mxu0 %vm369_vm1, %v5768_v10  ;;  %553 = vmatpush.msrb.mxu3 %v323_v47  ;;  %v128_v26 = vld [vmem:[%s14061_s3 + $0x348] sm:$0xff]  ;;  %v247_v30 = vld [vmem:[%s14061_s3 + $0x700] sm:$0xff] }
  0x20   :  { %516 = vmatpush.msrb.mxu2 %v290_v19  ;;  %473 = vmatpush.msrb.mxu1 %v305_v50  ;;  %v263_v19 = vld [vmem:[%s14061_s3 + $0x780] sm:$0xff]  ;;  %v256_v27 = vld [vmem:[%s14061_s3 + $0x748] sm:$0xff] }
  0x21   :  { %4434 = vmatmul.msk.f32.gmra.mxu2 %vm369_vm1, %v5813_v20  ;;  %4431 = vmatmul.msk.f32.gmra.mxu1 %vm369_vm1, %v5818_v21  ;;  %v104_v40 = vld [vmem:[%s14061_s3 + $0x288] sm:$0xff]  ;;  %v215_v47 = vld [vmem:[%s14061_s3 + $0x600] sm:$0xff] }
  0x22   :  { %4482 = vmatpush.msk.msra.mxu2 %vm394_vm0, %v350_v31  ;;  %554 = vmatpush.msrb.mxu3 %v315_v49  ;;  %v120_v31 = vld [vmem:[%s14061_s3 + $0x308] sm:$0xff] }
  0x23   :  { %474 = vmatpush.msrb.mxu1 %v297_v52  ;;  %886 = vmatpush.msrb.mxu0 %v143_v13  ;;  %v232_v41 = vld [vmem:[%s14061_s3 + $0x688] sm:$0xff]  ;;  %v207_v52 = vld [vmem:[%s14061_s3 + $0x5c0] sm:$0xff] }
  0x24   :  { %674 = vmatpush.msra.mxu2 %v342_v32  ;;  %555 = vmatpush.msrb.mxu3 %v307_v51  ;;  %v248_v32 = vld [vmem:[%s14061_s3 + $0x708] sm:$0xff]  ;;  %v79_v51 = vld [vmem:[%s14061_s3 + $0x1c0] sm:$0xff] }
  0x25   :  { %475 = vmatpush.msrb.mxu1 %v289_v54  ;;  %887 = vmatpush.msrb.mxu0 %v135_v18  ;;  %v96_v44 = vld [vmem:[%s14061_s3 + $0x248] sm:$0xff] }
  0x26   :  { %675 = vmatpush.msra.mxu2 %v334_v34  ;;  %556 = vmatpush.msrb.mxu3 %v299_v53  ;;  %v224_v45 = vld [vmem:[%s14061_s3 + $0x648] sm:$0xff] }
  0x27   :  { %4466 = vmatmul.msk.f32.gmra.mxu0 %vm369_vm1, %v5795_v16  ;;  %4473 = vmatpush.msk.msra.mxu1 %vm394_vm0, %v349_v56  ;;  %v88_v48 = vld [vmem:[%s14061_s3 + $0x208] sm:$0xff] }
  0x28   :  { %676 = vmatpush.msra.mxu2 %v326_v35  ;;  %557 = vmatpush.msrb.mxu3 %v291_v55  ;;  %v111_v35 = vld [vmem:[%s14061_s3 + $0x2c0] sm:$0xff]  ;;  %v216_v49 = vld [vmem:[%s14061_s3 + $0x608] sm:$0xff] }
  0x29   :  { %4447 = vmatmul.msk.f32.vlgmr.msrb.gmra.mxu2 %vm369_vm1, %v5768_v10  ;;  %4438 = vmatmul.msk.f32.vlgmr.msrb.gmra.mxu1 %vm369_vm1, %v5768_v10  ;;  %v80_v53 = vld [vmem:[%s14061_s3 + $0x1c8] sm:$0xff]  ;;  %v199_v55 = vld [vmem:[%s14061_s3 + $0x580] sm:$0xff] }
  0x2a   :  { %677 = vmatpush.msra.mxu2 %v318_v36  ;;  %4456 = vmatmul.msk.f32.vlgmr.msrb.gmra.mxu3 %vm369_vm1, %v5768_v10  ;;  %v239_v36 = vld [vmem:[%s14061_s3 + $0x6c0] sm:$0xff]  ;;  %v208_v54 = vld [vmem:[%s14061_s3 + $0x5c8] sm:$0xff] }
  0x2b   :  { %4491 = vmatpush.msk.msra.mxu3 %vm394_vm0, %v351_v57  ;;  %633 = vmatpush.msra.mxu1 %v341_v59  ;;  %v72_v56 = vld [vmem:[%s14061_s3 + $0x188] sm:$0xff]  ;;  %v63_v59 = vld [vmem:[%s14061_s3 + $0x140] sm:$0xff] }
  0x2c   :  { %678 = vmatpush.msra.mxu2 %v310_v37  ;;  %888 = vmatpush.msrb.mxu0 %v127_v24  ;;  %v112_v37 = vld [vmem:[%s14061_s3 + $0x2c8] sm:$0xff] }
  0x2d   :  { %715 = vmatpush.msra.mxu3 %v343_v60  ;;  %634 = vmatpush.msra.mxu1 %v333_v61  ;;  %v200_v57 = vld [vmem:[%s14061_s3 + $0x588] sm:$0xff]  ;;  %v191_v60 = vld [vmem:[%s14061_s3 + $0x540] sm:$0xff] }
  0x2e   :  { %679 = vmatpush.msra.mxu2 %v302_v38  ;;  %889 = vmatpush.msrb.mxu0 %v119_v28  ;;  %v103_v38 = vld [vmem:[%s14061_s3 + $0x280] sm:$0xff]  ;;  %v64_v61 = vld [vmem:[%s14061_s3 + $0x148] sm:$0xff] }
  0x2f   :  { %4467 = vmatmul.msk.f32.gmra.mxu0 %vm369_vm1, %v5818_v21  ;;  %716 = vmatpush.msra.mxu3 %v335_v62  ;;  %v192_v62 = vld [vmem:[%s14061_s3 + $0x548] sm:$0xff] }
  0x30   :  { %680 = vmatpush.msra.mxu2 %v294_v39  ;;  %635 = vmatpush.msra.mxu1 %v325_v63  ;;  %v231_v39 = vld [vmem:[%s14061_s3 + $0x680] sm:$0xff]  ;;  %v176_v13 = vld [vmem:[%s14061_s3 + $0x4c8] sm:$0xff] }
  0x31   :  { %4448 = vmatmul.msk.f32.gmra.mxu2 %vm369_vm1, %v5795_v16  ;;  %4439 = vmatmul.msk.f32.gmra.mxu1 %vm369_vm1, %v5795_v16  ;;  %v55_v63 = vld [vmem:[%s14061_s3 + $0x100] sm:$0xff] }
  0x32   :  { %4457 = vmatmul.msk.f32.gmra.mxu3 %vm369_vm1, %v5795_v16  ;;  %636 = vmatpush.msra.mxu1 %v317_v1  ;;  %v6231_v1 = vld [vmem:[%s14062_s2] sm:$0xff] }
  0x33   :  { %717 = vmatpush.msra.mxu3 %v327_v0  ;;  %926 = vmatpush.msrb.mxu2 %v144_v17  ;;  %v183_v0 = vld [vmem:[%s14061_s3 + $0x500] sm:$0xff]  ;;  %v40_v17 = vld [vmem:[%s14061_s3 + $0x88] sm:$0xff]  ;;  %v6281_v24 = vperm.slane %v6231_v1, 0 }
  0x34   :  { %637 = vmatpush.msra.mxu1 %v309_v4  ;;  %890 = vmatpush.msrb.mxu0 %v111_v35  ;;  %v56_v4 = vld [vmem:[%s14061_s3 + $0x108] sm:$0xff] }
  0x35   :  { %718 = vmatpush.msra.mxu3 %v319_v2  ;;  %927 = vmatpush.msrb.mxu2 %v136_v22  ;;  %v31_v22 = vld [vmem:[%s14061_s3 + $0x40] sm:$0xff]  ;;  %14668 = vst [vmem:[#allocation9_spill] sm:$0xff] %v6281_v24  ;;  %v152_v35 = vld [vmem:[%s14061_s3 + $0x408] sm:$0xff] }
  0x36   :  { %638 = vmatpush.msra.mxu1 %v301_v6  ;;  %891 = vmatpush.msrb.mxu0 %v103_v38  ;;  %v6242_v6 = vperm.slane %v6231_v1, 2  ;;  %v274_v38 = vld [vmem:[%s14061_s3 + $0x7d8] sm:$0xff] }
  0x37   :  { %4468 = vmatmul.msk.f32.gmra.mxu0 %vm369_vm1, %v5760_v8  ;;  %719 = vmatpush.msra.mxu3 %v311_v5  ;;  %v184_v5 = vld [vmem:[%s14061_s3 + $0x508] sm:$0xff] }
  0x38   :  { %639 = vmatpush.msra.mxu1 %v293_v9  ;;  %928 = vmatpush.msrb.mxu2 %v128_v26  ;;  %14667 = vst [vmem:[#allocation8_spill] sm:$0xff] %v6242_v6  ;;  %v175_v9 = vld [vmem:[%s14061_s3 + $0x4c0] sm:$0xff]  ;;  %v160_v26 = vld [vmem:[%s14061_s3 + $0x448] sm:$0xff] }
  0x39   :  { %4449 = vmatmul.msk.f32.gmra.mxu2 %vm369_vm1, %v5818_v21  ;;  %4440 = vmatmul.msk.f32.gmra.mxu1 %vm369_vm1, %v5818_v21 }
  0x3a   :  { %4458 = vmatmul.msk.f32.gmra.mxu3 %vm369_vm1, %v5818_v21  ;;  %906 = vmatpush.msrb.mxu1 %v271_v15  ;;  %v167_v15 = vld [vmem:[%s14061_s3 + $0x480] sm:$0xff] }
  0x3b   :  { %720 = vmatpush.msra.mxu3 %v303_v7  ;;  %929 = vmatpush.msrb.mxu2 %v120_v31  ;;  %v47_v7 = vld [vmem:[%s14061_s3 + $0xc0] sm:$0xff] }
  0x3c   :  { %907 = vmatpush.msrb.mxu1 %v263_v19  ;;  %892 = vmatpush.msrb.mxu0 %v95_v42  ;;  %v151_v31 = vld [vmem:[%s14061_s3 + $0x400] sm:$0xff]  ;;  %v266_v42 = vld [vmem:[%s14061_s3 + $0x798] sm:$0xff] }
  0x3d   :  { %721 = vmatpush.msra.mxu3 %v295_v11  ;;  %930 = vmatpush.msrb.mxu2 %v112_v37  ;;  %v48_v11 = vld [vmem:[%s14061_s3 + $0xc8] sm:$0xff]  ;;  %v273_v37 = vld [vmem:[%s14061_s3 + $0x7d0] sm:$0xff] }
  0x3e   :  { %908 = vmatpush.msrb.mxu1 %v255_v25  ;;  %893 = vmatpush.msrb.mxu0 %v87_v46  ;;  %v32_v25 = vld [vmem:[%s14061_s3 + $0x48] sm:$0xff]  ;;  %v130_v46 = vld [vmem:[%s14061_s3 + $0x358] sm:$0xff] }
  0x3f   :  { %4469 = vmatmul.msk.f32.gmra.mxu0 %vm369_vm1, %v5787_v14  ;;  %931 = vmatpush.msrb.mxu2 %v104_v40  ;;  %v265_v40 = vld [vmem:[%s14061_s3 + $0x790] sm:$0xff] }
  0x40   :  { %909 = vmatpush.msrb.mxu1 %v247_v30  ;;  %894 = vmatpush.msrb.mxu0 %v79_v51  ;;  %v23_v30 = vld [vmem:[%s14061_s3] sm:$0xff]  ;;  %v121_v51 = vld [vmem:[%s14061_s3 + $0x310] sm:$0xff] }
  0x41   :  { %4450 = vmatmul.msk.f32.gmra.mxu2 %vm369_vm1, %v5760_v8  ;;  %4441 = vmatmul.msk.f32.gmra.mxu1 %vm369_vm1, %v5760_v8 }
  0x42   :  { %4459 = vmatmul.msk.f32.gmra.mxu3 %vm369_vm1, %v5760_v8  ;;  %910 = vmatpush.msrb.mxu1 %v239_v36  ;;  %v145_v36 = vld [vmem:[%s14061_s3 + $0x3d0] sm:$0xff] }
  0x43   :  { %932 = vmatpush.msrb.mxu2 %v96_v44  ;;  %v257_v44 = vld [vmem:[%s14061_s3 + $0x750] sm:$0xff] }
  0x44   :  { %911 = vmatpush.msrb.mxu1 %v231_v39 }
  0x45   :  { %933 = vmatpush.msrb.mxu2 %v88_v48 }
  0x46   :  { %912 = vmatpush.msrb.mxu1 %v223_v43  ;;  %v129_v43 = vld [vmem:[%s14061_s3 + $0x350] sm:$0xff] }
  0x47   :  { %4470 = vmatmul.msk.f32.gmra.mxu0 %vm369_vm1, %v5813_v20  ;;  %934 = vmatpush.msrb.mxu2 %v80_v53  ;;  %v122_v53 = vld [vmem:[%s14061_s3 + $0x318] sm:$0xff] }
  0x48   :  { %913 = vmatpush.msrb.mxu1 %v215_v47  ;;  %v258_v47 = vld [vmem:[%s14061_s3 + $0x758] sm:$0xff] }
  0x49   :  { %4451 = vmatmul.msk.f32.gmra.mxu2 %vm369_vm1, %v5787_v14  ;;  %4442 = vmatmul.msk.f32.gmra.mxu1 %vm369_vm1, %v5787_v14 }
  0x4a   :  { %4460 = vmatmul.msk.f32.gmra.mxu3 %vm369_vm1, %v5787_v14  ;;  %914 = vmatpush.msrb.mxu1 %v207_v52  ;;  %v249_v52 = vld [vmem:[%s14061_s3 + $0x710] sm:$0xff] }
  0x4b   :  { %935 = vmatpush.msrb.mxu2 %v72_v56  ;;  %v113_v56 = vld [vmem:[%s14061_s3 + $0x2d0] sm:$0xff] }
  0x4c   :  { %915 = vmatpush.msrb.mxu1 %v199_v55 }
  0x4d   :  { %936 = vmatpush.msrb.mxu2 %v64_v61  ;;  %v105_v61 = vld [vmem:[%s14061_s3 + $0x290] sm:$0xff] }
  0x4e   :  { %916 = vmatpush.msrb.mxu1 %v191_v60  ;;  %v242_v60 = vld [vmem:[%s14061_s3 + $0x6d8] sm:$0xff] }
  0x4f   :  { %4471 = vmatmul.msk.f32.gmra.mxu0 %vm369_vm1, %v5853_v29  ;;  %937 = vmatpush.msrb.mxu2 %v56_v4 }
  0x50   :  { %917 = vmatpush.msrb.mxu1 %v183_v0 }
  0x51   :  { %4452 = vmatmul.msk.f32.gmra.mxu2 %vm369_vm1, %v5813_v20  ;;  %4443 = vmatmul.msk.f32.gmra.mxu1 %vm369_vm1, %v5813_v20 }
  0x52   :  { %4461 = vmatmul.msk.f32.gmra.mxu3 %vm369_vm1, %v5813_v20  ;;  %918 = vmatpush.msrb.mxu1 %v175_v9  ;;  %v97_v9 = vld [vmem:[%s14061_s3 + $0x250] sm:$0xff] }
  0x53   :  { %938 = vmatpush.msrb.mxu2 %v48_v11  ;;  %v225_v11 = vld [vmem:[%s14061_s3 + $0x650] sm:$0xff] }
  0x54   :  { %919 = vmatpush.msrb.mxu1 %v167_v15  ;;  %v226_v15 = vld [vmem:[%s14061_s3 + $0x658] sm:$0xff] }
  0x55   :  { %939 = vmatpush.msrb.mxu2 %v40_v17 }
  0x57   :  { %4472 = vmatmul.msk.f32.gmra.mxu0 %vm369_vm1, %v5874_v33  ;;  %940 = vmatpush.msrb.mxu2 %v32_v25  ;;  %v81_v25 = vld [vmem:[%s14061_s3 + $0x1d0] sm:$0xff] }
  0x59   :  { %4453 = vmatmul.msk.f32.gmra.mxu2 %vm369_vm1, %v5853_v29  ;;  %4444 = vmatmul.msk.f32.gmra.mxu1 %vm369_vm1, %v5853_v29 }
  0x5a   :  { %4462 = vmatmul.msk.f32.gmra.mxu3 %vm369_vm1, %v5853_v29 }
  0x61   :  { %4454 = vmatmul.msk.f32.gmra.mxu2 %vm369_vm1, %v5874_v33  ;;  %4445 = vmatmul.msk.f32.gmra.mxu1 %vm369_vm1, %v5874_v33 }
  0x62   :  { %4463 = vmatmul.msk.f32.gmra.mxu3 %vm369_vm1, %v5874_v33 }
  0x69   :  { %4483 = vmatmul.msk.f32.vlgmr.msra.gmra.mxu2 %vm369_vm1, %v5768_v10  ;;  %4474 = vmatmul.msk.f32.vlgmr.msra.gmra.mxu1 %vm369_vm1, %v5768_v10 }
  0x6a   :  { %4492 = vmatmul.msk.f32.vlgmr.msra.gmra.mxu3 %vm369_vm1, %v5768_v10  ;;  %v272_v10 = vld [vmem:[%s14061_s3 + $0x7c8] sm:$0xff] }
  0x6b   :  { %946 = vmatpush.msrb.mxu3 %v272_v10  ;;  %v168_v10 = vld [vmem:[%s14061_s3 + $0x488] sm:$0xff] }
  0x6d   :  { %947 = vmatpush.msrb.mxu3 %v264_v23  ;;  %v159_v23 = vld [vmem:[%s14061_s3 + $0x440] sm:$0xff] }
  0x6e   :  { %920 = vmatpush.msrb.mxu1 %v159_v23 }
  0x6f   :  { %948 = vmatpush.msrb.mxu3 %v256_v27 }
  0x70   :  { %921 = vmatpush.msrb.mxu1 %v151_v31 }
  0x71   :  { %4484 = vmatmul.msk.f32.gmra.mxu2 %vm369_vm1, %v5795_v16  ;;  %4475 = vmatmul.msk.f32.gmra.mxu1 %vm369_vm1, %v5795_v16 }
  0x72   :  { %4493 = vmatmul.msk.f32.gmra.mxu3 %vm369_vm1, %v5795_v16  ;;  %v240_v16 = vld [vmem:[%s14061_s3 + $0x6c8] sm:$0xff]  ;;  %986 = vmatpush.msra.mxu1 %v273_v37 }
  0x73   :  { %949 = vmatpush.msrb.mxu3 %v248_v32 }
  0x74   :  { %987 = vmatpush.msra.mxu1 %v265_v40  ;;  %v194_v40 = vld [vmem:[%s14061_s3 + $0x558] sm:$0xff] }
  0x75   :  { %950 = vmatpush.msrb.mxu3 %v240_v16  ;;  %v146_v16 = vld [vmem:[%s14061_s3 + $0x3d8] sm:$0xff] }
  0x76   :  { %988 = vmatpush.msra.mxu1 %v257_v44  ;;  %v58_v44 = vld [vmem:[%s14061_s3 + $0x118] sm:$0xff] }
  0x77   :  { %951 = vmatpush.msrb.mxu3 %v232_v41  ;;  %v138_v41 = vld [vmem:[%s14061_s3 + $0x398] sm:$0xff] }
  0x78   :  { %989 = vmatpush.msra.mxu1 %v249_v52  ;;  %v49_v52 = vld [vmem:[%s14061_s3 + $0xd0] sm:$0xff] }
  0x79   :  { %4485 = vmatmul.msk.f32.gmra.mxu2 %vm369_vm1, %v5818_v21  ;;  %952 = vmatpush.msrb.mxu3 %v224_v45  ;;  %v6339_v45 = vperm.slane %v6231_v1, 4 }
  0x7a   :  { %4476 = vmatmul.msk.f32.gmra.mxu1 %vm369_vm1, %v5818_v21  ;;  %4494 = vmatmul.msk.f32.gmra.mxu3 %vm369_vm1, %v5818_v21  ;;  %v71_v21 = vld [vmem:[%s14061_s3 + $0x180] sm:$0xff] }
  0x7b   :  { %953 = vmatpush.msrb.mxu3 %v216_v49  ;;  %895 = vmatpush.msrb.mxu0 %v71_v21  ;;  %14670 = vst [vmem:[#allocation11_spill] sm:$0xff] %v6339_v45 }
  0x7d   :  { %954 = vmatpush.msrb.mxu3 %v208_v54  ;;  %896 = vmatpush.msrb.mxu0 %v63_v59  ;;  %v250_v54 = vld [vmem:[%s14061_s3 + $0x718] sm:$0xff] }
  0x7e   :  { %v114_v59 = vld [vmem:[%s14061_s3 + $0x2d8] sm:$0xff] }
  0x7f   :  { %955 = vmatpush.msrb.mxu3 %v200_v57  ;;  %897 = vmatpush.msrb.mxu0 %v55_v63  ;;  %v241_v57 = vld [vmem:[%s14061_s3 + $0x6d0] sm:$0xff] }
  0x80   :  { %990 = vmatpush.msra.mxu1 %v241_v57  ;;  %v41_v57 = vld [vmem:[%s14061_s3 + $0x90] sm:$0xff] }
  0x81   :  { %4486 = vmatmul.msk.f32.gmra.mxu2 %vm369_vm1, %v5760_v8  ;;  %956 = vmatpush.msrb.mxu3 %v192_v62  ;;  %v233_v62 = vld [vmem:[%s14061_s3 + $0x690] sm:$0xff] }
  0x82   :  { %4477 = vmatmul.msk.f32.gmra.mxu1 %vm369_vm1, %v5760_v8  ;;  %4495 = vmatmul.msk.f32.gmra.mxu3 %vm369_vm1, %v5760_v8  ;;  %v39_v8 = vld [vmem:[%s14061_s3 + $0x80] sm:$0xff] }
  0x83   :  { %957 = vmatpush.msrb.mxu3 %v184_v5  ;;  %898 = vmatpush.msrb.mxu0 %v47_v7  ;;  %v106_v5 = vld [vmem:[%s14061_s3 + $0x298] sm:$0xff] }
  0x84   :  { %991 = vmatpush.msra.mxu1 %v233_v62  ;;  %v6537_v62 = vld [vmem:[%s14061_s3 + $0x498] sm:$0xff] }
  0x85   :  { %958 = vmatpush.msrb.mxu3 %v176_v13  ;;  %899 = vmatpush.msrb.mxu0 %v39_v8  ;;  %v98_v8 = vld [vmem:[%s14061_s3 + $0x258] sm:$0xff] }
  0x86   :  { %992 = vmatpush.msra.mxu1 %v225_v11  ;;  %v6566_v11 = vld [vmem:[%s14061_s3 + $0x10] sm:$0xff] }
  0x87   :  { %959 = vmatpush.msrb.mxu3 %v168_v10  ;;  %900 = vmatpush.msrb.mxu0 %v31_v22  ;;  %v89_v10 = vld [vmem:[%s14061_s3 + $0x210] sm:$0xff]  ;;  %v218_v22 = vld [vmem:[%s14061_s3 + $0x618] sm:$0xff] }
  0x89   :  { %4487 = vmatmul.msk.f32.gmra.mxu2 %vm369_vm1, %v5787_v14  ;;  %960 = vmatpush.msrb.mxu3 %v160_v26  ;;  %v209_v26 = vld [vmem:[%s14061_s3 + $0x5d0] sm:$0xff] }
  0x8a   :  { %4478 = vmatmul.msk.f32.gmra.mxu1 %vm369_vm1, %v5787_v14  ;;  %4496 = vmatmul.msk.f32.gmra.mxu3 %vm369_vm1, %v5787_v14  ;;  %v137_v14 = vld [vmem:[%s14061_s3 + $0x390] sm:$0xff] }
  0x8b   :  { %901 = vmatpush.msrb.mxu0 %v23_v30  ;;  %961 = vmatpush.msrb.mxu3 %v152_v35  ;;  %v210_v30 = vld [vmem:[%s14061_s3 + $0x5d8] sm:$0xff] }
  0x8c   :  { %v74_v35 = vld [vmem:[%s14061_s3 + $0x198] sm:$0xff] }
  0x8d   :  { %966 = vmatpush.msra.mxu0 %v145_v36  ;;  %1026 = vmatpush.msra.mxu3 %v274_v38  ;;  %v202_v36 = vld [vmem:[%s14061_s3 + $0x598] sm:$0xff]  ;;  %v193_v38 = vld [vmem:[%s14061_s3 + $0x550] sm:$0xff] }
  0x8e   :  { %v436_v19 = vpop.f32.mrf.mxu1 }
  0x8f   :  { %v437_v28 = vadd.f32 %v436_v19, %v6281_v24  ;;  %967 = vmatpush.msra.mxu0 %v137_v14  ;;  %1027 = vmatpush.msra.mxu3 %v266_v42  ;;  %v90_v19 = vld [vmem:[%s14061_s3 + $0x218] sm:$0xff]  ;;  %v185_v42 = vld [vmem:[%s14061_s3 + $0x510] sm:$0xff] }
  0x90   :  { %v66_v14 = vld [vmem:[%s14061_s3 + $0x158] sm:$0xff] }
  0x91   :  { %4488 = vmatmul.msk.f32.gmra.mxu2 %vm369_vm1, %v5813_v20  ;;  %v4500_v39 = vmul.f32 -1.442695, %v437_v28  ;;  %968 = vmatpush.msra.mxu0 %v129_v43  ;;  %v82_v28 = vld [vmem:[%s14061_s3 + $0x1d8] sm:$0xff] }
  0x92   :  { %1028 = vmatpush.msra.mxu3 %v258_v47  ;;  %4479 = vmatmul.msk.f32.gmra.mxu1 %vm369_vm1, %v5813_v20 }
  0x93   :  { %969 = vmatpush.msra.mxu0 %v121_v51  ;;  %4497 = vmatmul.msk.f32.gmra.mxu3 %vm369_vm1, %v5813_v20  ;;  %v234_v20 = vld [vmem:[%s14061_s3 + $0x698] sm:$0xff] }
  0x94   :  { %v6020_v58 = vpop.f32.mrf.mxu2  ;;  %1029 = vmatpush.msra.mxu3 %v250_v54 }
  0x95   :  { %14663 = vst [vmem:[#allocation4_spill] sm:$0xff] %v6020_v58  ;;  %970 = vmatpush.msra.mxu0 %v113_v56  ;;  %v6511_v56 = vld [vmem:[%s14061_s3 + $0x4d8] sm:$0xff] }
  0x96   :  { %v6384_v63 = vpop.f32.mrf.mxu1  ;;  %1030 = vmatpush.msra.mxu3 %v242_v60  ;;  %v6423_v23 = vpop.f32.mrf.mxu3  ;;  %v7176_v58 = vld [vmem:[%s14061_s3 + $0xb8] sm:$0xff] }
  0x97   :  { %971 = vmatpush.msra.mxu0 %v105_v61  ;;  %14673 = vst [vmem:[#allocation14_spill] sm:$0xff] %v6423_v23  ;;  %v166_v23 = vld [vmem:[%s14061_s3 + $0x478] sm:$0xff] }
  0x98   :  { %1031 = vmatpush.msra.mxu3 %v234_v20 }
  0x99   :  { %4489 = vmatmul.msk.f32.gmra.mxu2 %vm369_vm1, %v5853_v29  ;;  %972 = vmatpush.msra.mxu0 %v97_v9  ;;  %v6559_v9 = vld [vmem:[%s14061_s3 + $0x458] sm:$0xff] }
  0x9a   :  { %1032 = vmatpush.msra.mxu3 %v226_v15  ;;  %4480 = vmatmul.msk.f32.gmra.mxu1 %vm369_vm1, %v5853_v29 }
  0x9b   :  { %973 = vmatpush.msra.mxu0 %v89_v10  ;;  %4498 = vmatmul.msk.f32.gmra.mxu3 %vm369_vm1, %v5853_v29 }
  0x9c   :  { %v6050_v3 = vpop.f32.mrf.mxu2  ;;  %v600_v49 = vpop.f32.mrf.mxu0  ;;  %1033 = vmatpush.msra.mxu3 %v218_v22  ;;  %v6587_v22 = vperm.slane %v6231_v1, 6  ;;  %v276_v1 = vld [vmem:[%s14061_s3 + $0x7e8] sm:$0xff] }
  0x9d   :  { %14664 = vst [vmem:[#allocation5_spill] sm:$0xff] %v6050_v3  ;;  %v601_v55 = vadd.f32 %v600_v49, %v6339_v45  ;;  %974 = vmatpush.msra.mxu0 %v81_v25  ;;  %v7152_v3 = vld [vmem:[%s14061_s3 + $0xf8] sm:$0xff] }
  0x9e   :  { %v6438_v31 = vpop.f32.mrf.mxu1  ;;  %1034 = vmatpush.msra.mxu3 %v210_v30  ;;  %v6488_v47 = vpop.f32.mrf.mxu3  ;;  %14678 = vst [vmem:[#allocation19_spill] sm:$0xff] %v6587_v22  ;;  %v275_v30 = vld [vmem:[%s14061_s3 + $0x7e0] sm:$0xff] }
  0x9f   :  { %v4502_v7 = vmul.f32 -1.442695, %v601_v55  ;;  %14674 = vst [vmem:[#allocation15_spill] sm:$0xff] %v6438_v31  ;;  %v50_v55 = vld [vmem:[%s14061_s3 + $0xd8] sm:$0xff] }
  0xa0   :  { %1035 = vmatpush.msra.mxu3 %v202_v36  ;;  %14676 = vst [vmem:[#allocation17_spill] sm:$0xff] %v6488_v47  ;;  %v267_v36 = vld [vmem:[%s14061_s3 + $0x7a0] sm:$0xff]  ;;  %v7013_v47 = vld [vmem:[%s14061_s3 + $0x2f0] sm:$0xff]  ;;  %v7200_v31 = vld [vmem:[%s14061_s3 + $0x78] sm:$0xff] }
  0xa1   :  { %4490 = vmatmul.msk.f32.gmra.mxu2 %vm369_vm1, %v5874_v33  ;;  %14704 = vst [vmem:[#allocation38_spill] sm:$0xff] %v7200_v31 }
  0xa2   :  { %1036 = vmatpush.msra.mxu3 %v194_v40  ;;  %4481 = vmatmul.msk.f32.gmra.mxu1 %vm369_vm1, %v5874_v33 }
  0xa3   :  { %4499 = vmatmul.msk.f32.gmra.mxu3 %vm369_vm1, %v5874_v33  ;;  %v6532_v33 = vld [vmem:[%s14061_s3 + $0x98] sm:$0xff] }
  0xa4   :  { %v6076_v12 = vpop.f32.mrf.mxu2 }
  0xa5   :  { %14665 = vst [vmem:[#allocation6_spill] sm:$0xff] %v6076_v12  ;;  %v7102_v12 = vld [vmem:[%s14061_s3 + $0x1b8] sm:$0xff] }
  0xa6   :  { %v477_v54 = vpop.f32.mrf.mxu1 }
  0xa7   :  { %v260_v54 = vld [vmem:[%s14061_s3 + $0x768] sm:$0xff] }
  0xac   :  { %v6130_v34 = vpop.f32.mrf.mxu2 }
  0xad   :  { %v519_v18 = vadd.f32 %v6130_v34, %v6242_v6  ;;  %v24_v34 = vld [vmem:[%s14061_s3 + $0x8] sm:$0xff]  ;;  %v559_v15 = vpop.f32.mrf.mxu3 }
  0xae   :  { %941 = vmatpush.msrb.mxu2 %v24_v34  ;;  %v201_v34 = vld [vmem:[%s14061_s3 + $0x590] sm:$0xff]  ;;  %v6591_v25 = vpop.f32.mrf.mxu1 }
  0xaf   :  { %v4501_v32 = vmul.f32 -1.442695, %v519_v18  ;;  %v217_v18 = vld [vmem:[%s14061_s3 + $0x610] sm:$0xff] }
  0xb0   :  { %1006 = vmatpush.msra.mxu2 %v146_v16  ;;  %993 = vmatpush.msra.mxu1 %v217_v18  ;;  %v65_v16 = vld [vmem:[%s14061_s3 + $0x150] sm:$0xff]  ;;  %v6579_v18 = vld [vmem:[%s14061_s3 + $0x18] sm:$0xff] }
  0xb1   :  { %4566 = vpow2.f32 %v4501_v32  ;;  %v73_v32 = vld [vmem:[%s14061_s3 + $0x190] sm:$0xff] }
  0xb2   :  { %4568 = vpow2.f32 %v4500_v39  ;;  %1007 = vmatpush.msra.mxu2 %v138_v41  ;;  %994 = vmatpush.msra.mxu1 %v209_v26  ;;  %v57_v41 = vld [vmem:[%s14061_s3 + $0x110] sm:$0xff] }
  0xb3   :  { %975 = vmatpush.msra.mxu0 %v73_v32 }
  0xb4   :  { %v6180_v50 = vpop.f32.mrf.mxu2  ;;  %1008 = vmatpush.msra.mxu2 %v130_v46  ;;  %995 = vmatpush.msra.mxu1 %v201_v34  ;;  %v6486_v46 = vld [vmem:[%s14061_s3 + $0x518] sm:$0xff] }
  0xb5   :  { %976 = vmatpush.msra.mxu0 %v65_v16  ;;  %1037 = vmatpush.msra.mxu3 %v6486_v46  ;;  %v268_v16 = vld [vmem:[%s14061_s3 + $0x7a8] sm:$0xff] }
  0xb6   :  { %1009 = vmatpush.msra.mxu2 %v122_v53  ;;  %996 = vmatpush.msra.mxu1 %v193_v38  ;;  %v6500_v53 = vld [vmem:[%s14061_s3 + $0x4d0] sm:$0xff] }
  0xb7   :  { %v4567_v21 = vpop.eup %4566  ;;  %977 = vmatpush.msra.mxu0 %v57_v41  ;;  %1038 = vmatpush.msra.mxu3 %v6511_v56 }
  0xb8   :  { %v4569_v0 = vpop.eup %4568  ;;  %v6386_v4 = vadd.f32 1.0, %v4567_v21  ;;  %1010 = vmatpush.msra.mxu2 %v114_v59  ;;  %997 = vmatpush.msra.mxu1 %v185_v42  ;;  %v6523_v59 = vld [vmem:[%s14061_s3 + $0x490] sm:$0xff] }
  0xb9   :  { %v6408_v17 = vadd.f32 1.0, %v4569_v0  ;;  %978 = vmatpush.msra.mxu0 %v49_v52  ;;  %v6543_v0 = vld [vmem:[%s14061_s3 + $0x50] sm:$0xff]  ;;  %1039 = vmatpush.msra.mxu3 %v6537_v62  ;;  %v259_v52 = vld [vmem:[%s14061_s3 + $0x760] sm:$0xff] }
  0xba   :  { %1011 = vmatpush.msra.mxu2 %v106_v5  ;;  %4570 = vrcp.f32 %v6386_v4  ;;  %998 = vmatpush.msra.mxu1 %v6500_v53  ;;  %v6548_v5 = vld [vmem:[%s14061_s3 + $0x450] sm:$0xff]  ;;  %vm847_vm3 = vweird.f32 %v6386_v4  ;;  %v853_v38 = vand.u32 2147483648, %v6386_v4 }
  0xbb   :  { %4572 = vpow2.f32 %v4502_v7  ;;  %979 = vmatpush.msra.mxu0 %v41_v57  ;;  %v6554_v7 = vld [vmem:[%s14061_s3 + $0x58] sm:$0xff]  ;;  %1040 = vmatpush.msra.mxu3 %v6559_v9  ;;  %vm832_vm4 = vweird.f32 %v6408_v17  ;;  %v838_v40 = vand.u32 2147483648, %v6408_v17  ;;  %v836_v42 = vand.u32 2147483647, %v6408_v17  ;;  %v251_v57 = vld [vmem:[%s14061_s3 + $0x720] sm:$0xff] }
  0xbc   :  { %v6233_v2 = vpop.f32.mrf.mxu2  ;;  %1012 = vmatpush.msra.mxu2 %v98_v8  ;;  %4574 = vrcp.f32 %v6408_v17  ;;  %999 = vmatpush.msra.mxu1 %v6523_v59  ;;  %v6571_v8 = vld [vmem:[%s14061_s3 + $0x410] sm:$0xff] }
  0xbd   :  { %14666 = vst [vmem:[#allocation7_spill] sm:$0xff] %v6233_v2  ;;  %980 = vmatpush.msra.mxu0 %v6543_v0  ;;  %v839_v15 = vor.u32 1.1754944e-38, %v838_v40  ;;  %vm837_vm8 = vcmp.eq.f32.partialorder %v836_v42, 8.507059e+37  ;;  %v228_v40 = vld [vmem:[%s14061_s3 + $0x668] sm:$0xff]  ;;  %v7205_v2 = vld [vmem:[%s14061_s3 + $0x700] sm:$0xff] }
  0xbe   :  { %1013 = vmatpush.msra.mxu2 %v90_v19  ;;  %1000 = vmatpush.msra.mxu1 %v6548_v5  ;;  %v6584_v19 = vld [vmem:[%s14061_s3 + $0x418] sm:$0xff]  ;;  %14705 = vst [vmem:[#allocation39_spill] sm:$0xff] %v7205_v2 }
  0xbf   :  { %981 = vmatpush.msra.mxu0 %v6566_v11  ;;  %1041 = vmatpush.msra.mxu3 %v6584_v19 }
  0xc0   :  { %v6456_v37 = vpop.eup %4570  ;;  %1014 = vmatpush.msra.mxu2 %v82_v28  ;;  %1001 = vmatpush.msra.mxu1 %v6571_v8 }
  0xc1   :  { %v4573_v39 = vpop.eup %4572  ;;  %v843_v49 = vmul.f32 %v6456_v37, %v6386_v4  ;;  %vm848_vm2 = vweird.f32 %v6456_v37 }
  0xc2   :  { %1015 = vmatpush.msra.mxu2 %v74_v35  ;;  %v6478_v43 = vpop.eup %4574  ;;  %v6492_v51 = vadd.f32 1.0, %v4573_v39  ;;  %v14066_v35 = vmov 0.0   ;;  %vm6630_vm6 = vmor %vm847_vm3, %vm848_vm2 }
  0xc3   :  { %v828_v21 = vmul.f32 %v6478_v43, %v6408_v17  ;;  %v844_v60 = vsub.f32 1.0, %v843_v49  ;;  %vm833_vm5 = vweird.f32 %v6478_v43  ;;  %922 = vmatmul.f32.vlgmr.msrb.gmra.mxu1 %v14066_v35  ;;  %962 = vmatmul.f32.vlgmr.msrb.gmra.mxu3 %v14066_v35  ;;  %v851_v49 = vand.u32 2147483647, %v6386_v4  ;;  %v6649_v4 = vpop.f32.mrf.mxu3  ;;  %v252_v17 = vld [vmem:[%s14061_s3 + $0x728] sm:$0xff] }
  0xc4   :  { %v6289_v27 = vpop.f32.mrf.mxu2  ;;  %1016 = vmatpush.msra.mxu2 %v66_v14  ;;  %4576 = vrcp.f32 %v6492_v51  ;;  %1066 = vmatpush.msrb.mxu1 %v275_v30  ;;  %vm6645_vm7 = vmor %vm832_vm4, %vm833_vm5  ;;  %v244_v30 = vld [vmem:[%s14061_s3 + $0x6e8] sm:$0xff]  ;;  %vm862_vm10 = vweird.f32 %v6492_v51  ;;  %v868_v42 = vand.u32 2147483648, %v6492_v51 }
  0xc5   :  { %14669 = vst [vmem:[#allocation10_spill] sm:$0xff] %v6289_v27  ;;  %v829_v20 = vsub.f32 1.0, %v828_v21  ;;  %v845_v10 = vmul.f32 %v6456_v37, %v844_v60  ;;  %1106 = vmatpush.msrb.mxu3 %v276_v1  ;;  %v854_v60 = vor.u32 1.1754944e-38, %v853_v38  ;;  %vm852_vm9 = vcmp.eq.f32.partialorder %v851_v49, 8.507059e+37  ;;  %v219_v49 = vld [vmem:[%s14061_s3 + $0x620] sm:$0xff] }
  0xc6   :  { %1017 = vmatpush.msra.mxu2 %v58_v44  ;;  %1067 = vmatpush.msrb.mxu1 %v267_v36  ;;  %v866_v21 = vand.u32 2147483647, %v6492_v51  ;;  %v7181_v27 = vld [vmem:[%s14061_s3 + $0x740] sm:$0xff] }
  0xc7   :  { %v830_v28 = vmul.f32 %v6478_v43, %v829_v20  ;;  %v846_v34 = vadd.f32 %v6456_v37, %v845_v10  ;;  %1107 = vmatpush.msrb.mxu3 %v268_v16  ;;  %v6660_v10 = vpop.f32.mrf.mxu1  ;;  %14702 = vst [vmem:[#allocation36_spill] sm:$0xff] %v7181_v27 }
  0xc8   :  { %1018 = vmatpush.msra.mxu2 %v50_v55  ;;  %1068 = vmatpush.msrb.mxu1 %v259_v52  ;;  %14683 = vst [vmem:[#allocation20_spill] sm:$0xff] %v6660_v10  ;;  %v220_v52 = vld [vmem:[%s14061_s3 + $0x628] sm:$0xff]  ;;  %vm867_vm13 = vcmp.eq.f32.partialorder %v866_v21, 8.507059e+37  ;;  %v171_v21 = vld [vmem:[%s14061_s3 + $0x4a0] sm:$0xff] }
  0xc9   :  { %v831_v41 = vadd.f32 %v6478_v43, %v830_v28  ;;  %v850_v55 = vsel %vm6630_vm6, %v6456_v37, %v846_v34  ;;  %1108 = vmatpush.msrb.mxu3 %v260_v54  ;;  %v243_v37 = vld [vmem:[%s14061_s3 + $0x6e0] sm:$0xff]  ;;  %v7187_v10 = vld [vmem:[%s14061_s3 + $0x748] sm:$0xff] }
  0xca   :  { %1019 = vmatpush.msra.mxu2 %v6532_v33  ;;  %v6593_v26 = vpop.eup %4576  ;;  %v855_v1 = vsel %vm852_vm9, %v854_v60, %v850_v55  ;;  %1069 = vmatpush.msrb.mxu1 %v251_v57  ;;  %v212_v60 = vld [vmem:[%s14061_s3 + $0x5e8] sm:$0xff]  ;;  %14703 = vst [vmem:[#allocation37_spill] sm:$0xff] %v7187_v10 }
  0xcb   :  { %v858_v39 = vmul.f32 %v6593_v26, %v6492_v51  ;;  %v835_v28 = vsel %vm6645_vm7, %v6478_v43, %v831_v41  ;;  %1109 = vmatpush.msrb.mxu3 %v252_v17  ;;  %1002 = vmatmul.f32.vlgmr.msra.gmra.mxu1 %v14066_v35  ;;  %v235_v43 = vld [vmem:[%s14061_s3 + $0x6a0] sm:$0xff]  ;;  %v873_v38 = vmul.f32 0.0, %v855_v1  ;;  %vm863_vm11 = vweird.f32 %v6593_v26  ;;  %v6688_v41 = vpop.f32.mrf.mxu3  ;;  %v172_v57 = vld [vmem:[%s14061_s3 + $0x4a8] sm:$0xff] }
  0xcc   :  { %v6347_v48 = vpop.f32.mrf.mxu2  ;;  %1020 = vmatpush.msra.mxu2 %v6554_v7  ;;  %1042 = vmatmul.f32.vlgmr.msra.gmra.mxu3 %v14066_v35  ;;  %v840_v16 = vsel %vm837_vm8, %v839_v15, %v835_v28  ;;  %14684 = vst [vmem:[#allocation21_spill] sm:$0xff] %v6688_v41  ;;  %vm6703_vm12 = vmor %vm862_vm10, %vm863_vm11  ;;  %v211_v17 = vld [vmem:[%s14061_s3 + $0x5e0] sm:$0xff]  ;;  %v869_v51 = vor.u32 1.1754944e-38, %v868_v42  ;;  %v204_v15 = vld [vmem:[%s14061_s3 + $0x5a8] sm:$0xff] }
  0xcd   :  { %14671 = vst [vmem:[#allocation12_spill] sm:$0xff] %v6347_v48  ;;  %v859_v20 = vsub.f32 1.0, %v858_v39  ;;  %1070 = vmatpush.msrb.mxu1 %v243_v37  ;;  %1110 = vmatpush.msrb.mxu3 %v244_v30  ;;  %v195_v37 = vld [vmem:[%s14061_s3 + $0x560] sm:$0xff]  ;;  %v196_v30 = vld [vmem:[%s14061_s3 + $0x568] sm:$0xff]  ;;  %v7195_v41 = vld [vmem:[%s14061_s3 + $0x70] sm:$0xff] }
  0xce   :  { %1021 = vmatpush.msra.mxu2 %v6579_v18  ;;  %v179_v42 = vld [vmem:[%s14061_s3 + $0x4e0] sm:$0xff] }
  0xcf   :  { %v860_v36 = vmul.f32 %v6593_v26, %v859_v20  ;;  %1071 = vmatpush.msrb.mxu1 %v235_v43  ;;  %v6701_v55 = vpop.f32.mrf.mxu1  ;;  %v203_v20 = vld [vmem:[%s14061_s3 + $0x5a0] sm:$0xff] }
  0xd0   :  { %14685 = vst [vmem:[#allocation22_spill] sm:$0xff] %v6701_v55  ;;  %v7157_v48 = vld [vmem:[%s14061_s3 + $0x780] sm:$0xff]  ;;  %v7163_v55 = vld [vmem:[%s14061_s3 + $0x788] sm:$0xff] }
  0xd1   :  { %v861_v54 = vadd.f32 %v6593_v26, %v860_v36  ;;  %v148_v36 = vld [vmem:[%s14061_s3 + $0x3e8] sm:$0xff]  ;;  %14700 = vst [vmem:[#allocation34_spill] sm:$0xff] %v7157_v48 }
  0xd2   :  { %14701 = vst [vmem:[#allocation35_spill] sm:$0xff] %v7163_v55 }
  0xd3   :  { %v865_v28 = vsel %vm6703_vm12, %v6593_v26, %v861_v54  ;;  %v6729_v1 = vpop.f32.mrf.mxu3  ;;  %v147_v26 = vld [vmem:[%s14061_s3 + $0x3e0] sm:$0xff]  ;;  %v132_v54 = vld [vmem:[%s14061_s3 + $0x368] sm:$0xff] }
  0xd4   :  { %v6400_v13 = vpop.f32.mrf.mxu2  ;;  %14688 = vst [vmem:[#allocation23_spill] sm:$0xff] %v6729_v1  ;;  %v7171_v1 = vld [vmem:[%s14061_s3 + $0xb0] sm:$0xff] }
  0xd5   :  { %14672 = vst [vmem:[#allocation13_spill] sm:$0xff] %v6400_v13  ;;  %v14697_v13 = vmov 0.0  }
  0xdc   :  { %v6458_v29 = vpop.f32.mrf.mxu2 }
  0xdd   :  { %14675 = vst [vmem:[#allocation16_spill] sm:$0xff] %v6458_v29  ;;  %v7067_v29 = vld [vmem:[%s14061_s3 + $0x230] sm:$0xff] }
  0xe4   :  { %v6526_v61 = vpop.f32.mrf.mxu2 }
  0xe5   :  { %14677 = vst [vmem:[#allocation18_spill] sm:$0xff] %v6526_v61  ;;  %v7031_v61 = vld [vmem:[%s14061_s3 + $0x2b0] sm:$0xff] }
  0xec   :  { %v682_v32 = vpop.f32.mrf.mxu2 }
  0xed   :  { %v683_v14 = vadd.f32 %v682_v32, %v6587_v22  ;;  %v236_v32 = vld [vmem:[%s14061_s3 + $0x6a8] sm:$0xff] }
  0xee   :  { %1111 = vmatpush.msrb.mxu3 %v236_v32  ;;  %v870_v32 = vsel %vm867_vm13, %v869_v51, %v865_v28  ;;  %v6779_v51 = vpop.f32.mrf.mxu3 }
  0xef   :  { %4578 = vtanh.f32 %v683_v14  ;;  %v227_v14 = vld [vmem:[%s14061_s3 + $0x660] sm:$0xff]  ;;  %14690 = vst [vmem:[#allocation25_spill] sm:$0xff] %v6779_v51  ;;  %v7147_v51 = vld [vmem:[%s14061_s3 + $0xf0] sm:$0xff] }
  0xf0   :  { %1072 = vmatpush.msrb.mxu1 %v227_v14  ;;  %1112 = vmatpush.msrb.mxu3 %v228_v40  ;;  %v139_v14 = vld [vmem:[%s14061_s3 + $0x3a0] sm:$0xff]  ;;  %v140_v40 = vld [vmem:[%s14061_s3 + $0x3a8] sm:$0xff] }
  0xf2   :  { %1073 = vmatpush.msrb.mxu1 %v219_v49  ;;  %1113 = vmatpush.msrb.mxu3 %v220_v52  ;;  %v180_v49 = vld [vmem:[%s14061_s3 + $0x4e8] sm:$0xff]  ;;  %v131_v52 = vld [vmem:[%s14061_s3 + $0x360] sm:$0xff] }
  0xf4   :  { %1074 = vmatpush.msrb.mxu1 %v211_v17  ;;  %1114 = vmatpush.msrb.mxu3 %v212_v60  ;;  %v123_v17 = vld [vmem:[%s14061_s3 + $0x320] sm:$0xff]  ;;  %v124_v60 = vld [vmem:[%s14061_s3 + $0x328] sm:$0xff] }
  0xf5   :  { %v4579_v34 = vpop.eup %4578 }
  0xf6   :  { %v874_v39 = vmul.f32 %v4579_v34, %v840_v16  ;;  %1075 = vmatpush.msrb.mxu1 %v203_v20  ;;  %1115 = vmatpush.msrb.mxu3 %v204_v15  ;;  %v6739_v16 = vpop.f32.mrf.mxu1  ;;  %v115_v20 = vld [vmem:[%s14061_s3 + $0x2e0] sm:$0xff]  ;;  %v116_v15 = vld [vmem:[%s14061_s3 + $0x2e8] sm:$0xff] }
  0xf7   :  { %14689 = vst [vmem:[#allocation24_spill] sm:$0xff] %v6739_v16  ;;  %v7133_v16 = vld [vmem:[%s14061_s3 + $0x7c0] sm:$0xff] }
  0xf8   :  { %v6691_v44 = vadd.f32 %v874_v39, %v873_v38  ;;  %1076 = vmatpush.msrb.mxu1 %v195_v37  ;;  %1116 = vmatpush.msrb.mxu3 %v196_v30  ;;  %v187_v38 = vld [vmem:[%s14061_s3 + $0x520] sm:$0xff]  ;;  %v188_v39 = vld [vmem:[%s14061_s3 + $0x528] sm:$0xff]  ;;  %14698 = vst [vmem:[#allocation32_spill] sm:$0xff] %v7133_v16 }
  0xf9   :  { %v163_v37 = vld [vmem:[%s14061_s3 + $0x460] sm:$0xff]  ;;  %v164_v30 = vld [vmem:[%s14061_s3 + $0x468] sm:$0xff] }
  0xfa   :  { %4580 = vtanh.f32 %v6691_v44  ;;  %1077 = vmatpush.msrb.mxu1 %v187_v38  ;;  %1117 = vmatpush.msrb.mxu3 %v188_v39  ;;  %v99_v38 = vld [vmem:[%s14061_s3 + $0x260] sm:$0xff]  ;;  %v100_v39 = vld [vmem:[%s14061_s3 + $0x268] sm:$0xff] }
  0xfc   :  { %1078 = vmatpush.msrb.mxu1 %v179_v42  ;;  %1118 = vmatpush.msrb.mxu3 %v180_v49  ;;  %v6821_v42 = vpop.f32.mrf.mxu3  ;;  %v277_v49 = vld [vmem:[%s14061_s3 + $0x7f0] sm:$0xff] }
  0xfd   :  { %14692 = vst [vmem:[#allocation27_spill] sm:$0xff] %v6821_v42  ;;  %v7085_v42 = vld [vmem:[%s14061_s3 + $0x1f0] sm:$0xff] }
  0xfe   :  { %1079 = vmatpush.msrb.mxu1 %v171_v21  ;;  %1119 = vmatpush.msrb.mxu3 %v172_v57  ;;  %v6787_v28 = vpop.f32.mrf.mxu1  ;;  %v84_v21 = vld [vmem:[%s14061_s3 + $0x1e8] sm:$0xff] }
  0xff   :  { %14691 = vst [vmem:[#allocation26_spill] sm:$0xff] %v6787_v28  ;;  %v158_v28 = vld [vmem:[%s14061_s3 + $0x438] sm:$0xff] }
 0x100   :  { %v4581_v43 = vpop.eup %4580  ;;  %1080 = vmatpush.msrb.mxu1 %v163_v37  ;;  %1120 = vmatpush.msrb.mxu3 %v164_v30  ;;  %v261_v37 = vld [vmem:[%s14061_s3 + $0x770] sm:$0xff]  ;;  %v262_v30 = vld [vmem:[%s14061_s3 + $0x778] sm:$0xff] }
 0x101   :  { %v6731_v34 = vmul.f32 %v4581_v43, %v870_v32  ;;  %v107_v43 = vld [vmem:[%s14061_s3 + $0x2a0] sm:$0xff]  ;;  %v108_v32 = vld [vmem:[%s14061_s3 + $0x2a8] sm:$0xff] }
 0x103   :  { %902 = vmatmul.f32.vlgmr.msrb.gmra.mxu0 %v6731_v34  ;;  %942 = vmatmul.f32.vlgmr.msrb.gmra.mxu2 %v6731_v34 }
 0x104   :  { %1046 = vmatpush.msrb.mxu0 %v147_v26  ;;  %1086 = vmatpush.msrb.mxu2 %v148_v36  ;;  %v155_v26 = vld [vmem:[%s14061_s3 + $0x420] sm:$0xff]  ;;  %v156_v36 = vld [vmem:[%s14061_s3 + $0x428] sm:$0xff] }
 0x105   :  { %1081 = vmatpush.msrb.mxu1 %v155_v26  ;;  %1121 = vmatpush.msrb.mxu3 %v156_v36  ;;  %v253_v26 = vld [vmem:[%s14061_s3 + $0x730] sm:$0xff]  ;;  %v254_v36 = vld [vmem:[%s14061_s3 + $0x738] sm:$0xff] }
 0x106   :  { %1047 = vmatpush.msrb.mxu0 %v139_v14  ;;  %1087 = vmatpush.msrb.mxu2 %v140_v40  ;;  %v91_v14 = vld [vmem:[%s14061_s3 + $0x220] sm:$0xff]  ;;  %v92_v40 = vld [vmem:[%s14061_s3 + $0x228] sm:$0xff]  ;;  %v6837_v57 = vpop.f32.mrf.mxu1 }
 0x107   :  { %1082 = vmatmul.f32.vlgmr.msrb.gmra.mxu1 %v14066_v35  ;;  %1122 = vmatmul.f32.vlgmr.msrb.gmra.mxu3 %v14066_v35  ;;  %14693 = vst [vmem:[#allocation28_spill] sm:$0xff] %v6837_v57  ;;  %v6995_v35 = vld [vmem:[%s14061_s3 + $0x330] sm:$0xff]  ;;  %v174_v57 = vld [vmem:[%s14061_s3 + $0x4b8] sm:$0xff] }
 0x108   :  { %1048 = vmatpush.msrb.mxu0 %v131_v52  ;;  %1088 = vmatpush.msrb.mxu2 %v132_v54  ;;  %v278_v52 = vld [vmem:[%s14061_s3 + $0x7f8] sm:$0xff]  ;;  %v83_v54 = vld [vmem:[%s14061_s3 + $0x1e0] sm:$0xff] }
 0x109   :  { %1146 = vmatpush.msra.mxu1 %v277_v49  ;;  %1186 = vmatpush.msra.mxu3 %v278_v52  ;;  %v246_v49 = vld [vmem:[%s14061_s3 + $0x6f8] sm:$0xff]  ;;  %v51_v52 = vld [vmem:[%s14061_s3 + $0xe0] sm:$0xff] }
 0x10a   :  { %1049 = vmatpush.msrb.mxu0 %v123_v17  ;;  %1089 = vmatpush.msrb.mxu2 %v124_v60  ;;  %v269_v17 = vld [vmem:[%s14061_s3 + $0x7b0] sm:$0xff]  ;;  %v270_v60 = vld [vmem:[%s14061_s3 + $0x7b8] sm:$0xff] }
 0x10b   :  { %982 = vmatmul.f32.vlgmr.msra.gmra.mxu0 %v6731_v34  ;;  %1022 = vmatmul.f32.vlgmr.msra.gmra.mxu2 %v6731_v34 }
 0x10c   :  { %1050 = vmatpush.msrb.mxu0 %v115_v20  ;;  %1090 = vmatpush.msrb.mxu2 %v116_v15  ;;  %v75_v20 = vld [vmem:[%s14061_s3 + $0x1a0] sm:$0xff]  ;;  %v76_v15 = vld [vmem:[%s14061_s3 + $0x1a8] sm:$0xff] }
 0x10d   :  { %1147 = vmatpush.msra.mxu1 %v269_v17  ;;  %1187 = vmatpush.msra.mxu3 %v270_v60  ;;  %v237_v17 = vld [vmem:[%s14061_s3 + $0x6b0] sm:$0xff]  ;;  %v238_v60 = vld [vmem:[%s14061_s3 + $0x6b8] sm:$0xff] }
 0x10e   :  { %1051 = vmatpush.msrb.mxu0 %v107_v43  ;;  %1091 = vmatpush.msrb.mxu2 %v108_v32  ;;  %v67_v43 = vld [vmem:[%s14061_s3 + $0x160] sm:$0xff]  ;;  %v68_v32 = vld [vmem:[%s14061_s3 + $0x168] sm:$0xff] }
 0x10f   :  { %1148 = vmatpush.msra.mxu1 %v261_v37  ;;  %1188 = vmatpush.msra.mxu3 %v262_v30  ;;  %v229_v37 = vld [vmem:[%s14061_s3 + $0x670] sm:$0xff]  ;;  %v230_v30 = vld [vmem:[%s14061_s3 + $0x678] sm:$0xff] }
 0x110   :  { %1052 = vmatpush.msrb.mxu0 %v99_v38  ;;  %1092 = vmatpush.msrb.mxu2 %v100_v39  ;;  %v59_v38 = vld [vmem:[%s14061_s3 + $0x120] sm:$0xff]  ;;  %v60_v39 = vld [vmem:[%s14061_s3 + $0x128] sm:$0xff] }
 0x111   :  { %1149 = vmatpush.msra.mxu1 %v253_v26  ;;  %1189 = vmatpush.msra.mxu3 %v254_v36  ;;  %v221_v26 = vld [vmem:[%s14061_s3 + $0x630] sm:$0xff]  ;;  %v222_v36 = vld [vmem:[%s14061_s3 + $0x638] sm:$0xff] }
 0x112   :  { %1053 = vmatpush.msrb.mxu0 %v91_v14  ;;  %1093 = vmatpush.msrb.mxu2 %v92_v40  ;;  %v6875_v14 = vpop.f32.mrf.mxu3  ;;  %v245_v40 = vld [vmem:[%s14061_s3 + $0x6f0] sm:$0xff] }
 0x113   :  { %14694 = vst [vmem:[#allocation29_spill] sm:$0xff] %v6875_v14  ;;  %1150 = vmatpush.msra.mxu1 %v245_v40  ;;  %1190 = vmatpush.msra.mxu3 %v246_v49  ;;  %v6939_v49 = vld [vmem:[%s14061_s3 + $0x3f0] sm:$0xff] }
 0x114   :  { %1054 = vmatpush.msrb.mxu0 %v83_v54  ;;  %1094 = vmatpush.msrb.mxu2 %v84_v21  ;;  %v52_v54 = vld [vmem:[%s14061_s3 + $0xe8] sm:$0xff]  ;;  %v6889_v21 = vpop.f32.mrf.mxu1  ;;  %v7049_v14 = vld [vmem:[%s14061_s3 + $0x270] sm:$0xff] }
 0x115   :  { %14695 = vst [vmem:[#allocation30_spill] sm:$0xff] %v6889_v21  ;;  %1151 = vmatpush.msra.mxu1 %v237_v17  ;;  %1191 = vmatpush.msra.mxu3 %v238_v60  ;;  %v213_v17 = vld [vmem:[%s14061_s3 + $0x5f0] sm:$0xff]  ;;  %v214_v60 = vld [vmem:[%s14061_s3 + $0x5f8] sm:$0xff] }
 0x116   :  { %1055 = vmatpush.msrb.mxu0 %v75_v20  ;;  %1095 = vmatpush.msrb.mxu2 %v76_v15  ;;  %v43_v20 = vld [vmem:[%s14061_s3 + $0xa0] sm:$0xff]  ;;  %v44_v15 = vld [vmem:[%s14061_s3 + $0xa8] sm:$0xff]  ;;  %v189_v21 = vld [vmem:[%s14061_s3 + $0x530] sm:$0xff] }
 0x117   :  { %1152 = vmatpush.msra.mxu1 %v229_v37  ;;  %1192 = vmatpush.msra.mxu3 %v230_v30  ;;  %v205_v37 = vld [vmem:[%s14061_s3 + $0x5b0] sm:$0xff]  ;;  %v206_v30 = vld [vmem:[%s14061_s3 + $0x5b8] sm:$0xff] }
 0x118   :  { %1056 = vmatpush.msrb.mxu0 %v67_v43  ;;  %1096 = vmatpush.msrb.mxu2 %v68_v32  ;;  %v6912_v43 = vld [vmem:[%s14061_s3 + $0x60] sm:$0xff]  ;;  %v36_v32 = vld [vmem:[%s14061_s3 + $0x68] sm:$0xff] }
 0x119   :  { %1153 = vmatpush.msra.mxu1 %v221_v26  ;;  %1193 = vmatpush.msra.mxu3 %v222_v36  ;;  %v6982_v26 = vld [vmem:[%s14061_s3 + $0x378] sm:$0xff]  ;;  %v197_v36 = vld [vmem:[%s14061_s3 + $0x570] sm:$0xff] }
 0x11a   :  { %1057 = vmatpush.msrb.mxu0 %v59_v38  ;;  %1097 = vmatpush.msrb.mxu2 %v60_v39  ;;  %v6926_v38 = vld [vmem:[%s14061_s3 + $0x20] sm:$0xff]  ;;  %v6931_v39 = vld [vmem:[%s14061_s3 + $0x28] sm:$0xff]  ;;  %v6933_v40 = vpop.f32.mrf.mxu3 }
 0x11b   :  { %14696 = vst [vmem:[#allocation31_spill] sm:$0xff] %v6933_v40  ;;  %1154 = vmatpush.msra.mxu1 %v213_v17  ;;  %1194 = vmatpush.msra.mxu3 %v214_v60  ;;  %v7000_v17 = vld [vmem:[%s14061_s3 + $0x338] sm:$0xff] }
 0x11c   :  { %1058 = vmatpush.msrb.mxu0 %v51_v52  ;;  %1098 = vmatpush.msrb.mxu2 %v52_v54  ;;  %v6944_v52 = vld [vmem:[%s14061_s3 + $0x3f8] sm:$0xff]  ;;  %v641_v54 = vpop.f32.mrf.mxu1 }
 0x11d   :  { %v198_v54 = vld [vmem:[%s14061_s3 + $0x578] sm:$0xff]  ;;  %1155 = vmatpush.msra.mxu1 %v205_v37  ;;  %1195 = vmatpush.msra.mxu3 %v206_v30  ;;  %v181_v30 = vld [vmem:[%s14061_s3 + $0x4f0] sm:$0xff] }
 0x11e   :  { %1059 = vmatpush.msrb.mxu0 %v43_v20  ;;  %1099 = vmatpush.msrb.mxu2 %v44_v15  ;;  %v6959_v20 = vld [vmem:[%s14061_s3 + $0x3b0] sm:$0xff]  ;;  %v6964_v15 = vld [vmem:[%s14061_s3 + $0x3b8] sm:$0xff] }
 0x11f   :  { %v190_v40 = vld [vmem:[%s14061_s3 + $0x538] sm:$0xff]  ;;  %1156 = vmatpush.msra.mxu1 %v197_v36  ;;  %1196 = vmatpush.msra.mxu3 %v198_v54  ;;  %v173_v54 = vld [vmem:[%s14061_s3 + $0x4b0] sm:$0xff] }
 0x120   :  { %1060 = vmatpush.msrb.mxu0 %v6912_v43  ;;  %1100 = vmatpush.msrb.mxu2 %v36_v32  ;;  %v6977_v32 = vld [vmem:[%s14061_s3 + $0x370] sm:$0xff]  ;;  %v7018_v37 = vld [vmem:[%s14061_s3 + $0x2f8] sm:$0xff] }
 0x121   :  { %v7036_v36 = vld [vmem:[%s14061_s3 + $0x2b8] sm:$0xff]  ;;  %1157 = vmatpush.msra.mxu1 %v189_v21  ;;  %1197 = vmatpush.msra.mxu3 %v190_v40  ;;  %v165_v40 = vld [vmem:[%s14061_s3 + $0x470] sm:$0xff] }
 0x122   :  { %1061 = vmatpush.msrb.mxu0 %v6926_v38  ;;  %1101 = vmatpush.msrb.mxu2 %v6931_v39  ;;  %v723_v60 = vpop.f32.mrf.mxu3  ;;  %v7054_v21 = vld [vmem:[%s14061_s3 + $0x278] sm:$0xff] }
 0x123   :  { %1062 = vmatmul.f32.vlgmr.msrb.gmra.mxu0 %v6731_v34  ;;  %1102 = vmatmul.f32.vlgmr.msrb.gmra.mxu2 %v6731_v34  ;;  %v182_v60 = vld [vmem:[%s14061_s3 + $0x4f8] sm:$0xff] }
 0x124   :  { %1126 = vmatpush.msra.mxu0 %v6939_v49  ;;  %1166 = vmatpush.msra.mxu2 %v6944_v52 }
 0x125   :  { %1158 = vmatpush.msra.mxu1 %v181_v30  ;;  %1198 = vmatpush.msra.mxu3 %v182_v60  ;;  %v7072_v30 = vld [vmem:[%s14061_s3 + $0x238] sm:$0xff]  ;;  %v157_v60 = vld [vmem:[%s14061_s3 + $0x430] sm:$0xff] }
 0x126   :  { %1127 = vmatpush.msra.mxu0 %v6959_v20  ;;  %1167 = vmatpush.msra.mxu2 %v6964_v15 }
 0x127   :  { %1159 = vmatpush.msra.mxu1 %v173_v54  ;;  %1199 = vmatpush.msra.mxu3 %v174_v57  ;;  %v7090_v57 = vld [vmem:[%s14061_s3 + $0x1f8] sm:$0xff]  ;;  %v7097_v54 = vld [vmem:[%s14061_s3 + $0x1b0] sm:$0xff] }
 0x128   :  { %1128 = vmatpush.msra.mxu0 %v6977_v32  ;;  %1168 = vmatpush.msra.mxu2 %v6982_v26 }
 0x129   :  { %1160 = vmatpush.msra.mxu1 %v165_v40  ;;  %1200 = vmatpush.msra.mxu3 %v166_v23  ;;  %v7109_v23 = vld [vmem:[%s14061_s3 + $0x170] sm:$0xff]  ;;  %v7114_v40 = vld [vmem:[%s14061_s3 + $0x178] sm:$0xff] }
 0x12a   :  { %1129 = vmatpush.msra.mxu0 %v6995_v35  ;;  %1169 = vmatpush.msra.mxu2 %v7000_v17 }
 0x12b   :  { %1161 = vmatpush.msra.mxu1 %v157_v60  ;;  %1201 = vmatpush.msra.mxu3 %v158_v28  ;;  %v7123_v28 = vld [vmem:[%s14061_s3 + $0x130] sm:$0xff]  ;;  %v7128_v60 = vld [vmem:[%s14061_s3 + $0x138] sm:$0xff] }
 0x12c   :  { %1130 = vmatpush.msra.mxu0 %v7013_v47  ;;  %1170 = vmatpush.msra.mxu2 %v7018_v37 }
 0x12d   :  { %1162 = vmatmul.f32.vlgmr.msra.gmra.mxu1 %v14697_v13  ;;  %1202 = vmatmul.f32.vlgmr.msra.gmra.mxu3 %v14697_v13  ;;  %v7139_v13 = vld [vmem:[%s14061_s3 + $0x7c8] sm:$0xff] }
 0x12e   :  { %1131 = vmatpush.msra.mxu0 %v7031_v61  ;;  %1171 = vmatpush.msra.mxu2 %v7036_v36  ;;  %14699 = vst [vmem:[#allocation33_spill] sm:$0xff] %v7139_v13 }
 0x12f   :  { %1369 = vmatpush.msrb.mxu1 %v7133_v16  ;;  %1409 = vmatpush.msrb.mxu3 %v7139_v13  ;;  %v7242_v13 = vpop.f32.mrf.mxu1  ;;  %v7247_v16 = vld [vmem:[%s14061_s3 + $0x680] sm:$0xff] }
 0x130   :  { %1132 = vmatpush.msra.mxu0 %v7049_v14  ;;  %1172 = vmatpush.msra.mxu2 %v7054_v21  ;;  %14711 = vst [vmem:[#allocation45_spill] sm:$0xff] %v7247_v16 }
 0x131   :  { %1370 = vmatpush.msrb.mxu1 %v7157_v48  ;;  %1410 = vmatpush.msrb.mxu3 %v7163_v55  ;;  %v7229_v55 = vld [vmem:[%s14061_s3 + $0x6c0] sm:$0xff]  ;;  %v7240_v48 = vpop.f32.mrf.mxu0 }
 0x132   :  { %1133 = vmatpush.msra.mxu0 %v7067_v29  ;;  %1173 = vmatpush.msra.mxu2 %v7072_v30  ;;  %14709 = vst [vmem:[#allocation43_spill] sm:$0xff] %v7229_v55 }
 0x133   :  { %1371 = vmatpush.msrb.mxu1 %v7181_v27  ;;  %1411 = vmatpush.msrb.mxu3 %v7187_v10  ;;  %v7211_v10 = vld [vmem:[%s14061_s3 + $0x708] sm:$0xff]  ;;  %v7219_v27 = vld [vmem:[%s14061_s3 + $0x30] sm:$0xff] }
 0x134   :  { %1134 = vmatpush.msra.mxu0 %v7085_v42  ;;  %1174 = vmatpush.msra.mxu2 %v7090_v57  ;;  %14706 = vst [vmem:[#allocation40_spill] sm:$0xff] %v7211_v10 }
 0x135   :  { %1372 = vmatpush.msrb.mxu1 %v7205_v2  ;;  %1412 = vmatpush.msrb.mxu3 %v7211_v10  ;;  %14707 = vst [vmem:[#allocation41_spill] sm:$0xff] %v7219_v27  ;;  %v7224_v2 = vld [vmem:[%s14061_s3 + $0x38] sm:$0xff]  ;;  %v7235_v10 = vld [vmem:[%s14061_s3 + $0x6c8] sm:$0xff] }
 0x136   :  { %1135 = vmatpush.msra.mxu0 %v7097_v54  ;;  %1175 = vmatpush.msra.mxu2 %v7102_v12  ;;  %14708 = vst [vmem:[#allocation42_spill] sm:$0xff] %v7224_v2 }
 0x137   :  { %1373 = vmatpush.msrb.mxu1 %v7229_v55  ;;  %14710 = vst [vmem:[#allocation44_spill] sm:$0xff] %v7235_v10  ;;  %1413 = vmatpush.msrb.mxu3 %v7235_v10  ;;  %v7253_v55 = vld [vmem:[%s14061_s3 + $0x688] sm:$0xff]  ;;  %v7263_v10 = vld [vmem:[%s14061_s3 + $0x3c0] sm:$0xff] }
 0x138   :  { %1136 = vmatpush.msra.mxu0 %v7109_v23  ;;  %1176 = vmatpush.msra.mxu2 %v7114_v40  ;;  %14712 = vst [vmem:[#allocation46_spill] sm:$0xff] %v7253_v55 }
 0x139   :  { %1374 = vmatpush.msrb.mxu1 %v7247_v16  ;;  %1414 = vmatpush.msrb.mxu3 %v7253_v55  ;;  %14713 = vst [vmem:[#allocation47_spill] sm:$0xff] %v7263_v10  ;;  %v7269_v16 = vld [vmem:[%s14061_s3 + $0x3c8] sm:$0xff]  ;;  %v7275_v55 = vld [vmem:[%s14061_s3 + $0x640] sm:$0xff] }
 0x13a   :  { %1137 = vmatpush.msra.mxu0 %v7123_v28  ;;  %1177 = vmatpush.msra.mxu2 %v7128_v60  ;;  %14714 = vst [vmem:[#allocation48_spill] sm:$0xff] %v7269_v16 }
 0x13b   :  { %14715 = vst [vmem:[#allocation49_spill] sm:$0xff] %v7275_v55  ;;  %1375 = vmatpush.msrb.mxu1 %v7275_v55  ;;  %v7297_v55 = vld [vmem:[%s14061_s3 + $0x388] sm:$0xff] }
 0x13c   :  { %1138 = vmatpush.msra.mxu0 %v7147_v51  ;;  %1178 = vmatpush.msra.mxu2 %v7152_v3  ;;  %14718 = vst [vmem:[#allocation52_spill] sm:$0xff] %v7297_v55 }
 0x13e   :  { %1139 = vmatpush.msra.mxu0 %v7171_v1  ;;  %1179 = vmatpush.msra.mxu2 %v7176_v58 }
 0x140   :  { %1140 = vmatpush.msra.mxu0 %v7195_v41  ;;  %1180 = vmatpush.msra.mxu2 %v7200_v31  ;;  %v7338_v31 = vpop.f32.mrf.mxu1 }
 0x141   :  { %14726 = vst [vmem:[#allocation60_spill] sm:$0xff] %v7338_v31  ;;  %v7361_v31 = vld [vmem:[%s14061_s3 + $0x588] sm:$0xff] }
 0x142   :  { %1141 = vmatpush.msra.mxu0 %v7219_v27  ;;  %1181 = vmatpush.msra.mxu2 %v7224_v2  ;;  %v7286_v2 = vpop.f32.mrf.mxu3  ;;  %v7309_v27 = vld [vmem:[%s14061_s3 + $0x608] sm:$0xff]  ;;  %14730 = vst [vmem:[#allocation64_spill] sm:$0xff] %v7361_v31 }
 0x143   :  { %1142 = vmatmul.f32.vlgmr.msra.gmra.mxu0 %v6731_v34  ;;  %1182 = vmatmul.f32.vlgmr.msra.gmra.mxu2 %v6731_v34  ;;  %v7281_v34 = vld [vmem:[%s14061_s3 + $0x648] sm:$0xff]  ;;  %14720 = vst [vmem:[#allocation54_spill] sm:$0xff] %v7309_v27 }
 0x144   :  { %1349 = vmatpush.msrb.mxu0 %v7263_v10  ;;  %1389 = vmatpush.msrb.mxu2 %v7269_v16  ;;  %14716 = vst [vmem:[#allocation50_spill] sm:$0xff] %v7281_v34  ;;  %v7284_v10 = vpop.f32.mrf.mxu2  ;;  %v7291_v16 = vld [vmem:[%s14061_s3 + $0x380] sm:$0xff] }
 0x145   :  { %1415 = vmatpush.msrb.mxu3 %v7281_v34  ;;  %14717 = vst [vmem:[#allocation51_spill] sm:$0xff] %v7291_v16  ;;  %v7303_v34 = vld [vmem:[%s14061_s3 + $0x600] sm:$0xff] }
 0x146   :  { %1350 = vmatpush.msrb.mxu0 %v7291_v16  ;;  %1390 = vmatpush.msrb.mxu2 %v7297_v55  ;;  %14719 = vst [vmem:[#allocation53_spill] sm:$0xff] %v7303_v34  ;;  %v7315_v16 = vld [vmem:[%s14061_s3 + $0x340] sm:$0xff]  ;;  %v7321_v55 = vld [vmem:[%s14061_s3 + $0x348] sm:$0xff] }
 0x147   :  { %1376 = vmatpush.msrb.mxu1 %v7303_v34  ;;  %1416 = vmatpush.msrb.mxu3 %v7309_v27  ;;  %14721 = vst [vmem:[#allocation55_spill] sm:$0xff] %v7315_v16  ;;  %v7327_v34 = vld [vmem:[%s14061_s3 + $0x5c0] sm:$0xff]  ;;  %v7333_v27 = vld [vmem:[%s14061_s3 + $0x5c8] sm:$0xff] }
 0x148   :  { %1351 = vmatpush.msrb.mxu0 %v7315_v16  ;;  %14722 = vst [vmem:[#allocation56_spill] sm:$0xff] %v7321_v55  ;;  %1391 = vmatpush.msrb.mxu2 %v7321_v55  ;;  %v7336_v16 = vpop.f32.mrf.mxu0  ;;  %v7343_v55 = vld [vmem:[%s14061_s3 + $0x300] sm:$0xff] }
 0x149   :  { %14723 = vst [vmem:[#allocation57_spill] sm:$0xff] %v7327_v34  ;;  %1377 = vmatpush.msrb.mxu1 %v7327_v34  ;;  %1417 = vmatpush.msrb.mxu3 %v7333_v27  ;;  %v7349_v34 = vld [vmem:[%s14061_s3 + $0x308] sm:$0xff] }
 0x14a   :  { %14724 = vst [vmem:[#allocation58_spill] sm:$0xff] %v7333_v27  ;;  %1352 = vmatpush.msrb.mxu0 %v7343_v55  ;;  %1392 = vmatpush.msrb.mxu2 %v7349_v34  ;;  %v7367_v27 = vld [vmem:[%s14061_s3 + $0x2c0] sm:$0xff] }
 0x14b   :  { %14725 = vst [vmem:[#allocation59_spill] sm:$0xff] %v7336_v16  ;;  %v7355_v16 = vld [vmem:[%s14061_s3 + $0x580] sm:$0xff]  ;;  %1418 = vmatpush.msrb.mxu3 %v7361_v31  ;;  %v7385_v31 = vld [vmem:[%s14061_s3 + $0x548] sm:$0xff] }
 0x14c   :  { %14727 = vst [vmem:[#allocation61_spill] sm:$0xff] %v7343_v55  ;;  %1378 = vmatpush.msrb.mxu1 %v7355_v16  ;;  %1353 = vmatpush.msrb.mxu0 %v7367_v27  ;;  %v7414_v55 = vpop.f32.mrf.mxu3 }
 0x14d   :  { %14728 = vst [vmem:[#allocation62_spill] sm:$0xff] %v7349_v34  ;;  %v7373_v34 = vld [vmem:[%s14061_s3 + $0x2c8] sm:$0xff]  ;;  %1419 = vmatpush.msrb.mxu3 %v7385_v31 }
 0x14e   :  { %14729 = vst [vmem:[#allocation63_spill] sm:$0xff] %v7355_v16  ;;  %1393 = vmatpush.msrb.mxu2 %v7373_v34  ;;  %v7379_v16 = vld [vmem:[%s14061_s3 + $0x540] sm:$0xff] }
 0x14f   :  { %14731 = vst [vmem:[#allocation65_spill] sm:$0xff] %v7367_v27  ;;  %1379 = vmatpush.msrb.mxu1 %v7379_v16  ;;  %v7391_v27 = vld [vmem:[%s14061_s3 + $0x280] sm:$0xff] }
 0x150   :  { %14732 = vst [vmem:[#allocation66_spill] sm:$0xff] %v7373_v34  ;;  %1354 = vmatpush.msrb.mxu0 %v7391_v27  ;;  %v7397_v34 = vld [vmem:[%s14061_s3 + $0x288] sm:$0xff] }
 0x151   :  { %14733 = vst [vmem:[#allocation67_spill] sm:$0xff] %v7379_v16  ;;  %1394 = vmatpush.msrb.mxu2 %v7397_v34  ;;  %v7403_v16 = vld [vmem:[%s14061_s3 + $0x500] sm:$0xff] }
 0x152   :  { %14734 = vst [vmem:[#allocation68_spill] sm:$0xff] %v7385_v31  ;;  %1380 = vmatpush.msrb.mxu1 %v7403_v16  ;;  %v7409_v31 = vld [vmem:[%s14061_s3 + $0x508] sm:$0xff] }
 0x153   :  { %14735 = vst [vmem:[#allocation69_spill] sm:$0xff] %v7391_v27  ;;  %1420 = vmatpush.msrb.mxu3 %v7409_v31  ;;  %v7412_v27 = vpop.f32.mrf.mxu2 }
 0x154   :  { %14736 = vst [vmem:[#allocation70_spill] sm:$0xff] %v7397_v34  ;;  %v7419_v34 = vld [vmem:[%s14061_s3 + $0x240] sm:$0xff] }
 0x155   :  { %14737 = vst [vmem:[#allocation71_spill] sm:$0xff] %v7403_v16  ;;  %1355 = vmatpush.msrb.mxu0 %v7419_v34  ;;  %v7425_v16 = vld [vmem:[%s14061_s3 + $0x248] sm:$0xff] }
 0x156   :  { %14738 = vst [vmem:[#allocation72_spill] sm:$0xff] %v7409_v31  ;;  %1395 = vmatpush.msrb.mxu2 %v7425_v16  ;;  %v7443_v31 = vld [vmem:[%s14061_s3 + $0x200] sm:$0xff] }
 0x157   :  { %14739 = vst [vmem:[#allocation73_spill] sm:$0xff] %v7412_v27  ;;  %v7431_v27 = vld [vmem:[%s14061_s3 + $0x4c0] sm:$0xff]  ;;  %1356 = vmatpush.msrb.mxu0 %v7443_v31 }
 0x158   :  { %14740 = vst [vmem:[#allocation74_spill] sm:$0xff] %v7414_v55  ;;  %1381 = vmatpush.msrb.mxu1 %v7431_v27  ;;  %v7437_v55 = vld [vmem:[%s14061_s3 + $0x4c8] sm:$0xff] }
 0x159   :  { %14741 = vst [vmem:[#allocation75_spill] sm:$0xff] %v7419_v34  ;;  %1421 = vmatpush.msrb.mxu3 %v7437_v55  ;;  %v7466_v34 = vpop.f32.mrf.mxu1 }
 0x15a   :  { %14742 = vst [vmem:[#allocation76_spill] sm:$0xff] %v7425_v16  ;;  %v7449_v16 = vld [vmem:[%s14061_s3 + $0x208] sm:$0xff] }
 0x15b   :  { %14743 = vst [vmem:[#allocation77_spill] sm:$0xff] %v7431_v27  ;;  %1396 = vmatpush.msrb.mxu2 %v7449_v16  ;;  %v7455_v27 = vld [vmem:[%s14061_s3 + $0x480] sm:$0xff] }
 0x15c   :  { %14744 = vst [vmem:[#allocation78_spill] sm:$0xff] %v7437_v55  ;;  %1382 = vmatpush.msrb.mxu1 %v7455_v27  ;;  %v7461_v55 = vld [vmem:[%s14061_s3 + $0x488] sm:$0xff] }
 0x15d   :  { %14745 = vst [vmem:[#allocation79_spill] sm:$0xff] %v7443_v31  ;;  %1422 = vmatpush.msrb.mxu3 %v7461_v55  ;;  %v7464_v31 = vpop.f32.mrf.mxu0 }
 0x15e   :  { %14746 = vst [vmem:[#allocation80_spill] sm:$0xff] %v7449_v16  ;;  %v7471_v16 = vld [vmem:[%s14061_s3 + $0x1c0] sm:$0xff] }
 0x15f   :  { %14747 = vst [vmem:[#allocation81_spill] sm:$0xff] %v7455_v27  ;;  %1357 = vmatpush.msrb.mxu0 %v7471_v16  ;;  %v7477_v27 = vld [vmem:[%s14061_s3 + $0x1c8] sm:$0xff] }
 0x160   :  { %14748 = vst [vmem:[#allocation82_spill] sm:$0xff] %v7461_v55  ;;  %1397 = vmatpush.msrb.mxu2 %v7477_v27  ;;  %v7495_v55 = vld [vmem:[%s14061_s3 + $0x180] sm:$0xff] }
 0x161   :  { %14749 = vst [vmem:[#allocation83_spill] sm:$0xff] %v7464_v31  ;;  %v7483_v31 = vld [vmem:[%s14061_s3 + $0x440] sm:$0xff]  ;;  %1358 = vmatpush.msrb.mxu0 %v7495_v55 }
 0x162   :  { %14750 = vst [vmem:[#allocation84_spill] sm:$0xff] %v7466_v34  ;;  %1383 = vmatpush.msrb.mxu1 %v7483_v31  ;;  %v7489_v34 = vld [vmem:[%s14061_s3 + $0x448] sm:$0xff] }
 0x163   :  { %14751 = vst [vmem:[#allocation85_spill] sm:$0xff] %v7471_v16  ;;  %1423 = vmatpush.msrb.mxu3 %v7489_v34  ;;  %v7542_v16 = vpop.f32.mrf.mxu3 }
 0x164   :  { %14752 = vst [vmem:[#allocation86_spill] sm:$0xff] %v7477_v27  ;;  %v7501_v27 = vld [vmem:[%s14061_s3 + $0x188] sm:$0xff] }
 0x165   :  { %14753 = vst [vmem:[#allocation87_spill] sm:$0xff] %v7483_v31  ;;  %1398 = vmatpush.msrb.mxu2 %v7501_v27  ;;  %v7507_v31 = vld [vmem:[%s14061_s3 + $0x400] sm:$0xff] }
 0x166   :  { %14754 = vst [vmem:[#allocation88_spill] sm:$0xff] %v7489_v34  ;;  %1384 = vmatpush.msrb.mxu1 %v7507_v31  ;;  %v7513_v34 = vld [vmem:[%s14061_s3 + $0x408] sm:$0xff] }
 0x167   :  { %14755 = vst [vmem:[#allocation89_spill] sm:$0xff] %v7495_v55  ;;  %1424 = vmatpush.msrb.mxu3 %v7513_v34  ;;  %v7519_v55 = vld [vmem:[%s14061_s3 + $0x140] sm:$0xff] }
 0x168   :  { %14756 = vst [vmem:[#allocation90_spill] sm:$0xff] %v7501_v27  ;;  %1359 = vmatpush.msrb.mxu0 %v7519_v55  ;;  %v7525_v27 = vld [vmem:[%s14061_s3 + $0x148] sm:$0xff] }
 0x169   :  { %14757 = vst [vmem:[#allocation91_spill] sm:$0xff] %v7507_v31  ;;  %1399 = vmatpush.msrb.mxu2 %v7525_v27  ;;  %v7531_v31 = vld [vmem:[%s14061_s3 + $0x7d0] sm:$0xff] }
 0x16a   :  { %14758 = vst [vmem:[#allocation92_spill] sm:$0xff] %v7513_v34  ;;  %1449 = vmatpush.msra.mxu1 %v7531_v31  ;;  %v7537_v34 = vld [vmem:[%s14061_s3 + $0x7d8] sm:$0xff] }
 0x16b   :  { %14759 = vst [vmem:[#allocation93_spill] sm:$0xff] %v7519_v55  ;;  %1489 = vmatpush.msra.mxu3 %v7537_v34  ;;  %v7540_v55 = vpop.f32.mrf.mxu2 }
 0x16c   :  { %14760 = vst [vmem:[#allocation94_spill] sm:$0xff] %v7525_v27  ;;  %v7547_v27 = vld [vmem:[%s14061_s3 + $0x100] sm:$0xff] }
 0x16d   :  { %14761 = vst [vmem:[#allocation95_spill] sm:$0xff] %v7531_v31  ;;  %1360 = vmatpush.msrb.mxu0 %v7547_v27  ;;  %v7553_v31 = vld [vmem:[%s14061_s3 + $0x108] sm:$0xff] }
 0x16e   :  { %14762 = vst [vmem:[#allocation96_spill] sm:$0xff] %v7537_v34  ;;  %1400 = vmatpush.msrb.mxu2 %v7553_v31  ;;  %v7571_v34 = vld [vmem:[%s14061_s3 + $0xc0] sm:$0xff] }
 0x16f   :  { %14763 = vst [vmem:[#allocation97_spill] sm:$0xff] %v7540_v55  ;;  %v7559_v55 = vld [vmem:[%s14061_s3 + $0x790] sm:$0xff]  ;;  %1361 = vmatpush.msrb.mxu0 %v7571_v34 }
 0x170   :  { %14764 = vst [vmem:[#allocation98_spill] sm:$0xff] %v7542_v16  ;;  %1450 = vmatpush.msra.mxu1 %v7559_v55  ;;  %v7565_v16 = vld [vmem:[%s14061_s3 + $0x798] sm:$0xff] }
 0x171   :  { %14765 = vst [vmem:[#allocation99_spill] sm:$0xff] %v7547_v27  ;;  %1490 = vmatpush.msra.mxu3 %v7565_v16  ;;  %v7594_v27 = vpop.f32.mrf.mxu1 }
 0x172   :  { %14766 = vst [vmem:[#allocation100_spill] sm:$0xff] %v7553_v31  ;;  %v7577_v31 = vld [vmem:[%s14061_s3 + $0xc8] sm:$0xff] }
 0x173   :  { %14767 = vst [vmem:[#allocation101_spill] sm:$0xff] %v7559_v55  ;;  %1401 = vmatpush.msrb.mxu2 %v7577_v31  ;;  %v7583_v55 = vld [vmem:[%s14061_s3 + $0x750] sm:$0xff] }
 0x174   :  { %14768 = vst [vmem:[#allocation102_spill] sm:$0xff] %v7565_v16  ;;  %1451 = vmatpush.msra.mxu1 %v7583_v55  ;;  %v7589_v16 = vld [vmem:[%s14061_s3 + $0x758] sm:$0xff] }
 0x175   :  { %14769 = vst [vmem:[#allocation103_spill] sm:$0xff] %v7571_v34  ;;  %1491 = vmatpush.msra.mxu3 %v7589_v16  ;;  %v7592_v34 = vpop.f32.mrf.mxu0 }
 0x176   :  { %14770 = vst [vmem:[#allocation104_spill] sm:$0xff] %v7577_v31  ;;  %v7599_v31 = vld [vmem:[%s14061_s3 + $0x80] sm:$0xff] }
 0x177   :  { %14771 = vst [vmem:[#allocation105_spill] sm:$0xff] %v7583_v55  ;;  %1362 = vmatpush.msrb.mxu0 %v7599_v31  ;;  %v7605_v55 = vld [vmem:[%s14061_s3 + $0x88] sm:$0xff] }
 0x178   :  { %14772 = vst [vmem:[#allocation106_spill] sm:$0xff] %v7589_v16  ;;  %1402 = vmatpush.msrb.mxu2 %v7605_v55  ;;  %v7623_v16 = vld [vmem:[%s14061_s3 + $0x40] sm:$0xff] }
 0x179   :  { %14773 = vst [vmem:[#allocation107_spill] sm:$0xff] %v7592_v34  ;;  %v7611_v34 = vld [vmem:[%s14061_s3 + $0x710] sm:$0xff]  ;;  %1363 = vmatpush.msrb.mxu0 %v7623_v16 }
 0x17a   :  { %14774 = vst [vmem:[#allocation108_spill] sm:$0xff] %v7594_v27  ;;  %1452 = vmatpush.msra.mxu1 %v7611_v34  ;;  %v7617_v27 = vld [vmem:[%s14061_s3 + $0x718] sm:$0xff] }
 0x17b   :  { %14775 = vst [vmem:[#allocation109_spill] sm:$0xff] %v7599_v31  ;;  %1492 = vmatpush.msra.mxu3 %v7617_v27  ;;  %v7670_v31 = vpop.f32.mrf.mxu3 }
 0x17c   :  { %14776 = vst [vmem:[#allocation110_spill] sm:$0xff] %v7605_v55  ;;  %v7629_v55 = vld [vmem:[%s14061_s3 + $0x48] sm:$0xff] }
 0x17d   :  { %14777 = vst [vmem:[#allocation111_spill] sm:$0xff] %v7611_v34  ;;  %1403 = vmatpush.msrb.mxu2 %v7629_v55  ;;  %v7635_v34 = vld [vmem:[%s14061_s3 + $0x6d0] sm:$0xff] }
 0x17e   :  { %14778 = vst [vmem:[#allocation112_spill] sm:$0xff] %v7617_v27  ;;  %1453 = vmatpush.msra.mxu1 %v7635_v34  ;;  %v7641_v27 = vld [vmem:[%s14061_s3 + $0x6d8] sm:$0xff] }
 0x17f   :  { %14779 = vst [vmem:[#allocation113_spill] sm:$0xff] %v7623_v16  ;;  %1493 = vmatpush.msra.mxu3 %v7641_v27  ;;  %v7647_v16 = vld [vmem:[%s14061_s3] sm:$0xff] }
 0x180   :  { %14780 = vst [vmem:[#allocation114_spill] sm:$0xff] %v7629_v55  ;;  %1364 = vmatpush.msrb.mxu0 %v7647_v16  ;;  %v7653_v55 = vld [vmem:[%s14061_s3 + $0x8] sm:$0xff] }
 0x181   :  { %14781 = vst [vmem:[#allocation115_spill] sm:$0xff] %v7635_v34  ;;  %1404 = vmatpush.msrb.mxu2 %v7653_v55  ;;  %v7659_v34 = vld [vmem:[%s14061_s3 + $0x3d0] sm:$0xff] }
 0x182   :  { %14782 = vst [vmem:[#allocation116_spill] sm:$0xff] %v7641_v27  ;;  %1429 = vmatpush.msra.mxu0 %v7659_v34  ;;  %v7665_v27 = vld [vmem:[%s14061_s3 + $0x3d8] sm:$0xff] }
 0x183   :  { %14783 = vst [vmem:[#allocation117_spill] sm:$0xff] %v7647_v16  ;;  %1469 = vmatpush.msra.mxu2 %v7665_v27  ;;  %v7668_v16 = vpop.f32.mrf.mxu2 }
 0x184   :  { %14784 = vst [vmem:[#allocation118_spill] sm:$0xff] %v7653_v55  ;;  %v7675_v55 = vld [vmem:[%s14061_s3 + $0x690] sm:$0xff] }
 0x185   :  { %14785 = vst [vmem:[#allocation119_spill] sm:$0xff] %v7659_v34  ;;  %1454 = vmatpush.msra.mxu1 %v7675_v55  ;;  %v7681_v34 = vld [vmem:[%s14061_s3 + $0x698] sm:$0xff] }
 0x186   :  { %14786 = vst [vmem:[#allocation120_spill] sm:$0xff] %v7665_v27  ;;  %1494 = vmatpush.msra.mxu3 %v7681_v34  ;;  %v7722_v27 = vpop.f32.mrf.mxu1 }
 0x187   :  { %14787 = vst [vmem:[#allocation121_spill] sm:$0xff] %v7668_v16  ;;  %v7687_v16 = vld [vmem:[%s14061_s3 + $0x390] sm:$0xff] }
 0x188   :  { %14788 = vst [vmem:[#allocation122_spill] sm:$0xff] %v7670_v31  ;;  %1430 = vmatpush.msra.mxu0 %v7687_v16  ;;  %v7693_v31 = vld [vmem:[%s14061_s3 + $0x398] sm:$0xff] }
 0x189   :  { %14789 = vst [vmem:[#allocation123_spill] sm:$0xff] %v7675_v55  ;;  %1470 = vmatpush.msra.mxu2 %v7693_v31  ;;  %v7699_v55 = vld [vmem:[%s14061_s3 + $0x650] sm:$0xff] }
 0x18a   :  { %14790 = vst [vmem:[#allocation124_spill] sm:$0xff] %v7681_v34  ;;  %1455 = vmatpush.msra.mxu1 %v7699_v55  ;;  %v7705_v34 = vld [vmem:[%s14061_s3 + $0x658] sm:$0xff] }
 0x18b   :  { %14791 = vst [vmem:[#allocation125_spill] sm:$0xff] %v7687_v16  ;;  %1495 = vmatpush.msra.mxu3 %v7705_v34  ;;  %v7711_v16 = vld [vmem:[%s14061_s3 + $0x350] sm:$0xff] }
 0x18c   :  { %14792 = vst [vmem:[#allocation126_spill] sm:$0xff] %v7693_v31  ;;  %1431 = vmatpush.msra.mxu0 %v7711_v16  ;;  %v7717_v31 = vld [vmem:[%s14061_s3 + $0x358] sm:$0xff] }
 0x18d   :  { %14793 = vst [vmem:[#allocation127_spill] sm:$0xff] %v7699_v55  ;;  %1471 = vmatpush.msra.mxu2 %v7717_v31  ;;  %v7720_v55 = vpop.f32.mrf.mxu0 }
 0x18e   :  { %14794 = vst [vmem:[#allocation128_spill] sm:$0xff] %v7705_v34  ;;  %v7727_v34 = vld [vmem:[%s14061_s3 + $0x610] sm:$0xff] }
 0x18f   :  { %14795 = vst [vmem:[#allocation129_spill] sm:$0xff] %v7711_v16  ;;  %1456 = vmatpush.msra.mxu1 %v7727_v34  ;;  %v7733_v16 = vld [vmem:[%s14061_s3 + $0x618] sm:$0xff] }
 0x190   :  { %14796 = vst [vmem:[#allocation130_spill] sm:$0xff] %v7717_v31  ;;  %1496 = vmatpush.msra.mxu3 %v7733_v16  ;;  %v7798_v31 = vpop.f32.mrf.mxu3 }
 0x191   :  { %14797 = vst [vmem:[#allocation131_spill] sm:$0xff] %v7720_v55  ;;  %v7739_v55 = vld [vmem:[%s14061_s3 + $0x310] sm:$0xff] }
 0x192   :  { %14798 = vst [vmem:[#allocation132_spill] sm:$0xff] %v7722_v27  ;;  %1432 = vmatpush.msra.mxu0 %v7739_v55  ;;  %v7745_v27 = vld [vmem:[%s14061_s3 + $0x318] sm:$0xff] }
 0x193   :  { %14799 = vst [vmem:[#allocation133_spill] sm:$0xff] %v7727_v34  ;;  %1472 = vmatpush.msra.mxu2 %v7745_v27  ;;  %v7751_v34 = vld [vmem:[%s14061_s3 + $0x5d0] sm:$0xff] }
 0x194   :  { %14800 = vst [vmem:[#allocation134_spill] sm:$0xff] %v7733_v16  ;;  %1457 = vmatpush.msra.mxu1 %v7751_v34  ;;  %v7757_v16 = vld [vmem:[%s14061_s3 + $0x5d8] sm:$0xff] }
 0x195   :  { %14801 = vst [vmem:[#allocation135_spill] sm:$0xff] %v7739_v55  ;;  %1497 = vmatpush.msra.mxu3 %v7757_v16  ;;  %v7763_v55 = vld [vmem:[%s14061_s3 + $0x2d0] sm:$0xff] }
 0x196   :  { %14802 = vst [vmem:[#allocation136_spill] sm:$0xff] %v7745_v27  ;;  %1433 = vmatpush.msra.mxu0 %v7763_v55  ;;  %v7769_v27 = vld [vmem:[%s14061_s3 + $0x2d8] sm:$0xff] }
 0x197   :  { %14803 = vst [vmem:[#allocation137_spill] sm:$0xff] %v7751_v34  ;;  %1473 = vmatpush.msra.mxu2 %v7769_v27  ;;  %v7775_v34 = vld [vmem:[%s14061_s3 + $0x590] sm:$0xff] }
 0x198   :  { %14804 = vst [vmem:[#allocation138_spill] sm:$0xff] %v7757_v16  ;;  %1458 = vmatpush.msra.mxu1 %v7775_v34  ;;  %v7781_v16 = vld [vmem:[%s14061_s3 + $0x598] sm:$0xff] }
 0x199   :  { %14805 = vst [vmem:[#allocation139_spill] sm:$0xff] %v7763_v55  ;;  %1498 = vmatpush.msra.mxu3 %v7781_v16  ;;  %v7787_v55 = vld [vmem:[%s14061_s3 + $0x290] sm:$0xff] }
 0x19a   :  { %14806 = vst [vmem:[#allocation140_spill] sm:$0xff] %v7769_v27  ;;  %1434 = vmatpush.msra.mxu0 %v7787_v55  ;;  %v7793_v27 = vld [vmem:[%s14061_s3 + $0x298] sm:$0xff] }
 0x19b   :  { %14807 = vst [vmem:[#allocation141_spill] sm:$0xff] %v7775_v34  ;;  %1474 = vmatpush.msra.mxu2 %v7793_v27  ;;  %v7796_v34 = vpop.f32.mrf.mxu2 }
 0x19c   :  { %14808 = vst [vmem:[#allocation142_spill] sm:$0xff] %v7781_v16  ;;  %v7803_v16 = vld [vmem:[%s14061_s3 + $0x550] sm:$0xff] }
 0x19d   :  { %14809 = vst [vmem:[#allocation143_spill] sm:$0xff] %v7787_v55  ;;  %1459 = vmatpush.msra.mxu1 %v7803_v16  ;;  %v7809_v55 = vld [vmem:[%s14061_s3 + $0x558] sm:$0xff] }
 0x19e   :  { %14810 = vst [vmem:[#allocation144_spill] sm:$0xff] %v7793_v27  ;;  %1499 = vmatpush.msra.mxu3 %v7809_v55  ;;  %v7845_v27 = vpop.f32.mrf.mxu1 }
 0x19f   :  { %14811 = vst [vmem:[#allocation145_spill] sm:$0xff] %v7796_v34  ;;  %v7815_v34 = vld [vmem:[%s14061_s3 + $0x250] sm:$0xff] }
 0x1a0   :  { %14812 = vst [vmem:[#allocation146_spill] sm:$0xff] %v7798_v31  ;;  %1435 = vmatpush.msra.mxu0 %v7815_v34  ;;  %v7821_v31 = vld [vmem:[%s14061_s3 + $0x258] sm:$0xff]  ;;  %1500 = vmatpush.msra.mxu3 %v6486_v46  ;;  %v7852_v46 = vld [vmem:[%s14061_s3 + $0x1d0] sm:$0xff] }
 0x1a1   :  { %14813 = vst [vmem:[#allocation147_spill] sm:$0xff] %v7803_v16  ;;  %1475 = vmatpush.msra.mxu2 %v7821_v31  ;;  %v7827_v16 = vld [vmem:[%s14061_s3 + $0x510] sm:$0xff] }
 0x1a2   :  { %14814 = vst [vmem:[#allocation148_spill] sm:$0xff] %v7809_v55  ;;  %1460 = vmatpush.msra.mxu1 %v7827_v16  ;;  %v7834_v55 = vld [vmem:[%s14061_s3 + $0x210] sm:$0xff]  ;;  %1501 = vmatpush.msra.mxu3 %v6511_v56  ;;  %v7872_v56 = vld [vmem:[%s14061_s3 + $0x198] sm:$0xff] }
 0x1a3   :  { %14815 = vst [vmem:[#allocation149_spill] sm:$0xff] %v7815_v34  ;;  %1436 = vmatpush.msra.mxu0 %v7834_v55  ;;  %v7843_v34 = vpop.f32.mrf.mxu0 }
 0x1a4   :  { %14816 = vst [vmem:[#allocation150_spill] sm:$0xff] %v7821_v31  ;;  %v7840_v31 = vld [vmem:[%s14061_s3 + $0x218] sm:$0xff]  ;;  %1461 = vmatpush.msra.mxu1 %v6500_v53  ;;  %1502 = vmatpush.msra.mxu3 %v6537_v62  ;;  %v7866_v53 = vld [vmem:[%s14061_s3 + $0x190] sm:$0xff] }
 0x1a5   :  { %14817 = vst [vmem:[#allocation151_spill] sm:$0xff] %v7827_v16  ;;  %1476 = vmatpush.msra.mxu2 %v7840_v31  ;;  %1437 = vmatpush.msra.mxu0 %v7852_v46  ;;  %v7858_v16 = vld [vmem:[%s14061_s3 + $0x1d8] sm:$0xff] }
 0x1a6   :  { %14818 = vst [vmem:[#allocation152_spill] sm:$0xff] %v7834_v55  ;;  %1462 = vmatpush.msra.mxu1 %v6523_v59  ;;  %1503 = vmatpush.msra.mxu3 %v6559_v9  ;;  %v7880_v59 = vld [vmem:[%s14061_s3 + $0x150] sm:$0xff]  ;;  %v7886_v62 = vld [vmem:[%s14061_s3 + $0x158] sm:$0xff] }
 0x1a7   :  { %14819 = vst [vmem:[#allocation153_spill] sm:$0xff] %v7840_v31  ;;  %1477 = vmatpush.msra.mxu2 %v7858_v16  ;;  %1438 = vmatpush.msra.mxu0 %v7866_v53  ;;  %v7904_v9 = vld [vmem:[%s14061_s3 + $0x118] sm:$0xff] }
 0x1a8   :  { %14820 = vst [vmem:[#allocation154_spill] sm:$0xff] %v7843_v34  ;;  %1463 = vmatpush.msra.mxu1 %v6548_v5  ;;  %v7891_v34 = vpop.f32.mrf.mxu3  ;;  %1504 = vmatpush.msra.mxu3 %v6584_v19  ;;  %v7898_v5 = vld [vmem:[%s14061_s3 + $0x110] sm:$0xff]  ;;  %v7916_v19 = vld [vmem:[%s14061_s3 + $0xd8] sm:$0xff] }
 0x1a9   :  { %14821 = vst [vmem:[#allocation155_spill] sm:$0xff] %v7845_v27  ;;  %1478 = vmatpush.msra.mxu2 %v7872_v56  ;;  %1439 = vmatpush.msra.mxu0 %v7880_v59  ;;  %v7889_v27 = vpop.f32.mrf.mxu2 }
 0x1aa   :  { %14822 = vst [vmem:[#allocation156_spill] sm:$0xff] %v7852_v46  ;;  %1464 = vmatpush.msra.mxu1 %v6571_v8  ;;  %v7910_v8 = vld [vmem:[%s14061_s3 + $0xd0] sm:$0xff] }
 0x1ab   :  { %14823 = vst [vmem:[#allocation157_spill] sm:$0xff] %v7858_v16  ;;  %1479 = vmatpush.msra.mxu2 %v7886_v62  ;;  %1440 = vmatpush.msra.mxu0 %v7898_v5 }
 0x1ac   :  { %14824 = vst [vmem:[#allocation158_spill] sm:$0xff] %v7866_v53 }
 0x1ad   :  { %14825 = vst [vmem:[#allocation159_spill] sm:$0xff] %v7872_v56  ;;  %1480 = vmatpush.msra.mxu2 %v7904_v9  ;;  %1441 = vmatpush.msra.mxu0 %v7910_v8 }
 0x1ae   :  { %14826 = vst [vmem:[#allocation160_spill] sm:$0xff] %v7880_v59 }
 0x1af   :  { %14827 = vst [vmem:[#allocation161_spill] sm:$0xff] %v7886_v62  ;;  %1481 = vmatpush.msra.mxu2 %v7916_v19 }
 0x1b0   :  { %14828 = vst [vmem:[#allocation162_spill] sm:$0xff] %v7889_v27  ;;  %v7921_v27 = vpop.f32.mrf.mxu1 }
 0x1b1   :  { %14829 = vst [vmem:[#allocation163_spill] sm:$0xff] %v7891_v34  ;;  %v7919_v34 = vpop.f32.mrf.mxu0  ;;  %1482 = vmatpush.msra.mxu2 %v6532_v33  ;;  %v522_v33 = vadd.f32 %v6180_v50, %v6242_v6 }
 0x1b2   :  { %14830 = vst [vmem:[#allocation164_spill] sm:$0xff] %v7898_v5 }
 0x1b3   :  { %14831 = vst [vmem:[#allocation165_spill] sm:$0xff] %v7904_v9  ;;  %v7926_v9 = vld [vmem:[%s14061_s3 + $0x90] sm:$0xff]  ;;  %1483 = vmatpush.msra.mxu2 %v6554_v7 }
 0x1b4   :  { %14832 = vst [vmem:[#allocation166_spill] sm:$0xff] %v7910_v8  ;;  %1442 = vmatpush.msra.mxu0 %v7926_v9 }
 0x1b5   :  { %14833 = vst [vmem:[#allocation167_spill] sm:$0xff] %v7916_v19  ;;  %1484 = vmatpush.msra.mxu2 %v6579_v18 }
 0x1b6   :  { %14834 = vst [vmem:[#allocation168_spill] sm:$0xff] %v7919_v34  ;;  %1443 = vmatpush.msra.mxu0 %v6543_v0  ;;  %v7934_v34 = vpop.f32.mrf.mxu2 }
 0x1b7   :  { %14835 = vst [vmem:[#allocation169_spill] sm:$0xff] %v7921_v27  ;;  %v7936_v27 = vpop.f32.mrf.mxu3 }
 0x1b8   :  { %14836 = vst [vmem:[#allocation170_spill] sm:$0xff] %v7926_v9  ;;  %1444 = vmatpush.msra.mxu0 %v6566_v11  ;;  %v923_v8 = vpop.f32.mrf.mxu1  ;;  %v7943_v11 = vld [vmem:[%s14062_s2] sm:$0xff] }
 0x1b9   :  { %14837 = vst [vmem:[#allocation171_spill] sm:$0xff] %v7934_v34  ;;  %v903_v19 = vpop.f32.mrf.mxu0  ;;  %v7946_v18 = vperm.slane %v7943_v11, 3  ;;  %v440_v34 = vadd.f32 %v6384_v63, %v6281_v24 }
 0x1ba   :  { %14838 = vst [vmem:[#allocation172_spill] sm:$0xff] %v7936_v27  ;;  %v924_v0 = vadd.f32 %v923_v8, %v903_v19 }
 0x1bb   :  { %14839 = vst [vmem:[#allocation173_spill] sm:$0xff] %v7946_v18 }
 0x1bc   :  { %v1206_v50 = vadd.f32 %v924_v0, %v440_v34  ;;  %v604_v34 = vadd.f32 %v7240_v48, %v6339_v45 }
 0x1be   :  { %v943_v5 = vpop.f32.mrf.mxu2  ;;  %v4503_v31 = vmul.f32 -1.442695, %v1206_v50 }
 0x1bf   :  { %v963_v62 = vpop.f32.mrf.mxu3 }
 0x1c0   :  { %v1003_v9 = vpop.f32.mrf.mxu1  ;;  %v964_v19 = vadd.f32 %v963_v62, %v943_v5 }
 0x1c1   :  { %v983_v59 = vpop.f32.mrf.mxu0 }
 0x1c2   :  { %v1004_v56 = vadd.f32 %v1003_v9, %v983_v59  ;;  %v7951_v59 = vperm.slane %v7943_v11, 1  ;;  %v563_v9 = vadd.f32 %v6649_v4, %v7946_v18 }
 0x1c4   :  { %v1208_v27 = vadd.f32 %v1004_v56, %v522_v33  ;;  %14840 = vst [vmem:[#allocation174_spill] sm:$0xff] %v7951_v59  ;;  %v481_v46 = vadd.f32 %v6591_v25, %v7951_v59 }
 0x1c6   :  { %v1023_v7 = vpop.f32.mrf.mxu2  ;;  %v4505_v8 = vmul.f32 -1.442695, %v1208_v27  ;;  %v1207_v56 = vadd.f32 %v964_v19, %v481_v46  ;;  %v7960_v27 = vperm.slane %v7943_v11, 5 }
 0x1c7   :  { %v1043_v53 = vpop.f32.mrf.mxu3 }
 0x1c8   :  { %v1044_v16 = vadd.f32 %v1043_v53, %v1023_v7  ;;  %v1083_v55 = vpop.f32.mrf.mxu1  ;;  %4582 = vpow2.f32 %v4505_v8  ;;  %v4504_v0 = vmul.f32 -1.442695, %v1207_v56  ;;  %14841 = vst [vmem:[#allocation175_spill] sm:$0xff] %v7960_v27 }
 0x1c9   :  { %v1063_v33 = vpop.f32.mrf.mxu0  ;;  %4584 = vpow2.f32 %v4503_v31 }
 0x1ca   :  { %v1209_v6 = vadd.f32 %v1044_v16, %v563_v9  ;;  %v1084_v53 = vadd.f32 %v1083_v55, %v1063_v33 }
 0x1cc   :  { %v4506_v63 = vmul.f32 -1.442695, %v1209_v6  ;;  %v1210_v16 = vadd.f32 %v1084_v53, %v604_v34  ;;  %v645_v6 = vadd.f32 %v7242_v13, %v7960_v27 }
 0x1ce   :  { %v4583_v4 = vpop.eup %4582  ;;  %4586 = vpow2.f32 %v4506_v63  ;;  %v1103_v25 = vpop.f32.mrf.mxu2  ;;  %v4507_v31 = vmul.f32 -1.442695, %v1210_v16 }
 0x1cf   :  { %v1123_v7 = vpop.f32.mrf.mxu3  ;;  %v4585_v5 = vpop.eup %4584  ;;  %4588 = vpow2.f32 %v4504_v0  ;;  %v7962_v46 = vadd.f32 1.0, %v4583_v4 }
 0x1d0   :  { %v1124_v62 = vadd.f32 %v1123_v7, %v1103_v25  ;;  %v7966_v48 = vadd.f32 1.0, %v4585_v5 }
 0x1d1   :  { %4590 = vrcp.f32 %v7962_v46  ;;  %v1279_v18 = vand.u32 2147483648, %v7962_v46  ;;  %vm1273_vm0 = vweird.f32 %v7962_v46 }
 0x1d2   :  { %v1211_v50 = vadd.f32 %v1124_v62, %v645_v6  ;;  %4592 = vpow2.f32 %v4507_v31  ;;  %v1247_v45 = vand.u32 2147483647, %v7966_v48  ;;  %vm1243_vm2 = vweird.f32 %v7966_v48 }
 0x1d3   :  { %4594 = vrcp.f32 %v7966_v48 }
 0x1d4   :  { %v4587_v55 = vpop.eup %4586  ;;  %v4508_v19 = vmul.f32 -1.442695, %v1211_v50  ;;  %v1163_v50 = vpop.f32.mrf.mxu1  ;;  %vm8028_vm3 = vcmp.eq.f32.partialorder %v1247_v45, 8.507059e+37 }
 0x1d5   :  { %v4589_v9 = vpop.eup %4588  ;;  %v7969_v8 = vadd.f32 1.0, %v4587_v55 }
 0x1d6   :  { %v7972_v56 = vadd.f32 1.0, %v4589_v9 }
 0x1d7   :  { %v7974_v33 = vpop.eup %4590  ;;  %4596 = vrcp.f32 %v7969_v8  ;;  %vm1288_vm8 = vweird.f32 %v7969_v8 }
 0x1d8   :  { %v4593_v13 = vpop.eup %4592  ;;  %4598 = vpow2.f32 %v4508_v19  ;;  %v1269_v53 = vmul.f32 %v7974_v33, %v7962_v46  ;;  %vm1274_vm14 = vweird.f32 %v7974_v33  ;;  %vm1258_vm5 = vweird.f32 %v7972_v56 }
 0x1d9   :  { %v7977_v63 = vpop.eup %4594  ;;  %4600 = vrcp.f32 %v7972_v56  ;;  %v7982_v34 = vadd.f32 1.0, %v4593_v13  ;;  %v1143_v13 = vpop.f32.mrf.mxu0  ;;  %vm8021_vm1 = vmor %vm1273_vm0, %vm1274_vm14 }
 0x1da   :  { %v1239_v7 = vmul.f32 %v7977_v63, %v7966_v48  ;;  %v1270_v16 = vsub.f32 1.0, %v1269_v53  ;;  %v1164_v27 = vadd.f32 %v1163_v50, %v1143_v13  ;;  %vm1244_vm15 = vweird.f32 %v7977_v63  ;;  %v1203_v50 = vpop.f32.mrf.mxu3 }
 0x1db   :  { %4602 = vrcp.f32 %v7982_v34  ;;  %vm8038_vm4 = vmor %vm1243_vm2, %vm1244_vm15  ;;  %vm1303_vm15 = vweird.f32 %v7982_v34 }
 0x1dc   :  { %v1240_v62 = vsub.f32 1.0, %v1239_v7  ;;  %v1271_v55 = vmul.f32 %v7974_v33, %v1270_v16  ;;  %v686_v7 = vadd.f32 %v7284_v10, %v6587_v22  ;;  %v1249_v16 = vand.u32 2147483648, %v7966_v48 }
 0x1dd   :  { %v7984_v0 = vpop.eup %4596 }
 0x1de   :  { %v4599_v4 = vpop.eup %4598  ;;  %v1284_v5 = vmul.f32 %v7984_v0, %v7969_v8  ;;  %v1241_v53 = vmul.f32 %v7977_v63, %v1240_v62  ;;  %v1212_v24 = vadd.f32 %v1164_v27, %v686_v7  ;;  %vm1289_vm7 = vweird.f32 %v7984_v0  ;;  %v8135_v7 = vld [vmem:[%s14061_s3 + $0x368] sm:$0xff] }
 0x1df   :  { %v7989_v25 = vpop.eup %4600  ;;  %v7993_v6 = vadd.f32 1.0, %v4599_v4  ;;  %v8005_v4 = vperm.slane %v7943_v11, 7  ;;  %vm8059_vm10 = vmor %vm1288_vm8, %vm1289_vm7 }
 0x1e0   :  { %v1254_v31 = vmul.f32 %v7989_v25, %v7972_v56  ;;  %v1285_v19 = vsub.f32 1.0, %v1284_v5  ;;  %v1272_v5 = vadd.f32 %v7974_v33, %v1271_v55  ;;  %v1242_v11 = vadd.f32 %v7977_v63, %v1241_v53  ;;  %v1183_v53 = vpop.f32.mrf.mxu2 }
 0x1e1   :  { %v7998_v9 = vpop.eup %4602  ;;  %4604 = vrcp.f32 %v7993_v6  ;;  %14842 = vst [vmem:[#allocation176_spill] sm:$0xff] %v8005_v4  ;;  %v727_v55 = vadd.f32 %v7286_v2, %v8005_v4  ;;  %v1280_v4 = vor.u32 1.1754944e-38, %v1279_v18  ;;  %v1204_v45 = vadd.f32 %v1203_v50, %v1183_v53 }
 0x1e2   :  { %v1255_v59 = vsub.f32 1.0, %v1254_v31  ;;  %v1299_v62 = vmul.f32 %v7998_v9, %v7982_v34  ;;  %v1286_v10 = vmul.f32 %v7984_v0, %v1285_v19  ;;  %v1277_v31 = vand.u32 2147483647, %v7962_v46 }
 0x1e3   :  { %4606 = vtanh.f32 %v1212_v24  ;;  %v1250_v19 = vor.u32 1.1754944e-38, %v1249_v16  ;;  %v1276_v46 = vsel %vm8021_vm1, %v7974_v33, %v1272_v5  ;;  %v1246_v48 = vsel %vm8038_vm4, %v7977_v63, %v1242_v11 }
 0x1e4   :  { %v1256_v2 = vmul.f32 %v7989_v25, %v1255_v59  ;;  %v1300_v22 = vsub.f32 1.0, %v1299_v62  ;;  %vm1278_vm6 = vcmp.eq.f32.partialorder %v1277_v31, 8.507059e+37  ;;  %v1287_v33 = vadd.f32 %v7984_v0, %v1286_v10 }
 0x1e5   :  { %v1294_v18 = vand.u32 2147483648, %v7969_v8  ;;  %v1281_v16 = vsel %vm1278_vm6, %v1280_v4, %v1276_v46  ;;  %v1213_v5 = vadd.f32 %v1204_v45, %v727_v55  ;;  %vm1259_vm9 = vweird.f32 %v7989_v25 }
 0x1e6   :  { %v1257_v62 = vadd.f32 %v7989_v25, %v1256_v2  ;;  %v1292_v63 = vand.u32 2147483647, %v7969_v8  ;;  %v1301_v10 = vmul.f32 %v7998_v9, %v1300_v22  ;;  %v1251_v31 = vsel %vm8028_vm3, %v1250_v19, %v1246_v48  ;;  %vm8070_vm11 = vmor %vm1258_vm5, %vm1259_vm9 }
 0x1e7   :  { %v8026_v27 = vpop.eup %4604  ;;  %v1264_v50 = vand.u32 2147483648, %v7972_v56  ;;  %4608 = vtanh.f32 %v1213_v5  ;;  %v1330_v4 = vmul.f32 %v1281_v16, %v6691_v44  ;;  %v1262_v46 = vand.u32 2147483647, %v7972_v56 }
 0x1e8   :  { %v1314_v59 = vmul.f32 %v8026_v27, %v7993_v6  ;;  %v1291_v8 = vsel %vm8059_vm10, %v7984_v0, %v1287_v33  ;;  %v1295_v22 = vor.u32 1.1754944e-38, %v1294_v18  ;;  %v1261_v44 = vsel %vm8070_vm11, %v7989_v25, %v1257_v62 }
 0x1e9   :  { %v4607_v11 = vpop.eup %4606  ;;  %vm1293_vm12 = vcmp.eq.f32.partialorder %v1292_v63, 8.507059e+37  ;;  %v1302_v2 = vadd.f32 %v7998_v9, %v1301_v10  ;;  %vm1304_vm13 = vweird.f32 %v7998_v9  ;;  %v1265_v0 = vor.u32 1.1754944e-38, %v1264_v50 }
 0x1ea   :  { %v1332_v55 = vmul.f32 %v4607_v11, %v1251_v31  ;;  %v1315_v53 = vsub.f32 1.0, %v1314_v59  ;;  %v1296_v24 = vsel %vm1293_vm12, %v1295_v22, %v1291_v8  ;;  %v1309_v45 = vand.u32 2147483648, %v7982_v34  ;;  %vm1305_vm0 = vmor %vm1303_vm15, %vm1304_vm13  ;;  %v8121_v8 = vld [vmem:[%s14061_s3 + $0x3a8] sm:$0xff] }
 0x1eb   :  { %vm1263_vm14 = vcmp.eq.f32.partialorder %v1262_v46, 8.507059e+37  ;;  %v1307_v48 = vand.u32 2147483647, %v7982_v34  ;;  %v1331_v18 = vmul.f32 0.0, %v1296_v24  ;;  %v1306_v16 = vsel %vm1305_vm0, %v7998_v9, %v1302_v2  ;;  %v8115_v46 = vld [vmem:[%s14061_s3 + $0x3a0] sm:$0xff]  ;;  %v8161_v24 = vld [vmem:[%s14061_s3 + $0x7e8] sm:$0xff] }
 0x1ec   :  { %v8074_v19 = vadd.f32 %v1332_v55, %v1330_v4  ;;  %v1316_v33 = vmul.f32 %v8026_v27, %v1315_v53  ;;  %v1266_v25 = vsel %vm1263_vm14, %v1265_v0, %v1261_v44  ;;  %v1310_v5 = vor.u32 1.1754944e-38, %v1309_v45  ;;  %v8103_v4 = vld [vmem:[%s14061_s3 + $0x3e0] sm:$0xff]  ;;  %v8155_v0 = vld [vmem:[%s14061_s3 + $0x328] sm:$0xff] }
 0x1ed   :  { %v4609_v56 = vpop.eup %4608  ;;  %vm1308_vm1 = vcmp.eq.f32.partialorder %v1307_v48, 8.507059e+37  ;;  %vm1319_vm2 = vweird.f32 %v8026_v27  ;;  %v1324_v34 = vand.u32 2147483648, %v7993_v6  ;;  %vm1318_vm3 = vweird.f32 %v7993_v6  ;;  %v8129_v53 = vld [vmem:[%s14061_s3 + $0x360] sm:$0xff]  ;;  %v8181_v48 = vld [vmem:[%s14061_s3 + $0x2e8] sm:$0xff] }
 0x1ee   :  { %4610 = vtanh.f32 %v8074_v19  ;;  %v1333_v59 = vmul.f32 %v4609_v56, %v1266_v25  ;;  %v1317_v63 = vadd.f32 %v8026_v27, %v1316_v33  ;;  %v1311_v10 = vsel %vm1308_vm1, %v1310_v5, %v1306_v16  ;;  %vm1320_vm4 = vmor %vm1318_vm3, %vm1319_vm2  ;;  %v8143_v44 = vld [vmem:[%s14061_s3 + $0x320] sm:$0xff]  ;;  %v8187_v33 = vld [vmem:[%s14061_s3 + $0x7a8] sm:$0xff] }
 0x1ef   :  { %v1322_v31 = vand.u32 2147483647, %v7993_v6  ;;  %v1325_v13 = vor.u32 1.1754944e-38, %v1324_v34  ;;  %v8109_v6 = vld [vmem:[%s14061_s3 + $0x3e8] sm:$0xff]  ;;  %v8149_v2 = vld [vmem:[%s14061_s3 + $0x7e0] sm:$0xff] }
 0x1f0   :  { %v8087_v62 = vadd.f32 %v1333_v59, %v1331_v18  ;;  %v1321_v9 = vsel %vm1320_vm4, %v8026_v27, %v1317_v63  ;;  %v8169_v45 = vld [vmem:[%s14061_s3 + $0x2e0] sm:$0xff]  ;;  %v8205_v59 = vld [vmem:[%s14061_s3 + $0x2a8] sm:$0xff] }
 0x1f1   :  { %vm1323_vm5 = vcmp.eq.f32.partialorder %v1322_v31, 8.507059e+37  ;;  %v8175_v56 = vld [vmem:[%s14061_s3 + $0x7a0] sm:$0xff]  ;;  %v8211_v16 = vld [vmem:[%s14061_s3 + $0x768] sm:$0xff] }
 0x1f2   :  { %4612 = vtanh.f32 %v8087_v62  ;;  %v1326_v55 = vsel %vm1323_vm5, %v1325_v13, %v1321_v9  ;;  %v8193_v25 = vld [vmem:[%s14061_s3 + $0x2a0] sm:$0xff]  ;;  %v8255_v9 = vld [vmem:[%s14061_s3 + $0x228] sm:$0xff] }
 0x1f3   :  { %v8199_v18 = vld [vmem:[%s14061_s3 + $0x760] sm:$0xff]  ;;  %14854 = vst [vmem:[#allocation178_spill] sm:$0xff] %v8255_v9  ;;  %v8261_v13 = vld [vmem:[%s14061_s3 + $0x6e8] sm:$0xff] }
 0x1f4   :  { %v4611_v11 = vpop.eup %4610  ;;  %v8217_v5 = vld [vmem:[%s14061_s3 + $0x260] sm:$0xff]  ;;  %14855 = vst [vmem:[#allocation179_spill] sm:$0xff] %v8261_v13 }
 0x1f5   :  { %v8095_v50 = vmul.f32 %v4611_v11, %v1311_v10  ;;  %v8223_v63 = vld [vmem:[%s14061_s3 + $0x720] sm:$0xff]  ;;  %v8229_v11 = vld [vmem:[%s14061_s3 + $0x268] sm:$0xff] }
 0x1f6   :  { %v8235_v10 = vld [vmem:[%s14061_s3 + $0x728] sm:$0xff]  ;;  %v8243_v34 = vld [vmem:[%s14061_s3 + $0x220] sm:$0xff] }
 0x1f7   :  { %1365 = vmatmul.f32.vlgmr.msrb.gmra.mxu0 %v8095_v50  ;;  %1405 = vmatmul.f32.vlgmr.msrb.gmra.mxu2 %v8095_v50  ;;  %v8249_v31 = vld [vmem:[%s14061_s3 + $0x6e0] sm:$0xff] }
 0x1f8   :  { %1509 = vmatpush.msrb.mxu0 %v8103_v4  ;;  %1549 = vmatpush.msrb.mxu2 %v8109_v6  ;;  %v4613_v27 = vpop.eup %4612 }
 0x1f9   :  { %v8124_v22 = vmul.f32 %v4613_v27, %v1326_v55  ;;  %v8267_v27 = vld [vmem:[%s14061_s3 + $0x1e0] sm:$0xff] }
 0x1fa   :  { %1510 = vmatpush.msrb.mxu0 %v8115_v46  ;;  %1550 = vmatpush.msrb.mxu2 %v8121_v8  ;;  %14856 = vst [vmem:[#allocation180_spill] sm:$0xff] %v8267_v27  ;;  %v8273_v55 = vld [vmem:[%s14061_s3 + $0x6a0] sm:$0xff] }
 0x1fb   :  { %14853 = vst [vmem:[#allocation177_spill] sm:$0xff] %v8124_v22  ;;  %1385 = vmatmul.f32.vlgmr.msrb.gmra.mxu1 %v8124_v22  ;;  %1425 = vmatmul.f32.vlgmr.msrb.gmra.mxu3 %v8124_v22 }
 0x1fc   :  { %1511 = vmatpush.msrb.mxu0 %v8129_v53  ;;  %1551 = vmatpush.msrb.mxu2 %v8135_v7  ;;  %14857 = vst [vmem:[#allocation181_spill] sm:$0xff] %v8273_v55 }
 0x1fd   :  { %1529 = vmatpush.msrb.mxu1 %v8149_v2  ;;  %1569 = vmatpush.msrb.mxu3 %v8161_v24 }
 0x1fe   :  { %1512 = vmatpush.msrb.mxu0 %v8143_v44  ;;  %1552 = vmatpush.msrb.mxu2 %v8155_v0 }
 0x1ff   :  { %1445 = vmatmul.f32.vlgmr.msra.gmra.mxu0 %v8095_v50  ;;  %1485 = vmatmul.f32.vlgmr.msra.gmra.mxu2 %v8095_v50 }
 0x200   :  { %1513 = vmatpush.msrb.mxu0 %v8169_v45  ;;  %1530 = vmatpush.msrb.mxu1 %v8175_v56 }
 0x201   :  { %1553 = vmatpush.msrb.mxu2 %v8181_v48  ;;  %1570 = vmatpush.msrb.mxu3 %v8187_v33 }
 0x202   :  { %1514 = vmatpush.msrb.mxu0 %v8193_v25  ;;  %1531 = vmatpush.msrb.mxu1 %v8199_v18 }
 0x203   :  { %1554 = vmatpush.msrb.mxu2 %v8205_v59  ;;  %1571 = vmatpush.msrb.mxu3 %v8211_v16 }
 0x204   :  { %1515 = vmatpush.msrb.mxu0 %v8217_v5  ;;  %1532 = vmatpush.msrb.mxu1 %v8223_v63 }
 0x205   :  { %1555 = vmatpush.msrb.mxu2 %v8229_v11  ;;  %1572 = vmatpush.msrb.mxu3 %v8235_v10 }
 0x206   :  { %1465 = vmatmul.f32.vlgmr.msra.gmra.mxu1 %v8124_v22  ;;  %1505 = vmatmul.f32.vlgmr.msra.gmra.mxu3 %v8124_v22 }
 0x207   :  { %1516 = vmatpush.msrb.mxu0 %v8243_v34  ;;  %1533 = vmatpush.msrb.mxu1 %v8249_v31 }
 0x208   :  { %1556 = vmatpush.msrb.mxu2 %v8255_v9  ;;  %1573 = vmatpush.msrb.mxu3 %v8261_v13  ;;  %v8279_v9 = vld [vmem:[%s14061_s3 + $0x1e8] sm:$0xff] }
 0x209   :  { %1517 = vmatpush.msrb.mxu0 %v8267_v27  ;;  %1534 = vmatpush.msrb.mxu1 %v8273_v55  ;;  %14858 = vst [vmem:[#allocation182_spill] sm:$0xff] %v8279_v9  ;;  %v8285_v13 = vld [vmem:[%s14061_s3 + $0x6a8] sm:$0xff]  ;;  %v8291_v27 = vld [vmem:[%s14061_s3 + $0x1a0] sm:$0xff] }
 0x20a   :  { %1557 = vmatpush.msrb.mxu2 %v8279_v9  ;;  %14859 = vst [vmem:[#allocation183_spill] sm:$0xff] %v8285_v13  ;;  %1574 = vmatpush.msrb.mxu3 %v8285_v13  ;;  %v8297_v55 = vld [vmem:[%s14061_s3 + $0x660] sm:$0xff]  ;;  %v8303_v9 = vld [vmem:[%s14061_s3 + $0x1a8] sm:$0xff] }
 0x20b   :  { %14860 = vst [vmem:[#allocation184_spill] sm:$0xff] %v8291_v27  ;;  %1518 = vmatpush.msrb.mxu0 %v8291_v27  ;;  %1535 = vmatpush.msrb.mxu1 %v8297_v55  ;;  %v8309_v13 = vld [vmem:[%s14061_s3 + $0x668] sm:$0xff]  ;;  %v8315_v27 = vld [vmem:[%s14061_s3 + $0x160] sm:$0xff] }
 0x20c   :  { %14861 = vst [vmem:[#allocation185_spill] sm:$0xff] %v8297_v55  ;;  %1558 = vmatpush.msrb.mxu2 %v8303_v9  ;;  %1575 = vmatpush.msrb.mxu3 %v8309_v13  ;;  %v8321_v55 = vld [vmem:[%s14061_s3 + $0x620] sm:$0xff] }
 0x20d   :  { %14862 = vst [vmem:[#allocation186_spill] sm:$0xff] %v8303_v9  ;;  %1519 = vmatpush.msrb.mxu0 %v8315_v27  ;;  %1536 = vmatpush.msrb.mxu1 %v8321_v55  ;;  %v8327_v9 = vld [vmem:[%s14061_s3 + $0x168] sm:$0xff] }
 0x20e   :  { %14863 = vst [vmem:[#allocation187_spill] sm:$0xff] %v8309_v13  ;;  %1559 = vmatpush.msrb.mxu2 %v8327_v9  ;;  %v8333_v13 = vld [vmem:[%s14061_s3 + $0x628] sm:$0xff] }
 0x20f   :  { %14864 = vst [vmem:[#allocation188_spill] sm:$0xff] %v8315_v27  ;;  %1576 = vmatpush.msrb.mxu3 %v8333_v13  ;;  %v8339_v27 = vld [vmem:[%s14061_s3 + $0x120] sm:$0xff] }
 0x210   :  { %14865 = vst [vmem:[#allocation189_spill] sm:$0xff] %v8321_v55  ;;  %1520 = vmatpush.msrb.mxu0 %v8339_v27  ;;  %v8345_v55 = vld [vmem:[%s14061_s3 + $0x5e0] sm:$0xff] }
 0x211   :  { %14866 = vst [vmem:[#allocation190_spill] sm:$0xff] %v8327_v9  ;;  %1537 = vmatpush.msrb.mxu1 %v8345_v55  ;;  %v8351_v9 = vld [vmem:[%s14061_s3 + $0x128] sm:$0xff] }
 0x212   :  { %14867 = vst [vmem:[#allocation191_spill] sm:$0xff] %v8333_v13  ;;  %1560 = vmatpush.msrb.mxu2 %v8351_v9  ;;  %v8357_v13 = vld [vmem:[%s14061_s3 + $0x5e8] sm:$0xff] }
 0x213   :  { %14868 = vst [vmem:[#allocation192_spill] sm:$0xff] %v8339_v27  ;;  %1577 = vmatpush.msrb.mxu3 %v8357_v13  ;;  %v8363_v27 = vld [vmem:[%s14061_s3 + $0xe0] sm:$0xff] }
 0x214   :  { %14869 = vst [vmem:[#allocation193_spill] sm:$0xff] %v8345_v55  ;;  %1521 = vmatpush.msrb.mxu0 %v8363_v27  ;;  %v8369_v55 = vld [vmem:[%s14061_s3 + $0x5a0] sm:$0xff] }
 0x215   :  { %14870 = vst [vmem:[#allocation194_spill] sm:$0xff] %v8351_v9  ;;  %1538 = vmatpush.msrb.mxu1 %v8369_v55  ;;  %v8375_v9 = vld [vmem:[%s14061_s3 + $0xe8] sm:$0xff] }
 0x216   :  { %14871 = vst [vmem:[#allocation195_spill] sm:$0xff] %v8357_v13  ;;  %1561 = vmatpush.msrb.mxu2 %v8375_v9  ;;  %v8381_v13 = vld [vmem:[%s14061_s3 + $0x5a8] sm:$0xff] }
 0x217   :  { %14872 = vst [vmem:[#allocation196_spill] sm:$0xff] %v8363_v27  ;;  %1578 = vmatpush.msrb.mxu3 %v8381_v13  ;;  %v8387_v27 = vld [vmem:[%s14061_s3 + $0xa0] sm:$0xff] }
 0x218   :  { %14873 = vst [vmem:[#allocation197_spill] sm:$0xff] %v8369_v55  ;;  %1522 = vmatpush.msrb.mxu0 %v8387_v27  ;;  %v8393_v55 = vld [vmem:[%s14061_s3 + $0x560] sm:$0xff] }
 0x219   :  { %14874 = vst [vmem:[#allocation198_spill] sm:$0xff] %v8375_v9  ;;  %1539 = vmatpush.msrb.mxu1 %v8393_v55  ;;  %v8399_v9 = vld [vmem:[%s14061_s3 + $0xa8] sm:$0xff] }
 0x21a   :  { %14875 = vst [vmem:[#allocation199_spill] sm:$0xff] %v8381_v13  ;;  %1562 = vmatpush.msrb.mxu2 %v8399_v9  ;;  %v8405_v13 = vld [vmem:[%s14061_s3 + $0x568] sm:$0xff]  ;;  %1523 = vmatpush.msrb.mxu0 %v6912_v43  ;;  %v8431_v43 = vld [vmem:[%s14061_s3 + $0x4e0] sm:$0xff] }
 0x21b   :  { %14876 = vst [vmem:[#allocation200_spill] sm:$0xff] %v8393_v55  ;;  %1579 = vmatpush.msrb.mxu3 %v8405_v13  ;;  %v8412_v55 = vld [vmem:[%s14061_s3 + $0x520] sm:$0xff] }
 0x21c   :  { %14877 = vst [vmem:[#allocation201_spill] sm:$0xff] %v8399_v9  ;;  %1540 = vmatpush.msrb.mxu1 %v8412_v55  ;;  %v8418_v9 = vld [vmem:[%s14061_s3 + $0x68] sm:$0xff]  ;;  %1524 = vmatpush.msrb.mxu0 %v6926_v38  ;;  %v8448_v38 = vld [vmem:[%s14061_s3 + $0x4a0] sm:$0xff] }
 0x21d   :  { %14878 = vst [vmem:[#allocation202_spill] sm:$0xff] %v8405_v13  ;;  %1563 = vmatpush.msrb.mxu2 %v8418_v9  ;;  %v8424_v13 = vld [vmem:[%s14061_s3 + $0x528] sm:$0xff]  ;;  %1525 = vmatmul.f32.vlgmr.msrb.gmra.mxu0 %v8095_v50 }
 0x21e   :  { %14879 = vst [vmem:[#allocation203_spill] sm:$0xff] %v8418_v9  ;;  %1580 = vmatpush.msrb.mxu3 %v8424_v13  ;;  %1541 = vmatpush.msrb.mxu1 %v8431_v43  ;;  %v8438_v9 = vld [vmem:[%s14061_s3 + $0x4e8] sm:$0xff] }
 0x21f   :  { %1564 = vmatpush.msrb.mxu2 %v6931_v39  ;;  %1589 = vmatpush.msra.mxu0 %v6939_v49  ;;  %v8454_v39 = vld [vmem:[%s14061_s3 + $0x4a8] sm:$0xff]  ;;  %v8462_v49 = vld [vmem:[%s14061_s3 + $0x460] sm:$0xff] }
 0x220   :  { %1581 = vmatpush.msrb.mxu3 %v8438_v9  ;;  %1565 = vmatmul.f32.vlgmr.msrb.gmra.mxu2 %v8095_v50 }
 0x221   :  { %1629 = vmatpush.msra.mxu2 %v6944_v52  ;;  %1542 = vmatpush.msrb.mxu1 %v8448_v38  ;;  %v8468_v52 = vld [vmem:[%s14061_s3 + $0x468] sm:$0xff] }
 0x222   :  { %1582 = vmatpush.msrb.mxu3 %v8454_v39  ;;  %1590 = vmatpush.msra.mxu0 %v6959_v20  ;;  %14880 = vst [vmem:[#allocation204_spill] sm:$0xff] %v8468_v52  ;;  %v8476_v20 = vld [vmem:[%s14061_s3 + $0x420] sm:$0xff] }
 0x223   :  { %1630 = vmatpush.msra.mxu2 %v6964_v15  ;;  %1543 = vmatpush.msrb.mxu1 %v8462_v49  ;;  %14881 = vst [vmem:[#allocation205_spill] sm:$0xff] %v8476_v20  ;;  %v8482_v15 = vld [vmem:[%s14061_s3 + $0x428] sm:$0xff] }
 0x224   :  { %1583 = vmatpush.msrb.mxu3 %v8468_v52  ;;  %1591 = vmatpush.msra.mxu0 %v6977_v32  ;;  %14882 = vst [vmem:[#allocation206_spill] sm:$0xff] %v8482_v15  ;;  %v8491_v32 = vld [vmem:[%s14061_s3 + $0x7f0] sm:$0xff] }
 0x225   :  { %1631 = vmatpush.msra.mxu2 %v6982_v26  ;;  %1544 = vmatpush.msrb.mxu1 %v8476_v20  ;;  %14883 = vst [vmem:[#allocation207_spill] sm:$0xff] %v8491_v32  ;;  %v8498_v26 = vld [vmem:[%s14061_s3 + $0x7f8] sm:$0xff] }
 0x226   :  { %1584 = vmatpush.msrb.mxu3 %v8482_v15  ;;  %1545 = vmatmul.f32.vlgmr.msrb.gmra.mxu1 %v8124_v22  ;;  %14884 = vst [vmem:[#allocation208_spill] sm:$0xff] %v8498_v26 }
 0x227   :  { %1585 = vmatmul.f32.vlgmr.msrb.gmra.mxu3 %v8124_v22  ;;  %1592 = vmatpush.msra.mxu0 %v6995_v35  ;;  %v8505_v35 = vld [vmem:[%s14061_s3 + $0x7b0] sm:$0xff] }
 0x228   :  { %1609 = vmatpush.msra.mxu1 %v8491_v32  ;;  %1632 = vmatpush.msra.mxu2 %v7000_v17  ;;  %14885 = vst [vmem:[#allocation209_spill] sm:$0xff] %v8505_v35  ;;  %v8512_v17 = vld [vmem:[%s14061_s3 + $0x7b8] sm:$0xff] }
 0x229   :  { %1649 = vmatpush.msra.mxu3 %v8498_v26  ;;  %1593 = vmatpush.msra.mxu0 %v7013_v47  ;;  %14886 = vst [vmem:[#allocation210_spill] sm:$0xff] %v8512_v17  ;;  %v8519_v47 = vld [vmem:[%s14061_s3 + $0x770] sm:$0xff] }
 0x22a   :  { %1610 = vmatpush.msra.mxu1 %v8505_v35  ;;  %1633 = vmatpush.msra.mxu2 %v7018_v37  ;;  %14887 = vst [vmem:[#allocation211_spill] sm:$0xff] %v8519_v47  ;;  %v8526_v37 = vld [vmem:[%s14061_s3 + $0x778] sm:$0xff]  ;;  %v15052_v26 = vld [vmem:[#allocation174_spill] sm:$0xff] }
 0x22b   :  { %1650 = vmatpush.msra.mxu3 %v8512_v17  ;;  %1594 = vmatpush.msra.mxu0 %v7031_v61  ;;  %14888 = vst [vmem:[#allocation212_spill] sm:$0xff] %v8526_v37  ;;  %v8533_v61 = vld [vmem:[%s14061_s3 + $0x730] sm:$0xff] }
 0x22c   :  { %1611 = vmatpush.msra.mxu1 %v8519_v47  ;;  %1634 = vmatpush.msra.mxu2 %v7036_v36  ;;  %14889 = vst [vmem:[#allocation213_spill] sm:$0xff] %v8533_v61  ;;  %v8540_v36 = vld [vmem:[%s14061_s3 + $0x738] sm:$0xff] }
 0x22d   :  { %1651 = vmatpush.msra.mxu3 %v8526_v37  ;;  %1595 = vmatpush.msra.mxu0 %v7049_v14  ;;  %14890 = vst [vmem:[#allocation214_spill] sm:$0xff] %v8540_v36  ;;  %v8547_v14 = vld [vmem:[%s14061_s3 + $0x6f0] sm:$0xff] }
 0x22e   :  { %1612 = vmatpush.msra.mxu1 %v8533_v61  ;;  %1635 = vmatpush.msra.mxu2 %v7054_v21  ;;  %14891 = vst [vmem:[#allocation215_spill] sm:$0xff] %v8547_v14  ;;  %v8554_v21 = vld [vmem:[%s14061_s3 + $0x6f8] sm:$0xff]  ;;  %v15051_v61 = vld [vmem:[#allocation21_spill] sm:$0xff] }
 0x22f   :  { %1652 = vmatpush.msra.mxu3 %v8540_v36  ;;  %1596 = vmatpush.msra.mxu0 %v7067_v29  ;;  %14892 = vst [vmem:[#allocation216_spill] sm:$0xff] %v8554_v21  ;;  %v8561_v29 = vld [vmem:[%s14061_s3 + $0x6b0] sm:$0xff] }
 0x230   :  { %1613 = vmatpush.msra.mxu1 %v8547_v14  ;;  %1636 = vmatpush.msra.mxu2 %v7072_v30  ;;  %14893 = vst [vmem:[#allocation217_spill] sm:$0xff] %v8561_v29  ;;  %v8568_v30 = vld [vmem:[%s14061_s3 + $0x6b8] sm:$0xff] }
 0x231   :  { %1653 = vmatpush.msra.mxu3 %v8554_v21  ;;  %1597 = vmatpush.msra.mxu0 %v7085_v42  ;;  %14894 = vst [vmem:[#allocation218_spill] sm:$0xff] %v8568_v30  ;;  %v8575_v42 = vld [vmem:[%s14061_s3 + $0x670] sm:$0xff] }
 0x232   :  { %1614 = vmatpush.msra.mxu1 %v8561_v29  ;;  %1637 = vmatpush.msra.mxu2 %v7090_v57  ;;  %14895 = vst [vmem:[#allocation219_spill] sm:$0xff] %v8575_v42  ;;  %v8582_v57 = vld [vmem:[%s14061_s3 + $0x678] sm:$0xff] }
 0x233   :  { %1654 = vmatpush.msra.mxu3 %v8568_v30  ;;  %1598 = vmatpush.msra.mxu0 %v7097_v54  ;;  %14896 = vst [vmem:[#allocation220_spill] sm:$0xff] %v8582_v57  ;;  %v8589_v54 = vld [vmem:[%s14061_s3 + $0x630] sm:$0xff]  ;;  %v15049_v30 = vld [vmem:[#allocation15_spill] sm:$0xff] }
 0x234   :  { %1615 = vmatpush.msra.mxu1 %v8575_v42  ;;  %1638 = vmatpush.msra.mxu2 %v7102_v12  ;;  %14897 = vst [vmem:[#allocation221_spill] sm:$0xff] %v8589_v54  ;;  %v8596_v12 = vld [vmem:[%s14061_s3 + $0x638] sm:$0xff]  ;;  %v15048_v42 = vld [vmem:[#allocation9_spill] sm:$0xff] }
 0x235   :  { %1655 = vmatpush.msra.mxu3 %v8582_v57  ;;  %1599 = vmatpush.msra.mxu0 %v7109_v23  ;;  %14898 = vst [vmem:[#allocation222_spill] sm:$0xff] %v8596_v12  ;;  %v8603_v23 = vld [vmem:[%s14061_s3 + $0x5f0] sm:$0xff]  ;;  %v443_v29 = vadd.f32 %v15049_v30, %v15048_v42  ;;  %v15054_v30 = vld [vmem:[#allocation11_spill] sm:$0xff] }
 0x236   :  { %1616 = vmatpush.msra.mxu1 %v8589_v54  ;;  %1639 = vmatpush.msra.mxu2 %v7114_v40  ;;  %14899 = vst [vmem:[#allocation223_spill] sm:$0xff] %v8603_v23  ;;  %v8610_v40 = vld [vmem:[%s14061_s3 + $0x5f8] sm:$0xff] }
 0x237   :  { %1656 = vmatpush.msra.mxu3 %v8596_v12  ;;  %1600 = vmatpush.msra.mxu0 %v7123_v28  ;;  %14900 = vst [vmem:[#allocation224_spill] sm:$0xff] %v8610_v40  ;;  %v8617_v28 = vld [vmem:[%s14061_s3 + $0x5b0] sm:$0xff] }
 0x238   :  { %1617 = vmatpush.msra.mxu1 %v8603_v23  ;;  %1640 = vmatpush.msra.mxu2 %v7128_v60  ;;  %14901 = vst [vmem:[#allocation225_spill] sm:$0xff] %v8617_v28  ;;  %v8624_v60 = vld [vmem:[%s14061_s3 + $0x5b8] sm:$0xff]  ;;  %v14931_v23 = vld [vmem:[#allocation66_spill] sm:$0xff] }
 0x239   :  { %1657 = vmatpush.msra.mxu3 %v8610_v40  ;;  %1601 = vmatpush.msra.mxu0 %v7147_v51  ;;  %14902 = vst [vmem:[#allocation226_spill] sm:$0xff] %v8624_v60  ;;  %v8631_v51 = vld [vmem:[%s14061_s3 + $0x570] sm:$0xff]  ;;  %v14929_v40 = vld [vmem:[#allocation35_spill] sm:$0xff] }
 0x23a   :  { %1618 = vmatpush.msra.mxu1 %v8617_v28  ;;  %1641 = vmatpush.msra.mxu2 %v7152_v3  ;;  %14903 = vst [vmem:[#allocation227_spill] sm:$0xff] %v8631_v51  ;;  %v8638_v3 = vld [vmem:[%s14061_s3 + $0x578] sm:$0xff]  ;;  %v14928_v28 = vld [vmem:[#allocation34_spill] sm:$0xff] }
 0x23b   :  { %1658 = vmatpush.msra.mxu3 %v8624_v60  ;;  %1602 = vmatpush.msra.mxu0 %v7171_v1  ;;  %14904 = vst [vmem:[#allocation228_spill] sm:$0xff] %v8638_v3  ;;  %v8645_v1 = vld [vmem:[%s14061_s3 + $0x530] sm:$0xff] }
 0x23c   :  { %1619 = vmatpush.msra.mxu1 %v8631_v51  ;;  %1642 = vmatpush.msra.mxu2 %v7176_v58  ;;  %14905 = vst [vmem:[#allocation229_spill] sm:$0xff] %v8645_v1  ;;  %v14906_v60 = vld [vmem:[#allocation38_spill] sm:$0xff]  ;;  %v8652_v58 = vld [vmem:[%s14061_s3 + $0x538] sm:$0xff]  ;;  %v14908_v51 = vld [vmem:[#allocation41_spill] sm:$0xff] }
 0x23d   :  { %1659 = vmatpush.msra.mxu3 %v8638_v3  ;;  %1603 = vmatpush.msra.mxu0 %v7195_v41  ;;  %14907 = vst [vmem:[#allocation38_spill] sm:$0xff] %v8652_v58  ;;  %v8659_v41 = vld [vmem:[%s14061_s3 + $0x4f0] sm:$0xff] }
 0x23e   :  { %1620 = vmatpush.msra.mxu1 %v8645_v1  ;;  %1643 = vmatpush.msra.mxu2 %v14906_v60  ;;  %14909 = vst [vmem:[#allocation41_spill] sm:$0xff] %v8659_v41  ;;  %v14910_v3 = vld [vmem:[#allocation42_spill] sm:$0xff]  ;;  %v8666_v60 = vld [vmem:[%s14061_s3 + $0x4f8] sm:$0xff] }
 0x23f   :  { %1660 = vmatpush.msra.mxu3 %v8652_v58  ;;  %1604 = vmatpush.msra.mxu0 %v14908_v51  ;;  %14911 = vst [vmem:[#allocation42_spill] sm:$0xff] %v8666_v60  ;;  %v8674_v51 = vld [vmem:[%s14061_s3 + $0x4b0] sm:$0xff]  ;;  %v14918_v58 = vld [vmem:[#allocation51_spill] sm:$0xff] }
 0x240   :  { %1621 = vmatpush.msra.mxu1 %v8659_v41  ;;  %1644 = vmatpush.msra.mxu2 %v14910_v3  ;;  %14912 = vst [vmem:[#allocation230_spill] sm:$0xff] %v8674_v51  ;;  %v8680_v3 = vld [vmem:[%s14061_s3 + $0x4b8] sm:$0xff]  ;;  %v14927_v1 = vld [vmem:[#allocation62_spill] sm:$0xff] }
 0x241   :  { %1661 = vmatpush.msra.mxu3 %v8666_v60  ;;  %1605 = vmatmul.f32.vlgmr.msra.gmra.mxu0 %v8095_v50  ;;  %14913 = vst [vmem:[#allocation231_spill] sm:$0xff] %v8680_v3  ;;  %v14914_v41 = vld [vmem:[#allocation47_spill] sm:$0xff]  ;;  %v14915_v60 = vld [vmem:[#allocation48_spill] sm:$0xff] }
 0x242   :  { %1645 = vmatmul.f32.vlgmr.msra.gmra.mxu2 %v8095_v50  ;;  %1622 = vmatpush.msra.mxu1 %v8674_v51  ;;  %v8688_v50 = vld [vmem:[%s14061_s3 + $0x470] sm:$0xff]  ;;  %v8694_v51 = vld [vmem:[%s14061_s3 + $0x478] sm:$0xff] }
 0x243   :  { %1662 = vmatpush.msra.mxu3 %v8680_v3  ;;  %1812 = vmatpush.msrb.mxu0 %v14914_v41  ;;  %14916 = vst [vmem:[#allocation47_spill] sm:$0xff] %v8688_v50  ;;  %v14919_v3 = vld [vmem:[#allocation52_spill] sm:$0xff]  ;;  %v8702_v41 = vld [vmem:[%s14061_s3 + $0x430] sm:$0xff] }
 0x244   :  { %1852 = vmatpush.msrb.mxu2 %v14915_v60  ;;  %1623 = vmatpush.msra.mxu1 %v8688_v50  ;;  %14917 = vst [vmem:[#allocation48_spill] sm:$0xff] %v8694_v51  ;;  %v8708_v60 = vld [vmem:[%s14061_s3 + $0x438] sm:$0xff]  ;;  %v14925_v50 = vld [vmem:[#allocation33_spill] sm:$0xff] }
 0x245   :  { %1663 = vmatpush.msra.mxu3 %v8694_v51  ;;  %1813 = vmatpush.msrb.mxu0 %v14918_v58  ;;  %14920 = vst [vmem:[#allocation51_spill] sm:$0xff] %v8702_v41  ;;  %v14922_v58 = vld [vmem:[#allocation55_spill] sm:$0xff]  ;;  %v14924_v51 = vld [vmem:[#allocation32_spill] sm:$0xff] }
 0x246   :  { %1853 = vmatpush.msrb.mxu2 %v14919_v3  ;;  %1624 = vmatpush.msra.mxu1 %v8702_v41  ;;  %14921 = vst [vmem:[#allocation52_spill] sm:$0xff] %v8708_v60  ;;  %v14923_v3 = vld [vmem:[#allocation56_spill] sm:$0xff]  ;;  %v14926_v41 = vld [vmem:[#allocation61_spill] sm:$0xff] }
 0x247   :  { %1664 = vmatpush.msra.mxu3 %v8708_v60  ;;  %1625 = vmatmul.f32.vlgmr.msra.gmra.mxu1 %v8124_v22  ;;  %v14930_v60 = vld [vmem:[#allocation65_spill] sm:$0xff] }
 0x248   :  { %1665 = vmatmul.f32.vlgmr.msra.gmra.mxu3 %v8124_v22  ;;  %1814 = vmatpush.msrb.mxu0 %v14922_v58  ;;  %v14932_v22 = vld [vmem:[#allocation36_spill] sm:$0xff]  ;;  %v14933_v58 = vld [vmem:[#allocation37_spill] sm:$0xff] }
 0x249   :  { %1854 = vmatpush.msrb.mxu2 %v14923_v3  ;;  %1832 = vmatpush.msrb.mxu1 %v14924_v51  ;;  %v14934_v3 = vld [vmem:[#allocation69_spill] sm:$0xff]  ;;  %v14935_v51 = vld [vmem:[#allocation70_spill] sm:$0xff] }
 0x24a   :  { %1872 = vmatpush.msrb.mxu3 %v14925_v50  ;;  %1815 = vmatpush.msrb.mxu0 %v14926_v41  ;;  %v14936_v50 = vld [vmem:[#allocation39_spill] sm:$0xff]  ;;  %v14937_v41 = vld [vmem:[#allocation40_spill] sm:$0xff] }
 0x24b   :  { %1855 = vmatpush.msrb.mxu2 %v14927_v1  ;;  %1833 = vmatpush.msrb.mxu1 %v14928_v28  ;;  %v14938_v1 = vld [vmem:[#allocation75_spill] sm:$0xff]  ;;  %v14939_v28 = vld [vmem:[#allocation76_spill] sm:$0xff] }
 0x24c   :  { %1873 = vmatpush.msrb.mxu3 %v14929_v40  ;;  %1816 = vmatpush.msrb.mxu0 %v14930_v60  ;;  %v14940_v40 = vld [vmem:[#allocation43_spill] sm:$0xff]  ;;  %v14941_v60 = vld [vmem:[#allocation44_spill] sm:$0xff] }
 0x24d   :  { %1856 = vmatpush.msrb.mxu2 %v14931_v23  ;;  %1834 = vmatpush.msrb.mxu1 %v14932_v22  ;;  %v14942_v23 = vld [vmem:[#allocation79_spill] sm:$0xff]  ;;  %v14943_v22 = vld [vmem:[#allocation80_spill] sm:$0xff] }
 0x24e   :  { %1874 = vmatpush.msrb.mxu3 %v14933_v58  ;;  %1817 = vmatpush.msrb.mxu0 %v14934_v3  ;;  %v14944_v58 = vld [vmem:[#allocation45_spill] sm:$0xff]  ;;  %v14945_v3 = vld [vmem:[#allocation46_spill] sm:$0xff] }
 0x24f   :  { %1857 = vmatpush.msrb.mxu2 %v14935_v51  ;;  %1835 = vmatpush.msrb.mxu1 %v14936_v50  ;;  %v14946_v51 = vld [vmem:[#allocation85_spill] sm:$0xff]  ;;  %v14947_v50 = vld [vmem:[#allocation86_spill] sm:$0xff] }
 0x250   :  { %1875 = vmatpush.msrb.mxu3 %v14937_v41  ;;  %1818 = vmatpush.msrb.mxu0 %v14938_v1  ;;  %v14948_v41 = vld [vmem:[#allocation49_spill] sm:$0xff]  ;;  %v14949_v1 = vld [vmem:[#allocation50_spill] sm:$0xff] }
 0x251   :  { %1858 = vmatpush.msrb.mxu2 %v14939_v28  ;;  %1836 = vmatpush.msrb.mxu1 %v14940_v40  ;;  %v14950_v28 = vld [vmem:[#allocation89_spill] sm:$0xff]  ;;  %v14951_v40 = vld [vmem:[#allocation90_spill] sm:$0xff] }
 0x252   :  { %1876 = vmatpush.msrb.mxu3 %v14941_v60  ;;  %1819 = vmatpush.msrb.mxu0 %v14942_v23  ;;  %v14952_v60 = vld [vmem:[#allocation53_spill] sm:$0xff]  ;;  %v14953_v23 = vld [vmem:[#allocation54_spill] sm:$0xff] }
 0x253   :  { %1859 = vmatpush.msrb.mxu2 %v14943_v22  ;;  %1837 = vmatpush.msrb.mxu1 %v14944_v58  ;;  %v14954_v22 = vld [vmem:[#allocation93_spill] sm:$0xff]  ;;  %v14955_v58 = vld [vmem:[#allocation94_spill] sm:$0xff] }
 0x254   :  { %1877 = vmatpush.msrb.mxu3 %v14945_v3  ;;  %1820 = vmatpush.msrb.mxu0 %v14946_v51  ;;  %v14956_v3 = vld [vmem:[#allocation57_spill] sm:$0xff]  ;;  %v14957_v51 = vld [vmem:[#allocation58_spill] sm:$0xff] }
 0x255   :  { %1860 = vmatpush.msrb.mxu2 %v14947_v50  ;;  %1838 = vmatpush.msrb.mxu1 %v14948_v41  ;;  %v14958_v50 = vld [vmem:[#allocation99_spill] sm:$0xff]  ;;  %v14959_v41 = vld [vmem:[#allocation100_spill] sm:$0xff] }
 0x256   :  { %1878 = vmatpush.msrb.mxu3 %v14949_v1  ;;  %1821 = vmatpush.msrb.mxu0 %v14950_v28  ;;  %v14960_v1 = vld [vmem:[#allocation63_spill] sm:$0xff]  ;;  %v14961_v28 = vld [vmem:[#allocation64_spill] sm:$0xff] }
 0x257   :  { %1861 = vmatpush.msrb.mxu2 %v14951_v40  ;;  %1839 = vmatpush.msrb.mxu1 %v14952_v60  ;;  %v14962_v40 = vld [vmem:[#allocation103_spill] sm:$0xff]  ;;  %v14963_v60 = vld [vmem:[#allocation104_spill] sm:$0xff] }
 0x258   :  { %1879 = vmatpush.msrb.mxu3 %v14953_v23  ;;  %1822 = vmatpush.msrb.mxu0 %v14954_v22  ;;  %v14964_v23 = vld [vmem:[#allocation67_spill] sm:$0xff]  ;;  %v14965_v22 = vld [vmem:[#allocation68_spill] sm:$0xff] }
 0x259   :  { %1862 = vmatpush.msrb.mxu2 %v14955_v58  ;;  %1840 = vmatpush.msrb.mxu1 %v14956_v3  ;;  %v14966_v58 = vld [vmem:[#allocation109_spill] sm:$0xff]  ;;  %v14967_v3 = vld [vmem:[#allocation110_spill] sm:$0xff] }
 0x25a   :  { %1880 = vmatpush.msrb.mxu3 %v14957_v51  ;;  %1823 = vmatpush.msrb.mxu0 %v14958_v50  ;;  %v14968_v51 = vld [vmem:[#allocation71_spill] sm:$0xff]  ;;  %v14969_v50 = vld [vmem:[#allocation72_spill] sm:$0xff] }
 0x25b   :  { %1863 = vmatpush.msrb.mxu2 %v14959_v41  ;;  %1841 = vmatpush.msrb.mxu1 %v14960_v1  ;;  %v14970_v41 = vld [vmem:[#allocation113_spill] sm:$0xff]  ;;  %v14971_v1 = vld [vmem:[#allocation114_spill] sm:$0xff] }
 0x25c   :  { %1881 = vmatpush.msrb.mxu3 %v14961_v28  ;;  %1824 = vmatpush.msrb.mxu0 %v14962_v40  ;;  %v14972_v28 = vld [vmem:[#allocation77_spill] sm:$0xff]  ;;  %v14973_v40 = vld [vmem:[#allocation78_spill] sm:$0xff] }
 0x25d   :  { %1864 = vmatpush.msrb.mxu2 %v14963_v60  ;;  %1842 = vmatpush.msrb.mxu1 %v14964_v23  ;;  %v14974_v60 = vld [vmem:[#allocation117_spill] sm:$0xff]  ;;  %v14975_v23 = vld [vmem:[#allocation118_spill] sm:$0xff] }
 0x25e   :  { %1882 = vmatpush.msrb.mxu3 %v14965_v22  ;;  %1825 = vmatpush.msrb.mxu0 %v14966_v58  ;;  %v14976_v22 = vld [vmem:[#allocation119_spill] sm:$0xff]  ;;  %v14977_v58 = vld [vmem:[#allocation120_spill] sm:$0xff] }
 0x25f   :  { %1865 = vmatpush.msrb.mxu2 %v14967_v3  ;;  %1843 = vmatpush.msrb.mxu1 %v14968_v51  ;;  %v14978_v3 = vld [vmem:[#allocation81_spill] sm:$0xff]  ;;  %v14979_v51 = vld [vmem:[#allocation82_spill] sm:$0xff] }
 0x260   :  { %1883 = vmatpush.msrb.mxu3 %v14969_v50  ;;  %1826 = vmatpush.msrb.mxu0 %v14970_v41  ;;  %v14980_v50 = vld [vmem:[#allocation125_spill] sm:$0xff]  ;;  %v14981_v41 = vld [vmem:[#allocation126_spill] sm:$0xff] }
 0x261   :  { %1866 = vmatpush.msrb.mxu2 %v14971_v1  ;;  %1844 = vmatpush.msrb.mxu1 %v14972_v28  ;;  %v14982_v1 = vld [vmem:[#allocation87_spill] sm:$0xff]  ;;  %v14983_v28 = vld [vmem:[#allocation88_spill] sm:$0xff] }
 0x262   :  { %1884 = vmatpush.msrb.mxu3 %v14973_v40  ;;  %1827 = vmatpush.msrb.mxu0 %v14974_v60  ;;  %v14984_v40 = vld [vmem:[#allocation129_spill] sm:$0xff]  ;;  %v14985_v60 = vld [vmem:[#allocation130_spill] sm:$0xff] }
 0x263   :  { %1867 = vmatpush.msrb.mxu2 %v14975_v23  ;;  %1845 = vmatpush.msrb.mxu1 %v14978_v3  ;;  %v14986_v23 = vld [vmem:[#allocation91_spill] sm:$0xff] }
 0x264   :  { %1892 = vmatpush.msra.mxu0 %v14976_v22  ;;  %1885 = vmatpush.msrb.mxu3 %v14979_v51  ;;  %v14987_v22 = vld [vmem:[#allocation92_spill] sm:$0xff]  ;;  %v14989_v3 = vld [vmem:[#allocation95_spill] sm:$0xff] }
 0x265   :  { %1932 = vmatpush.msra.mxu2 %v14977_v58  ;;  %1846 = vmatpush.msrb.mxu1 %v14982_v1  ;;  %v14988_v58 = vld [vmem:[#allocation135_spill] sm:$0xff]  ;;  %v14990_v51 = vld [vmem:[#allocation136_spill] sm:$0xff]  ;;  %v14993_v1 = vld [vmem:[#allocation101_spill] sm:$0xff] }
 0x266   :  { %1893 = vmatpush.msra.mxu0 %v14980_v50  ;;  %1886 = vmatpush.msrb.mxu3 %v14983_v28  ;;  %v14991_v50 = vld [vmem:[#allocation96_spill] sm:$0xff] }
 0x267   :  { %1933 = vmatpush.msra.mxu2 %v14981_v41  ;;  %1847 = vmatpush.msrb.mxu1 %v14986_v23  ;;  %v14992_v41 = vld [vmem:[#allocation139_spill] sm:$0xff]  ;;  %v14994_v28 = vld [vmem:[#allocation140_spill] sm:$0xff]  ;;  %v14997_v23 = vld [vmem:[#allocation105_spill] sm:$0xff] }
 0x268   :  { %1894 = vmatpush.msra.mxu0 %v14984_v40  ;;  %1887 = vmatpush.msrb.mxu3 %v14987_v22  ;;  %v14995_v40 = vld [vmem:[#allocation102_spill] sm:$0xff]  ;;  %v14998_v22 = vld [vmem:[#allocation144_spill] sm:$0xff] }
 0x269   :  { %1934 = vmatpush.msra.mxu2 %v14985_v60  ;;  %1912 = vmatpush.msra.mxu1 %v14989_v3  ;;  %v14996_v60 = vld [vmem:[#allocation143_spill] sm:$0xff]  ;;  %v15000_v3 = vld [vmem:[#allocation149_spill] sm:$0xff] }
 0x26a   :  { %1895 = vmatpush.msra.mxu0 %v14988_v58  ;;  %1952 = vmatpush.msra.mxu3 %v14991_v50  ;;  %v14999_v58 = vld [vmem:[#allocation106_spill] sm:$0xff] }
 0x26b   :  { %1935 = vmatpush.msra.mxu2 %v14990_v51  ;;  %1913 = vmatpush.msra.mxu1 %v14993_v1  ;;  %v15001_v51 = vld [vmem:[#allocation111_spill] sm:$0xff]  ;;  %v15002_v50 = vld [vmem:[#allocation150_spill] sm:$0xff]  ;;  %v15004_v1 = vld [vmem:[#allocation152_spill] sm:$0xff] }
 0x26c   :  { %1896 = vmatpush.msra.mxu0 %v14992_v41  ;;  %1953 = vmatpush.msra.mxu3 %v14995_v40  ;;  %v15003_v41 = vld [vmem:[#allocation112_spill] sm:$0xff]  ;;  %v15006_v40 = vld [vmem:[#allocation153_spill] sm:$0xff] }
 0x26d   :  { %1936 = vmatpush.msra.mxu2 %v14994_v28  ;;  %1914 = vmatpush.msra.mxu1 %v14997_v23  ;;  %v15005_v28 = vld [vmem:[#allocation115_spill] sm:$0xff]  ;;  %v15008_v23 = vld [vmem:[#allocation156_spill] sm:$0xff] }
 0x26e   :  { %1897 = vmatpush.msra.mxu0 %v14996_v60  ;;  %1954 = vmatpush.msra.mxu3 %v14999_v58  ;;  %v15007_v60 = vld [vmem:[#allocation116_spill] sm:$0xff]  ;;  %v15010_v58 = vld [vmem:[#allocation157_spill] sm:$0xff] }
 0x26f   :  { %1937 = vmatpush.msra.mxu2 %v14998_v22  ;;  %1915 = vmatpush.msra.mxu1 %v15001_v51  ;;  %v15009_v22 = vld [vmem:[#allocation123_spill] sm:$0xff]  ;;  %v15012_v51 = vld [vmem:[#allocation158_spill] sm:$0xff] }
 0x270   :  { %1898 = vmatpush.msra.mxu0 %v15000_v3  ;;  %1955 = vmatpush.msra.mxu3 %v15003_v41  ;;  %v15011_v3 = vld [vmem:[#allocation124_spill] sm:$0xff]  ;;  %v15014_v41 = vld [vmem:[#allocation159_spill] sm:$0xff] }
 0x271   :  { %1938 = vmatpush.msra.mxu2 %v15002_v50  ;;  %1916 = vmatpush.msra.mxu1 %v15005_v28  ;;  %v15013_v50 = vld [vmem:[#allocation127_spill] sm:$0xff]  ;;  %v15016_v28 = vld [vmem:[#allocation160_spill] sm:$0xff] }
 0x272   :  { %1899 = vmatpush.msra.mxu0 %v15004_v1  ;;  %1956 = vmatpush.msra.mxu3 %v15007_v60  ;;  %v15015_v1 = vld [vmem:[#allocation128_spill] sm:$0xff]  ;;  %v15018_v60 = vld [vmem:[#allocation161_spill] sm:$0xff] }
 0x273   :  { %1939 = vmatpush.msra.mxu2 %v15006_v40  ;;  %1917 = vmatpush.msra.mxu1 %v15009_v22  ;;  %v15017_v40 = vld [vmem:[#allocation133_spill] sm:$0xff]  ;;  %v15020_v22 = vld [vmem:[#allocation164_spill] sm:$0xff] }
 0x274   :  { %1900 = vmatpush.msra.mxu0 %v15008_v23  ;;  %1957 = vmatpush.msra.mxu3 %v15011_v3  ;;  %v15019_v23 = vld [vmem:[#allocation134_spill] sm:$0xff]  ;;  %v15022_v3 = vld [vmem:[#allocation165_spill] sm:$0xff] }
 0x275   :  { %1940 = vmatpush.msra.mxu2 %v15010_v58  ;;  %1918 = vmatpush.msra.mxu1 %v15013_v50  ;;  %v15021_v58 = vld [vmem:[#allocation137_spill] sm:$0xff]  ;;  %v15024_v50 = vld [vmem:[#allocation166_spill] sm:$0xff] }
 0x276   :  { %1901 = vmatpush.msra.mxu0 %v15012_v51  ;;  %1958 = vmatpush.msra.mxu3 %v15015_v1  ;;  %v15023_v51 = vld [vmem:[#allocation138_spill] sm:$0xff]  ;;  %v15026_v1 = vld [vmem:[#allocation167_spill] sm:$0xff] }
 0x277   :  { %1941 = vmatpush.msra.mxu2 %v15014_v41  ;;  %1919 = vmatpush.msra.mxu1 %v15017_v40  ;;  %v15025_v41 = vld [vmem:[#allocation141_spill] sm:$0xff]  ;;  %v15028_v40 = vld [vmem:[#allocation170_spill] sm:$0xff] }
 0x278   :  { %1902 = vmatpush.msra.mxu0 %v15016_v28  ;;  %1959 = vmatpush.msra.mxu3 %v15019_v23  ;;  %v15027_v28 = vld [vmem:[#allocation142_spill] sm:$0xff]  ;;  %v8824_v23 = vld [vmem:[%s14061_s3 + $0x98] sm:$0xff] }
 0x279   :  { %1942 = vmatpush.msra.mxu2 %v15018_v60  ;;  %1920 = vmatpush.msra.mxu1 %v15021_v58  ;;  %v15029_v60 = vld [vmem:[#allocation147_spill] sm:$0xff]  ;;  %15030 = vst [vmem:[#allocation55_spill] sm:$0xff] %v8824_v23  ;;  %v8831_v58 = vld [vmem:[%s14061_s3 + $0x50] sm:$0xff] }
 0x27a   :  { %1903 = vmatpush.msra.mxu0 %v15020_v22  ;;  %1960 = vmatpush.msra.mxu3 %v15023_v51  ;;  %v15031_v22 = vld [vmem:[#allocation148_spill] sm:$0xff]  ;;  %15032 = vst [vmem:[#allocation56_spill] sm:$0xff] %v8831_v58  ;;  %v8838_v51 = vld [vmem:[%s14061_s3 + $0x58] sm:$0xff] }
 0x27b   :  { %1943 = vmatpush.msra.mxu2 %v15022_v3  ;;  %1921 = vmatpush.msra.mxu1 %v15025_v41  ;;  %v15033_v3 = vld [vmem:[#allocation151_spill] sm:$0xff]  ;;  %15034 = vst [vmem:[#allocation32_spill] sm:$0xff] %v8838_v51  ;;  %v8850_v41 = vld [vmem:[%s14061_s3 + $0x10] sm:$0xff] }
 0x27c   :  { %1904 = vmatpush.msra.mxu0 %v15024_v50  ;;  %1961 = vmatpush.msra.mxu3 %v15027_v28  ;;  %v8844_v50 = vld [vmem:[%s14061_s3 + $0x518] sm:$0xff]  ;;  %15036 = vst [vmem:[#allocation61_spill] sm:$0xff] %v8850_v41 }
 0x27d   :  { %1944 = vmatpush.msra.mxu2 %v15026_v1  ;;  %1922 = vmatpush.msra.mxu1 %v15029_v60  ;;  %15035 = vst [vmem:[#allocation33_spill] sm:$0xff] %v8844_v50  ;;  %v8856_v1 = vld [vmem:[%s14061_s3 + $0x4d0] sm:$0xff]  ;;  %v8862_v28 = vld [vmem:[%s14061_s3 + $0x18] sm:$0xff] }
 0x27e   :  { %1905 = vmatpush.msra.mxu0 %v15028_v40  ;;  %1962 = vmatpush.msra.mxu3 %v15031_v22  ;;  %15037 = vst [vmem:[#allocation62_spill] sm:$0xff] %v8856_v1  ;;  %v8868_v40 = vld [vmem:[%s14061_s3 + $0x4d8] sm:$0xff]  ;;  %v8874_v60 = vld [vmem:[%s14061_s3 + $0x490] sm:$0xff] }
 0x27f   :  { %1945 = vmatpush.msra.mxu2 %v8824_v23  ;;  %1923 = vmatpush.msra.mxu1 %v15033_v3  ;;  %15038 = vst [vmem:[#allocation34_spill] sm:$0xff] %v8862_v28  ;;  %v8880_v22 = vld [vmem:[%s14061_s3 + $0x498] sm:$0xff]  ;;  %v8886_v3 = vld [vmem:[%s14061_s3 + $0x450] sm:$0xff] }
 0x280   :  { %1906 = vmatpush.msra.mxu0 %v8831_v58  ;;  %1963 = vmatpush.msra.mxu3 %v8844_v50  ;;  %15039 = vst [vmem:[#allocation35_spill] sm:$0xff] %v8868_v40  ;;  %v15046_v58 = vld [vmem:[#allocation8_spill] sm:$0xff]  ;;  %v15047_v23 = vld [vmem:[#allocation7_spill] sm:$0xff] }
 0x281   :  { %1946 = vmatpush.msra.mxu2 %v8838_v51  ;;  %1924 = vmatpush.msra.mxu1 %v8856_v1  ;;  %15040 = vst [vmem:[#allocation65_spill] sm:$0xff] %v8874_v60  ;;  %v1426_v1 = vpop.f32.mrf.mxu3  ;;  %v525_v12 = vadd.f32 %v15047_v23, %v15046_v58 }
 0x282   :  { %1907 = vmatpush.msra.mxu0 %v8850_v41  ;;  %1964 = vmatpush.msra.mxu3 %v8868_v40  ;;  %15041 = vst [vmem:[#allocation66_spill] sm:$0xff] %v8880_v22  ;;  %v8892_v40 = vld [vmem:[%s14061_s3 + $0x458] sm:$0xff]  ;;  %v1406_v41 = vpop.f32.mrf.mxu2 }
 0x283   :  { %1947 = vmatpush.msra.mxu2 %v8862_v28  ;;  %1925 = vmatpush.msra.mxu1 %v8874_v60  ;;  %15042 = vst [vmem:[#allocation36_spill] sm:$0xff] %v8886_v3  ;;  %v8898_v60 = vld [vmem:[%s14061_s3 + $0x410] sm:$0xff]  ;;  %v1366_v28 = vpop.f32.mrf.mxu0  ;;  %v1427_v17 = vadd.f32 %v1426_v1, %v1406_v41 }
 0x284   :  { %1965 = vmatpush.msra.mxu3 %v8880_v22  ;;  %15043 = vst [vmem:[#allocation37_spill] sm:$0xff] %v8892_v40  ;;  %v8904_v22 = vld [vmem:[%s14061_s3 + $0x418] sm:$0xff] }
 0x285   :  { %1926 = vmatpush.msra.mxu1 %v8886_v3  ;;  %15044 = vst [vmem:[#allocation69_spill] sm:$0xff] %v8898_v60  ;;  %v1386_v3 = vpop.f32.mrf.mxu1 }
 0x286   :  { %1966 = vmatpush.msra.mxu3 %v8892_v40  ;;  %15045 = vst [vmem:[#allocation70_spill] sm:$0xff] %v8904_v22  ;;  %v1387_v54 = vadd.f32 %v1386_v3, %v1366_v28 }
 0x287   :  { %1927 = vmatpush.msra.mxu1 %v8898_v60 }
 0x288   :  { %1967 = vmatpush.msra.mxu3 %v8904_v22  ;;  %v1669_v36 = vadd.f32 %v1387_v54, %v443_v29  ;;  %v15050_v22 = vld [vmem:[#allocation173_spill] sm:$0xff] }
 0x289   :  { %v1506_v57 = vpop.f32.mrf.mxu3  ;;  %v566_v37 = vadd.f32 %v15051_v61, %v15050_v22 }
 0x28a   :  { %v1486_v21 = vpop.f32.mrf.mxu2  ;;  %v4509_v32 = vmul.f32 -1.442695, %v1669_v36 }
 0x28b   :  { %v1446_v40 = vpop.f32.mrf.mxu0  ;;  %v1507_v14 = vadd.f32 %v1506_v57, %v1486_v21  ;;  %v15055_v21 = vld [vmem:[#allocation59_spill] sm:$0xff] }
 0x28c   :  { %v607_v29 = vadd.f32 %v15055_v21, %v15054_v30  ;;  %v15059_v30 = vld [vmem:[#allocation73_spill] sm:$0xff] }
 0x28d   :  { %v1466_v50 = vpop.f32.mrf.mxu1  ;;  %v1672_v35 = vadd.f32 %v1507_v14, %v566_v37 }
 0x28e   :  { %v1467_v51 = vadd.f32 %v1466_v50, %v1446_v40  ;;  %v15053_v50 = vld [vmem:[#allocation20_spill] sm:$0xff] }
 0x28f   :  { %v484_v40 = vadd.f32 %v15053_v50, %v15052_v26 }
 0x290   :  { %v1671_v60 = vadd.f32 %v1467_v51, %v525_v12  ;;  %v4512_v51 = vmul.f32 -1.442695, %v1672_v35 }
 0x291   :  { %v1670_v28 = vadd.f32 %v1427_v17, %v484_v40  ;;  %v15057_v17 = vld [vmem:[#allocation60_spill] sm:$0xff] }
 0x292   :  { %v4511_v47 = vmul.f32 -1.442695, %v1671_v60 }
 0x293   :  { %v4510_v57 = vmul.f32 -1.442695, %v1670_v28 }
 0x294   :  { %4614 = vpow2.f32 %v4511_v47  ;;  %v15056_v47 = vld [vmem:[#allocation175_spill] sm:$0xff] }
 0x295   :  { %4616 = vpow2.f32 %v4509_v32  ;;  %v648_v60 = vadd.f32 %v15057_v17, %v15056_v47 }
 0x296   :  { %4618 = vpow2.f32 %v4512_v51 }
 0x297   :  { %4620 = vpow2.f32 %v4510_v57 }
 0x29a   :  { %v1526_v12 = vpop.f32.mrf.mxu0  ;;  %v4615_v54 = vpop.eup %4614 }
 0x29b   :  { %v4617_v1 = vpop.eup %4616  ;;  %v8917_v36 = vadd.f32 1.0, %v4615_v54 }
 0x29c   :  { %v4619_v50 = vpop.eup %4618  ;;  %v1695_v32 = vadd.f32 1.0, %v4617_v1 }
 0x29d   :  { %4622 = vrcp.f32 %v8917_v36  ;;  %v8922_v28 = vadd.f32 1.0, %v4619_v50  ;;  %vm1736_vm8 = vweird.f32 %v8917_v36 }
 0x29e   :  { %v1712_v58 = vand.u32 2147483648, %v1695_v32  ;;  %vm1706_vm9 = vweird.f32 %v1695_v32 }
 0x29f   :  { %vm1751_vm0 = vweird.f32 %v8922_v28 }
 0x2a3   :  { %v1546_v23 = vpop.f32.mrf.mxu1  ;;  %v1566_v37 = vpop.f32.mrf.mxu2 }
 0x2a4   :  { %v1547_v3 = vadd.f32 %v1546_v23, %v1526_v12  ;;  %v4621_v23 = vpop.eup %4620 }
 0x2a5   :  { %v8924_v51 = vadd.f32 1.0, %v4621_v23 }
 0x2a6   :  { %v1673_v61 = vadd.f32 %v1547_v3, %v607_v29  ;;  %v8926_v3 = vpop.eup %4622 }
 0x2a7   :  { %v1732_v57 = vmul.f32 %v8926_v3, %v8917_v36  ;;  %vm1737_vm6 = vweird.f32 %v8926_v3  ;;  %vm1721_vm13 = vweird.f32 %v8924_v51 }
 0x2a8   :  { %v4513_v35 = vmul.f32 -1.442695, %v1673_v61  ;;  %vm8967_vm10 = vmor %vm1736_vm8, %vm1737_vm6 }
 0x2aa   :  { %v1586_v41 = vpop.f32.mrf.mxu3  ;;  %4624 = vpow2.f32 %v4513_v35 }
 0x2ab   :  { %v1587_v14 = vadd.f32 %v1586_v41, %v1566_v37  ;;  %4626 = vrcp.f32 %v1695_v32 }
 0x2ac   :  { %4628 = vrcp.f32 %v8922_v28 }
 0x2ad   :  { %v1674_v40 = vadd.f32 %v1587_v14, %v648_v60  ;;  %v1733_v14 = vsub.f32 1.0, %v1732_v57 }
 0x2af   :  { %v4514_v12 = vmul.f32 -1.442695, %v1674_v40  ;;  %v1734_v40 = vmul.f32 %v8926_v3, %v1733_v14  ;;  %v1742_v14 = vand.u32 2147483648, %v8917_v36 }
 0x2b0   :  { %v4625_v21 = vpop.eup %4624 }
 0x2b1   :  { %4630 = vpow2.f32 %v4514_v12  ;;  %v8929_v29 = vpop.eup %4626  ;;  %v8934_v54 = vadd.f32 1.0, %v4625_v21  ;;  %v1735_v15 = vadd.f32 %v8926_v3, %v1734_v40  ;;  %v15061_v40 = vld [vmem:[#allocation74_spill] sm:$0xff] }
 0x2b2   :  { %4632 = vrcp.f32 %v8924_v51  ;;  %v8936_v61 = vpop.eup %4628  ;;  %v1702_v41 = vmul.f32 %v8929_v29, %v1695_v32  ;;  %vm1707_vm7 = vweird.f32 %v8929_v29 }
 0x2b3   :  { %4634 = vrcp.f32 %v8934_v54  ;;  %v1747_v60 = vmul.f32 %v8936_v61, %v8922_v28  ;;  %vm8983_vm12 = vmor %vm1706_vm9, %vm1707_vm7  ;;  %vm1752_vm15 = vweird.f32 %v8936_v61  ;;  %vm1766_vm7 = vweird.f32 %v8934_v54 }
 0x2b4   :  { %v1703_v17 = vsub.f32 1.0, %v1702_v41  ;;  %v15058_v41 = vld [vmem:[#allocation19_spill] sm:$0xff]  ;;  %vm9004_vm2 = vmor %vm1751_vm0, %vm1752_vm15 }
 0x2b5   :  { %v1748_v12 = vsub.f32 1.0, %v1747_v60  ;;  %v689_v26 = vadd.f32 %v15059_v30, %v15058_v41 }
 0x2b6   :  { %v1704_v47 = vmul.f32 %v8929_v29, %v1703_v17 }
 0x2b7   :  { %v4631_v37 = vpop.eup %4630  ;;  %v1749_v30 = vmul.f32 %v8936_v61, %v1748_v12  ;;  %v1713_v12 = vor.u32 1.1754944e-38, %v1712_v58 }
 0x2b8   :  { %v8940_v1 = vpop.eup %4632  ;;  %v8944_v35 = vadd.f32 1.0, %v4631_v37  ;;  %v1710_v37 = vand.u32 2147483647, %v1695_v32  ;;  %v1705_v17 = vadd.f32 %v8929_v29, %v1704_v47 }
 0x2b9   :  { %v1717_v50 = vmul.f32 %v8940_v1, %v8924_v51  ;;  %v8949_v23 = vpop.eup %4634  ;;  %vm1722_vm1 = vweird.f32 %v8940_v1 }
 0x2ba   :  { %4636 = vrcp.f32 %v8944_v35  ;;  %v1762_v60 = vmul.f32 %v8949_v23, %v8934_v54  ;;  %vm8973_vm11 = vcmp.eq.f32.partialorder %v1710_v37, 8.507059e+37  ;;  %v1743_v37 = vor.u32 1.1754944e-38, %v1742_v14  ;;  %vm9015_vm3 = vmor %vm1721_vm13, %vm1722_vm1 }
 0x2bb   :  { %v1718_v42 = vsub.f32 1.0, %v1717_v50  ;;  %v1740_v50 = vand.u32 2147483647, %v8917_v36  ;;  %v1739_v36 = vsel %vm8967_vm10, %v8926_v3, %v1735_v15  ;;  %v1709_v58 = vsel %vm8983_vm12, %v8929_v29, %v1705_v17 }
 0x2bc   :  { %v1750_v15 = vadd.f32 %v8936_v61, %v1749_v30  ;;  %v1755_v29 = vand.u32 2147483647, %v8922_v28  ;;  %v1714_v17 = vsel %vm8973_vm11, %v1713_v12, %v1709_v58  ;;  %vm1767_vm5 = vweird.f32 %v8949_v23 }
 0x2bd   :  { %v1719_v32 = vmul.f32 %v8940_v1, %v1718_v42  ;;  %vm1741_vm14 = vcmp.eq.f32.partialorder %v1740_v50, 8.507059e+37  ;;  %v1757_v42 = vand.u32 2147483648, %v8922_v28  ;;  %v1727_v50 = vand.u32 2147483648, %v8924_v51  ;;  %vm1768_vm8 = vmor %vm1766_vm7, %vm1767_vm5 }
 0x2be   :  { %v1606_v21 = vpop.f32.mrf.mxu0  ;;  %v1744_v41 = vsel %vm1741_vm14, %v1743_v37, %v1739_v36  ;;  %v1725_v36 = vand.u32 2147483647, %v8924_v51  ;;  %v1754_v28 = vsel %vm9004_vm2, %v8936_v61, %v1750_v15  ;;  %vm1756_vm4 = vcmp.eq.f32.partialorder %v1755_v29, 8.507059e+37 }
 0x2bf   :  { %v1758_v12 = vor.u32 1.1754944e-38, %v1757_v42  ;;  %v1728_v61 = vor.u32 1.1754944e-38, %v1727_v50  ;;  %v1772_v51 = vand.u32 2147483648, %v8934_v54  ;;  %v1770_v15 = vand.u32 2147483647, %v8934_v54 }
 0x2c0   :  { %vm1726_vm6 = vcmp.eq.f32.partialorder %v1725_v36, 8.507059e+37  ;;  %v1787_v54 = vand.u32 2147483648, %v8944_v35  ;;  %vm1781_vm11 = vweird.f32 %v8944_v35  ;;  %v9107_v36 = vld [vmem:[%s14061_s3 + $0x60] sm:$0xff] }
 0x2c1   :  { %v1759_v37 = vsel %vm1756_vm4, %v1758_v12, %v1754_v28  ;;  %vm1771_vm9 = vcmp.eq.f32.partialorder %v1770_v15, 8.507059e+37  ;;  %v15098_v28 = vld [vmem:[#allocation203_spill] sm:$0xff]  ;;  %v15100_v12 = vld [vmem:[#allocation205_spill] sm:$0xff] }
 0x2c2   :  { %v9197_v15 = vld [vmem:[%s14061_s3 + $0x2f8] sm:$0xff] }
 0x2c4   :  { %v1626_v57 = vpop.f32.mrf.mxu1 }
 0x2c5   :  { %v1627_v22 = vadd.f32 %v1626_v57, %v1606_v21  ;;  %v15060_v21 = vld [vmem:[#allocation176_spill] sm:$0xff]  ;;  %v1646_v47 = vpop.f32.mrf.mxu2 }
 0x2c6   :  { %v730_v57 = vadd.f32 %v15061_v40, %v15060_v21  ;;  %v1763_v40 = vsub.f32 1.0, %v1762_v60 }
 0x2c7   :  { %v1675_v20 = vadd.f32 %v1627_v22, %v689_v26  ;;  %v8971_v26 = vpop.eup %4636  ;;  %v15099_v22 = vld [vmem:[#allocation204_spill] sm:$0xff] }
 0x2c8   :  { %v1777_v3 = vmul.f32 %v8971_v26, %v8944_v35  ;;  %v1764_v30 = vmul.f32 %v8949_v23, %v1763_v40  ;;  %vm1782_vm10 = vweird.f32 %v8971_v26 }
 0x2c9   :  { %4638 = vtanh.f32 %v1675_v20  ;;  %vm1783_vm12 = vmor %vm1781_vm11, %vm1782_vm10 }
 0x2ca   :  { %v1765_v20 = vadd.f32 %v8949_v23, %v1764_v30 }
 0x2cb   :  { %v1666_v52 = vpop.f32.mrf.mxu3 }
 0x2cc   :  { %v1667_v21 = vadd.f32 %v1666_v52, %v1646_v47  ;;  %v1720_v52 = vadd.f32 %v8940_v1, %v1719_v32  ;;  %v1778_v32 = vsub.f32 1.0, %v1777_v3  ;;  %v1794_v3 = vmul.f32 %v1759_v37, %v8087_v62  ;;  %v15103_v37 = vld [vmem:[#allocation208_spill] sm:$0xff] }
 0x2cd   :  { %v1785_v62 = vand.u32 2147483647, %v8944_v35  ;;  %v1788_v47 = vor.u32 1.1754944e-38, %v1787_v54  ;;  %v9232_v54 = vld [vmem:[%s14061_s3 + $0x230] sm:$0xff] }
 0x2ce   :  { %v1676_v60 = vadd.f32 %v1667_v21, %v730_v57  ;;  %v1793_v21 = vmul.f32 %v1744_v41, %v8074_v19  ;;  %v1724_v19 = vsel %vm9015_vm3, %v8940_v1, %v1720_v52  ;;  %v1779_v42 = vmul.f32 %v8971_v26, %v1778_v32  ;;  %v9123_v32 = vld [vmem:[%s14061_s3 + $0x28] sm:$0xff] }
 0x2cf   :  { %v4639_v14 = vpop.eup %4638  ;;  %v1729_v1 = vsel %vm1726_vm6, %v1728_v61, %v1724_v19  ;;  %v1773_v52 = vor.u32 1.1754944e-38, %v1772_v51  ;;  %vm1786_vm13 = vcmp.eq.f32.partialorder %v1785_v62, 8.507059e+37  ;;  %v15101_v19 = vld [vmem:[#allocation206_spill] sm:$0xff]  ;;  %v9183_v61 = vld [vmem:[%s14061_s3 + $0x338] sm:$0xff] }
 0x2d0   :  { %4640 = vtanh.f32 %v1676_v60  ;;  %v1795_v57 = vmul.f32 %v4639_v14, %v1714_v17  ;;  %v1769_v60 = vsel %vm1768_vm8, %v8949_v23, %v1765_v20  ;;  %v1780_v14 = vadd.f32 %v8971_v26, %v1779_v42  ;;  %v15102_v20 = vld [vmem:[#allocation207_spill] sm:$0xff]  ;;  %v9190_v51 = vld [vmem:[%s14061_s3 + $0x2f0] sm:$0xff] }
 0x2d1   :  { %v1774_v17 = vsel %vm1771_vm9, %v1773_v52, %v1769_v60  ;;  %v15105_v42 = vld [vmem:[#allocation210_spill] sm:$0xff]  ;;  %v15107_v60 = vld [vmem:[#allocation212_spill] sm:$0xff]  ;;  %v15110_v62 = vld [vmem:[#allocation215_spill] sm:$0xff] }
 0x2d2   :  { %v9019_v40 = vadd.f32 %v1795_v57, %v1793_v21  ;;  %v1784_v23 = vsel %vm1783_vm12, %v8971_v26, %v1780_v14  ;;  %v15097_v26 = vld [vmem:[#allocation202_spill] sm:$0xff]  ;;  %v15108_v14 = vld [vmem:[#allocation213_spill] sm:$0xff] }
 0x2d3   :  { %v1789_v57 = vsel %vm1786_vm13, %v1788_v47, %v1784_v23  ;;  %v9218_v52 = vld [vmem:[%s14061_s3 + $0x270] sm:$0xff]  ;;  %v9239_v23 = vld [vmem:[%s14061_s3 + $0x238] sm:$0xff]  ;;  %v15111_v47 = vld [vmem:[#allocation216_spill] sm:$0xff] }
 0x2d4   :  { %4642 = vtanh.f32 %v9019_v40 }
 0x2d6   :  { %v4641_v58 = vpop.eup %4640 }
 0x2d7   :  { %v1796_v41 = vmul.f32 %v4641_v58, %v1729_v1  ;;  %v15104_v58 = vld [vmem:[#allocation209_spill] sm:$0xff]  ;;  %v9204_v1 = vld [vmem:[%s14061_s3 + $0x2b0] sm:$0xff] }
 0x2d9   :  { %v9033_v29 = vadd.f32 %v1796_v41, %v1794_v3  ;;  %v15106_v3 = vld [vmem:[#allocation211_spill] sm:$0xff] }
 0x2da   :  { %v4643_v30 = vpop.eup %4642  ;;  %v9211_v41 = vld [vmem:[%s14061_s3 + $0x2b8] sm:$0xff] }
 0x2db   :  { %4644 = vtanh.f32 %v9033_v29  ;;  %v9041_v50 = vmul.f32 %v4643_v30, %v1774_v17  ;;  %v9225_v30 = vld [vmem:[%s14061_s3 + $0x278] sm:$0xff]  ;;  %v15109_v17 = vld [vmem:[#allocation214_spill] sm:$0xff] }
 0x2dd   :  { %1828 = vmatmul.f32.vlgmr.msrb.gmra.mxu0 %v9041_v50  ;;  %1868 = vmatmul.f32.vlgmr.msrb.gmra.mxu2 %v9041_v50 }
 0x2de   :  { %1972 = vmatpush.msrb.mxu0 %v8103_v4  ;;  %2012 = vmatpush.msrb.mxu2 %v8109_v6  ;;  %v15073_v4 = vld [vmem:[#allocation178_spill] sm:$0xff]  ;;  %v15074_v6 = vld [vmem:[#allocation179_spill] sm:$0xff] }
 0x2e0   :  { %1973 = vmatpush.msrb.mxu0 %v8115_v46  ;;  %2013 = vmatpush.msrb.mxu2 %v8121_v8  ;;  %v15075_v46 = vld [vmem:[#allocation180_spill] sm:$0xff]  ;;  %v15076_v8 = vld [vmem:[#allocation181_spill] sm:$0xff] }
 0x2e1   :  { %v4645_v21 = vpop.eup %4644 }
 0x2e2   :  { %v9050_v35 = vmul.f32 %v4645_v21, %v1789_v57  ;;  %1974 = vmatpush.msrb.mxu0 %v8129_v53  ;;  %2014 = vmatpush.msrb.mxu2 %v8135_v7  ;;  %v15077_v53 = vld [vmem:[#allocation182_spill] sm:$0xff]  ;;  %v15078_v7 = vld [vmem:[#allocation183_spill] sm:$0xff]  ;;  %v15112_v57 = vld [vmem:[#allocation217_spill] sm:$0xff] }
 0x2e3   :  { %v9246_v21 = vld [vmem:[%s14061_s3 + $0x1f0] sm:$0xff] }
 0x2e4   :  { %15072 = vst [vmem:[#allocation39_spill] sm:$0xff] %v9050_v35  ;;  %1848 = vmatmul.f32.vlgmr.msrb.gmra.mxu1 %v9050_v35  ;;  %1888 = vmatmul.f32.vlgmr.msrb.gmra.mxu3 %v9050_v35 }
 0x2e5   :  { %1975 = vmatpush.msrb.mxu0 %v8143_v44  ;;  %1992 = vmatpush.msrb.mxu1 %v8149_v2  ;;  %v15079_v44 = vld [vmem:[#allocation184_spill] sm:$0xff]  ;;  %v15080_v2 = vld [vmem:[#allocation185_spill] sm:$0xff] }
 0x2e6   :  { %2015 = vmatpush.msrb.mxu2 %v8155_v0  ;;  %2032 = vmatpush.msrb.mxu3 %v8161_v24  ;;  %v15081_v0 = vld [vmem:[#allocation186_spill] sm:$0xff]  ;;  %v15082_v24 = vld [vmem:[#allocation187_spill] sm:$0xff] }
 0x2e7   :  { %1908 = vmatmul.f32.vlgmr.msra.gmra.mxu0 %v9041_v50  ;;  %1948 = vmatmul.f32.vlgmr.msra.gmra.mxu2 %v9041_v50 }
 0x2e8   :  { %1976 = vmatpush.msrb.mxu0 %v8169_v45  ;;  %1993 = vmatpush.msrb.mxu1 %v8175_v56  ;;  %v15083_v45 = vld [vmem:[#allocation188_spill] sm:$0xff]  ;;  %v15084_v56 = vld [vmem:[#allocation189_spill] sm:$0xff] }
 0x2e9   :  { %2016 = vmatpush.msrb.mxu2 %v8181_v48  ;;  %2033 = vmatpush.msrb.mxu3 %v8187_v33  ;;  %v15085_v48 = vld [vmem:[#allocation190_spill] sm:$0xff]  ;;  %v15086_v33 = vld [vmem:[#allocation191_spill] sm:$0xff] }
 0x2ea   :  { %1977 = vmatpush.msrb.mxu0 %v8193_v25  ;;  %1994 = vmatpush.msrb.mxu1 %v8199_v18  ;;  %v15087_v25 = vld [vmem:[#allocation192_spill] sm:$0xff]  ;;  %v15088_v18 = vld [vmem:[#allocation193_spill] sm:$0xff] }
 0x2eb   :  { %2017 = vmatpush.msrb.mxu2 %v8205_v59  ;;  %2034 = vmatpush.msrb.mxu3 %v8211_v16  ;;  %v15089_v59 = vld [vmem:[#allocation194_spill] sm:$0xff]  ;;  %v15090_v16 = vld [vmem:[#allocation195_spill] sm:$0xff] }
 0x2ec   :  { %1978 = vmatpush.msrb.mxu0 %v8217_v5  ;;  %1995 = vmatpush.msrb.mxu1 %v8223_v63  ;;  %v15091_v5 = vld [vmem:[#allocation196_spill] sm:$0xff]  ;;  %v15092_v63 = vld [vmem:[#allocation197_spill] sm:$0xff] }
 0x2ed   :  { %2018 = vmatpush.msrb.mxu2 %v8229_v11  ;;  %2035 = vmatpush.msrb.mxu3 %v8235_v10  ;;  %v15093_v11 = vld [vmem:[#allocation198_spill] sm:$0xff]  ;;  %v15094_v10 = vld [vmem:[#allocation199_spill] sm:$0xff] }
 0x2ee   :  { %1928 = vmatmul.f32.vlgmr.msra.gmra.mxu1 %v9050_v35  ;;  %1968 = vmatmul.f32.vlgmr.msra.gmra.mxu3 %v9050_v35 }
 0x2ef   :  { %1979 = vmatpush.msrb.mxu0 %v8243_v34  ;;  %1996 = vmatpush.msrb.mxu1 %v8249_v31  ;;  %v15095_v34 = vld [vmem:[#allocation200_spill] sm:$0xff]  ;;  %v15096_v31 = vld [vmem:[#allocation201_spill] sm:$0xff] }
 0x2f0   :  { %2019 = vmatpush.msrb.mxu2 %v15073_v4  ;;  %2036 = vmatpush.msrb.mxu3 %v15074_v6  ;;  %v9253_v4 = vld [vmem:[%s14061_s3 + $0x1f8] sm:$0xff]  ;;  %v15113_v6 = vld [vmem:[#allocation218_spill] sm:$0xff] }
 0x2f1   :  { %1980 = vmatpush.msrb.mxu0 %v15075_v46  ;;  %1997 = vmatpush.msrb.mxu1 %v15076_v8  ;;  %v9260_v46 = vld [vmem:[%s14061_s3 + $0x1b0] sm:$0xff]  ;;  %v15114_v8 = vld [vmem:[#allocation219_spill] sm:$0xff] }
 0x2f2   :  { %2020 = vmatpush.msrb.mxu2 %v15077_v53  ;;  %2037 = vmatpush.msrb.mxu3 %v15078_v7  ;;  %v9267_v53 = vld [vmem:[%s14061_s3 + $0x1b8] sm:$0xff]  ;;  %v15115_v7 = vld [vmem:[#allocation220_spill] sm:$0xff] }
 0x2f3   :  { %1981 = vmatpush.msrb.mxu0 %v15079_v44  ;;  %1998 = vmatpush.msrb.mxu1 %v15080_v2  ;;  %v9274_v44 = vld [vmem:[%s14061_s3 + $0x170] sm:$0xff]  ;;  %v15116_v2 = vld [vmem:[#allocation221_spill] sm:$0xff] }
 0x2f4   :  { %2021 = vmatpush.msrb.mxu2 %v15081_v0  ;;  %2038 = vmatpush.msrb.mxu3 %v15082_v24  ;;  %v9281_v0 = vld [vmem:[%s14061_s3 + $0x178] sm:$0xff]  ;;  %v15117_v24 = vld [vmem:[#allocation222_spill] sm:$0xff] }
 0x2f5   :  { %1982 = vmatpush.msrb.mxu0 %v15083_v45  ;;  %1999 = vmatpush.msrb.mxu1 %v15084_v56  ;;  %v9288_v45 = vld [vmem:[%s14061_s3 + $0x130] sm:$0xff]  ;;  %v15118_v56 = vld [vmem:[#allocation223_spill] sm:$0xff] }
 0x2f6   :  { %2022 = vmatpush.msrb.mxu2 %v15085_v48  ;;  %2039 = vmatpush.msrb.mxu3 %v15086_v33  ;;  %v9295_v48 = vld [vmem:[%s14061_s3 + $0x138] sm:$0xff]  ;;  %v15119_v33 = vld [vmem:[#allocation224_spill] sm:$0xff] }
 0x2f7   :  { %1983 = vmatpush.msrb.mxu0 %v15087_v25  ;;  %2000 = vmatpush.msrb.mxu1 %v15088_v18  ;;  %v9302_v25 = vld [vmem:[%s14061_s3 + $0xf0] sm:$0xff]  ;;  %v15120_v18 = vld [vmem:[#allocation225_spill] sm:$0xff] }
 0x2f8   :  { %2023 = vmatpush.msrb.mxu2 %v15089_v59  ;;  %2040 = vmatpush.msrb.mxu3 %v15090_v16  ;;  %v9309_v59 = vld [vmem:[%s14061_s3 + $0xf8] sm:$0xff]  ;;  %v15121_v16 = vld [vmem:[#allocation226_spill] sm:$0xff] }
 0x2f9   :  { %1984 = vmatpush.msrb.mxu0 %v15091_v5  ;;  %2001 = vmatpush.msrb.mxu1 %v15092_v63  ;;  %v9316_v5 = vld [vmem:[%s14061_s3 + $0xb0] sm:$0xff]  ;;  %v15122_v63 = vld [vmem:[#allocation227_spill] sm:$0xff] }
 0x2fa   :  { %2024 = vmatpush.msrb.mxu2 %v15093_v11  ;;  %2041 = vmatpush.msrb.mxu3 %v15094_v10  ;;  %v9323_v11 = vld [vmem:[%s14061_s3 + $0xb8] sm:$0xff]  ;;  %v15123_v10 = vld [vmem:[#allocation228_spill] sm:$0xff] }
 0x2fb   :  { %1985 = vmatpush.msrb.mxu0 %v8387_v27  ;;  %2002 = vmatpush.msrb.mxu1 %v15095_v34  ;;  %v9116_v27 = vld [vmem:[%s14061_s3 + $0x20] sm:$0xff]  ;;  %v9330_v34 = vld [vmem:[%s14061_s3 + $0x70] sm:$0xff] }
 0x2fc   :  { %2025 = vmatpush.msrb.mxu2 %v15096_v31  ;;  %2042 = vmatpush.msrb.mxu3 %v15097_v26  ;;  %15124 = vst [vmem:[#allocation40_spill] sm:$0xff] %v9330_v34  ;;  %v15125_v31 = vld [vmem:[#allocation229_spill] sm:$0xff]  ;;  %v9337_v26 = vld [vmem:[%s14061_s3 + $0x78] sm:$0xff] }
 0x2fd   :  { %1986 = vmatpush.msrb.mxu0 %v9107_v36  ;;  %2003 = vmatpush.msrb.mxu1 %v8412_v55  ;;  %v9138_v55 = vld [vmem:[%s14061_s3 + $0x3f8] sm:$0xff]  ;;  %15126 = vst [vmem:[#allocation75_spill] sm:$0xff] %v9337_v26 }
 0x2fe   :  { %2026 = vmatpush.msrb.mxu2 %v15098_v28  ;;  %2043 = vmatpush.msrb.mxu3 %v8424_v13  ;;  %v9132_v13 = vld [vmem:[%s14061_s3 + $0x3f0] sm:$0xff] }
 0x2ff   :  { %1987 = vmatpush.msrb.mxu0 %v9116_v27  ;;  %2004 = vmatpush.msrb.mxu1 %v8431_v43  ;;  %v9152_v43 = vld [vmem:[%s14061_s3 + $0x3b8] sm:$0xff]  ;;  %v15127_v28 = vld [vmem:[#allocation38_spill] sm:$0xff] }
 0x300   :  { %2027 = vmatpush.msrb.mxu2 %v9123_v32  ;;  %2044 = vmatpush.msrb.mxu3 %v8438_v9  ;;  %v9146_v9 = vld [vmem:[%s14061_s3 + $0x3b0] sm:$0xff] }
 0x301   :  { %1988 = vmatmul.f32.vlgmr.msrb.gmra.mxu0 %v9041_v50  ;;  %2028 = vmatmul.f32.vlgmr.msrb.gmra.mxu2 %v9041_v50 }
 0x302   :  { %2052 = vmatpush.msra.mxu0 %v9132_v13  ;;  %2092 = vmatpush.msra.mxu2 %v9138_v55 }
 0x303   :  { %2005 = vmatpush.msrb.mxu1 %v8448_v38  ;;  %2045 = vmatpush.msrb.mxu3 %v8454_v39  ;;  %v9160_v38 = vld [vmem:[%s14061_s3 + $0x370] sm:$0xff]  ;;  %v9166_v39 = vld [vmem:[%s14061_s3 + $0x378] sm:$0xff] }
 0x304   :  { %2053 = vmatpush.msra.mxu0 %v9146_v9  ;;  %2093 = vmatpush.msra.mxu2 %v9152_v43 }
 0x305   :  { %2006 = vmatpush.msrb.mxu1 %v8462_v49  ;;  %2046 = vmatpush.msrb.mxu3 %v15099_v22  ;;  %v9176_v49 = vld [vmem:[%s14061_s3 + $0x330] sm:$0xff] }
 0x306   :  { %2054 = vmatpush.msra.mxu0 %v9160_v38  ;;  %2094 = vmatpush.msra.mxu2 %v9166_v39  ;;  %v9344_v22 = vld [vmem:[%s14061_s3 + $0x30] sm:$0xff] }
 0x307   :  { %2007 = vmatpush.msrb.mxu1 %v15100_v12  ;;  %2047 = vmatpush.msrb.mxu3 %v15101_v19  ;;  %15128 = vst [vmem:[#allocation76_spill] sm:$0xff] %v9344_v22  ;;  %v15129_v12 = vld [vmem:[#allocation41_spill] sm:$0xff]  ;;  %v9351_v19 = vld [vmem:[%s14061_s3 + $0x38] sm:$0xff] }
 0x308   :  { %2008 = vmatmul.f32.vlgmr.msrb.gmra.mxu1 %v9050_v35  ;;  %2048 = vmatmul.f32.vlgmr.msrb.gmra.mxu3 %v9050_v35  ;;  %15130 = vst [vmem:[#allocation43_spill] sm:$0xff] %v9351_v19 }
 0x309   :  { %2055 = vmatpush.msra.mxu0 %v9176_v49  ;;  %2072 = vmatpush.msra.mxu1 %v15102_v20  ;;  %v15131_v20 = vld [vmem:[#allocation42_spill] sm:$0xff] }
 0x30a   :  { %2095 = vmatpush.msra.mxu2 %v9183_v61  ;;  %2112 = vmatpush.msra.mxu3 %v15103_v37  ;;  %v15132_v37 = vld [vmem:[#allocation230_spill] sm:$0xff] }
 0x30b   :  { %2056 = vmatpush.msra.mxu0 %v9190_v51  ;;  %2073 = vmatpush.msra.mxu1 %v15104_v58  ;;  %v15133_v58 = vld [vmem:[#allocation231_spill] sm:$0xff] }
 0x30c   :  { %2096 = vmatpush.msra.mxu2 %v9197_v15  ;;  %2113 = vmatpush.msra.mxu3 %v15105_v42  ;;  %v9362_v42 = vld [vmem:[%s14061_s3 + $0x3c0] sm:$0xff] }
 0x30d   :  { %2057 = vmatpush.msra.mxu0 %v9204_v1  ;;  %2074 = vmatpush.msra.mxu1 %v15106_v3  ;;  %15134 = vst [vmem:[#allocation44_spill] sm:$0xff] %v9362_v42  ;;  %v9368_v3 = vld [vmem:[%s14061_s3 + $0x3c8] sm:$0xff] }
 0x30e   :  { %2097 = vmatpush.msra.mxu2 %v9211_v41  ;;  %2114 = vmatpush.msra.mxu3 %v15107_v60  ;;  %15135 = vst [vmem:[#allocation79_spill] sm:$0xff] %v9368_v3  ;;  %v15136_v60 = vld [vmem:[#allocation47_spill] sm:$0xff] }
 0x30f   :  { %2058 = vmatpush.msra.mxu0 %v9218_v52  ;;  %2075 = vmatpush.msra.mxu1 %v15108_v14  ;;  %v9376_v14 = vld [vmem:[%s14061_s3 + $0x380] sm:$0xff] }
 0x310   :  { %2098 = vmatpush.msra.mxu2 %v9225_v30  ;;  %2115 = vmatpush.msra.mxu3 %v15109_v17  ;;  %15138 = vst [vmem:[#allocation80_spill] sm:$0xff] %v9376_v14  ;;  %v9382_v17 = vld [vmem:[%s14061_s3 + $0x388] sm:$0xff] }
 0x311   :  { %2059 = vmatpush.msra.mxu0 %v9232_v54  ;;  %2076 = vmatpush.msra.mxu1 %v15110_v62  ;;  %15139 = vst [vmem:[#allocation45_spill] sm:$0xff] %v9382_v17  ;;  %v15140_v62 = vld [vmem:[#allocation51_spill] sm:$0xff] }
 0x312   :  { %2099 = vmatpush.msra.mxu2 %v9239_v23  ;;  %2116 = vmatpush.msra.mxu3 %v15111_v47  ;;  %v15141_v47 = vld [vmem:[#allocation52_spill] sm:$0xff] }
 0x313   :  { %2060 = vmatpush.msra.mxu0 %v9246_v21  ;;  %2077 = vmatpush.msra.mxu1 %v15112_v57  ;;  %v9392_v57 = vld [vmem:[%s14061_s3 + $0x340] sm:$0xff] }
 0x314   :  { %2100 = vmatpush.msra.mxu2 %v9253_v4  ;;  %2117 = vmatpush.msra.mxu3 %v15113_v6  ;;  %15142 = vst [vmem:[#allocation46_spill] sm:$0xff] %v9392_v57  ;;  %v9398_v6 = vld [vmem:[%s14061_s3 + $0x348] sm:$0xff] }
 0x315   :  { %2061 = vmatpush.msra.mxu0 %v9260_v46  ;;  %2078 = vmatpush.msra.mxu1 %v15114_v8  ;;  %15143 = vst [vmem:[#allocation85_spill] sm:$0xff] %v9398_v6  ;;  %v9404_v8 = vld [vmem:[%s14061_s3 + $0x7c0] sm:$0xff] }
 0x316   :  { %2101 = vmatpush.msra.mxu2 %v9267_v53  ;;  %2118 = vmatpush.msra.mxu3 %v15115_v7  ;;  %15144 = vst [vmem:[#allocation86_spill] sm:$0xff] %v9404_v8  ;;  %v9410_v7 = vld [vmem:[%s14061_s3 + $0x7c8] sm:$0xff] }
 0x317   :  { %2062 = vmatpush.msra.mxu0 %v9274_v44  ;;  %2079 = vmatpush.msra.mxu1 %v15116_v2  ;;  %15145 = vst [vmem:[#allocation49_spill] sm:$0xff] %v9410_v7  ;;  %v9416_v2 = vld [vmem:[%s14061_s3 + $0x300] sm:$0xff] }
 0x318   :  { %2102 = vmatpush.msra.mxu2 %v9281_v0  ;;  %2119 = vmatpush.msra.mxu3 %v15117_v24  ;;  %15146 = vst [vmem:[#allocation50_spill] sm:$0xff] %v9416_v2  ;;  %v9422_v24 = vld [vmem:[%s14061_s3 + $0x308] sm:$0xff] }
 0x319   :  { %2063 = vmatpush.msra.mxu0 %v9288_v45  ;;  %2080 = vmatpush.msra.mxu1 %v15118_v56  ;;  %15147 = vst [vmem:[#allocation89_spill] sm:$0xff] %v9422_v24  ;;  %v9428_v56 = vld [vmem:[%s14061_s3 + $0x780] sm:$0xff] }
 0x31a   :  { %2103 = vmatpush.msra.mxu2 %v9295_v48  ;;  %2120 = vmatpush.msra.mxu3 %v15119_v33  ;;  %15148 = vst [vmem:[#allocation90_spill] sm:$0xff] %v9428_v56  ;;  %v9434_v33 = vld [vmem:[%s14061_s3 + $0x788] sm:$0xff] }
 0x31b   :  { %2064 = vmatpush.msra.mxu0 %v9302_v25  ;;  %2081 = vmatpush.msra.mxu1 %v15120_v18  ;;  %15149 = vst [vmem:[#allocation53_spill] sm:$0xff] %v9434_v33  ;;  %v9440_v18 = vld [vmem:[%s14061_s3 + $0x2c0] sm:$0xff] }
 0x31c   :  { %2104 = vmatpush.msra.mxu2 %v9309_v59  ;;  %2121 = vmatpush.msra.mxu3 %v15121_v16  ;;  %15150 = vst [vmem:[#allocation54_spill] sm:$0xff] %v9440_v18  ;;  %v9446_v16 = vld [vmem:[%s14061_s3 + $0x2c8] sm:$0xff] }
 0x31d   :  { %2065 = vmatpush.msra.mxu0 %v9316_v5  ;;  %2082 = vmatpush.msra.mxu1 %v15122_v63  ;;  %15151 = vst [vmem:[#allocation93_spill] sm:$0xff] %v9446_v16  ;;  %v9452_v63 = vld [vmem:[%s14061_s3 + $0x740] sm:$0xff] }
 0x31e   :  { %2105 = vmatpush.msra.mxu2 %v9323_v11  ;;  %2122 = vmatpush.msra.mxu3 %v15123_v10  ;;  %15152 = vst [vmem:[#allocation94_spill] sm:$0xff] %v9452_v63  ;;  %v9458_v10 = vld [vmem:[%s14061_s3 + $0x748] sm:$0xff] }
 0x31f   :  { %2066 = vmatpush.msra.mxu0 %v9330_v34  ;;  %2083 = vmatpush.msra.mxu1 %v15125_v31  ;;  %15153 = vst [vmem:[#allocation57_spill] sm:$0xff] %v9458_v10  ;;  %v9464_v31 = vld [vmem:[%s14061_s3 + $0x280] sm:$0xff] }
 0x320   :  { %2106 = vmatpush.msra.mxu2 %v9337_v26  ;;  %2123 = vmatpush.msra.mxu3 %v15127_v28  ;;  %15154 = vst [vmem:[#allocation58_spill] sm:$0xff] %v9464_v31  ;;  %v9470_v28 = vld [vmem:[%s14061_s3 + $0x288] sm:$0xff] }
 0x321   :  { %2067 = vmatpush.msra.mxu0 %v9344_v22  ;;  %2084 = vmatpush.msra.mxu1 %v15129_v12  ;;  %15155 = vst [vmem:[#allocation99_spill] sm:$0xff] %v9470_v28  ;;  %v9476_v12 = vld [vmem:[%s14061_s3 + $0x700] sm:$0xff] }
 0x322   :  { %2107 = vmatpush.msra.mxu2 %v9351_v19  ;;  %2124 = vmatpush.msra.mxu3 %v15131_v20  ;;  %15156 = vst [vmem:[#allocation100_spill] sm:$0xff] %v9476_v12  ;;  %v9482_v20 = vld [vmem:[%s14061_s3 + $0x708] sm:$0xff] }
 0x323   :  { %2068 = vmatmul.f32.vlgmr.msra.gmra.mxu0 %v9041_v50  ;;  %2108 = vmatmul.f32.vlgmr.msra.gmra.mxu2 %v9041_v50  ;;  %v15137_v50 = vld [vmem:[#allocation48_spill] sm:$0xff]  ;;  %15157 = vst [vmem:[#allocation63_spill] sm:$0xff] %v9482_v20 }
 0x324   :  { %2085 = vmatpush.msra.mxu1 %v15132_v37  ;;  %2125 = vmatpush.msra.mxu3 %v15133_v58  ;;  %v9488_v37 = vld [vmem:[%s14061_s3 + $0x240] sm:$0xff]  ;;  %v9494_v58 = vld [vmem:[%s14061_s3 + $0x248] sm:$0xff] }
 0x325   :  { %2275 = vmatpush.msrb.mxu0 %v9362_v42  ;;  %2315 = vmatpush.msrb.mxu2 %v9368_v3  ;;  %15158 = vst [vmem:[#allocation64_spill] sm:$0xff] %v9488_v37  ;;  %v15272_v3 = vld [vmem:[#allocation174_spill] sm:$0xff] }
 0x326   :  { %2086 = vmatpush.msra.mxu1 %v15136_v60  ;;  %2126 = vmatpush.msra.mxu3 %v15137_v50  ;;  %15159 = vst [vmem:[#allocation103_spill] sm:$0xff] %v9494_v58  ;;  %v9500_v60 = vld [vmem:[%s14061_s3 + $0x6c0] sm:$0xff]  ;;  %v9506_v50 = vld [vmem:[%s14061_s3 + $0x6c8] sm:$0xff] }
 0x327   :  { %2276 = vmatpush.msrb.mxu0 %v9376_v14  ;;  %2316 = vmatpush.msrb.mxu2 %v9382_v17  ;;  %15160 = vst [vmem:[#allocation104_spill] sm:$0xff] %v9500_v60 }
 0x328   :  { %2087 = vmatpush.msra.mxu1 %v15140_v62  ;;  %2127 = vmatpush.msra.mxu3 %v15141_v47  ;;  %15161 = vst [vmem:[#allocation67_spill] sm:$0xff] %v9506_v50  ;;  %v9512_v62 = vld [vmem:[%s14061_s3 + $0x200] sm:$0xff]  ;;  %v9518_v47 = vld [vmem:[%s14061_s3 + $0x208] sm:$0xff] }
 0x329   :  { %2088 = vmatmul.f32.vlgmr.msra.gmra.mxu1 %v9050_v35  ;;  %2128 = vmatmul.f32.vlgmr.msra.gmra.mxu3 %v9050_v35  ;;  %15162 = vst [vmem:[#allocation68_spill] sm:$0xff] %v9512_v62  ;;  %v9524_v35 = vld [vmem:[%s14061_s3 + $0x680] sm:$0xff] }
 0x32a   :  { %2277 = vmatpush.msrb.mxu0 %v9392_v57  ;;  %2317 = vmatpush.msrb.mxu2 %v9398_v6  ;;  %15163 = vst [vmem:[#allocation109_spill] sm:$0xff] %v9518_v47 }
 0x32b   :  { %2295 = vmatpush.msrb.mxu1 %v9404_v8  ;;  %2335 = vmatpush.msrb.mxu3 %v9410_v7  ;;  %15164 = vst [vmem:[#allocation110_spill] sm:$0xff] %v9524_v35  ;;  %v15271_v8 = vld [vmem:[#allocation23_spill] sm:$0xff] }
 0x32c   :  { %2278 = vmatpush.msrb.mxu0 %v9416_v2  ;;  %2318 = vmatpush.msrb.mxu2 %v9422_v24  ;;  %v15269_v24 = vld [vmem:[#allocation4_spill] sm:$0xff] }
 0x32d   :  { %2296 = vmatpush.msrb.mxu1 %v9428_v56  ;;  %2336 = vmatpush.msrb.mxu3 %v9434_v33 }
 0x32e   :  { %2279 = vmatpush.msrb.mxu0 %v9440_v18  ;;  %2319 = vmatpush.msrb.mxu2 %v9446_v16  ;;  %v15267_v18 = vld [vmem:[#allocation10_spill] sm:$0xff] }
 0x32f   :  { %2297 = vmatpush.msrb.mxu1 %v9452_v63  ;;  %2337 = vmatpush.msrb.mxu3 %v9458_v10 }
 0x330   :  { %2280 = vmatpush.msrb.mxu0 %v9464_v31  ;;  %2320 = vmatpush.msrb.mxu2 %v9470_v28  ;;  %v15262_v28 = vld [vmem:[#allocation36_spill] sm:$0xff]  ;;  %v15263_v31 = vld [vmem:[#allocation37_spill] sm:$0xff] }
 0x331   :  { %2298 = vmatpush.msrb.mxu1 %v9476_v12  ;;  %2338 = vmatpush.msrb.mxu3 %v9482_v20  ;;  %v15258_v20 = vld [vmem:[#allocation34_spill] sm:$0xff] }
 0x332   :  { %2281 = vmatpush.msrb.mxu0 %v9488_v37  ;;  %2321 = vmatpush.msrb.mxu2 %v9494_v58  ;;  %v15254_v58 = vld [vmem:[#allocation32_spill] sm:$0xff]  ;;  %v15257_v37 = vld [vmem:[#allocation62_spill] sm:$0xff] }
 0x333   :  { %2299 = vmatpush.msrb.mxu1 %v9500_v60  ;;  %2339 = vmatpush.msrb.mxu3 %v9506_v50  ;;  %v9530_v50 = vld [vmem:[%s14061_s3 + $0x688] sm:$0xff]  ;;  %v15252_v60 = vld [vmem:[#allocation56_spill] sm:$0xff]  ;;  %v15261_v12 = vld [vmem:[#allocation66_spill] sm:$0xff] }
 0x334   :  { %2282 = vmatpush.msrb.mxu0 %v9512_v62  ;;  %2322 = vmatpush.msrb.mxu2 %v9518_v47  ;;  %15165 = vst [vmem:[#allocation71_spill] sm:$0xff] %v9530_v50  ;;  %v9536_v62 = vld [vmem:[%s14061_s3 + $0x1c0] sm:$0xff]  ;;  %v9542_v47 = vld [vmem:[%s14061_s3 + $0x1c8] sm:$0xff] }
 0x335   :  { %2300 = vmatpush.msrb.mxu1 %v9524_v35  ;;  %2340 = vmatpush.msrb.mxu3 %v9530_v50  ;;  %15166 = vst [vmem:[#allocation72_spill] sm:$0xff] %v9536_v62  ;;  %v9548_v35 = vld [vmem:[%s14061_s3 + $0x640] sm:$0xff]  ;;  %v9554_v50 = vld [vmem:[%s14061_s3 + $0x648] sm:$0xff] }
 0x336   :  { %2283 = vmatpush.msrb.mxu0 %v9536_v62  ;;  %15167 = vst [vmem:[#allocation113_spill] sm:$0xff] %v9542_v47  ;;  %2323 = vmatpush.msrb.mxu2 %v9542_v47  ;;  %v9560_v62 = vld [vmem:[%s14061_s3 + $0x180] sm:$0xff]  ;;  %v9566_v47 = vld [vmem:[%s14061_s3 + $0x188] sm:$0xff] }
 0x337   :  { %15168 = vst [vmem:[#allocation114_spill] sm:$0xff] %v9548_v35  ;;  %2301 = vmatpush.msrb.mxu1 %v9548_v35  ;;  %2341 = vmatpush.msrb.mxu3 %v9554_v50  ;;  %v9572_v35 = vld [vmem:[%s14061_s3 + $0x600] sm:$0xff] }
 0x338   :  { %15169 = vst [vmem:[#allocation77_spill] sm:$0xff] %v9554_v50  ;;  %2284 = vmatpush.msrb.mxu0 %v9560_v62  ;;  %2324 = vmatpush.msrb.mxu2 %v9566_v47  ;;  %v9578_v50 = vld [vmem:[%s14061_s3 + $0x608] sm:$0xff] }
 0x339   :  { %15170 = vst [vmem:[#allocation78_spill] sm:$0xff] %v9560_v62  ;;  %2302 = vmatpush.msrb.mxu1 %v9572_v35  ;;  %2342 = vmatpush.msrb.mxu3 %v9578_v50  ;;  %v9584_v62 = vld [vmem:[%s14061_s3 + $0x140] sm:$0xff] }
 0x33a   :  { %15171 = vst [vmem:[#allocation117_spill] sm:$0xff] %v9566_v47  ;;  %2285 = vmatpush.msrb.mxu0 %v9584_v62  ;;  %v9590_v47 = vld [vmem:[%s14061_s3 + $0x148] sm:$0xff] }
 0x33b   :  { %15172 = vst [vmem:[#allocation118_spill] sm:$0xff] %v9572_v35  ;;  %2325 = vmatpush.msrb.mxu2 %v9590_v47  ;;  %v9596_v35 = vld [vmem:[%s14061_s3 + $0x5c0] sm:$0xff] }
 0x33c   :  { %15173 = vst [vmem:[#allocation119_spill] sm:$0xff] %v9578_v50  ;;  %2303 = vmatpush.msrb.mxu1 %v9596_v35  ;;  %v9602_v50 = vld [vmem:[%s14061_s3 + $0x5c8] sm:$0xff] }
 0x33d   :  { %15174 = vst [vmem:[#allocation120_spill] sm:$0xff] %v9584_v62  ;;  %2343 = vmatpush.msrb.mxu3 %v9602_v50  ;;  %v9608_v62 = vld [vmem:[%s14061_s3 + $0x100] sm:$0xff] }
 0x33e   :  { %15175 = vst [vmem:[#allocation81_spill] sm:$0xff] %v9590_v47  ;;  %2286 = vmatpush.msrb.mxu0 %v9608_v62  ;;  %v9614_v47 = vld [vmem:[%s14061_s3 + $0x108] sm:$0xff] }
 0x33f   :  { %15176 = vst [vmem:[#allocation82_spill] sm:$0xff] %v9596_v35  ;;  %2326 = vmatpush.msrb.mxu2 %v9614_v47  ;;  %v9620_v35 = vld [vmem:[%s14061_s3 + $0x580] sm:$0xff] }
 0x340   :  { %15177 = vst [vmem:[#allocation125_spill] sm:$0xff] %v9602_v50  ;;  %2304 = vmatpush.msrb.mxu1 %v9620_v35  ;;  %v9626_v50 = vld [vmem:[%s14061_s3 + $0x588] sm:$0xff] }
 0x341   :  { %15178 = vst [vmem:[#allocation126_spill] sm:$0xff] %v9608_v62  ;;  %2344 = vmatpush.msrb.mxu3 %v9626_v50  ;;  %v9632_v62 = vld [vmem:[%s14061_s3 + $0xc0] sm:$0xff] }
 0x342   :  { %15179 = vst [vmem:[#allocation87_spill] sm:$0xff] %v9614_v47  ;;  %2287 = vmatpush.msrb.mxu0 %v9632_v62  ;;  %v9638_v47 = vld [vmem:[%s14061_s3 + $0xc8] sm:$0xff] }
 0x343   :  { %15180 = vst [vmem:[#allocation88_spill] sm:$0xff] %v9620_v35  ;;  %2327 = vmatpush.msrb.mxu2 %v9638_v47  ;;  %v9644_v35 = vld [vmem:[%s14061_s3 + $0x540] sm:$0xff] }
 0x344   :  { %15181 = vst [vmem:[#allocation129_spill] sm:$0xff] %v9626_v50  ;;  %2305 = vmatpush.msrb.mxu1 %v9644_v35  ;;  %v9650_v50 = vld [vmem:[%s14061_s3 + $0x548] sm:$0xff] }
 0x345   :  { %15182 = vst [vmem:[#allocation130_spill] sm:$0xff] %v9632_v62  ;;  %2345 = vmatpush.msrb.mxu3 %v9650_v50  ;;  %v9656_v62 = vld [vmem:[%s14061_s3 + $0x80] sm:$0xff] }
 0x346   :  { %15183 = vst [vmem:[#allocation91_spill] sm:$0xff] %v9638_v47  ;;  %2288 = vmatpush.msrb.mxu0 %v9656_v62  ;;  %v9662_v47 = vld [vmem:[%s14061_s3 + $0x88] sm:$0xff] }
 0x347   :  { %15184 = vst [vmem:[#allocation92_spill] sm:$0xff] %v9644_v35  ;;  %2328 = vmatpush.msrb.mxu2 %v9662_v47  ;;  %v9668_v35 = vld [vmem:[%s14061_s3 + $0x500] sm:$0xff] }
 0x348   :  { %15185 = vst [vmem:[#allocation135_spill] sm:$0xff] %v9650_v50  ;;  %2306 = vmatpush.msrb.mxu1 %v9668_v35  ;;  %v9674_v50 = vld [vmem:[%s14061_s3 + $0x508] sm:$0xff] }
 0x349   :  { %15186 = vst [vmem:[#allocation95_spill] sm:$0xff] %v9656_v62  ;;  %2346 = vmatpush.msrb.mxu3 %v9674_v50  ;;  %v9680_v62 = vld [vmem:[%s14061_s3 + $0x40] sm:$0xff] }
 0x34a   :  { %15187 = vst [vmem:[#allocation136_spill] sm:$0xff] %v9662_v47  ;;  %2289 = vmatpush.msrb.mxu0 %v9680_v62  ;;  %v9686_v47 = vld [vmem:[%s14061_s3 + $0x48] sm:$0xff] }
 0x34b   :  { %15188 = vst [vmem:[#allocation96_spill] sm:$0xff] %v9668_v35  ;;  %2329 = vmatpush.msrb.mxu2 %v9686_v47  ;;  %v9692_v35 = vld [vmem:[%s14061_s3 + $0x4c0] sm:$0xff] }
 0x34c   :  { %15189 = vst [vmem:[#allocation139_spill] sm:$0xff] %v9674_v50  ;;  %2307 = vmatpush.msrb.mxu1 %v9692_v35  ;;  %v9698_v50 = vld [vmem:[%s14061_s3 + $0x4c8] sm:$0xff] }
 0x34d   :  { %15190 = vst [vmem:[#allocation101_spill] sm:$0xff] %v9680_v62  ;;  %2347 = vmatpush.msrb.mxu3 %v9698_v50  ;;  %v9704_v62 = vld [vmem:[%s14061_s3] sm:$0xff] }
 0x34e   :  { %15191 = vst [vmem:[#allocation140_spill] sm:$0xff] %v9686_v47  ;;  %2290 = vmatpush.msrb.mxu0 %v9704_v62  ;;  %v9710_v47 = vld [vmem:[%s14061_s3 + $0x8] sm:$0xff] }
 0x34f   :  { %15192 = vst [vmem:[#allocation102_spill] sm:$0xff] %v9692_v35  ;;  %2330 = vmatpush.msrb.mxu2 %v9710_v47  ;;  %v9716_v35 = vld [vmem:[%s14061_s3 + $0x3d0] sm:$0xff] }
 0x350   :  { %15193 = vst [vmem:[#allocation143_spill] sm:$0xff] %v9698_v50  ;;  %2355 = vmatpush.msra.mxu0 %v9716_v35  ;;  %v9722_v50 = vld [vmem:[%s14061_s3 + $0x3d8] sm:$0xff] }
 0x351   :  { %15194 = vst [vmem:[#allocation105_spill] sm:$0xff] %v9704_v62  ;;  %2395 = vmatpush.msra.mxu2 %v9722_v50  ;;  %v9728_v62 = vld [vmem:[%s14061_s3 + $0x480] sm:$0xff] }
 0x352   :  { %15195 = vst [vmem:[#allocation144_spill] sm:$0xff] %v9710_v47  ;;  %2308 = vmatpush.msrb.mxu1 %v9728_v62  ;;  %v9734_v47 = vld [vmem:[%s14061_s3 + $0x488] sm:$0xff] }
 0x353   :  { %15196 = vst [vmem:[#allocation106_spill] sm:$0xff] %v9716_v35  ;;  %2348 = vmatpush.msrb.mxu3 %v9734_v47  ;;  %v9740_v35 = vld [vmem:[%s14061_s3 + $0x390] sm:$0xff] }
 0x354   :  { %15197 = vst [vmem:[#allocation149_spill] sm:$0xff] %v9722_v50  ;;  %2356 = vmatpush.msra.mxu0 %v9740_v35  ;;  %v9746_v50 = vld [vmem:[%s14061_s3 + $0x398] sm:$0xff] }
 0x355   :  { %15198 = vst [vmem:[#allocation111_spill] sm:$0xff] %v9728_v62  ;;  %2396 = vmatpush.msra.mxu2 %v9746_v50  ;;  %v9752_v62 = vld [vmem:[%s14061_s3 + $0x440] sm:$0xff] }
 0x356   :  { %15199 = vst [vmem:[#allocation150_spill] sm:$0xff] %v9734_v47  ;;  %2309 = vmatpush.msrb.mxu1 %v9752_v62  ;;  %v9758_v47 = vld [vmem:[%s14061_s3 + $0x448] sm:$0xff] }
 0x357   :  { %15200 = vst [vmem:[#allocation112_spill] sm:$0xff] %v9740_v35  ;;  %2349 = vmatpush.msrb.mxu3 %v9758_v47  ;;  %v9764_v35 = vld [vmem:[%s14061_s3 + $0x350] sm:$0xff] }
 0x358   :  { %15201 = vst [vmem:[#allocation152_spill] sm:$0xff] %v9746_v50  ;;  %2357 = vmatpush.msra.mxu0 %v9764_v35  ;;  %v9770_v50 = vld [vmem:[%s14061_s3 + $0x358] sm:$0xff] }
 0x359   :  { %15202 = vst [vmem:[#allocation115_spill] sm:$0xff] %v9752_v62  ;;  %2397 = vmatpush.msra.mxu2 %v9770_v50  ;;  %v9776_v62 = vld [vmem:[%s14061_s3 + $0x400] sm:$0xff] }
 0x35a   :  { %15203 = vst [vmem:[#allocation153_spill] sm:$0xff] %v9758_v47  ;;  %2310 = vmatpush.msrb.mxu1 %v9776_v62  ;;  %v9782_v47 = vld [vmem:[%s14061_s3 + $0x408] sm:$0xff] }
 0x35b   :  { %15204 = vst [vmem:[#allocation116_spill] sm:$0xff] %v9764_v35  ;;  %2350 = vmatpush.msrb.mxu3 %v9782_v47  ;;  %v9788_v35 = vld [vmem:[%s14061_s3 + $0x310] sm:$0xff] }
 0x35c   :  { %15205 = vst [vmem:[#allocation156_spill] sm:$0xff] %v9770_v50  ;;  %2358 = vmatpush.msra.mxu0 %v9788_v35  ;;  %v9794_v50 = vld [vmem:[%s14061_s3 + $0x7d0] sm:$0xff] }
 0x35d   :  { %15206 = vst [vmem:[#allocation123_spill] sm:$0xff] %v9776_v62  ;;  %2375 = vmatpush.msra.mxu1 %v9794_v50  ;;  %v9800_v62 = vld [vmem:[%s14061_s3 + $0x318] sm:$0xff] }
 0x35e   :  { %15207 = vst [vmem:[#allocation157_spill] sm:$0xff] %v9782_v47  ;;  %2398 = vmatpush.msra.mxu2 %v9800_v62  ;;  %v9806_v47 = vld [vmem:[%s14061_s3 + $0x7d8] sm:$0xff] }
 0x35f   :  { %15208 = vst [vmem:[#allocation124_spill] sm:$0xff] %v9788_v35  ;;  %2415 = vmatpush.msra.mxu3 %v9806_v47  ;;  %v9812_v35 = vld [vmem:[%s14061_s3 + $0x2d0] sm:$0xff] }
 0x360   :  { %15209 = vst [vmem:[#allocation158_spill] sm:$0xff] %v9794_v50  ;;  %2359 = vmatpush.msra.mxu0 %v9812_v35  ;;  %v9818_v50 = vld [vmem:[%s14061_s3 + $0x790] sm:$0xff] }
 0x361   :  { %15210 = vst [vmem:[#allocation127_spill] sm:$0xff] %v9800_v62  ;;  %2376 = vmatpush.msra.mxu1 %v9818_v50  ;;  %v9824_v62 = vld [vmem:[%s14061_s3 + $0x2d8] sm:$0xff] }
 0x362   :  { %15211 = vst [vmem:[#allocation159_spill] sm:$0xff] %v9806_v47  ;;  %2399 = vmatpush.msra.mxu2 %v9824_v62  ;;  %v9830_v47 = vld [vmem:[%s14061_s3 + $0x798] sm:$0xff] }
 0x363   :  { %15212 = vst [vmem:[#allocation128_spill] sm:$0xff] %v9812_v35  ;;  %2416 = vmatpush.msra.mxu3 %v9830_v47  ;;  %v9836_v35 = vld [vmem:[%s14061_s3 + $0x290] sm:$0xff] }
 0x364   :  { %15213 = vst [vmem:[#allocation160_spill] sm:$0xff] %v9818_v50  ;;  %2360 = vmatpush.msra.mxu0 %v9836_v35  ;;  %v9842_v50 = vld [vmem:[%s14061_s3 + $0x750] sm:$0xff] }
 0x365   :  { %15214 = vst [vmem:[#allocation133_spill] sm:$0xff] %v9824_v62  ;;  %2377 = vmatpush.msra.mxu1 %v9842_v50  ;;  %v9848_v62 = vld [vmem:[%s14061_s3 + $0x298] sm:$0xff] }
 0x366   :  { %15215 = vst [vmem:[#allocation161_spill] sm:$0xff] %v9830_v47  ;;  %2400 = vmatpush.msra.mxu2 %v9848_v62  ;;  %v9854_v47 = vld [vmem:[%s14061_s3 + $0x758] sm:$0xff] }
 0x367   :  { %15216 = vst [vmem:[#allocation134_spill] sm:$0xff] %v9836_v35  ;;  %2417 = vmatpush.msra.mxu3 %v9854_v47  ;;  %v9860_v35 = vld [vmem:[%s14061_s3 + $0x250] sm:$0xff]  ;;  %v1889_v10 = vpop.f32.mrf.mxu3 }
 0x368   :  { %15217 = vst [vmem:[#allocation164_spill] sm:$0xff] %v9842_v50  ;;  %2361 = vmatpush.msra.mxu0 %v9860_v35  ;;  %v9866_v50 = vld [vmem:[%s14061_s3 + $0x710] sm:$0xff] }
 0x369   :  { %15218 = vst [vmem:[#allocation137_spill] sm:$0xff] %v9848_v62  ;;  %2378 = vmatpush.msra.mxu1 %v9866_v50  ;;  %v9872_v62 = vld [vmem:[%s14061_s3 + $0x258] sm:$0xff] }
 0x36a   :  { %15219 = vst [vmem:[#allocation165_spill] sm:$0xff] %v9854_v47  ;;  %2401 = vmatpush.msra.mxu2 %v9872_v62  ;;  %v9878_v47 = vld [vmem:[%s14061_s3 + $0x718] sm:$0xff] }
 0x36b   :  { %15220 = vst [vmem:[#allocation138_spill] sm:$0xff] %v9860_v35  ;;  %2418 = vmatpush.msra.mxu3 %v9878_v47  ;;  %v9884_v35 = vld [vmem:[%s14061_s3 + $0x210] sm:$0xff] }
 0x36c   :  { %15221 = vst [vmem:[#allocation166_spill] sm:$0xff] %v9866_v50  ;;  %2362 = vmatpush.msra.mxu0 %v9884_v35  ;;  %v9890_v50 = vld [vmem:[%s14061_s3 + $0x6d0] sm:$0xff] }
 0x36d   :  { %15222 = vst [vmem:[#allocation141_spill] sm:$0xff] %v9872_v62  ;;  %2379 = vmatpush.msra.mxu1 %v9890_v50  ;;  %v9896_v62 = vld [vmem:[%s14061_s3 + $0x218] sm:$0xff] }
 0x36e   :  { %15223 = vst [vmem:[#allocation167_spill] sm:$0xff] %v9878_v47  ;;  %2402 = vmatpush.msra.mxu2 %v9896_v62  ;;  %v9902_v47 = vld [vmem:[%s14061_s3 + $0x6d8] sm:$0xff] }
 0x36f   :  { %15224 = vst [vmem:[#allocation142_spill] sm:$0xff] %v9884_v35  ;;  %2419 = vmatpush.msra.mxu3 %v9902_v47  ;;  %v9908_v35 = vld [vmem:[%s14061_s3 + $0x1d0] sm:$0xff] }
 0x370   :  { %15225 = vst [vmem:[#allocation170_spill] sm:$0xff] %v9890_v50  ;;  %2363 = vmatpush.msra.mxu0 %v9908_v35  ;;  %v9914_v50 = vld [vmem:[%s14061_s3 + $0x690] sm:$0xff] }
 0x371   :  { %15226 = vst [vmem:[#allocation147_spill] sm:$0xff] %v9896_v62  ;;  %2380 = vmatpush.msra.mxu1 %v9914_v50  ;;  %v9920_v62 = vld [vmem:[%s14061_s3 + $0x1d8] sm:$0xff] }
 0x372   :  { %15227 = vst [vmem:[#allocation148_spill] sm:$0xff] %v9902_v47  ;;  %2403 = vmatpush.msra.mxu2 %v9920_v62  ;;  %v9926_v47 = vld [vmem:[%s14061_s3 + $0x698] sm:$0xff] }
 0x373   :  { %15228 = vst [vmem:[#allocation151_spill] sm:$0xff] %v9908_v35  ;;  %2420 = vmatpush.msra.mxu3 %v9926_v47  ;;  %v9932_v35 = vld [vmem:[%s14061_s3 + $0x190] sm:$0xff] }
 0x374   :  { %15229 = vst [vmem:[#allocation7_spill] sm:$0xff] %v9914_v50  ;;  %2364 = vmatpush.msra.mxu0 %v9932_v35  ;;  %v9938_v50 = vld [vmem:[%s14061_s3 + $0x650] sm:$0xff] }
 0x375   :  { %15230 = vst [vmem:[#allocation15_spill] sm:$0xff] %v9920_v62  ;;  %2381 = vmatpush.msra.mxu1 %v9938_v50  ;;  %v9944_v62 = vld [vmem:[%s14061_s3 + $0x198] sm:$0xff] }
 0x376   :  { %15231 = vst [vmem:[#allocation21_spill] sm:$0xff] %v9926_v47  ;;  %2404 = vmatpush.msra.mxu2 %v9944_v62  ;;  %v9950_v47 = vld [vmem:[%s14061_s3 + $0x658] sm:$0xff] }
 0x377   :  { %15232 = vst [vmem:[#allocation20_spill] sm:$0xff] %v9932_v35  ;;  %2421 = vmatpush.msra.mxu3 %v9950_v47  ;;  %v9956_v35 = vld [vmem:[%s14061_s3 + $0x150] sm:$0xff] }
 0x378   :  { %15233 = vst [vmem:[#allocation59_spill] sm:$0xff] %v9938_v50  ;;  %2365 = vmatpush.msra.mxu0 %v9956_v35  ;;  %v9962_v50 = vld [vmem:[%s14061_s3 + $0x610] sm:$0xff] }
 0x379   :  { %15234 = vst [vmem:[#allocation60_spill] sm:$0xff] %v9944_v62  ;;  %2382 = vmatpush.msra.mxu1 %v9962_v50  ;;  %v9968_v62 = vld [vmem:[%s14061_s3 + $0x158] sm:$0xff] }
 0x37a   :  { %15235 = vst [vmem:[#allocation73_spill] sm:$0xff] %v9950_v47  ;;  %2405 = vmatpush.msra.mxu2 %v9968_v62  ;;  %v9974_v47 = vld [vmem:[%s14061_s3 + $0x618] sm:$0xff] }
 0x37b   :  { %15236 = vst [vmem:[#allocation74_spill] sm:$0xff] %v9956_v35  ;;  %2422 = vmatpush.msra.mxu3 %v9974_v47  ;;  %v9980_v35 = vld [vmem:[%s14061_s3 + $0x110] sm:$0xff] }
 0x37c   :  { %15237 = vst [vmem:[#allocation178_spill] sm:$0xff] %v9962_v50  ;;  %2366 = vmatpush.msra.mxu0 %v9980_v35  ;;  %v9986_v50 = vld [vmem:[%s14061_s3 + $0x5d0] sm:$0xff] }
 0x37d   :  { %15238 = vst [vmem:[#allocation179_spill] sm:$0xff] %v9968_v62  ;;  %2383 = vmatpush.msra.mxu1 %v9986_v50  ;;  %v9992_v62 = vld [vmem:[%s14061_s3 + $0x118] sm:$0xff] }
 0x37e   :  { %15239 = vst [vmem:[#allocation180_spill] sm:$0xff] %v9974_v47  ;;  %2406 = vmatpush.msra.mxu2 %v9992_v62  ;;  %v9998_v47 = vld [vmem:[%s14061_s3 + $0x5d8] sm:$0xff] }
 0x37f   :  { %15240 = vst [vmem:[#allocation181_spill] sm:$0xff] %v9980_v35  ;;  %2423 = vmatpush.msra.mxu3 %v9998_v47  ;;  %v10004_v35 = vld [vmem:[%s14061_s3 + $0xd0] sm:$0xff] }
 0x380   :  { %15241 = vst [vmem:[#allocation182_spill] sm:$0xff] %v9986_v50  ;;  %2367 = vmatpush.msra.mxu0 %v10004_v35  ;;  %v10010_v50 = vld [vmem:[%s14061_s3 + $0x590] sm:$0xff] }
 0x381   :  { %15242 = vst [vmem:[#allocation183_spill] sm:$0xff] %v9992_v62  ;;  %2384 = vmatpush.msra.mxu1 %v10010_v50  ;;  %v10016_v62 = vld [vmem:[%s14061_s3 + $0xd8] sm:$0xff] }
 0x382   :  { %15243 = vst [vmem:[#allocation184_spill] sm:$0xff] %v9998_v47  ;;  %2407 = vmatpush.msra.mxu2 %v10016_v62  ;;  %v10022_v47 = vld [vmem:[%s14061_s3 + $0x598] sm:$0xff] }
 0x383   :  { %15244 = vst [vmem:[#allocation185_spill] sm:$0xff] %v10004_v35  ;;  %2424 = vmatpush.msra.mxu3 %v10022_v47  ;;  %v10028_v35 = vld [vmem:[%s14061_s3 + $0x90] sm:$0xff] }
 0x384   :  { %15245 = vst [vmem:[#allocation186_spill] sm:$0xff] %v10010_v50  ;;  %2368 = vmatpush.msra.mxu0 %v10028_v35  ;;  %v10034_v50 = vld [vmem:[%s14061_s3 + $0x550] sm:$0xff] }
 0x385   :  { %15246 = vst [vmem:[#allocation187_spill] sm:$0xff] %v10016_v62  ;;  %2385 = vmatpush.msra.mxu1 %v10034_v50  ;;  %v15250_v62 = vld [vmem:[#allocation55_spill] sm:$0xff] }
 0x386   :  { %15247 = vst [vmem:[#allocation188_spill] sm:$0xff] %v10022_v47  ;;  %2408 = vmatpush.msra.mxu2 %v15250_v62  ;;  %v10041_v47 = vld [vmem:[%s14061_s3 + $0x558] sm:$0xff]  ;;  %2369 = vmatpush.msra.mxu0 %v15252_v60  ;;  %v15256_v62 = vld [vmem:[#allocation61_spill] sm:$0xff] }
 0x387   :  { %15248 = vst [vmem:[#allocation189_spill] sm:$0xff] %v10028_v35  ;;  %2425 = vmatpush.msra.mxu3 %v10041_v47  ;;  %v10048_v35 = vld [vmem:[%s14061_s3 + $0x510] sm:$0xff]  ;;  %v15260_v60 = vld [vmem:[#allocation65_spill] sm:$0xff] }
 0x388   :  { %15249 = vst [vmem:[#allocation190_spill] sm:$0xff] %v10034_v50  ;;  %2386 = vmatpush.msra.mxu1 %v10048_v35  ;;  %2409 = vmatpush.msra.mxu2 %v15254_v58  ;;  %v15255_v50 = vld [vmem:[#allocation33_spill] sm:$0xff]  ;;  %v15265_v58 = vld [vmem:[#allocation70_spill] sm:$0xff] }
 0x389   :  { %15251 = vst [vmem:[#allocation191_spill] sm:$0xff] %v10041_v47  ;;  %2426 = vmatpush.msra.mxu3 %v15255_v50  ;;  %2370 = vmatpush.msra.mxu0 %v15256_v62  ;;  %v15259_v47 = vld [vmem:[#allocation35_spill] sm:$0xff]  ;;  %v1849_v50 = vpop.f32.mrf.mxu1  ;;  %v1829_v62 = vpop.f32.mrf.mxu0 }
 0x38a   :  { %15253 = vst [vmem:[#allocation192_spill] sm:$0xff] %v10048_v35  ;;  %2387 = vmatpush.msra.mxu1 %v15257_v37  ;;  %2410 = vmatpush.msra.mxu2 %v15258_v20  ;;  %v15264_v35 = vld [vmem:[#allocation69_spill] sm:$0xff]  ;;  %v1869_v37 = vpop.f32.mrf.mxu2  ;;  %v1850_v33 = vadd.f32 %v1849_v50, %v1829_v62 }
 0x38b   :  { %2427 = vmatpush.msra.mxu3 %v15259_v47  ;;  %v15266_v47 = vld [vmem:[#allocation8_spill] sm:$0xff]  ;;  %v1890_v17 = vadd.f32 %v1889_v10, %v1869_v37 }
 0x38c   :  { %2388 = vmatpush.msra.mxu1 %v15260_v60  ;;  %v528_v60 = vadd.f32 %v15267_v18, %v15266_v47 }
 0x38d   :  { %2428 = vmatpush.msra.mxu3 %v15261_v12  ;;  %v1969_v12 = vpop.f32.mrf.mxu3 }
 0x38e   :  { %2389 = vmatpush.msra.mxu1 %v15262_v28  ;;  %v15268_v28 = vld [vmem:[#allocation9_spill] sm:$0xff] }
 0x38f   :  { %2429 = vmatpush.msra.mxu3 %v15263_v31  ;;  %v446_v31 = vadd.f32 %v15269_v24, %v15268_v28  ;;  %v15274_v24 = vld [vmem:[#allocation11_spill] sm:$0xff] }
 0x390   :  { %2390 = vmatpush.msra.mxu1 %v15264_v35 }
 0x391   :  { %2430 = vmatpush.msra.mxu3 %v15265_v58  ;;  %v1929_v63 = vpop.f32.mrf.mxu1  ;;  %v1909_v20 = vpop.f32.mrf.mxu0  ;;  %v2132_v7 = vadd.f32 %v1850_v33, %v446_v31  ;;  %v15270_v58 = vld [vmem:[#allocation173_spill] sm:$0xff] }
 0x392   :  { %v1930_v16 = vadd.f32 %v1929_v63, %v1909_v20  ;;  %v1949_v2 = vpop.f32.mrf.mxu2  ;;  %v569_v6 = vadd.f32 %v15271_v8, %v15270_v58  ;;  %v15273_v63 = vld [vmem:[#allocation22_spill] sm:$0xff] }
 0x393   :  { %v1970_v35 = vadd.f32 %v1969_v12, %v1949_v2  ;;  %v487_v20 = vadd.f32 %v15273_v63, %v15272_v3  ;;  %v4515_v42 = vmul.f32 -1.442695, %v2132_v7  ;;  %v15275_v2 = vld [vmem:[#allocation83_spill] sm:$0xff] }
 0x394   :  { %v2134_v56 = vadd.f32 %v1930_v16, %v528_v60  ;;  %v610_v33 = vadd.f32 %v15275_v2, %v15274_v24  ;;  %v15279_v24 = vld [vmem:[#allocation97_spill] sm:$0xff] }
 0x395   :  { %v2135_v14 = vadd.f32 %v1970_v35, %v569_v6  ;;  %v2133_v50 = vadd.f32 %v1890_v17, %v487_v20  ;;  %v15277_v17 = vld [vmem:[#allocation84_spill] sm:$0xff] }
 0x396   :  { %v4517_v57 = vmul.f32 -1.442695, %v2134_v56  ;;  %v2049_v56 = vpop.f32.mrf.mxu3 }
 0x397   :  { %v4518_v62 = vmul.f32 -1.442695, %v2135_v14  ;;  %v4516_v12 = vmul.f32 -1.442695, %v2133_v50 }
 0x398   :  { %4646 = vpow2.f32 %v4517_v57  ;;  %v15276_v57 = vld [vmem:[#allocation175_spill] sm:$0xff] }
 0x399   :  { %v2009_v18 = vpop.f32.mrf.mxu1  ;;  %v1989_v16 = vpop.f32.mrf.mxu0  ;;  %4648 = vpow2.f32 %v4515_v42  ;;  %v651_v35 = vadd.f32 %v15277_v17, %v15276_v57 }
 0x39a   :  { %v2010_v60 = vadd.f32 %v2009_v18, %v1989_v16  ;;  %4650 = vpow2.f32 %v4518_v62  ;;  %v2029_v6 = vpop.f32.mrf.mxu2 }
 0x39b   :  { %v2050_v10 = vadd.f32 %v2049_v56, %v2029_v6  ;;  %4652 = vpow2.f32 %v4516_v12 }
 0x39c   :  { %v2136_v8 = vadd.f32 %v2010_v60, %v610_v33 }
 0x39d   :  { %v2137_v20 = vadd.f32 %v2050_v10, %v651_v35 }
 0x39e   :  { %v4647_v31 = vpop.eup %4646  ;;  %v4519_v14 = vmul.f32 -1.442695, %v2136_v8 }
 0x39f   :  { %v4649_v37 = vpop.eup %4648  ;;  %v10073_v7 = vadd.f32 1.0, %v4647_v31  ;;  %v4520_v16 = vmul.f32 -1.442695, %v2137_v20 }
 0x3a0   :  { %v4651_v63 = vpop.eup %4650  ;;  %v2158_v42 = vadd.f32 1.0, %v4649_v37 }
 0x3a1   :  { %4654 = vrcp.f32 %v10073_v7  ;;  %v4653_v18 = vpop.eup %4652  ;;  %v10078_v50 = vadd.f32 1.0, %v4651_v63  ;;  %v2205_v19 = vand.u32 2147483648, %v10073_v7  ;;  %vm2199_vm0 = vweird.f32 %v10073_v7 }
 0x3a2   :  { %4656 = vpow2.f32 %v4519_v14  ;;  %v10080_v62 = vadd.f32 1.0, %v4653_v18  ;;  %v2175_v47 = vand.u32 2147483648, %v2158_v42  ;;  %vm2169_vm2 = vweird.f32 %v2158_v42 }
 0x3a3   :  { %4658 = vrcp.f32 %v2158_v42  ;;  %vm2214_vm8 = vweird.f32 %v10078_v50 }
 0x3a4   :  { %4660 = vrcp.f32 %v10078_v50  ;;  %vm2184_vm5 = vweird.f32 %v10080_v62 }
 0x3a5   :  { %4662 = vpow2.f32 %v4520_v16 }
 0x3a6   :  { %4664 = vrcp.f32 %v10080_v62 }
 0x3a7   :  { %v10082_v60 = vpop.eup %4654 }
 0x3a8   :  { %v4657_v2 = vpop.eup %4656  ;;  %v2195_v12 = vmul.f32 %v10082_v60, %v10073_v7  ;;  %vm2200_vm14 = vweird.f32 %v10082_v60 }
 0x3a9   :  { %v10085_v33 = vpop.eup %4658  ;;  %v10090_v31 = vadd.f32 1.0, %v4657_v2  ;;  %v2069_v2 = vpop.f32.mrf.mxu0  ;;  %vm10123_vm1 = vmor %vm2199_vm0, %vm2200_vm14 }
 0x3aa   :  { %v10092_v8 = vpop.eup %4660  ;;  %v2165_v56 = vmul.f32 %v10085_v33, %v2158_v42  ;;  %v2196_v10 = vsub.f32 1.0, %v2195_v12  ;;  %v2089_v12 = vpop.f32.mrf.mxu1  ;;  %vm2170_vm15 = vweird.f32 %v10085_v33 }
 0x3ab   :  { %v4663_v6 = vpop.eup %4662  ;;  %4666 = vrcp.f32 %v10090_v31  ;;  %v2210_v35 = vmul.f32 %v10092_v8, %v10078_v50  ;;  %v2090_v58 = vadd.f32 %v2089_v12, %v2069_v2  ;;  %v15280_v2 = vld [vmem:[#allocation176_spill] sm:$0xff]  ;;  %v15281_v12 = vld [vmem:[#allocation98_spill] sm:$0xff]  ;;  %vm10139_vm4 = vmor %vm2169_vm2, %vm2170_vm15  ;;  %vm2215_vm6 = vweird.f32 %v10092_v8 }
 0x3ac   :  { %v10096_v37 = vpop.eup %4664  ;;  %v2166_v17 = vsub.f32 1.0, %v2165_v56  ;;  %v10100_v14 = vadd.f32 1.0, %v4663_v6  ;;  %v2197_v20 = vmul.f32 %v10082_v60, %v2196_v10  ;;  %v15278_v56 = vld [vmem:[#allocation19_spill] sm:$0xff]  ;;  %v2173_v6 = vand.u32 2147483647, %v2158_v42  ;;  %v2129_v26 = vpop.f32.mrf.mxu3  ;;  %vm10156_vm10 = vmor %vm2214_vm8, %vm2215_vm6 }
 0x3ad   :  { %v2180_v63 = vmul.f32 %v10096_v37, %v10080_v62  ;;  %v2211_v16 = vsub.f32 1.0, %v2210_v35  ;;  %v692_v3 = vadd.f32 %v15279_v24, %v15278_v56  ;;  %v733_v56 = vadd.f32 %v15281_v12, %v15280_v2 }
 0x3ae   :  { %4668 = vrcp.f32 %v10100_v14  ;;  %v2167_v57 = vmul.f32 %v10085_v33, %v2166_v17  ;;  %v2198_v10 = vadd.f32 %v10082_v60, %v2197_v20  ;;  %vm10129_vm3 = vcmp.eq.f32.partialorder %v2173_v6, 8.507059e+37 }
 0x3af   :  { %v2181_v28 = vsub.f32 1.0, %v2180_v63  ;;  %v2138_v22 = vadd.f32 %v2090_v58, %v692_v3  ;;  %v2212_v24 = vmul.f32 %v10092_v8, %v2211_v16  ;;  %v2203_v63 = vand.u32 2147483647, %v10073_v7 }
 0x3b0   :  { %v2168_v17 = vadd.f32 %v10085_v33, %v2167_v57  ;;  %v2176_v16 = vor.u32 1.1754944e-38, %v2175_v47  ;;  %v2202_v7 = vsel %vm10123_vm1, %v10082_v60, %v2198_v10  ;;  %v2109_v57 = vpop.f32.mrf.mxu2  ;;  %v2206_v2 = vor.u32 1.1754944e-38, %v2205_v19 }
 0x3b1   :  { %v10105_v18 = vpop.eup %4666  ;;  %4670 = vtanh.f32 %v2138_v22  ;;  %v2182_v12 = vmul.f32 %v10096_v37, %v2181_v28  ;;  %v2130_v42 = vadd.f32 %v2129_v26, %v2109_v57  ;;  %vm2204_vm7 = vcmp.eq.f32.partialorder %v2203_v63, 8.507059e+37 }
 0x3b2   :  { %v2225_v35 = vmul.f32 %v10105_v18, %v10090_v31  ;;  %v2172_v47 = vsel %vm10139_vm4, %v10085_v33, %v2168_v17  ;;  %v2213_v28 = vadd.f32 %v10092_v8, %v2212_v24  ;;  %v2220_v19 = vand.u32 2147483648, %v10078_v50 }
 0x3b3   :  { %v2207_v6 = vsel %vm2204_vm7, %v2206_v2, %v2202_v7  ;;  %v2139_v10 = vadd.f32 %v2130_v42, %v733_v56  ;;  %v2183_v26 = vadd.f32 %v10096_v37, %v2182_v12  ;;  %vm2185_vm9 = vweird.f32 %v10096_v37 }
 0x3b4   :  { %v10127_v3 = vpop.eup %4668  ;;  %v2226_v34 = vsub.f32 1.0, %v2225_v35  ;;  %v2218_v35 = vand.u32 2147483647, %v10078_v50  ;;  %v2177_v17 = vsel %vm10129_vm3, %v2176_v16, %v2172_v47  ;;  %v2190_v56 = vand.u32 2147483648, %v10080_v62  ;;  %vm10171_vm11 = vmor %vm2184_vm5, %vm2185_vm9 }
 0x3b5   :  { %v2240_v60 = vmul.f32 %v10127_v3, %v10100_v14  ;;  %4672 = vtanh.f32 %v2139_v10  ;;  %v2256_v63 = vmul.f32 %v2207_v6, %v9019_v40  ;;  %v2188_v7 = vand.u32 2147483647, %v10080_v62 }
 0x3b6   :  { %v2227_v24 = vmul.f32 %v10105_v18, %v2226_v34  ;;  %v2217_v50 = vsel %vm10156_vm10, %v10092_v8, %v2213_v28  ;;  %v2221_v57 = vor.u32 1.1754944e-38, %v2220_v19  ;;  %v2187_v40 = vsel %vm10171_vm11, %v10096_v37, %v2183_v26  ;;  %v10245_v34 = vld [vmem:[%s14061_s3 + $0x320] sm:$0xff] }
 0x3b7   :  { %v4671_v20 = vpop.eup %4670  ;;  %v2241_v12 = vsub.f32 1.0, %v2240_v60  ;;  %vm2219_vm12 = vcmp.eq.f32.partialorder %v2218_v35, 8.507059e+37  ;;  %vm2230_vm13 = vweird.f32 %v10105_v18  ;;  %v2191_v8 = vor.u32 1.1754944e-38, %v2190_v56  ;;  %v10205_v56 = vld [vmem:[%s14061_s3 + $0x3e0] sm:$0xff] }
 0x3b8   :  { %v2258_v2 = vmul.f32 %v4671_v20, %v2177_v17  ;;  %v2228_v16 = vadd.f32 %v10105_v18, %v2227_v24  ;;  %v2222_v22 = vsel %vm2219_vm12, %v2221_v57, %v2217_v50  ;;  %v2235_v42 = vand.u32 2147483648, %v10090_v31  ;;  %v10231_v57 = vld [vmem:[%s14061_s3 + $0x360] sm:$0xff] }
 0x3b9   :  { %vm2189_vm14 = vcmp.eq.f32.partialorder %v2188_v7, 8.507059e+37  ;;  %vm2229_vm15 = vweird.f32 %v10090_v31  ;;  %v2233_v47 = vand.u32 2147483647, %v10090_v31  ;;  %v2242_v28 = vmul.f32 %v10127_v3, %v2241_v12  ;;  %v10223_v7 = vld [vmem:[%s14061_s3 + $0x3a8] sm:$0xff] }
 0x3ba   :  { %v10175_v58 = vadd.f32 %v2258_v2, %v2256_v63  ;;  %v2192_v37 = vsel %vm2189_vm14, %v2191_v8, %v2187_v40  ;;  %vm2231_vm0 = vmor %vm2229_vm15, %vm2230_vm13  ;;  %v2257_v19 = vmul.f32 %v2222_v22, %v9033_v29  ;;  %v2236_v10 = vor.u32 1.1754944e-38, %v2235_v42  ;;  %v10217_v2 = vld [vmem:[%s14061_s3 + $0x3a0] sm:$0xff]  ;;  %v10237_v12 = vld [vmem:[%s14061_s3 + $0x368] sm:$0xff] }
 0x3bb   :  { %v4673_v62 = vpop.eup %4672  ;;  %v2232_v6 = vsel %vm2231_vm0, %v10105_v18, %v2228_v16  ;;  %vm2234_vm1 = vcmp.eq.f32.partialorder %v2233_v47, 8.507059e+37  ;;  %v2243_v35 = vadd.f32 %v10127_v3, %v2242_v28  ;;  %vm2245_vm2 = vweird.f32 %v10127_v3  ;;  %v10251_v40 = vld [vmem:[%s14061_s3 + $0x7e0] sm:$0xff]  ;;  %v10257_v16 = vld [vmem:[%s14061_s3 + $0x328] sm:$0xff] }
 0x3bc   :  { %4674 = vtanh.f32 %v10175_v58  ;;  %v2259_v60 = vmul.f32 %v4673_v62, %v2192_v37  ;;  %v2237_v33 = vsel %vm2234_vm1, %v2236_v10, %v2232_v6  ;;  %v2250_v31 = vand.u32 2147483648, %v10100_v14  ;;  %v10263_v8 = vld [vmem:[%s14061_s3 + $0x7e8] sm:$0xff]  ;;  %v10271_v22 = vld [vmem:[%s14061_s3 + $0x2e0] sm:$0xff] }
 0x3bd   :  { %vm2244_vm3 = vweird.f32 %v10100_v14  ;;  %v2248_v29 = vand.u32 2147483647, %v10100_v14  ;;  %v10211_v14 = vld [vmem:[%s14061_s3 + $0x3e8] sm:$0xff]  ;;  %v10277_v42 = vld [vmem:[%s14061_s3 + $0x7a0] sm:$0xff] }
 0x3be   :  { %v10189_v26 = vadd.f32 %v2259_v60, %v2257_v19  ;;  %vm2246_vm4 = vmor %vm2244_vm3, %vm2245_vm2  ;;  %v2251_v17 = vor.u32 1.1754944e-38, %v2250_v31  ;;  %v10283_v62 = vld [vmem:[%s14061_s3 + $0x2e8] sm:$0xff]  ;;  %v10295_v28 = vld [vmem:[%s14061_s3 + $0x2a0] sm:$0xff] }
 0x3bf   :  { %v2247_v18 = vsel %vm2246_vm4, %v10127_v3, %v2243_v35  ;;  %vm2249_vm5 = vcmp.eq.f32.partialorder %v2248_v29, 8.507059e+37  ;;  %v10289_v47 = vld [vmem:[%s14061_s3 + $0x7a8] sm:$0xff]  ;;  %v10301_v37 = vld [vmem:[%s14061_s3 + $0x760] sm:$0xff] }
 0x3c0   :  { %4676 = vtanh.f32 %v10189_v26  ;;  %v2252_v63 = vsel %vm2249_vm5, %v2251_v17, %v2247_v18  ;;  %v10307_v19 = vld [vmem:[%s14061_s3 + $0x2a8] sm:$0xff]  ;;  %v10319_v6 = vld [vmem:[%s14061_s3 + $0x260] sm:$0xff] }
 0x3c1   :  { %v10313_v60 = vld [vmem:[%s14061_s3 + $0x768] sm:$0xff]  ;;  %v10325_v10 = vld [vmem:[%s14061_s3 + $0x720] sm:$0xff] }
 0x3c2   :  { %v4675_v20 = vpop.eup %4674  ;;  %v10331_v35 = vld [vmem:[%s14061_s3 + $0x268] sm:$0xff]  ;;  %v10351_v31 = vld [vmem:[%s14061_s3 + $0x6e0] sm:$0xff] }
 0x3c3   :  { %v10197_v24 = vmul.f32 %v4675_v20, %v2237_v33  ;;  %v10337_v20 = vld [vmem:[%s14061_s3 + $0x728] sm:$0xff]  ;;  %v10345_v33 = vld [vmem:[%s14061_s3 + $0x220] sm:$0xff] }
 0x3c4   :  { %v10357_v29 = vld [vmem:[%s14061_s3 + $0x228] sm:$0xff]  ;;  %v10369_v17 = vld [vmem:[%s14061_s3 + $0x1e0] sm:$0xff] }
 0x3c5   :  { %2291 = vmatmul.f32.vlgmr.msrb.gmra.mxu0 %v10197_v24  ;;  %2331 = vmatmul.f32.vlgmr.msrb.gmra.mxu2 %v10197_v24  ;;  %v10363_v18 = vld [vmem:[%s14061_s3 + $0x6e8] sm:$0xff]  ;;  %15294 = vst [vmem:[#allocation195_spill] sm:$0xff] %v10369_v17 }
 0x3c6   :  { %2435 = vmatpush.msrb.mxu0 %v10205_v56  ;;  %2475 = vmatpush.msrb.mxu2 %v10211_v14  ;;  %v4677_v3 = vpop.eup %4676  ;;  %15293 = vst [vmem:[#allocation194_spill] sm:$0xff] %v10363_v18 }
 0x3c7   :  { %v10226_v50 = vmul.f32 %v4677_v3, %v2252_v63  ;;  %v10375_v3 = vld [vmem:[%s14061_s3 + $0x6a0] sm:$0xff]  ;;  %v10381_v63 = vld [vmem:[%s14061_s3 + $0x1e8] sm:$0xff] }
 0x3c8   :  { %2436 = vmatpush.msrb.mxu0 %v10217_v2  ;;  %2476 = vmatpush.msrb.mxu2 %v10223_v7  ;;  %15295 = vst [vmem:[#allocation196_spill] sm:$0xff] %v10375_v3 }
 0x3c9   :  { %15292 = vst [vmem:[#allocation193_spill] sm:$0xff] %v10226_v50  ;;  %2311 = vmatmul.f32.vlgmr.msrb.gmra.mxu1 %v10226_v50  ;;  %2351 = vmatmul.f32.vlgmr.msrb.gmra.mxu3 %v10226_v50 }
 0x3ca   :  { %2437 = vmatpush.msrb.mxu0 %v10231_v57  ;;  %2477 = vmatpush.msrb.mxu2 %v10237_v12  ;;  %15296 = vst [vmem:[#allocation197_spill] sm:$0xff] %v10381_v63 }
 0x3cb   :  { %2455 = vmatpush.msrb.mxu1 %v10251_v40  ;;  %2495 = vmatpush.msrb.mxu3 %v10263_v8 }
 0x3cc   :  { %2438 = vmatpush.msrb.mxu0 %v10245_v34  ;;  %2478 = vmatpush.msrb.mxu2 %v10257_v16 }
 0x3cd   :  { %2371 = vmatmul.f32.vlgmr.msra.gmra.mxu0 %v10197_v24  ;;  %2411 = vmatmul.f32.vlgmr.msra.gmra.mxu2 %v10197_v24 }
 0x3ce   :  { %2439 = vmatpush.msrb.mxu0 %v10271_v22  ;;  %2456 = vmatpush.msrb.mxu1 %v10277_v42 }
 0x3cf   :  { %2479 = vmatpush.msrb.mxu2 %v10283_v62  ;;  %2496 = vmatpush.msrb.mxu3 %v10289_v47 }
 0x3d0   :  { %2440 = vmatpush.msrb.mxu0 %v10295_v28  ;;  %2457 = vmatpush.msrb.mxu1 %v10301_v37 }
 0x3d1   :  { %2480 = vmatpush.msrb.mxu2 %v10307_v19  ;;  %2497 = vmatpush.msrb.mxu3 %v10313_v60 }
 0x3d2   :  { %2441 = vmatpush.msrb.mxu0 %v10319_v6  ;;  %2458 = vmatpush.msrb.mxu1 %v10325_v10 }
 0x3d3   :  { %2481 = vmatpush.msrb.mxu2 %v10331_v35  ;;  %2498 = vmatpush.msrb.mxu3 %v10337_v20 }
 0x3d4   :  { %2391 = vmatmul.f32.vlgmr.msra.gmra.mxu1 %v10226_v50  ;;  %2431 = vmatmul.f32.vlgmr.msra.gmra.mxu3 %v10226_v50 }
 0x3d5   :  { %2442 = vmatpush.msrb.mxu0 %v10345_v33  ;;  %2459 = vmatpush.msrb.mxu1 %v10351_v31 }
 0x3d6   :  { %2482 = vmatpush.msrb.mxu2 %v10357_v29  ;;  %2499 = vmatpush.msrb.mxu3 %v10363_v18  ;;  %v10387_v18 = vld [vmem:[%s14061_s3 + $0x6a8] sm:$0xff] }
 0x3d7   :  { %2443 = vmatpush.msrb.mxu0 %v10369_v17  ;;  %2460 = vmatpush.msrb.mxu1 %v10375_v3  ;;  %15297 = vst [vmem:[#allocation198_spill] sm:$0xff] %v10387_v18  ;;  %v10393_v17 = vld [vmem:[%s14061_s3 + $0x1a0] sm:$0xff] }
 0x3d8   :  { %2483 = vmatpush.msrb.mxu2 %v10381_v63  ;;  %2500 = vmatpush.msrb.mxu3 %v10387_v18  ;;  %15298 = vst [vmem:[#allocation199_spill] sm:$0xff] %v10393_v17  ;;  %v10399_v3 = vld [vmem:[%s14061_s3 + $0x660] sm:$0xff]  ;;  %v10405_v63 = vld [vmem:[%s14061_s3 + $0x1a8] sm:$0xff] }
 0x3d9   :  { %2444 = vmatpush.msrb.mxu0 %v10393_v17  ;;  %15299 = vst [vmem:[#allocation200_spill] sm:$0xff] %v10399_v3  ;;  %2461 = vmatpush.msrb.mxu1 %v10399_v3  ;;  %v10411_v18 = vld [vmem:[%s14061_s3 + $0x668] sm:$0xff]  ;;  %v10417_v17 = vld [vmem:[%s14061_s3 + $0x160] sm:$0xff] }
 0x3da   :  { %15300 = vst [vmem:[#allocation201_spill] sm:$0xff] %v10405_v63  ;;  %2484 = vmatpush.msrb.mxu2 %v10405_v63  ;;  %2501 = vmatpush.msrb.mxu3 %v10411_v18  ;;  %v10423_v3 = vld [vmem:[%s14061_s3 + $0x620] sm:$0xff]  ;;  %v10429_v63 = vld [vmem:[%s14061_s3 + $0x168] sm:$0xff] }
 0x3db   :  { %15301 = vst [vmem:[#allocation202_spill] sm:$0xff] %v10411_v18  ;;  %2445 = vmatpush.msrb.mxu0 %v10417_v17  ;;  %2462 = vmatpush.msrb.mxu1 %v10423_v3  ;;  %v10435_v18 = vld [vmem:[%s14061_s3 + $0x628] sm:$0xff] }
 0x3dc   :  { %15302 = vst [vmem:[#allocation203_spill] sm:$0xff] %v10417_v17  ;;  %2485 = vmatpush.msrb.mxu2 %v10429_v63  ;;  %2502 = vmatpush.msrb.mxu3 %v10435_v18  ;;  %v10441_v17 = vld [vmem:[%s14061_s3 + $0x120] sm:$0xff] }
 0x3dd   :  { %15303 = vst [vmem:[#allocation204_spill] sm:$0xff] %v10423_v3  ;;  %2446 = vmatpush.msrb.mxu0 %v10441_v17  ;;  %v10447_v3 = vld [vmem:[%s14061_s3 + $0x5e0] sm:$0xff] }
 0x3de   :  { %15304 = vst [vmem:[#allocation205_spill] sm:$0xff] %v10429_v63  ;;  %2463 = vmatpush.msrb.mxu1 %v10447_v3  ;;  %v10453_v63 = vld [vmem:[%s14061_s3 + $0x128] sm:$0xff] }
 0x3df   :  { %15305 = vst [vmem:[#allocation206_spill] sm:$0xff] %v10435_v18  ;;  %2486 = vmatpush.msrb.mxu2 %v10453_v63  ;;  %v10459_v18 = vld [vmem:[%s14061_s3 + $0x5e8] sm:$0xff] }
 0x3e0   :  { %15306 = vst [vmem:[#allocation207_spill] sm:$0xff] %v10441_v17  ;;  %2503 = vmatpush.msrb.mxu3 %v10459_v18  ;;  %v10465_v17 = vld [vmem:[%s14061_s3 + $0xe0] sm:$0xff] }
 0x3e1   :  { %15307 = vst [vmem:[#allocation208_spill] sm:$0xff] %v10447_v3  ;;  %2447 = vmatpush.msrb.mxu0 %v10465_v17  ;;  %v10471_v3 = vld [vmem:[%s14061_s3 + $0x5a0] sm:$0xff] }
 0x3e2   :  { %15308 = vst [vmem:[#allocation209_spill] sm:$0xff] %v10453_v63  ;;  %2464 = vmatpush.msrb.mxu1 %v10471_v3  ;;  %v10477_v63 = vld [vmem:[%s14061_s3 + $0xe8] sm:$0xff] }
 0x3e3   :  { %15309 = vst [vmem:[#allocation210_spill] sm:$0xff] %v10459_v18  ;;  %2487 = vmatpush.msrb.mxu2 %v10477_v63  ;;  %v10483_v18 = vld [vmem:[%s14061_s3 + $0x5a8] sm:$0xff] }
 0x3e4   :  { %15310 = vst [vmem:[#allocation211_spill] sm:$0xff] %v10465_v17  ;;  %2504 = vmatpush.msrb.mxu3 %v10483_v18  ;;  %v10489_v17 = vld [vmem:[%s14061_s3 + $0xa0] sm:$0xff] }
 0x3e5   :  { %15311 = vst [vmem:[#allocation212_spill] sm:$0xff] %v10471_v3  ;;  %2448 = vmatpush.msrb.mxu0 %v10489_v17  ;;  %v10495_v3 = vld [vmem:[%s14061_s3 + $0x560] sm:$0xff] }
 0x3e6   :  { %15312 = vst [vmem:[#allocation213_spill] sm:$0xff] %v10477_v63  ;;  %2465 = vmatpush.msrb.mxu1 %v10495_v3  ;;  %v10501_v63 = vld [vmem:[%s14061_s3 + $0xa8] sm:$0xff] }
 0x3e7   :  { %15313 = vst [vmem:[#allocation214_spill] sm:$0xff] %v10483_v18  ;;  %2488 = vmatpush.msrb.mxu2 %v10501_v63  ;;  %v10507_v18 = vld [vmem:[%s14061_s3 + $0x568] sm:$0xff]  ;;  %2449 = vmatpush.msrb.mxu0 %v9107_v36  ;;  %v10533_v36 = vld [vmem:[%s14061_s3 + $0x4e0] sm:$0xff] }
 0x3e8   :  { %15314 = vst [vmem:[#allocation215_spill] sm:$0xff] %v10495_v3  ;;  %2505 = vmatpush.msrb.mxu3 %v10507_v18  ;;  %v10514_v3 = vld [vmem:[%s14061_s3 + $0x520] sm:$0xff] }
 0x3e9   :  { %15315 = vst [vmem:[#allocation216_spill] sm:$0xff] %v10501_v63  ;;  %2466 = vmatpush.msrb.mxu1 %v10514_v3  ;;  %v10520_v63 = vld [vmem:[%s14061_s3 + $0x68] sm:$0xff]  ;;  %2450 = vmatpush.msrb.mxu0 %v9116_v27  ;;  %v10550_v27 = vld [vmem:[%s14061_s3 + $0x4a0] sm:$0xff] }
 0x3ea   :  { %15316 = vst [vmem:[#allocation217_spill] sm:$0xff] %v10507_v18  ;;  %2489 = vmatpush.msrb.mxu2 %v10520_v63  ;;  %v10526_v18 = vld [vmem:[%s14061_s3 + $0x528] sm:$0xff]  ;;  %2451 = vmatmul.f32.vlgmr.msrb.gmra.mxu0 %v10197_v24 }
 0x3eb   :  { %15317 = vst [vmem:[#allocation218_spill] sm:$0xff] %v10520_v63  ;;  %2506 = vmatpush.msrb.mxu3 %v10526_v18  ;;  %2467 = vmatpush.msrb.mxu1 %v10533_v36  ;;  %v10540_v63 = vld [vmem:[%s14061_s3 + $0x4e8] sm:$0xff] }
 0x3ec   :  { %2490 = vmatpush.msrb.mxu2 %v9123_v32  ;;  %2515 = vmatpush.msra.mxu0 %v9132_v13  ;;  %v10556_v32 = vld [vmem:[%s14061_s3 + $0x4a8] sm:$0xff]  ;;  %v10564_v13 = vld [vmem:[%s14061_s3 + $0x460] sm:$0xff] }
 0x3ed   :  { %2507 = vmatpush.msrb.mxu3 %v10540_v63  ;;  %2491 = vmatmul.f32.vlgmr.msrb.gmra.mxu2 %v10197_v24  ;;  %15318 = vst [vmem:[#allocation219_spill] sm:$0xff] %v10556_v32 }
 0x3ee   :  { %2555 = vmatpush.msra.mxu2 %v9138_v55  ;;  %2468 = vmatpush.msrb.mxu1 %v10550_v27  ;;  %15319 = vst [vmem:[#allocation220_spill] sm:$0xff] %v10564_v13  ;;  %v10570_v55 = vld [vmem:[%s14061_s3 + $0x468] sm:$0xff] }
 0x3ef   :  { %2508 = vmatpush.msrb.mxu3 %v10556_v32  ;;  %2516 = vmatpush.msra.mxu0 %v9146_v9  ;;  %15320 = vst [vmem:[#allocation221_spill] sm:$0xff] %v10570_v55  ;;  %v10578_v9 = vld [vmem:[%s14061_s3 + $0x420] sm:$0xff] }
 0x3f0   :  { %2556 = vmatpush.msra.mxu2 %v9152_v43  ;;  %2469 = vmatpush.msrb.mxu1 %v10564_v13  ;;  %15321 = vst [vmem:[#allocation222_spill] sm:$0xff] %v10578_v9  ;;  %v10584_v43 = vld [vmem:[%s14061_s3 + $0x428] sm:$0xff] }
 0x3f1   :  { %2509 = vmatpush.msrb.mxu3 %v10570_v55  ;;  %2517 = vmatpush.msra.mxu0 %v9160_v38  ;;  %15322 = vst [vmem:[#allocation223_spill] sm:$0xff] %v10584_v43  ;;  %v10593_v38 = vld [vmem:[%s14061_s3 + $0x7f0] sm:$0xff] }
 0x3f2   :  { %2557 = vmatpush.msra.mxu2 %v9166_v39  ;;  %2470 = vmatpush.msrb.mxu1 %v10578_v9  ;;  %15323 = vst [vmem:[#allocation224_spill] sm:$0xff] %v10593_v38  ;;  %v10600_v39 = vld [vmem:[%s14061_s3 + $0x7f8] sm:$0xff] }
 0x3f3   :  { %2510 = vmatpush.msrb.mxu3 %v10584_v43  ;;  %2471 = vmatmul.f32.vlgmr.msrb.gmra.mxu1 %v10226_v50  ;;  %15324 = vst [vmem:[#allocation225_spill] sm:$0xff] %v10600_v39 }
 0x3f4   :  { %2511 = vmatmul.f32.vlgmr.msrb.gmra.mxu3 %v10226_v50  ;;  %2518 = vmatpush.msra.mxu0 %v9176_v49  ;;  %v10607_v49 = vld [vmem:[%s14061_s3 + $0x7b0] sm:$0xff] }
 0x3f5   :  { %2535 = vmatpush.msra.mxu1 %v10593_v38  ;;  %2558 = vmatpush.msra.mxu2 %v9183_v61  ;;  %15325 = vst [vmem:[#allocation226_spill] sm:$0xff] %v10607_v49  ;;  %v10614_v61 = vld [vmem:[%s14061_s3 + $0x7b8] sm:$0xff]  ;;  %v15493_v38 = vld [vmem:[#allocation174_spill] sm:$0xff] }
 0x3f6   :  { %2575 = vmatpush.msra.mxu3 %v10600_v39  ;;  %2519 = vmatpush.msra.mxu0 %v9190_v51  ;;  %15326 = vst [vmem:[#allocation227_spill] sm:$0xff] %v10614_v61  ;;  %v10621_v51 = vld [vmem:[%s14061_s3 + $0x770] sm:$0xff] }
 0x3f7   :  { %2536 = vmatpush.msra.mxu1 %v10607_v49  ;;  %2559 = vmatpush.msra.mxu2 %v9197_v15  ;;  %15327 = vst [vmem:[#allocation228_spill] sm:$0xff] %v10621_v51  ;;  %v10628_v15 = vld [vmem:[%s14061_s3 + $0x778] sm:$0xff] }
 0x3f8   :  { %2576 = vmatpush.msra.mxu3 %v10614_v61  ;;  %2520 = vmatpush.msra.mxu0 %v9204_v1  ;;  %15328 = vst [vmem:[#allocation229_spill] sm:$0xff] %v10628_v15  ;;  %v10635_v1 = vld [vmem:[%s14061_s3 + $0x730] sm:$0xff] }
 0x3f9   :  { %2537 = vmatpush.msra.mxu1 %v10621_v51  ;;  %2560 = vmatpush.msra.mxu2 %v9211_v41  ;;  %15329 = vst [vmem:[#allocation38_spill] sm:$0xff] %v10635_v1  ;;  %v10642_v41 = vld [vmem:[%s14061_s3 + $0x738] sm:$0xff] }
 0x3fa   :  { %2577 = vmatpush.msra.mxu3 %v10628_v15  ;;  %2521 = vmatpush.msra.mxu0 %v9218_v52  ;;  %15330 = vst [vmem:[#allocation41_spill] sm:$0xff] %v10642_v41  ;;  %v10649_v52 = vld [vmem:[%s14061_s3 + $0x6f0] sm:$0xff]  ;;  %v15492_v15 = vld [vmem:[#allocation25_spill] sm:$0xff] }
 0x3fb   :  { %2538 = vmatpush.msra.mxu1 %v10635_v1  ;;  %2561 = vmatpush.msra.mxu2 %v9225_v30  ;;  %15331 = vst [vmem:[#allocation42_spill] sm:$0xff] %v10649_v52  ;;  %v10656_v30 = vld [vmem:[%s14061_s3 + $0x6f8] sm:$0xff] }
 0x3fc   :  { %2578 = vmatpush.msra.mxu3 %v10642_v41  ;;  %2522 = vmatpush.msra.mxu0 %v9232_v54  ;;  %15332 = vst [vmem:[#allocation230_spill] sm:$0xff] %v10656_v30  ;;  %v10663_v54 = vld [vmem:[%s14061_s3 + $0x6b0] sm:$0xff] }
 0x3fd   :  { %2539 = vmatpush.msra.mxu1 %v10649_v52  ;;  %2562 = vmatpush.msra.mxu2 %v9239_v23  ;;  %15333 = vst [vmem:[#allocation231_spill] sm:$0xff] %v10663_v54  ;;  %v10670_v23 = vld [vmem:[%s14061_s3 + $0x6b8] sm:$0xff] }
 0x3fe   :  { %2579 = vmatpush.msra.mxu3 %v10656_v30  ;;  %2523 = vmatpush.msra.mxu0 %v9246_v21  ;;  %15334 = vst [vmem:[#allocation47_spill] sm:$0xff] %v10670_v23  ;;  %v10677_v21 = vld [vmem:[%s14061_s3 + $0x670] sm:$0xff] }
 0x3ff   :  { %2540 = vmatpush.msra.mxu1 %v10663_v54  ;;  %2563 = vmatpush.msra.mxu2 %v9253_v4  ;;  %15335 = vst [vmem:[#allocation48_spill] sm:$0xff] %v10677_v21  ;;  %v10684_v4 = vld [vmem:[%s14061_s3 + $0x678] sm:$0xff]  ;;  %v15490_v54 = vld [vmem:[#allocation5_spill] sm:$0xff] }
 0x400   :  { %2580 = vmatpush.msra.mxu3 %v10670_v23  ;;  %2524 = vmatpush.msra.mxu0 %v9260_v46  ;;  %15336 = vst [vmem:[#allocation51_spill] sm:$0xff] %v10684_v4  ;;  %v10691_v46 = vld [vmem:[%s14061_s3 + $0x630] sm:$0xff]  ;;  %v15489_v23 = vld [vmem:[#allocation9_spill] sm:$0xff] }
 0x401   :  { %2541 = vmatpush.msra.mxu1 %v10677_v21  ;;  %2564 = vmatpush.msra.mxu2 %v9267_v53  ;;  %15337 = vst [vmem:[#allocation52_spill] sm:$0xff] %v10691_v46  ;;  %v10698_v53 = vld [vmem:[%s14061_s3 + $0x638] sm:$0xff]  ;;  %v449_v30 = vadd.f32 %v15490_v54, %v15489_v23 }
 0x402   :  { %2581 = vmatpush.msra.mxu3 %v10684_v4  ;;  %2525 = vmatpush.msra.mxu0 %v9274_v44  ;;  %15338 = vst [vmem:[#allocation55_spill] sm:$0xff] %v10698_v53  ;;  %v10705_v44 = vld [vmem:[%s14061_s3 + $0x5f0] sm:$0xff]  ;;  %v15495_v54 = vld [vmem:[#allocation11_spill] sm:$0xff] }
 0x403   :  { %2542 = vmatpush.msra.mxu1 %v10691_v46  ;;  %2565 = vmatpush.msra.mxu2 %v9281_v0  ;;  %15339 = vst [vmem:[#allocation56_spill] sm:$0xff] %v10705_v44  ;;  %v10712_v0 = vld [vmem:[%s14061_s3 + $0x5f8] sm:$0xff] }
 0x404   :  { %2582 = vmatpush.msra.mxu3 %v10698_v53  ;;  %2526 = vmatpush.msra.mxu0 %v9288_v45  ;;  %15340 = vst [vmem:[#allocation32_spill] sm:$0xff] %v10712_v0  ;;  %v10719_v45 = vld [vmem:[%s14061_s3 + $0x5b0] sm:$0xff]  ;;  %v15372_v53 = vld [vmem:[#allocation93_spill] sm:$0xff] }
 0x405   :  { %2543 = vmatpush.msra.mxu1 %v10705_v44  ;;  %2566 = vmatpush.msra.mxu2 %v9295_v48  ;;  %15341 = vst [vmem:[#allocation33_spill] sm:$0xff] %v10719_v45  ;;  %v10726_v48 = vld [vmem:[%s14061_s3 + $0x5b8] sm:$0xff]  ;;  %v15370_v44 = vld [vmem:[#allocation53_spill] sm:$0xff] }
 0x406   :  { %2583 = vmatpush.msra.mxu3 %v10712_v0  ;;  %2527 = vmatpush.msra.mxu0 %v9302_v25  ;;  %15342 = vst [vmem:[#allocation61_spill] sm:$0xff] %v10726_v48  ;;  %v10733_v25 = vld [vmem:[%s14061_s3 + $0x570] sm:$0xff] }
 0x407   :  { %2544 = vmatpush.msra.mxu1 %v10719_v45  ;;  %2567 = vmatpush.msra.mxu2 %v9309_v59  ;;  %15343 = vst [vmem:[#allocation62_spill] sm:$0xff] %v10733_v25  ;;  %v10740_v59 = vld [vmem:[%s14061_s3 + $0x578] sm:$0xff]  ;;  %v15345_v45 = vld [vmem:[#allocation40_spill] sm:$0xff]  ;;  %v15369_v0 = vld [vmem:[#allocation90_spill] sm:$0xff] }
 0x408   :  { %2584 = vmatpush.msra.mxu3 %v10726_v48  ;;  %2528 = vmatpush.msra.mxu0 %v9316_v5  ;;  %15344 = vst [vmem:[#allocation34_spill] sm:$0xff] %v10740_v59  ;;  %v10747_v5 = vld [vmem:[%s14061_s3 + $0x530] sm:$0xff]  ;;  %v15347_v48 = vld [vmem:[#allocation75_spill] sm:$0xff] }
 0x409   :  { %2545 = vmatpush.msra.mxu1 %v10733_v25  ;;  %2568 = vmatpush.msra.mxu2 %v9323_v11  ;;  %15346 = vst [vmem:[#allocation35_spill] sm:$0xff] %v10747_v5  ;;  %v10754_v11 = vld [vmem:[%s14061_s3 + $0x538] sm:$0xff]  ;;  %v15349_v25 = vld [vmem:[#allocation76_spill] sm:$0xff] }
 0x40a   :  { %2585 = vmatpush.msra.mxu3 %v10740_v59  ;;  %2529 = vmatpush.msra.mxu0 %v15345_v45  ;;  %15348 = vst [vmem:[#allocation65_spill] sm:$0xff] %v10754_v11  ;;  %v10761_v45 = vld [vmem:[%s14061_s3 + $0x4f0] sm:$0xff]  ;;  %v15351_v59 = vld [vmem:[#allocation43_spill] sm:$0xff] }
 0x40b   :  { %2546 = vmatpush.msra.mxu1 %v10747_v5  ;;  %2569 = vmatpush.msra.mxu2 %v15347_v48  ;;  %15350 = vst [vmem:[#allocation66_spill] sm:$0xff] %v10761_v45  ;;  %v10768_v48 = vld [vmem:[%s14061_s3 + $0x4f8] sm:$0xff]  ;;  %v15368_v5 = vld [vmem:[#allocation89_spill] sm:$0xff] }
 0x40c   :  { %2586 = vmatpush.msra.mxu3 %v10754_v11  ;;  %2530 = vmatpush.msra.mxu0 %v15349_v25  ;;  %15352 = vst [vmem:[#allocation36_spill] sm:$0xff] %v10768_v48  ;;  %v10776_v25 = vld [vmem:[%s14061_s3 + $0x4b0] sm:$0xff]  ;;  %v15359_v11 = vld [vmem:[#allocation80_spill] sm:$0xff] }
 0x40d   :  { %2547 = vmatpush.msra.mxu1 %v10761_v45  ;;  %2570 = vmatpush.msra.mxu2 %v15351_v59  ;;  %15353 = vst [vmem:[#allocation37_spill] sm:$0xff] %v10776_v25  ;;  %v10782_v59 = vld [vmem:[%s14061_s3 + $0x4b8] sm:$0xff]  ;;  %v15355_v45 = vld [vmem:[#allocation44_spill] sm:$0xff] }
 0x40e   :  { %2587 = vmatpush.msra.mxu3 %v10768_v48  ;;  %2531 = vmatmul.f32.vlgmr.msra.gmra.mxu0 %v10197_v24  ;;  %15354 = vst [vmem:[#allocation69_spill] sm:$0xff] %v10782_v59  ;;  %v15356_v48 = vld [vmem:[#allocation79_spill] sm:$0xff] }
 0x40f   :  { %2571 = vmatmul.f32.vlgmr.msra.gmra.mxu2 %v10197_v24  ;;  %2548 = vmatpush.msra.mxu1 %v10776_v25  ;;  %v10790_v24 = vld [vmem:[%s14061_s3 + $0x470] sm:$0xff]  ;;  %v10796_v25 = vld [vmem:[%s14061_s3 + $0x478] sm:$0xff] }
 0x410   :  { %2588 = vmatpush.msra.mxu3 %v10782_v59  ;;  %2738 = vmatpush.msrb.mxu0 %v15355_v45  ;;  %15357 = vst [vmem:[#allocation70_spill] sm:$0xff] %v10790_v24  ;;  %v15360_v59 = vld [vmem:[#allocation45_spill] sm:$0xff]  ;;  %v10804_v45 = vld [vmem:[%s14061_s3 + $0x430] sm:$0xff] }
 0x411   :  { %2778 = vmatpush.msrb.mxu2 %v15356_v48  ;;  %2549 = vmatpush.msra.mxu1 %v10790_v24  ;;  %15358 = vst [vmem:[#allocation10_spill] sm:$0xff] %v10796_v25  ;;  %v10810_v48 = vld [vmem:[%s14061_s3 + $0x438] sm:$0xff]  ;;  %v15366_v24 = vld [vmem:[#allocation49_spill] sm:$0xff] }
 0x412   :  { %2589 = vmatpush.msra.mxu3 %v10796_v25  ;;  %2739 = vmatpush.msrb.mxu0 %v15359_v11  ;;  %15361 = vst [vmem:[#allocation4_spill] sm:$0xff] %v10804_v45  ;;  %v15363_v11 = vld [vmem:[#allocation46_spill] sm:$0xff] }
 0x413   :  { %2779 = vmatpush.msrb.mxu2 %v15360_v59  ;;  %2550 = vmatpush.msra.mxu1 %v10804_v45  ;;  %15362 = vst [vmem:[#allocation23_spill] sm:$0xff] %v10810_v48  ;;  %v15364_v59 = vld [vmem:[#allocation85_spill] sm:$0xff]  ;;  %v15365_v25 = vld [vmem:[#allocation86_spill] sm:$0xff] }
 0x414   :  { %2590 = vmatpush.msra.mxu3 %v10810_v48  ;;  %2551 = vmatmul.f32.vlgmr.msra.gmra.mxu1 %v10226_v50  ;;  %v15367_v45 = vld [vmem:[#allocation50_spill] sm:$0xff] }
 0x415   :  { %2591 = vmatmul.f32.vlgmr.msra.gmra.mxu3 %v10226_v50  ;;  %2740 = vmatpush.msrb.mxu0 %v15363_v11  ;;  %v15371_v48 = vld [vmem:[#allocation54_spill] sm:$0xff]  ;;  %v15374_v11 = vld [vmem:[#allocation57_spill] sm:$0xff] }
 0x416   :  { %2780 = vmatpush.msrb.mxu2 %v15364_v59  ;;  %2758 = vmatpush.msrb.mxu1 %v15365_v25  ;;  %v15373_v50 = vld [vmem:[#allocation94_spill] sm:$0xff]  ;;  %v15376_v25 = vld [vmem:[#allocation99_spill] sm:$0xff] }
 0x417   :  { %2798 = vmatpush.msrb.mxu3 %v15366_v24  ;;  %2741 = vmatpush.msrb.mxu0 %v15367_v45  ;;  %v15375_v59 = vld [vmem:[#allocation58_spill] sm:$0xff]  ;;  %v15377_v24 = vld [vmem:[#allocation100_spill] sm:$0xff]  ;;  %v15378_v45 = vld [vmem:[#allocation63_spill] sm:$0xff] }
 0x418   :  { %2781 = vmatpush.msrb.mxu2 %v15368_v5  ;;  %2759 = vmatpush.msrb.mxu1 %v15369_v0  ;;  %v15379_v5 = vld [vmem:[#allocation64_spill] sm:$0xff]  ;;  %v15380_v0 = vld [vmem:[#allocation103_spill] sm:$0xff] }
 0x419   :  { %2799 = vmatpush.msrb.mxu3 %v15370_v44  ;;  %2742 = vmatpush.msrb.mxu0 %v15371_v48  ;;  %v15381_v44 = vld [vmem:[#allocation104_spill] sm:$0xff]  ;;  %v15382_v48 = vld [vmem:[#allocation67_spill] sm:$0xff] }
 0x41a   :  { %2782 = vmatpush.msrb.mxu2 %v15372_v53  ;;  %2760 = vmatpush.msrb.mxu1 %v15373_v50  ;;  %v15383_v53 = vld [vmem:[#allocation68_spill] sm:$0xff]  ;;  %v15384_v50 = vld [vmem:[#allocation109_spill] sm:$0xff] }
 0x41b   :  { %2800 = vmatpush.msrb.mxu3 %v15374_v11  ;;  %2743 = vmatpush.msrb.mxu0 %v15375_v59  ;;  %v15385_v11 = vld [vmem:[#allocation110_spill] sm:$0xff]  ;;  %v15386_v59 = vld [vmem:[#allocation71_spill] sm:$0xff] }
 0x41c   :  { %2783 = vmatpush.msrb.mxu2 %v15376_v25  ;;  %2761 = vmatpush.msrb.mxu1 %v15377_v24  ;;  %v15387_v25 = vld [vmem:[#allocation72_spill] sm:$0xff]  ;;  %v15388_v24 = vld [vmem:[#allocation113_spill] sm:$0xff] }
 0x41d   :  { %2801 = vmatpush.msrb.mxu3 %v15378_v45  ;;  %2744 = vmatpush.msrb.mxu0 %v15379_v5  ;;  %v15389_v45 = vld [vmem:[#allocation114_spill] sm:$0xff]  ;;  %v15390_v5 = vld [vmem:[#allocation77_spill] sm:$0xff] }
 0x41e   :  { %2784 = vmatpush.msrb.mxu2 %v15380_v0  ;;  %2762 = vmatpush.msrb.mxu1 %v15381_v44  ;;  %v15391_v0 = vld [vmem:[#allocation78_spill] sm:$0xff]  ;;  %v15392_v44 = vld [vmem:[#allocation117_spill] sm:$0xff] }
 0x41f   :  { %2802 = vmatpush.msrb.mxu3 %v15382_v48  ;;  %2745 = vmatpush.msrb.mxu0 %v15383_v53  ;;  %v15393_v48 = vld [vmem:[#allocation118_spill] sm:$0xff]  ;;  %v15394_v53 = vld [vmem:[#allocation119_spill] sm:$0xff] }
 0x420   :  { %2785 = vmatpush.msrb.mxu2 %v15384_v50  ;;  %2763 = vmatpush.msrb.mxu1 %v15385_v11  ;;  %v15395_v50 = vld [vmem:[#allocation120_spill] sm:$0xff]  ;;  %v15396_v11 = vld [vmem:[#allocation81_spill] sm:$0xff] }
 0x421   :  { %2803 = vmatpush.msrb.mxu3 %v15386_v59  ;;  %2746 = vmatpush.msrb.mxu0 %v15387_v25  ;;  %v15397_v59 = vld [vmem:[#allocation82_spill] sm:$0xff]  ;;  %v15398_v25 = vld [vmem:[#allocation125_spill] sm:$0xff] }
 0x422   :  { %2786 = vmatpush.msrb.mxu2 %v15388_v24  ;;  %2764 = vmatpush.msrb.mxu1 %v15389_v45  ;;  %v15399_v24 = vld [vmem:[#allocation126_spill] sm:$0xff]  ;;  %v15400_v45 = vld [vmem:[#allocation87_spill] sm:$0xff] }
 0x423   :  { %2804 = vmatpush.msrb.mxu3 %v15390_v5  ;;  %2747 = vmatpush.msrb.mxu0 %v15391_v0  ;;  %v15401_v5 = vld [vmem:[#allocation88_spill] sm:$0xff]  ;;  %v15402_v0 = vld [vmem:[#allocation129_spill] sm:$0xff] }
 0x424   :  { %2787 = vmatpush.msrb.mxu2 %v15392_v44  ;;  %2765 = vmatpush.msrb.mxu1 %v15393_v48  ;;  %v15403_v44 = vld [vmem:[#allocation130_spill] sm:$0xff]  ;;  %v15404_v48 = vld [vmem:[#allocation91_spill] sm:$0xff] }
 0x425   :  { %2805 = vmatpush.msrb.mxu3 %v15394_v53  ;;  %2748 = vmatpush.msrb.mxu0 %v15395_v50  ;;  %v15405_v53 = vld [vmem:[#allocation92_spill] sm:$0xff]  ;;  %v15406_v50 = vld [vmem:[#allocation135_spill] sm:$0xff] }
 0x426   :  { %2788 = vmatpush.msrb.mxu2 %v15396_v11  ;;  %2766 = vmatpush.msrb.mxu1 %v15397_v59  ;;  %v15407_v11 = vld [vmem:[#allocation95_spill] sm:$0xff]  ;;  %v15408_v59 = vld [vmem:[#allocation136_spill] sm:$0xff] }
 0x427   :  { %2806 = vmatpush.msrb.mxu3 %v15398_v25  ;;  %2749 = vmatpush.msrb.mxu0 %v15399_v24  ;;  %v15409_v25 = vld [vmem:[#allocation96_spill] sm:$0xff]  ;;  %v15410_v24 = vld [vmem:[#allocation139_spill] sm:$0xff] }
 0x428   :  { %2789 = vmatpush.msrb.mxu2 %v15400_v45  ;;  %2767 = vmatpush.msrb.mxu1 %v15401_v5  ;;  %v15411_v45 = vld [vmem:[#allocation101_spill] sm:$0xff]  ;;  %v15412_v5 = vld [vmem:[#allocation140_spill] sm:$0xff] }
 0x429   :  { %2807 = vmatpush.msrb.mxu3 %v15402_v0  ;;  %2750 = vmatpush.msrb.mxu0 %v15403_v44  ;;  %v15413_v0 = vld [vmem:[#allocation102_spill] sm:$0xff]  ;;  %v15414_v44 = vld [vmem:[#allocation143_spill] sm:$0xff] }
 0x42a   :  { %2790 = vmatpush.msrb.mxu2 %v15404_v48  ;;  %2768 = vmatpush.msrb.mxu1 %v15405_v53  ;;  %v15415_v48 = vld [vmem:[#allocation105_spill] sm:$0xff]  ;;  %v15416_v53 = vld [vmem:[#allocation144_spill] sm:$0xff] }
 0x42b   :  { %2808 = vmatpush.msrb.mxu3 %v15406_v50  ;;  %2751 = vmatpush.msrb.mxu0 %v15407_v11  ;;  %v15417_v50 = vld [vmem:[#allocation106_spill] sm:$0xff]  ;;  %v15418_v11 = vld [vmem:[#allocation149_spill] sm:$0xff] }
 0x42c   :  { %2791 = vmatpush.msrb.mxu2 %v15408_v59  ;;  %2769 = vmatpush.msrb.mxu1 %v15409_v25  ;;  %v15419_v59 = vld [vmem:[#allocation111_spill] sm:$0xff]  ;;  %v15420_v25 = vld [vmem:[#allocation150_spill] sm:$0xff] }
 0x42d   :  { %2809 = vmatpush.msrb.mxu3 %v15410_v24  ;;  %2752 = vmatpush.msrb.mxu0 %v15411_v45  ;;  %v15421_v24 = vld [vmem:[#allocation112_spill] sm:$0xff] }
 0x42e   :  { %2792 = vmatpush.msrb.mxu2 %v15412_v5  ;;  %2770 = vmatpush.msrb.mxu1 %v15413_v0  ;;  %v15422_v45 = vld [vmem:[#allocation152_spill] sm:$0xff]  ;;  %v15423_v5 = vld [vmem:[#allocation115_spill] sm:$0xff]  ;;  %v15424_v0 = vld [vmem:[#allocation153_spill] sm:$0xff] }
 0x42f   :  { %2810 = vmatpush.msrb.mxu3 %v15414_v44  ;;  %2753 = vmatpush.msrb.mxu0 %v15415_v48  ;;  %v15425_v44 = vld [vmem:[#allocation116_spill] sm:$0xff] }
 0x430   :  { %2793 = vmatpush.msrb.mxu2 %v15416_v53  ;;  %2771 = vmatpush.msrb.mxu1 %v15419_v59  ;;  %v15426_v48 = vld [vmem:[#allocation156_spill] sm:$0xff]  ;;  %v15427_v53 = vld [vmem:[#allocation123_spill] sm:$0xff]  ;;  %v15430_v59 = vld [vmem:[#allocation158_spill] sm:$0xff] }
 0x431   :  { %2818 = vmatpush.msra.mxu0 %v15417_v50  ;;  %2811 = vmatpush.msrb.mxu3 %v15420_v25  ;;  %v15428_v50 = vld [vmem:[#allocation157_spill] sm:$0xff]  ;;  %v15431_v25 = vld [vmem:[#allocation127_spill] sm:$0xff] }
 0x432   :  { %2858 = vmatpush.msra.mxu2 %v15418_v11  ;;  %2772 = vmatpush.msrb.mxu1 %v15423_v5  ;;  %v15429_v11 = vld [vmem:[#allocation124_spill] sm:$0xff] }
 0x433   :  { %2819 = vmatpush.msra.mxu0 %v15421_v24  ;;  %2812 = vmatpush.msrb.mxu3 %v15424_v0  ;;  %v15432_v24 = vld [vmem:[#allocation159_spill] sm:$0xff]  ;;  %v15434_v5 = vld [vmem:[#allocation160_spill] sm:$0xff]  ;;  %v15435_v0 = vld [vmem:[#allocation133_spill] sm:$0xff] }
 0x434   :  { %2859 = vmatpush.msra.mxu2 %v15422_v45  ;;  %2773 = vmatpush.msrb.mxu1 %v15427_v53  ;;  %v15433_v45 = vld [vmem:[#allocation128_spill] sm:$0xff] }
 0x435   :  { %2820 = vmatpush.msra.mxu0 %v15425_v44  ;;  %2813 = vmatpush.msrb.mxu3 %v15428_v50  ;;  %v15436_v44 = vld [vmem:[#allocation161_spill] sm:$0xff]  ;;  %v15438_v53 = vld [vmem:[#allocation164_spill] sm:$0xff] }
 0x436   :  { %2860 = vmatpush.msra.mxu2 %v15426_v48  ;;  %2838 = vmatpush.msra.mxu1 %v15430_v59  ;;  %v15437_v48 = vld [vmem:[#allocation134_spill] sm:$0xff]  ;;  %v15439_v50 = vld [vmem:[#allocation137_spill] sm:$0xff] }
 0x437   :  { %2821 = vmatpush.msra.mxu0 %v15429_v11  ;;  %2878 = vmatpush.msra.mxu3 %v15432_v24  ;;  %v15440_v11 = vld [vmem:[#allocation165_spill] sm:$0xff]  ;;  %v15441_v59 = vld [vmem:[#allocation138_spill] sm:$0xff] }
 0x438   :  { %2861 = vmatpush.msra.mxu2 %v15431_v25  ;;  %2839 = vmatpush.msra.mxu1 %v15434_v5  ;;  %v15442_v25 = vld [vmem:[#allocation166_spill] sm:$0xff]  ;;  %v15443_v24 = vld [vmem:[#allocation141_spill] sm:$0xff] }
 0x439   :  { %2822 = vmatpush.msra.mxu0 %v15433_v45  ;;  %2879 = vmatpush.msra.mxu3 %v15436_v44  ;;  %v15444_v45 = vld [vmem:[#allocation167_spill] sm:$0xff]  ;;  %v15445_v5 = vld [vmem:[#allocation142_spill] sm:$0xff] }
 0x43a   :  { %2862 = vmatpush.msra.mxu2 %v15435_v0  ;;  %2840 = vmatpush.msra.mxu1 %v15438_v53  ;;  %v15446_v0 = vld [vmem:[#allocation170_spill] sm:$0xff]  ;;  %v15447_v44 = vld [vmem:[#allocation147_spill] sm:$0xff] }
 0x43b   :  { %2823 = vmatpush.msra.mxu0 %v15437_v48  ;;  %2880 = vmatpush.msra.mxu3 %v15440_v11  ;;  %v15448_v48 = vld [vmem:[#allocation148_spill] sm:$0xff]  ;;  %v15449_v53 = vld [vmem:[#allocation151_spill] sm:$0xff] }
 0x43c   :  { %2863 = vmatpush.msra.mxu2 %v15439_v50  ;;  %2841 = vmatpush.msra.mxu1 %v15442_v25  ;;  %v15450_v50 = vld [vmem:[#allocation7_spill] sm:$0xff]  ;;  %v15453_v25 = vld [vmem:[#allocation20_spill] sm:$0xff] }
 0x43d   :  { %2824 = vmatpush.msra.mxu0 %v15441_v59  ;;  %2881 = vmatpush.msra.mxu3 %v15444_v45  ;;  %v15451_v11 = vld [vmem:[#allocation15_spill] sm:$0xff]  ;;  %v15452_v59 = vld [vmem:[#allocation21_spill] sm:$0xff]  ;;  %v15455_v45 = vld [vmem:[#allocation60_spill] sm:$0xff] }
 0x43e   :  { %2864 = vmatpush.msra.mxu2 %v15443_v24  ;;  %2842 = vmatpush.msra.mxu1 %v15446_v0  ;;  %v15454_v24 = vld [vmem:[#allocation59_spill] sm:$0xff]  ;;  %v15457_v0 = vld [vmem:[#allocation74_spill] sm:$0xff] }
 0x43f   :  { %2825 = vmatpush.msra.mxu0 %v15445_v5  ;;  %2882 = vmatpush.msra.mxu3 %v15448_v48  ;;  %v15456_v5 = vld [vmem:[#allocation73_spill] sm:$0xff]  ;;  %v15459_v48 = vld [vmem:[#allocation179_spill] sm:$0xff] }
 0x440   :  { %2865 = vmatpush.msra.mxu2 %v15447_v44  ;;  %2843 = vmatpush.msra.mxu1 %v15450_v50  ;;  %v15458_v44 = vld [vmem:[#allocation178_spill] sm:$0xff]  ;;  %v15461_v50 = vld [vmem:[#allocation181_spill] sm:$0xff] }
 0x441   :  { %2826 = vmatpush.msra.mxu0 %v15449_v53  ;;  %2883 = vmatpush.msra.mxu3 %v15452_v59  ;;  %v15460_v53 = vld [vmem:[#allocation180_spill] sm:$0xff]  ;;  %v15463_v59 = vld [vmem:[#allocation183_spill] sm:$0xff] }
 0x442   :  { %2866 = vmatpush.msra.mxu2 %v15451_v11  ;;  %2844 = vmatpush.msra.mxu1 %v15454_v24  ;;  %v15462_v11 = vld [vmem:[#allocation182_spill] sm:$0xff]  ;;  %v15465_v24 = vld [vmem:[#allocation185_spill] sm:$0xff] }
 0x443   :  { %2827 = vmatpush.msra.mxu0 %v15453_v25  ;;  %2884 = vmatpush.msra.mxu3 %v15456_v5  ;;  %v15464_v25 = vld [vmem:[#allocation184_spill] sm:$0xff]  ;;  %v15467_v5 = vld [vmem:[#allocation187_spill] sm:$0xff] }
 0x444   :  { %2867 = vmatpush.msra.mxu2 %v15455_v45  ;;  %2845 = vmatpush.msra.mxu1 %v15458_v44  ;;  %v15466_v45 = vld [vmem:[#allocation186_spill] sm:$0xff]  ;;  %v15469_v44 = vld [vmem:[#allocation189_spill] sm:$0xff] }
 0x445   :  { %2828 = vmatpush.msra.mxu0 %v15457_v0  ;;  %2885 = vmatpush.msra.mxu3 %v15460_v53  ;;  %v15468_v0 = vld [vmem:[#allocation188_spill] sm:$0xff]  ;;  %v10926_v53 = vld [vmem:[%s14061_s3 + $0x98] sm:$0xff] }
 0x446   :  { %2868 = vmatpush.msra.mxu2 %v15459_v48  ;;  %2846 = vmatpush.msra.mxu1 %v15462_v11  ;;  %v15470_v48 = vld [vmem:[#allocation190_spill] sm:$0xff]  ;;  %15471 = vst [vmem:[#allocation22_spill] sm:$0xff] %v10926_v53 }
 0x447   :  { %2829 = vmatpush.msra.mxu0 %v15461_v50  ;;  %2886 = vmatpush.msra.mxu3 %v15464_v25  ;;  %v15472_v50 = vld [vmem:[#allocation191_spill] sm:$0xff]  ;;  %v10933_v11 = vld [vmem:[%s14061_s3 + $0x50] sm:$0xff] }
 0x448   :  { %2869 = vmatpush.msra.mxu2 %v15463_v59  ;;  %2847 = vmatpush.msra.mxu1 %v15466_v45  ;;  %15473 = vst [vmem:[#allocation83_spill] sm:$0xff] %v10933_v11  ;;  %v15474_v59 = vld [vmem:[#allocation192_spill] sm:$0xff]  ;;  %v10940_v25 = vld [vmem:[%s14061_s3 + $0x58] sm:$0xff]  ;;  %v10952_v45 = vld [vmem:[%s14061_s3 + $0x10] sm:$0xff] }
 0x449   :  { %2830 = vmatpush.msra.mxu0 %v15465_v24  ;;  %2887 = vmatpush.msra.mxu3 %v15468_v0  ;;  %15475 = vst [vmem:[#allocation84_spill] sm:$0xff] %v10940_v25  ;;  %v10946_v24 = vld [vmem:[%s14061_s3 + $0x518] sm:$0xff] }
 0x44a   :  { %2870 = vmatpush.msra.mxu2 %v15467_v5  ;;  %2848 = vmatpush.msra.mxu1 %v15470_v48  ;;  %15476 = vst [vmem:[#allocation97_spill] sm:$0xff] %v10946_v24  ;;  %v10958_v5 = vld [vmem:[%s14061_s3 + $0x4d0] sm:$0xff]  ;;  %v10964_v0 = vld [vmem:[%s14061_s3 + $0x18] sm:$0xff] }
 0x44b   :  { %2831 = vmatpush.msra.mxu0 %v15469_v44  ;;  %2888 = vmatpush.msra.mxu3 %v15472_v50  ;;  %15477 = vst [vmem:[#allocation98_spill] sm:$0xff] %v10952_v45  ;;  %v10970_v44 = vld [vmem:[%s14061_s3 + $0x4d8] sm:$0xff]  ;;  %v10976_v48 = vld [vmem:[%s14061_s3 + $0x490] sm:$0xff] }
 0x44c   :  { %2871 = vmatpush.msra.mxu2 %v10926_v53  ;;  %2849 = vmatpush.msra.mxu1 %v15474_v59  ;;  %15478 = vst [vmem:[#allocation40_spill] sm:$0xff] %v10958_v5  ;;  %v10982_v50 = vld [vmem:[%s14061_s3 + $0x498] sm:$0xff]  ;;  %v10988_v59 = vld [vmem:[%s14061_s3 + $0x450] sm:$0xff]  ;;  %v15488_v53 = vld [vmem:[#allocation12_spill] sm:$0xff] }
 0x44d   :  { %2832 = vmatpush.msra.mxu0 %v10933_v11  ;;  %2889 = vmatpush.msra.mxu3 %v10946_v24  ;;  %15479 = vst [vmem:[#allocation75_spill] sm:$0xff] %v10964_v0  ;;  %v15487_v11 = vld [vmem:[#allocation8_spill] sm:$0xff] }
 0x44e   :  { %2872 = vmatpush.msra.mxu2 %v10940_v25  ;;  %2850 = vmatpush.msra.mxu1 %v10958_v5  ;;  %15480 = vst [vmem:[#allocation76_spill] sm:$0xff] %v10970_v44  ;;  %v2352_v5 = vpop.f32.mrf.mxu3  ;;  %v531_v46 = vadd.f32 %v15488_v53, %v15487_v11 }
 0x44f   :  { %2833 = vmatpush.msra.mxu0 %v10952_v45  ;;  %2890 = vmatpush.msra.mxu3 %v10970_v44  ;;  %15481 = vst [vmem:[#allocation43_spill] sm:$0xff] %v10976_v48  ;;  %v10994_v44 = vld [vmem:[%s14061_s3 + $0x458] sm:$0xff]  ;;  %v2332_v45 = vpop.f32.mrf.mxu2 }
 0x450   :  { %2873 = vmatpush.msra.mxu2 %v10964_v0  ;;  %2851 = vmatpush.msra.mxu1 %v10976_v48  ;;  %15482 = vst [vmem:[#allocation44_spill] sm:$0xff] %v10982_v50  ;;  %v11000_v48 = vld [vmem:[%s14061_s3 + $0x410] sm:$0xff]  ;;  %v2292_v0 = vpop.f32.mrf.mxu0  ;;  %v2353_v49 = vadd.f32 %v2352_v5, %v2332_v45 }
 0x451   :  { %2891 = vmatpush.msra.mxu3 %v10982_v50  ;;  %15483 = vst [vmem:[#allocation79_spill] sm:$0xff] %v10988_v59  ;;  %v11006_v50 = vld [vmem:[%s14061_s3 + $0x418] sm:$0xff] }
 0x452   :  { %2852 = vmatpush.msra.mxu1 %v10988_v59  ;;  %15484 = vst [vmem:[#allocation80_spill] sm:$0xff] %v10994_v44  ;;  %v2312_v59 = vpop.f32.mrf.mxu1 }
 0x453   :  { %2892 = vmatpush.msra.mxu3 %v10994_v44  ;;  %15485 = vst [vmem:[#allocation45_spill] sm:$0xff] %v11000_v48  ;;  %v2313_v4 = vadd.f32 %v2312_v59, %v2292_v0 }
 0x454   :  { %2853 = vmatpush.msra.mxu1 %v11000_v48  ;;  %15486 = vst [vmem:[#allocation46_spill] sm:$0xff] %v11006_v50 }
 0x455   :  { %2893 = vmatpush.msra.mxu3 %v11006_v50  ;;  %v2595_v1 = vadd.f32 %v2313_v4, %v449_v30  ;;  %v15491_v50 = vld [vmem:[#allocation173_spill] sm:$0xff] }
 0x456   :  { %v572_v51 = vadd.f32 %v15492_v15, %v15491_v50 }
 0x457   :  { %v2432_v21 = vpop.f32.mrf.mxu3  ;;  %v2412_v52 = vpop.f32.mrf.mxu2  ;;  %v4521_v43 = vmul.f32 -1.442695, %v2595_v1 }
 0x458   :  { %v2372_v44 = vpop.f32.mrf.mxu0  ;;  %v2433_v41 = vadd.f32 %v2432_v21, %v2412_v52  ;;  %v15496_v52 = vld [vmem:[#allocation107_spill] sm:$0xff] }
 0x459   :  { %v613_v30 = vadd.f32 %v15496_v52, %v15495_v54  ;;  %v15500_v54 = vld [vmem:[#allocation121_spill] sm:$0xff] }
 0x45a   :  { %v2392_v24 = vpop.f32.mrf.mxu1  ;;  %v2598_v39 = vadd.f32 %v2433_v41, %v572_v51 }
 0x45b   :  { %v2393_v25 = vadd.f32 %v2392_v24, %v2372_v44  ;;  %v15494_v24 = vld [vmem:[#allocation24_spill] sm:$0xff] }
 0x45c   :  { %v490_v44 = vadd.f32 %v15494_v24, %v15493_v38 }
 0x45d   :  { %v2597_v48 = vadd.f32 %v2393_v25, %v531_v46  ;;  %v4524_v25 = vmul.f32 -1.442695, %v2598_v39 }
 0x45e   :  { %v2596_v0 = vadd.f32 %v2353_v49, %v490_v44  ;;  %v15498_v49 = vld [vmem:[#allocation108_spill] sm:$0xff] }
 0x45f   :  { %v4523_v61 = vmul.f32 -1.442695, %v2597_v48 }
 0x460   :  { %v4522_v21 = vmul.f32 -1.442695, %v2596_v0 }
 0x461   :  { %4678 = vpow2.f32 %v4523_v61  ;;  %v15497_v61 = vld [vmem:[#allocation175_spill] sm:$0xff] }
 0x462   :  { %4680 = vpow2.f32 %v4521_v43  ;;  %v654_v48 = vadd.f32 %v15498_v49, %v15497_v61 }
 0x463   :  { %4682 = vpow2.f32 %v4524_v25 }
 0x464   :  { %4684 = vpow2.f32 %v4522_v21 }
 0x467   :  { %v2452_v46 = vpop.f32.mrf.mxu0  ;;  %v4679_v4 = vpop.eup %4678 }
 0x468   :  { %v4681_v5 = vpop.eup %4680  ;;  %v11019_v1 = vadd.f32 1.0, %v4679_v4 }
 0x469   :  { %v4683_v24 = vpop.eup %4682  ;;  %v2621_v43 = vadd.f32 1.0, %v4681_v5 }
 0x46a   :  { %4686 = vrcp.f32 %v11019_v1  ;;  %v11024_v0 = vadd.f32 1.0, %v4683_v24  ;;  %v2668_v9 = vand.u32 2147483648, %v11019_v1  ;;  %vm2662_vm8 = vweird.f32 %v11019_v1 }
 0x46b   :  { %v2638_v11 = vand.u32 2147483648, %v2621_v43  ;;  %vm2632_vm10 = vweird.f32 %v2621_v43 }
 0x46c   :  { %vm2677_vm0 = vweird.f32 %v11024_v0 }
 0x470   :  { %v2472_v53 = vpop.f32.mrf.mxu1  ;;  %v2492_v51 = vpop.f32.mrf.mxu2 }
 0x471   :  { %v2473_v59 = vadd.f32 %v2472_v53, %v2452_v46  ;;  %v4685_v53 = vpop.eup %4684 }
 0x472   :  { %v11026_v25 = vadd.f32 1.0, %v4685_v53 }
 0x473   :  { %v2599_v15 = vadd.f32 %v2473_v59, %v613_v30  ;;  %v11028_v59 = vpop.eup %4686 }
 0x474   :  { %v2658_v21 = vmul.f32 %v11028_v59, %v11019_v1  ;;  %vm2663_vm6 = vweird.f32 %v11028_v59  ;;  %vm2647_vm13 = vweird.f32 %v11026_v25 }
 0x475   :  { %v4525_v39 = vmul.f32 -1.442695, %v2599_v15  ;;  %vm11069_vm9 = vmor %vm2662_vm8, %vm2663_vm6 }
 0x477   :  { %v2512_v45 = vpop.f32.mrf.mxu3  ;;  %4688 = vpow2.f32 %v4525_v39 }
 0x478   :  { %v2513_v41 = vadd.f32 %v2512_v45, %v2492_v51  ;;  %4690 = vrcp.f32 %v2621_v43 }
 0x479   :  { %4692 = vrcp.f32 %v11024_v0 }
 0x47a   :  { %v2600_v44 = vadd.f32 %v2513_v41, %v654_v48  ;;  %v2659_v41 = vsub.f32 1.0, %v2658_v21 }
 0x47c   :  { %v4526_v46 = vmul.f32 -1.442695, %v2600_v44  ;;  %v2660_v44 = vmul.f32 %v11028_v59, %v2659_v41 }
 0x47d   :  { %v4689_v52 = vpop.eup %4688 }
 0x47e   :  { %4694 = vpow2.f32 %v4526_v46  ;;  %v11031_v30 = vpop.eup %4690  ;;  %v11036_v4 = vadd.f32 1.0, %v4689_v52  ;;  %v2661_v41 = vadd.f32 %v11028_v59, %v2660_v44 }
 0x47f   :  { %4696 = vrcp.f32 %v11026_v25  ;;  %v11038_v15 = vpop.eup %4692  ;;  %v2628_v45 = vmul.f32 %v11031_v30, %v2621_v43  ;;  %vm2633_vm7 = vweird.f32 %v11031_v30 }
 0x480   :  { %4698 = vrcp.f32 %v11036_v4  ;;  %v2673_v48 = vmul.f32 %v11038_v15, %v11024_v0  ;;  %vm11085_vm12 = vmor %vm2632_vm10, %vm2633_vm7  ;;  %vm2678_vm14 = vweird.f32 %v11038_v15  ;;  %vm2692_vm7 = vweird.f32 %v11036_v4 }
 0x481   :  { %v2629_v49 = vsub.f32 1.0, %v2628_v45  ;;  %v15499_v45 = vld [vmem:[#allocation19_spill] sm:$0xff]  ;;  %vm11102_vm2 = vmor %vm2677_vm0, %vm2678_vm14 }
 0x482   :  { %v2674_v46 = vsub.f32 1.0, %v2673_v48  ;;  %v695_v38 = vadd.f32 %v15500_v54, %v15499_v45 }
 0x483   :  { %v2630_v61 = vmul.f32 %v11031_v30, %v2629_v49 }
 0x484   :  { %v4695_v51 = vpop.eup %4694  ;;  %v2675_v54 = vmul.f32 %v11038_v15, %v2674_v46  ;;  %v2639_v46 = vor.u32 1.1754944e-38, %v2638_v11 }
 0x485   :  { %v11042_v5 = vpop.eup %4696  ;;  %v11046_v39 = vadd.f32 1.0, %v4695_v51  ;;  %v2636_v51 = vand.u32 2147483647, %v2621_v43  ;;  %v2631_v49 = vadd.f32 %v11031_v30, %v2630_v61 }
 0x486   :  { %v2643_v24 = vmul.f32 %v11042_v5, %v11026_v25  ;;  %v11051_v53 = vpop.eup %4698  ;;  %vm2648_vm1 = vweird.f32 %v11042_v5 }
 0x487   :  { %4700 = vrcp.f32 %v11046_v39  ;;  %v2688_v48 = vmul.f32 %v11051_v53, %v11036_v4  ;;  %vm11075_vm11 = vcmp.eq.f32.partialorder %v2636_v51, 8.507059e+37  ;;  %v2635_v11 = vsel %vm11085_vm12, %v11031_v30, %v2631_v49  ;;  %vm11117_vm3 = vmor %vm2647_vm13, %vm2648_vm1 }
 0x488   :  { %v2644_v23 = vsub.f32 1.0, %v2643_v24  ;;  %v2666_v24 = vand.u32 2147483647, %v11019_v1  ;;  %v2665_v1 = vsel %vm11069_vm9, %v11028_v59, %v2661_v41  ;;  %v2640_v49 = vsel %vm11075_vm11, %v2639_v46, %v2635_v11 }
 0x489   :  { %v2689_v32 = vsub.f32 1.0, %v2688_v48  ;;  %v2681_v48 = vand.u32 2147483647, %v11024_v0  ;;  %vm2693_vm5 = vweird.f32 %v11051_v53  ;;  %v2696_v11 = vand.u32 2147483647, %v11036_v4 }
 0x48a   :  { %vm2667_vm15 = vcmp.eq.f32.partialorder %v2666_v24, 8.507059e+37  ;;  %vm2694_vm8 = vmor %vm2692_vm7, %vm2693_vm5  ;;  %vm2707_vm11 = vweird.f32 %v11046_v39 }
 0x48b   :  { %v2532_v52 = vpop.f32.mrf.mxu0  ;;  %vm2682_vm4 = vcmp.eq.f32.partialorder %v2681_v48, 8.507059e+37  ;;  %vm2697_vm9 = vcmp.eq.f32.partialorder %v2696_v11, 8.507059e+37  ;;  %v15546_v11 = vld [vmem:[#allocation226_spill] sm:$0xff] }
 0x491   :  { %v2552_v21 = vpop.f32.mrf.mxu1 }
 0x492   :  { %v2553_v50 = vadd.f32 %v2552_v21, %v2532_v52  ;;  %v15501_v52 = vld [vmem:[#allocation176_spill] sm:$0xff]  ;;  %v15502_v21 = vld [vmem:[#allocation122_spill] sm:$0xff]  ;;  %v2572_v61 = vpop.f32.mrf.mxu2 }
 0x493   :  { %v736_v45 = vadd.f32 %v15502_v21, %v15501_v52  ;;  %v2645_v21 = vmul.f32 %v11042_v5, %v2644_v23  ;;  %v2669_v52 = vor.u32 1.1754944e-38, %v2668_v9  ;;  %v2676_v23 = vadd.f32 %v11038_v15, %v2675_v54 }
 0x494   :  { %v2601_v55 = vadd.f32 %v2553_v50, %v695_v38  ;;  %v11073_v38 = vpop.eup %4700  ;;  %v2683_v9 = vand.u32 2147483648, %v11024_v0  ;;  %v2690_v54 = vmul.f32 %v11051_v53, %v2689_v32  ;;  %v15542_v32 = vld [vmem:[#allocation222_spill] sm:$0xff] }
 0x495   :  { %v2703_v59 = vmul.f32 %v11073_v38, %v11046_v39  ;;  %v2670_v51 = vsel %vm2667_vm15, %v2669_v52, %v2665_v1  ;;  %v2651_v1 = vand.u32 2147483647, %v11026_v25  ;;  %v2680_v0 = vsel %vm11102_vm2, %v11038_v15, %v2676_v23 }
 0x496   :  { %4702 = vtanh.f32 %v2601_v55  ;;  %v2719_v24 = vmul.f32 %v2670_v51, %v10175_v58  ;;  %v2691_v46 = vadd.f32 %v11051_v53, %v2690_v54  ;;  %vm2708_vm10 = vweird.f32 %v11073_v38 }
 0x497   :  { %vm2652_vm6 = vcmp.eq.f32.partialorder %v2651_v1, 8.507059e+37  ;;  %vm2709_vm12 = vmor %vm2707_vm11, %vm2708_vm10  ;;  %v11254_v1 = vld [vmem:[%s14061_s3 + $0x3b8] sm:$0xff] }
 0x498   :  { %v2592_v13 = vpop.f32.mrf.mxu3  ;;  %v2695_v51 = vsel %vm2694_vm8, %v11051_v53, %v2691_v46  ;;  %v11278_v46 = vld [vmem:[%s14061_s3 + $0x330] sm:$0xff] }
 0x499   :  { %v2593_v43 = vadd.f32 %v2592_v13, %v2572_v61  ;;  %v2646_v13 = vadd.f32 %v11042_v5, %v2645_v21  ;;  %v2684_v61 = vor.u32 1.1754944e-38, %v2683_v9  ;;  %v2704_v21 = vsub.f32 1.0, %v2703_v59 }
 0x49b   :  { %v2602_v41 = vadd.f32 %v2593_v43, %v736_v45  ;;  %v2653_v45 = vand.u32 2147483648, %v11026_v25  ;;  %v2650_v58 = vsel %vm11117_vm3, %v11042_v5, %v2646_v13  ;;  %v2685_v55 = vsel %vm2682_vm4, %v2684_v61, %v2680_v0  ;;  %v15540_v0 = vld [vmem:[#allocation220_spill] sm:$0xff]  ;;  %v15541_v61 = vld [vmem:[#allocation221_spill] sm:$0xff] }
 0x49c   :  { %v4703_v44 = vpop.eup %4702  ;;  %v2698_v43 = vand.u32 2147483648, %v11036_v4  ;;  %v2705_v23 = vmul.f32 %v11073_v38, %v2704_v21  ;;  %v2720_v9 = vmul.f32 %v2685_v55, %v10189_v26  ;;  %v2713_v4 = vand.u32 2147483648, %v11046_v39  ;;  %v11268_v21 = vld [vmem:[%s14061_s3 + $0x378] sm:$0xff] }
 0x49d   :  { %4704 = vtanh.f32 %v2602_v41  ;;  %v2721_v52 = vmul.f32 %v4703_v44, %v2640_v49  ;;  %v2654_v15 = vor.u32 1.1754944e-38, %v2653_v45  ;;  %v2711_v26 = vand.u32 2147483647, %v11046_v39  ;;  %v11285_v55 = vld [vmem:[%s14061_s3 + $0x338] sm:$0xff] }
 0x49e   :  { %v2699_v41 = vor.u32 1.1754944e-38, %v2698_v43  ;;  %v2706_v48 = vadd.f32 %v11073_v38, %v2705_v23  ;;  %v2714_v49 = vor.u32 1.1754944e-38, %v2713_v4  ;;  %v15545_v43 = vld [vmem:[#allocation225_spill] sm:$0xff]  ;;  %v11299_v23 = vld [vmem:[%s14061_s3 + $0x2f8] sm:$0xff] }
 0x49f   :  { %v11121_v50 = vadd.f32 %v2721_v52, %v2719_v24  ;;  %v2655_v5 = vsel %vm2652_vm6, %v2654_v15, %v2650_v58  ;;  %vm2712_vm13 = vcmp.eq.f32.partialorder %v2711_v26, 8.507059e+37  ;;  %v11225_v52 = vld [vmem:[%s14061_s3 + $0x28] sm:$0xff]  ;;  %v15543_v58 = vld [vmem:[#allocation223_spill] sm:$0xff]  ;;  %v15544_v15 = vld [vmem:[#allocation224_spill] sm:$0xff] }
 0x4a0   :  { %v2700_v30 = vsel %vm2697_vm9, %v2699_v41, %v2695_v51  ;;  %v2710_v53 = vsel %vm2709_vm12, %v11073_v38, %v2706_v48  ;;  %v15538_v38 = vld [vmem:[#allocation218_spill] sm:$0xff]  ;;  %v11313_v51 = vld [vmem:[%s14061_s3 + $0x2b8] sm:$0xff]  ;;  %v15549_v41 = vld [vmem:[#allocation229_spill] sm:$0xff] }
 0x4a1   :  { %4706 = vtanh.f32 %v11121_v50  ;;  %v2715_v24 = vsel %vm2712_vm13, %v2714_v49, %v2710_v53  ;;  %v11320_v48 = vld [vmem:[%s14061_s3 + $0x270] sm:$0xff]  ;;  %v15551_v4 = vld [vmem:[#allocation41_spill] sm:$0xff]  ;;  %v11341_v49 = vld [vmem:[%s14061_s3 + $0x238] sm:$0xff] }
 0x4a2   :  { %v11334_v26 = vld [vmem:[%s14061_s3 + $0x230] sm:$0xff] }
 0x4a3   :  { %v4705_v25 = vpop.eup %4704  ;;  %v15552_v53 = vld [vmem:[#allocation42_spill] sm:$0xff] }
 0x4a4   :  { %v2722_v59 = vmul.f32 %v4705_v25, %v2655_v5  ;;  %v11292_v25 = vld [vmem:[%s14061_s3 + $0x2f0] sm:$0xff]  ;;  %v15547_v5 = vld [vmem:[#allocation227_spill] sm:$0xff] }
 0x4a6   :  { %v11135_v13 = vadd.f32 %v2722_v59, %v2720_v9  ;;  %v11306_v9 = vld [vmem:[%s14061_s3 + $0x2b0] sm:$0xff]  ;;  %v15548_v59 = vld [vmem:[#allocation228_spill] sm:$0xff] }
 0x4a7   :  { %v4707_v44 = vpop.eup %4706 }
 0x4a8   :  { %4708 = vtanh.f32 %v11135_v13  ;;  %v11143_v54 = vmul.f32 %v4707_v44, %v2700_v30  ;;  %v15550_v44 = vld [vmem:[#allocation38_spill] sm:$0xff]  ;;  %v11327_v30 = vld [vmem:[%s14061_s3 + $0x278] sm:$0xff] }
 0x4aa   :  { %2754 = vmatmul.f32.vlgmr.msrb.gmra.mxu0 %v11143_v54  ;;  %2794 = vmatmul.f32.vlgmr.msrb.gmra.mxu2 %v11143_v54 }
 0x4ab   :  { %2898 = vmatpush.msrb.mxu0 %v10205_v56  ;;  %2938 = vmatpush.msrb.mxu2 %v10211_v14  ;;  %v15514_v56 = vld [vmem:[#allocation194_spill] sm:$0xff]  ;;  %v15515_v14 = vld [vmem:[#allocation195_spill] sm:$0xff] }
 0x4ad   :  { %2899 = vmatpush.msrb.mxu0 %v10217_v2  ;;  %2939 = vmatpush.msrb.mxu2 %v10223_v7  ;;  %v15516_v2 = vld [vmem:[#allocation196_spill] sm:$0xff]  ;;  %v15517_v7 = vld [vmem:[#allocation197_spill] sm:$0xff] }
 0x4ae   :  { %v4709_v45 = vpop.eup %4708 }
 0x4af   :  { %v11152_v39 = vmul.f32 %v4709_v45, %v2715_v24  ;;  %2900 = vmatpush.msrb.mxu0 %v10231_v57  ;;  %2940 = vmatpush.msrb.mxu2 %v10237_v12  ;;  %v15518_v57 = vld [vmem:[#allocation198_spill] sm:$0xff]  ;;  %v15519_v12 = vld [vmem:[#allocation199_spill] sm:$0xff] }
 0x4b0   :  { %v15553_v45 = vld [vmem:[#allocation230_spill] sm:$0xff] }
 0x4b1   :  { %15513 = vst [vmem:[#allocation85_spill] sm:$0xff] %v11152_v39  ;;  %2774 = vmatmul.f32.vlgmr.msrb.gmra.mxu1 %v11152_v39  ;;  %2814 = vmatmul.f32.vlgmr.msrb.gmra.mxu3 %v11152_v39  ;;  %v11348_v24 = vld [vmem:[%s14061_s3 + $0x1f0] sm:$0xff] }
 0x4b2   :  { %2901 = vmatpush.msrb.mxu0 %v10245_v34  ;;  %2918 = vmatpush.msrb.mxu1 %v10251_v40  ;;  %v15520_v34 = vld [vmem:[#allocation200_spill] sm:$0xff]  ;;  %v15521_v40 = vld [vmem:[#allocation201_spill] sm:$0xff] }
 0x4b3   :  { %2941 = vmatpush.msrb.mxu2 %v10257_v16  ;;  %2958 = vmatpush.msrb.mxu3 %v10263_v8  ;;  %v15522_v16 = vld [vmem:[#allocation202_spill] sm:$0xff]  ;;  %v15523_v8 = vld [vmem:[#allocation203_spill] sm:$0xff] }
 0x4b4   :  { %2834 = vmatmul.f32.vlgmr.msra.gmra.mxu0 %v11143_v54  ;;  %2874 = vmatmul.f32.vlgmr.msra.gmra.mxu2 %v11143_v54 }
 0x4b5   :  { %2902 = vmatpush.msrb.mxu0 %v10271_v22  ;;  %2919 = vmatpush.msrb.mxu1 %v10277_v42  ;;  %v15524_v22 = vld [vmem:[#allocation204_spill] sm:$0xff]  ;;  %v15525_v42 = vld [vmem:[#allocation205_spill] sm:$0xff] }
 0x4b6   :  { %2942 = vmatpush.msrb.mxu2 %v10283_v62  ;;  %2959 = vmatpush.msrb.mxu3 %v10289_v47  ;;  %v15526_v62 = vld [vmem:[#allocation206_spill] sm:$0xff]  ;;  %v15527_v47 = vld [vmem:[#allocation207_spill] sm:$0xff] }
 0x4b7   :  { %2903 = vmatpush.msrb.mxu0 %v10295_v28  ;;  %2920 = vmatpush.msrb.mxu1 %v10301_v37  ;;  %v15528_v28 = vld [vmem:[#allocation208_spill] sm:$0xff]  ;;  %v15529_v37 = vld [vmem:[#allocation209_spill] sm:$0xff] }
 0x4b8   :  { %2943 = vmatpush.msrb.mxu2 %v10307_v19  ;;  %2960 = vmatpush.msrb.mxu3 %v10313_v60  ;;  %v15530_v19 = vld [vmem:[#allocation210_spill] sm:$0xff]  ;;  %v15531_v60 = vld [vmem:[#allocation211_spill] sm:$0xff] }
 0x4b9   :  { %2904 = vmatpush.msrb.mxu0 %v10319_v6  ;;  %2921 = vmatpush.msrb.mxu1 %v10325_v10  ;;  %v15532_v6 = vld [vmem:[#allocation212_spill] sm:$0xff]  ;;  %v15533_v10 = vld [vmem:[#allocation213_spill] sm:$0xff] }
 0x4ba   :  { %2944 = vmatpush.msrb.mxu2 %v10331_v35  ;;  %2961 = vmatpush.msrb.mxu3 %v10337_v20  ;;  %v15534_v35 = vld [vmem:[#allocation214_spill] sm:$0xff]  ;;  %v15535_v20 = vld [vmem:[#allocation215_spill] sm:$0xff] }
 0x4bb   :  { %2854 = vmatmul.f32.vlgmr.msra.gmra.mxu1 %v11152_v39  ;;  %2894 = vmatmul.f32.vlgmr.msra.gmra.mxu3 %v11152_v39 }
 0x4bc   :  { %2905 = vmatpush.msrb.mxu0 %v10345_v33  ;;  %2922 = vmatpush.msrb.mxu1 %v10351_v31  ;;  %v15536_v33 = vld [vmem:[#allocation216_spill] sm:$0xff]  ;;  %v15537_v31 = vld [vmem:[#allocation217_spill] sm:$0xff] }
 0x4bd   :  { %2945 = vmatpush.msrb.mxu2 %v10357_v29  ;;  %2962 = vmatpush.msrb.mxu3 %v15514_v56  ;;  %v11209_v29 = vld [vmem:[%s14061_s3 + $0x60] sm:$0xff]  ;;  %v15554_v56 = vld [vmem:[#allocation231_spill] sm:$0xff] }
 0x4be   :  { %2906 = vmatpush.msrb.mxu0 %v15515_v14  ;;  %2923 = vmatpush.msrb.mxu1 %v15516_v2  ;;  %v11355_v14 = vld [vmem:[%s14061_s3 + $0x1f8] sm:$0xff] }
 0x4bf   :  { %2946 = vmatpush.msrb.mxu2 %v15517_v7  ;;  %2963 = vmatpush.msrb.mxu3 %v15518_v57  ;;  %v15555_v2 = vld [vmem:[#allocation47_spill] sm:$0xff]  ;;  %v11362_v7 = vld [vmem:[%s14061_s3 + $0x1b0] sm:$0xff]  ;;  %v15556_v57 = vld [vmem:[#allocation48_spill] sm:$0xff] }
 0x4c0   :  { %2907 = vmatpush.msrb.mxu0 %v15519_v12  ;;  %2924 = vmatpush.msrb.mxu1 %v15520_v34  ;;  %v11369_v12 = vld [vmem:[%s14061_s3 + $0x1b8] sm:$0xff] }
 0x4c1   :  { %2947 = vmatpush.msrb.mxu2 %v15521_v40  ;;  %2964 = vmatpush.msrb.mxu3 %v15522_v16  ;;  %v15557_v34 = vld [vmem:[#allocation51_spill] sm:$0xff]  ;;  %v11376_v40 = vld [vmem:[%s14061_s3 + $0x170] sm:$0xff]  ;;  %v15558_v16 = vld [vmem:[#allocation52_spill] sm:$0xff] }
 0x4c2   :  { %2908 = vmatpush.msrb.mxu0 %v15523_v8  ;;  %2925 = vmatpush.msrb.mxu1 %v15524_v22  ;;  %v11383_v8 = vld [vmem:[%s14061_s3 + $0x178] sm:$0xff] }
 0x4c3   :  { %2948 = vmatpush.msrb.mxu2 %v15525_v42  ;;  %2965 = vmatpush.msrb.mxu3 %v15526_v62  ;;  %v15559_v22 = vld [vmem:[#allocation55_spill] sm:$0xff]  ;;  %v11390_v42 = vld [vmem:[%s14061_s3 + $0x130] sm:$0xff]  ;;  %v15560_v62 = vld [vmem:[#allocation56_spill] sm:$0xff] }
 0x4c4   :  { %2909 = vmatpush.msrb.mxu0 %v15527_v47  ;;  %2926 = vmatpush.msrb.mxu1 %v15528_v28  ;;  %v11397_v47 = vld [vmem:[%s14061_s3 + $0x138] sm:$0xff]  ;;  %v15561_v28 = vld [vmem:[#allocation32_spill] sm:$0xff] }
 0x4c5   :  { %2949 = vmatpush.msrb.mxu2 %v15529_v37  ;;  %2966 = vmatpush.msrb.mxu3 %v15530_v19  ;;  %v11404_v37 = vld [vmem:[%s14061_s3 + $0xf0] sm:$0xff]  ;;  %v15562_v19 = vld [vmem:[#allocation33_spill] sm:$0xff] }
 0x4c6   :  { %2910 = vmatpush.msrb.mxu0 %v15531_v60  ;;  %2927 = vmatpush.msrb.mxu1 %v15532_v6  ;;  %v11411_v60 = vld [vmem:[%s14061_s3 + $0xf8] sm:$0xff]  ;;  %v15563_v6 = vld [vmem:[#allocation61_spill] sm:$0xff] }
 0x4c7   :  { %2950 = vmatpush.msrb.mxu2 %v15533_v10  ;;  %2967 = vmatpush.msrb.mxu3 %v15534_v35  ;;  %v11418_v10 = vld [vmem:[%s14061_s3 + $0xb0] sm:$0xff] }
 0x4c8   :  { %2911 = vmatpush.msrb.mxu0 %v10489_v17  ;;  %2928 = vmatpush.msrb.mxu1 %v15535_v20  ;;  %v11218_v17 = vld [vmem:[%s14061_s3 + $0x20] sm:$0xff]  ;;  %v15564_v35 = vld [vmem:[#allocation62_spill] sm:$0xff]  ;;  %v11425_v20 = vld [vmem:[%s14061_s3 + $0xb8] sm:$0xff] }
 0x4c9   :  { %2951 = vmatpush.msrb.mxu2 %v15536_v33  ;;  %2968 = vmatpush.msrb.mxu3 %v15537_v31  ;;  %v15565_v33 = vld [vmem:[#allocation34_spill] sm:$0xff] }
 0x4ca   :  { %2912 = vmatpush.msrb.mxu0 %v11209_v29  ;;  %2929 = vmatpush.msrb.mxu1 %v10514_v3  ;;  %v11240_v3 = vld [vmem:[%s14061_s3 + $0x3f8] sm:$0xff]  ;;  %v11432_v31 = vld [vmem:[%s14061_s3 + $0x70] sm:$0xff] }
 0x4cb   :  { %2952 = vmatpush.msrb.mxu2 %v15538_v38  ;;  %2969 = vmatpush.msrb.mxu3 %v10526_v18  ;;  %v11234_v18 = vld [vmem:[%s14061_s3 + $0x3f0] sm:$0xff]  ;;  %15566 = vst [vmem:[#allocation86_spill] sm:$0xff] %v11432_v31  ;;  %v15567_v38 = vld [vmem:[#allocation35_spill] sm:$0xff] }
 0x4cc   :  { %2913 = vmatpush.msrb.mxu0 %v11218_v17  ;;  %2930 = vmatpush.msrb.mxu1 %v10533_v36  ;;  %v11248_v36 = vld [vmem:[%s14061_s3 + $0x3b0] sm:$0xff] }
 0x4cd   :  { %2953 = vmatpush.msrb.mxu2 %v11225_v52  ;;  %2970 = vmatpush.msrb.mxu3 %v10540_v63  ;;  %v15539_v63 = vld [vmem:[#allocation219_spill] sm:$0xff] }
 0x4ce   :  { %2914 = vmatmul.f32.vlgmr.msrb.gmra.mxu0 %v11143_v54  ;;  %2954 = vmatmul.f32.vlgmr.msrb.gmra.mxu2 %v11143_v54 }
 0x4cf   :  { %2978 = vmatpush.msra.mxu0 %v11234_v18  ;;  %3018 = vmatpush.msra.mxu2 %v11240_v3 }
 0x4d0   :  { %2931 = vmatpush.msrb.mxu1 %v10550_v27  ;;  %2971 = vmatpush.msrb.mxu3 %v15539_v63  ;;  %v11262_v27 = vld [vmem:[%s14061_s3 + $0x370] sm:$0xff]  ;;  %v11439_v63 = vld [vmem:[%s14061_s3 + $0x78] sm:$0xff] }
 0x4d1   :  { %2979 = vmatpush.msra.mxu0 %v11248_v36  ;;  %3019 = vmatpush.msra.mxu2 %v11254_v1  ;;  %15568 = vst [vmem:[#allocation49_spill] sm:$0xff] %v11439_v63 }
 0x4d2   :  { %2932 = vmatpush.msrb.mxu1 %v15540_v0  ;;  %2972 = vmatpush.msrb.mxu3 %v15541_v61  ;;  %v15569_v0 = vld [vmem:[#allocation65_spill] sm:$0xff]  ;;  %v11446_v61 = vld [vmem:[%s14061_s3 + $0x30] sm:$0xff] }
 0x4d3   :  { %2980 = vmatpush.msra.mxu0 %v11262_v27  ;;  %3020 = vmatpush.msra.mxu2 %v11268_v21  ;;  %15570 = vst [vmem:[#allocation50_spill] sm:$0xff] %v11446_v61 }
 0x4d4   :  { %2933 = vmatpush.msrb.mxu1 %v15542_v32  ;;  %2973 = vmatpush.msrb.mxu3 %v15543_v58  ;;  %v15571_v32 = vld [vmem:[#allocation66_spill] sm:$0xff]  ;;  %v11453_v58 = vld [vmem:[%s14061_s3 + $0x38] sm:$0xff] }
 0x4d5   :  { %2934 = vmatmul.f32.vlgmr.msrb.gmra.mxu1 %v11152_v39  ;;  %2974 = vmatmul.f32.vlgmr.msrb.gmra.mxu3 %v11152_v39  ;;  %15572 = vst [vmem:[#allocation89_spill] sm:$0xff] %v11453_v58 }
 0x4d6   :  { %2981 = vmatpush.msra.mxu0 %v11278_v46  ;;  %2998 = vmatpush.msra.mxu1 %v15544_v15  ;;  %v15573_v15 = vld [vmem:[#allocation36_spill] sm:$0xff] }
 0x4d7   :  { %3021 = vmatpush.msra.mxu2 %v11285_v55  ;;  %3038 = vmatpush.msra.mxu3 %v15545_v43  ;;  %v15574_v43 = vld [vmem:[#allocation37_spill] sm:$0xff] }
 0x4d8   :  { %2982 = vmatpush.msra.mxu0 %v11292_v25  ;;  %2999 = vmatpush.msra.mxu1 %v15546_v11  ;;  %v15575_v11 = vld [vmem:[#allocation69_spill] sm:$0xff] }
 0x4d9   :  { %3022 = vmatpush.msra.mxu2 %v11299_v23  ;;  %3039 = vmatpush.msra.mxu3 %v15547_v5  ;;  %v11464_v5 = vld [vmem:[%s14061_s3 + $0x3c0] sm:$0xff] }
 0x4da   :  { %2983 = vmatpush.msra.mxu0 %v11306_v9  ;;  %3000 = vmatpush.msra.mxu1 %v15548_v59  ;;  %15576 = vst [vmem:[#allocation90_spill] sm:$0xff] %v11464_v5  ;;  %v11470_v59 = vld [vmem:[%s14061_s3 + $0x3c8] sm:$0xff] }
 0x4db   :  { %3023 = vmatpush.msra.mxu2 %v11313_v51  ;;  %3040 = vmatpush.msra.mxu3 %v15549_v41  ;;  %15577 = vst [vmem:[#allocation53_spill] sm:$0xff] %v11470_v59  ;;  %v15578_v41 = vld [vmem:[#allocation70_spill] sm:$0xff] }
 0x4dc   :  { %2984 = vmatpush.msra.mxu0 %v11320_v48  ;;  %3001 = vmatpush.msra.mxu1 %v15550_v44  ;;  %v11478_v44 = vld [vmem:[%s14061_s3 + $0x380] sm:$0xff] }
 0x4dd   :  { %3024 = vmatpush.msra.mxu2 %v11327_v30  ;;  %3041 = vmatpush.msra.mxu3 %v15551_v4  ;;  %15580 = vst [vmem:[#allocation54_spill] sm:$0xff] %v11478_v44  ;;  %v11484_v4 = vld [vmem:[%s14061_s3 + $0x388] sm:$0xff] }
 0x4de   :  { %2985 = vmatpush.msra.mxu0 %v11334_v26  ;;  %3002 = vmatpush.msra.mxu1 %v15552_v53  ;;  %15581 = vst [vmem:[#allocation93_spill] sm:$0xff] %v11484_v4  ;;  %v15582_v53 = vld [vmem:[#allocation4_spill] sm:$0xff] }
 0x4df   :  { %3025 = vmatpush.msra.mxu2 %v11341_v49  ;;  %3042 = vmatpush.msra.mxu3 %v15553_v45  ;;  %v15583_v45 = vld [vmem:[#allocation23_spill] sm:$0xff] }
 0x4e0   :  { %2986 = vmatpush.msra.mxu0 %v11348_v24  ;;  %3003 = vmatpush.msra.mxu1 %v15554_v56  ;;  %v11494_v56 = vld [vmem:[%s14061_s3 + $0x340] sm:$0xff] }
 0x4e1   :  { %3026 = vmatpush.msra.mxu2 %v11355_v14  ;;  %3043 = vmatpush.msra.mxu3 %v15555_v2  ;;  %15584 = vst [vmem:[#allocation94_spill] sm:$0xff] %v11494_v56  ;;  %v11500_v2 = vld [vmem:[%s14061_s3 + $0x348] sm:$0xff] }
 0x4e2   :  { %2987 = vmatpush.msra.mxu0 %v11362_v7  ;;  %3004 = vmatpush.msra.mxu1 %v15556_v57  ;;  %15585 = vst [vmem:[#allocation57_spill] sm:$0xff] %v11500_v2  ;;  %v11506_v57 = vld [vmem:[%s14061_s3 + $0x7c0] sm:$0xff] }
 0x4e3   :  { %3027 = vmatpush.msra.mxu2 %v11369_v12  ;;  %3044 = vmatpush.msra.mxu3 %v15557_v34  ;;  %15586 = vst [vmem:[#allocation58_spill] sm:$0xff] %v11506_v57  ;;  %v11512_v34 = vld [vmem:[%s14061_s3 + $0x7c8] sm:$0xff] }
 0x4e4   :  { %2988 = vmatpush.msra.mxu0 %v11376_v40  ;;  %3005 = vmatpush.msra.mxu1 %v15558_v16  ;;  %15587 = vst [vmem:[#allocation99_spill] sm:$0xff] %v11512_v34  ;;  %v11518_v16 = vld [vmem:[%s14061_s3 + $0x300] sm:$0xff] }
 0x4e5   :  { %3028 = vmatpush.msra.mxu2 %v11383_v8  ;;  %3045 = vmatpush.msra.mxu3 %v15559_v22  ;;  %15588 = vst [vmem:[#allocation100_spill] sm:$0xff] %v11518_v16  ;;  %v11524_v22 = vld [vmem:[%s14061_s3 + $0x308] sm:$0xff] }
 0x4e6   :  { %2989 = vmatpush.msra.mxu0 %v11390_v42  ;;  %3006 = vmatpush.msra.mxu1 %v15560_v62  ;;  %15589 = vst [vmem:[#allocation63_spill] sm:$0xff] %v11524_v22  ;;  %v11530_v62 = vld [vmem:[%s14061_s3 + $0x780] sm:$0xff] }
 0x4e7   :  { %3029 = vmatpush.msra.mxu2 %v11397_v47  ;;  %3046 = vmatpush.msra.mxu3 %v15561_v28  ;;  %15590 = vst [vmem:[#allocation64_spill] sm:$0xff] %v11530_v62  ;;  %v11536_v28 = vld [vmem:[%s14061_s3 + $0x788] sm:$0xff] }
 0x4e8   :  { %2990 = vmatpush.msra.mxu0 %v11404_v37  ;;  %3007 = vmatpush.msra.mxu1 %v15562_v19  ;;  %15591 = vst [vmem:[#allocation103_spill] sm:$0xff] %v11536_v28  ;;  %v11542_v19 = vld [vmem:[%s14061_s3 + $0x2c0] sm:$0xff] }
 0x4e9   :  { %3030 = vmatpush.msra.mxu2 %v11411_v60  ;;  %3047 = vmatpush.msra.mxu3 %v15563_v6  ;;  %15592 = vst [vmem:[#allocation104_spill] sm:$0xff] %v11542_v19  ;;  %v11548_v6 = vld [vmem:[%s14061_s3 + $0x2c8] sm:$0xff] }
 0x4ea   :  { %2991 = vmatpush.msra.mxu0 %v11418_v10  ;;  %3008 = vmatpush.msra.mxu1 %v15564_v35  ;;  %15593 = vst [vmem:[#allocation67_spill] sm:$0xff] %v11548_v6  ;;  %v11554_v35 = vld [vmem:[%s14061_s3 + $0x740] sm:$0xff] }
 0x4eb   :  { %3031 = vmatpush.msra.mxu2 %v11425_v20  ;;  %3048 = vmatpush.msra.mxu3 %v15565_v33  ;;  %15594 = vst [vmem:[#allocation68_spill] sm:$0xff] %v11554_v35  ;;  %v11560_v33 = vld [vmem:[%s14061_s3 + $0x748] sm:$0xff] }
 0x4ec   :  { %2992 = vmatpush.msra.mxu0 %v11432_v31  ;;  %3009 = vmatpush.msra.mxu1 %v15567_v38  ;;  %15595 = vst [vmem:[#allocation109_spill] sm:$0xff] %v11560_v33  ;;  %v11566_v38 = vld [vmem:[%s14061_s3 + $0x280] sm:$0xff] }
 0x4ed   :  { %3032 = vmatpush.msra.mxu2 %v11439_v63  ;;  %3049 = vmatpush.msra.mxu3 %v15569_v0  ;;  %15596 = vst [vmem:[#allocation110_spill] sm:$0xff] %v11566_v38  ;;  %v11572_v0 = vld [vmem:[%s14061_s3 + $0x288] sm:$0xff] }
 0x4ee   :  { %2993 = vmatpush.msra.mxu0 %v11446_v61  ;;  %3010 = vmatpush.msra.mxu1 %v15571_v32  ;;  %15597 = vst [vmem:[#allocation71_spill] sm:$0xff] %v11572_v0  ;;  %v11578_v32 = vld [vmem:[%s14061_s3 + $0x700] sm:$0xff] }
 0x4ef   :  { %3033 = vmatpush.msra.mxu2 %v11453_v58  ;;  %3050 = vmatpush.msra.mxu3 %v15573_v15  ;;  %15598 = vst [vmem:[#allocation72_spill] sm:$0xff] %v11578_v32  ;;  %v11584_v15 = vld [vmem:[%s14061_s3 + $0x708] sm:$0xff] }
 0x4f0   :  { %2994 = vmatmul.f32.vlgmr.msra.gmra.mxu0 %v11143_v54  ;;  %3034 = vmatmul.f32.vlgmr.msra.gmra.mxu2 %v11143_v54  ;;  %v15579_v54 = vld [vmem:[#allocation10_spill] sm:$0xff]  ;;  %15599 = vst [vmem:[#allocation113_spill] sm:$0xff] %v11584_v15 }
 0x4f1   :  { %3011 = vmatpush.msra.mxu1 %v15574_v43  ;;  %3051 = vmatpush.msra.mxu3 %v15575_v11  ;;  %v11590_v43 = vld [vmem:[%s14061_s3 + $0x240] sm:$0xff]  ;;  %v11596_v11 = vld [vmem:[%s14061_s3 + $0x248] sm:$0xff] }
 0x4f2   :  { %3201 = vmatpush.msrb.mxu0 %v11464_v5  ;;  %3241 = vmatpush.msrb.mxu2 %v11470_v59  ;;  %15600 = vst [vmem:[#allocation114_spill] sm:$0xff] %v11590_v43  ;;  %v15714_v59 = vld [vmem:[#allocation174_spill] sm:$0xff] }
 0x4f3   :  { %3012 = vmatpush.msra.mxu1 %v15578_v41  ;;  %3052 = vmatpush.msra.mxu3 %v15579_v54  ;;  %15601 = vst [vmem:[#allocation77_spill] sm:$0xff] %v11596_v11  ;;  %v11602_v41 = vld [vmem:[%s14061_s3 + $0x6c0] sm:$0xff]  ;;  %v11608_v54 = vld [vmem:[%s14061_s3 + $0x6c8] sm:$0xff] }
 0x4f4   :  { %3202 = vmatpush.msrb.mxu0 %v11478_v44  ;;  %3242 = vmatpush.msrb.mxu2 %v11484_v4  ;;  %15602 = vst [vmem:[#allocation78_spill] sm:$0xff] %v11602_v41 }
 0x4f5   :  { %3013 = vmatpush.msra.mxu1 %v15582_v53  ;;  %3053 = vmatpush.msra.mxu3 %v15583_v45  ;;  %15603 = vst [vmem:[#allocation117_spill] sm:$0xff] %v11608_v54  ;;  %v11614_v53 = vld [vmem:[%s14061_s3 + $0x200] sm:$0xff]  ;;  %v11620_v45 = vld [vmem:[%s14061_s3 + $0x208] sm:$0xff] }
 0x4f6   :  { %3014 = vmatmul.f32.vlgmr.msra.gmra.mxu1 %v11152_v39  ;;  %3054 = vmatmul.f32.vlgmr.msra.gmra.mxu3 %v11152_v39  ;;  %15604 = vst [vmem:[#allocation118_spill] sm:$0xff] %v11614_v53  ;;  %v11626_v39 = vld [vmem:[%s14061_s3 + $0x680] sm:$0xff] }
 0x4f7   :  { %3203 = vmatpush.msrb.mxu0 %v11494_v56  ;;  %3243 = vmatpush.msrb.mxu2 %v11500_v2  ;;  %15605 = vst [vmem:[#allocation119_spill] sm:$0xff] %v11620_v45 }
 0x4f8   :  { %3221 = vmatpush.msrb.mxu1 %v11506_v57  ;;  %3261 = vmatpush.msrb.mxu3 %v11512_v34  ;;  %15606 = vst [vmem:[#allocation120_spill] sm:$0xff] %v11626_v39  ;;  %v15713_v57 = vld [vmem:[#allocation27_spill] sm:$0xff] }
 0x4f9   :  { %3204 = vmatpush.msrb.mxu0 %v11518_v16  ;;  %3244 = vmatpush.msrb.mxu2 %v11524_v22  ;;  %v15711_v22 = vld [vmem:[#allocation6_spill] sm:$0xff] }
 0x4fa   :  { %3222 = vmatpush.msrb.mxu1 %v11530_v62  ;;  %3262 = vmatpush.msrb.mxu3 %v11536_v28 }
 0x4fb   :  { %3205 = vmatpush.msrb.mxu0 %v11542_v19  ;;  %3245 = vmatpush.msrb.mxu2 %v11548_v6  ;;  %v15709_v19 = vld [vmem:[#allocation13_spill] sm:$0xff] }
 0x4fc   :  { %3223 = vmatpush.msrb.mxu1 %v11554_v35  ;;  %3263 = vmatpush.msrb.mxu3 %v11560_v33 }
 0x4fd   :  { %3206 = vmatpush.msrb.mxu0 %v11566_v38  ;;  %3246 = vmatpush.msrb.mxu2 %v11572_v0  ;;  %v15704_v0 = vld [vmem:[#allocation79_spill] sm:$0xff]  ;;  %v15705_v38 = vld [vmem:[#allocation80_spill] sm:$0xff] }
 0x4fe   :  { %3224 = vmatpush.msrb.mxu1 %v11578_v32  ;;  %3264 = vmatpush.msrb.mxu3 %v11584_v15  ;;  %v15700_v15 = vld [vmem:[#allocation75_spill] sm:$0xff]  ;;  %v15703_v32 = vld [vmem:[#allocation44_spill] sm:$0xff] }
 0x4ff   :  { %3207 = vmatpush.msrb.mxu0 %v11590_v43  ;;  %3247 = vmatpush.msrb.mxu2 %v11596_v11  ;;  %v15696_v11 = vld [vmem:[#allocation84_spill] sm:$0xff] }
 0x500   :  { %3225 = vmatpush.msrb.mxu1 %v11602_v41  ;;  %3265 = vmatpush.msrb.mxu3 %v11608_v54  ;;  %v11632_v54 = vld [vmem:[%s14061_s3 + $0x688] sm:$0xff]  ;;  %v15694_v41 = vld [vmem:[#allocation83_spill] sm:$0xff]  ;;  %v15699_v43 = vld [vmem:[#allocation40_spill] sm:$0xff] }
 0x501   :  { %3208 = vmatpush.msrb.mxu0 %v11614_v53  ;;  %3248 = vmatpush.msrb.mxu2 %v11620_v45  ;;  %15607 = vst [vmem:[#allocation81_spill] sm:$0xff] %v11632_v54  ;;  %v11638_v53 = vld [vmem:[%s14061_s3 + $0x1c0] sm:$0xff]  ;;  %v11644_v45 = vld [vmem:[%s14061_s3 + $0x1c8] sm:$0xff] }
 0x502   :  { %3226 = vmatpush.msrb.mxu1 %v11626_v39  ;;  %3266 = vmatpush.msrb.mxu3 %v11632_v54  ;;  %15608 = vst [vmem:[#allocation82_spill] sm:$0xff] %v11638_v53  ;;  %v11650_v39 = vld [vmem:[%s14061_s3 + $0x640] sm:$0xff]  ;;  %v11656_v54 = vld [vmem:[%s14061_s3 + $0x648] sm:$0xff] }
 0x503   :  { %3209 = vmatpush.msrb.mxu0 %v11638_v53  ;;  %15609 = vst [vmem:[#allocation125_spill] sm:$0xff] %v11644_v45  ;;  %3249 = vmatpush.msrb.mxu2 %v11644_v45  ;;  %v11662_v53 = vld [vmem:[%s14061_s3 + $0x180] sm:$0xff]  ;;  %v11668_v45 = vld [vmem:[%s14061_s3 + $0x188] sm:$0xff] }
 0x504   :  { %15610 = vst [vmem:[#allocation126_spill] sm:$0xff] %v11650_v39  ;;  %3227 = vmatpush.msrb.mxu1 %v11650_v39  ;;  %3267 = vmatpush.msrb.mxu3 %v11656_v54  ;;  %v11674_v39 = vld [vmem:[%s14061_s3 + $0x600] sm:$0xff] }
 0x505   :  { %15611 = vst [vmem:[#allocation87_spill] sm:$0xff] %v11656_v54  ;;  %3210 = vmatpush.msrb.mxu0 %v11662_v53  ;;  %3250 = vmatpush.msrb.mxu2 %v11668_v45  ;;  %v11680_v54 = vld [vmem:[%s14061_s3 + $0x608] sm:$0xff] }
 0x506   :  { %15612 = vst [vmem:[#allocation88_spill] sm:$0xff] %v11662_v53  ;;  %3228 = vmatpush.msrb.mxu1 %v11674_v39  ;;  %3268 = vmatpush.msrb.mxu3 %v11680_v54  ;;  %v11686_v53 = vld [vmem:[%s14061_s3 + $0x140] sm:$0xff] }
 0x507   :  { %15613 = vst [vmem:[#allocation129_spill] sm:$0xff] %v11668_v45  ;;  %3211 = vmatpush.msrb.mxu0 %v11686_v53  ;;  %v11692_v45 = vld [vmem:[%s14061_s3 + $0x148] sm:$0xff] }
 0x508   :  { %15614 = vst [vmem:[#allocation130_spill] sm:$0xff] %v11674_v39  ;;  %3251 = vmatpush.msrb.mxu2 %v11692_v45  ;;  %v11698_v39 = vld [vmem:[%s14061_s3 + $0x5c0] sm:$0xff] }
 0x509   :  { %15615 = vst [vmem:[#allocation91_spill] sm:$0xff] %v11680_v54  ;;  %3229 = vmatpush.msrb.mxu1 %v11698_v39  ;;  %v11704_v54 = vld [vmem:[%s14061_s3 + $0x5c8] sm:$0xff] }
 0x50a   :  { %15616 = vst [vmem:[#allocation92_spill] sm:$0xff] %v11686_v53  ;;  %3269 = vmatpush.msrb.mxu3 %v11704_v54  ;;  %v11710_v53 = vld [vmem:[%s14061_s3 + $0x100] sm:$0xff] }
 0x50b   :  { %15617 = vst [vmem:[#allocation135_spill] sm:$0xff] %v11692_v45  ;;  %3212 = vmatpush.msrb.mxu0 %v11710_v53  ;;  %v11716_v45 = vld [vmem:[%s14061_s3 + $0x108] sm:$0xff] }
 0x50c   :  { %15618 = vst [vmem:[#allocation95_spill] sm:$0xff] %v11698_v39  ;;  %3252 = vmatpush.msrb.mxu2 %v11716_v45  ;;  %v11722_v39 = vld [vmem:[%s14061_s3 + $0x580] sm:$0xff] }
 0x50d   :  { %15619 = vst [vmem:[#allocation136_spill] sm:$0xff] %v11704_v54  ;;  %3230 = vmatpush.msrb.mxu1 %v11722_v39  ;;  %v11728_v54 = vld [vmem:[%s14061_s3 + $0x588] sm:$0xff] }
 0x50e   :  { %15620 = vst [vmem:[#allocation96_spill] sm:$0xff] %v11710_v53  ;;  %3270 = vmatpush.msrb.mxu3 %v11728_v54  ;;  %v11734_v53 = vld [vmem:[%s14061_s3 + $0xc0] sm:$0xff] }
 0x50f   :  { %15621 = vst [vmem:[#allocation139_spill] sm:$0xff] %v11716_v45  ;;  %3213 = vmatpush.msrb.mxu0 %v11734_v53  ;;  %v11740_v45 = vld [vmem:[%s14061_s3 + $0xc8] sm:$0xff] }
 0x510   :  { %15622 = vst [vmem:[#allocation101_spill] sm:$0xff] %v11722_v39  ;;  %3253 = vmatpush.msrb.mxu2 %v11740_v45  ;;  %v11746_v39 = vld [vmem:[%s14061_s3 + $0x540] sm:$0xff] }
 0x511   :  { %15623 = vst [vmem:[#allocation140_spill] sm:$0xff] %v11728_v54  ;;  %3231 = vmatpush.msrb.mxu1 %v11746_v39  ;;  %v11752_v54 = vld [vmem:[%s14061_s3 + $0x548] sm:$0xff] }
 0x512   :  { %15624 = vst [vmem:[#allocation102_spill] sm:$0xff] %v11734_v53  ;;  %3271 = vmatpush.msrb.mxu3 %v11752_v54  ;;  %v11758_v53 = vld [vmem:[%s14061_s3 + $0x80] sm:$0xff] }
 0x513   :  { %15625 = vst [vmem:[#allocation143_spill] sm:$0xff] %v11740_v45  ;;  %3214 = vmatpush.msrb.mxu0 %v11758_v53  ;;  %v11764_v45 = vld [vmem:[%s14061_s3 + $0x88] sm:$0xff] }
 0x514   :  { %15626 = vst [vmem:[#allocation105_spill] sm:$0xff] %v11746_v39  ;;  %3254 = vmatpush.msrb.mxu2 %v11764_v45  ;;  %v11770_v39 = vld [vmem:[%s14061_s3 + $0x500] sm:$0xff] }
 0x515   :  { %15627 = vst [vmem:[#allocation144_spill] sm:$0xff] %v11752_v54  ;;  %3232 = vmatpush.msrb.mxu1 %v11770_v39  ;;  %v11776_v54 = vld [vmem:[%s14061_s3 + $0x508] sm:$0xff] }
 0x516   :  { %15628 = vst [vmem:[#allocation106_spill] sm:$0xff] %v11758_v53  ;;  %3272 = vmatpush.msrb.mxu3 %v11776_v54  ;;  %v11782_v53 = vld [vmem:[%s14061_s3 + $0x40] sm:$0xff] }
 0x517   :  { %15629 = vst [vmem:[#allocation149_spill] sm:$0xff] %v11764_v45  ;;  %3215 = vmatpush.msrb.mxu0 %v11782_v53  ;;  %v11788_v45 = vld [vmem:[%s14061_s3 + $0x48] sm:$0xff] }
 0x518   :  { %15630 = vst [vmem:[#allocation111_spill] sm:$0xff] %v11770_v39  ;;  %3255 = vmatpush.msrb.mxu2 %v11788_v45  ;;  %v11794_v39 = vld [vmem:[%s14061_s3 + $0x4c0] sm:$0xff] }
 0x519   :  { %15631 = vst [vmem:[#allocation150_spill] sm:$0xff] %v11776_v54  ;;  %3233 = vmatpush.msrb.mxu1 %v11794_v39  ;;  %v11800_v54 = vld [vmem:[%s14061_s3 + $0x4c8] sm:$0xff] }
 0x51a   :  { %15632 = vst [vmem:[#allocation112_spill] sm:$0xff] %v11782_v53  ;;  %3273 = vmatpush.msrb.mxu3 %v11800_v54  ;;  %v11806_v53 = vld [vmem:[%s14061_s3] sm:$0xff] }
 0x51b   :  { %15633 = vst [vmem:[#allocation152_spill] sm:$0xff] %v11788_v45  ;;  %3216 = vmatpush.msrb.mxu0 %v11806_v53  ;;  %v11812_v45 = vld [vmem:[%s14061_s3 + $0x8] sm:$0xff] }
 0x51c   :  { %15634 = vst [vmem:[#allocation115_spill] sm:$0xff] %v11794_v39  ;;  %3256 = vmatpush.msrb.mxu2 %v11812_v45  ;;  %v11818_v39 = vld [vmem:[%s14061_s3 + $0x3d0] sm:$0xff] }
 0x51d   :  { %15635 = vst [vmem:[#allocation153_spill] sm:$0xff] %v11800_v54  ;;  %3281 = vmatpush.msra.mxu0 %v11818_v39  ;;  %v11824_v54 = vld [vmem:[%s14061_s3 + $0x3d8] sm:$0xff] }
 0x51e   :  { %15636 = vst [vmem:[#allocation116_spill] sm:$0xff] %v11806_v53  ;;  %3321 = vmatpush.msra.mxu2 %v11824_v54  ;;  %v11830_v53 = vld [vmem:[%s14061_s3 + $0x480] sm:$0xff] }
 0x51f   :  { %15637 = vst [vmem:[#allocation156_spill] sm:$0xff] %v11812_v45  ;;  %3234 = vmatpush.msrb.mxu1 %v11830_v53  ;;  %v11836_v45 = vld [vmem:[%s14061_s3 + $0x488] sm:$0xff] }
 0x520   :  { %15638 = vst [vmem:[#allocation123_spill] sm:$0xff] %v11818_v39  ;;  %3274 = vmatpush.msrb.mxu3 %v11836_v45  ;;  %v11842_v39 = vld [vmem:[%s14061_s3 + $0x390] sm:$0xff] }
 0x521   :  { %15639 = vst [vmem:[#allocation157_spill] sm:$0xff] %v11824_v54  ;;  %3282 = vmatpush.msra.mxu0 %v11842_v39  ;;  %v11848_v54 = vld [vmem:[%s14061_s3 + $0x398] sm:$0xff] }
 0x522   :  { %15640 = vst [vmem:[#allocation124_spill] sm:$0xff] %v11830_v53  ;;  %3322 = vmatpush.msra.mxu2 %v11848_v54  ;;  %v11854_v53 = vld [vmem:[%s14061_s3 + $0x440] sm:$0xff] }
 0x523   :  { %15641 = vst [vmem:[#allocation158_spill] sm:$0xff] %v11836_v45  ;;  %3235 = vmatpush.msrb.mxu1 %v11854_v53  ;;  %v11860_v45 = vld [vmem:[%s14061_s3 + $0x448] sm:$0xff] }
 0x524   :  { %15642 = vst [vmem:[#allocation127_spill] sm:$0xff] %v11842_v39  ;;  %3275 = vmatpush.msrb.mxu3 %v11860_v45  ;;  %v11866_v39 = vld [vmem:[%s14061_s3 + $0x350] sm:$0xff] }
 0x525   :  { %15643 = vst [vmem:[#allocation159_spill] sm:$0xff] %v11848_v54  ;;  %3283 = vmatpush.msra.mxu0 %v11866_v39  ;;  %v11872_v54 = vld [vmem:[%s14061_s3 + $0x358] sm:$0xff] }
 0x526   :  { %15644 = vst [vmem:[#allocation128_spill] sm:$0xff] %v11854_v53  ;;  %3323 = vmatpush.msra.mxu2 %v11872_v54  ;;  %v11878_v53 = vld [vmem:[%s14061_s3 + $0x400] sm:$0xff] }
 0x527   :  { %15645 = vst [vmem:[#allocation160_spill] sm:$0xff] %v11860_v45  ;;  %3236 = vmatpush.msrb.mxu1 %v11878_v53  ;;  %v11884_v45 = vld [vmem:[%s14061_s3 + $0x408] sm:$0xff] }
 0x528   :  { %15646 = vst [vmem:[#allocation133_spill] sm:$0xff] %v11866_v39  ;;  %3276 = vmatpush.msrb.mxu3 %v11884_v45  ;;  %v11890_v39 = vld [vmem:[%s14061_s3 + $0x310] sm:$0xff] }
 0x529   :  { %15647 = vst [vmem:[#allocation161_spill] sm:$0xff] %v11872_v54  ;;  %3284 = vmatpush.msra.mxu0 %v11890_v39  ;;  %v11896_v54 = vld [vmem:[%s14061_s3 + $0x7d0] sm:$0xff] }
 0x52a   :  { %15648 = vst [vmem:[#allocation134_spill] sm:$0xff] %v11878_v53  ;;  %3301 = vmatpush.msra.mxu1 %v11896_v54  ;;  %v11902_v53 = vld [vmem:[%s14061_s3 + $0x318] sm:$0xff] }
 0x52b   :  { %15649 = vst [vmem:[#allocation164_spill] sm:$0xff] %v11884_v45  ;;  %3324 = vmatpush.msra.mxu2 %v11902_v53  ;;  %v11908_v45 = vld [vmem:[%s14061_s3 + $0x7d8] sm:$0xff] }
 0x52c   :  { %15650 = vst [vmem:[#allocation137_spill] sm:$0xff] %v11890_v39  ;;  %3341 = vmatpush.msra.mxu3 %v11908_v45  ;;  %v11914_v39 = vld [vmem:[%s14061_s3 + $0x2d0] sm:$0xff] }
 0x52d   :  { %15651 = vst [vmem:[#allocation165_spill] sm:$0xff] %v11896_v54  ;;  %3285 = vmatpush.msra.mxu0 %v11914_v39  ;;  %v11920_v54 = vld [vmem:[%s14061_s3 + $0x790] sm:$0xff] }
 0x52e   :  { %15652 = vst [vmem:[#allocation138_spill] sm:$0xff] %v11902_v53  ;;  %3302 = vmatpush.msra.mxu1 %v11920_v54  ;;  %v11926_v53 = vld [vmem:[%s14061_s3 + $0x2d8] sm:$0xff] }
 0x52f   :  { %15653 = vst [vmem:[#allocation166_spill] sm:$0xff] %v11908_v45  ;;  %3325 = vmatpush.msra.mxu2 %v11926_v53  ;;  %v11932_v45 = vld [vmem:[%s14061_s3 + $0x798] sm:$0xff] }
 0x530   :  { %15654 = vst [vmem:[#allocation141_spill] sm:$0xff] %v11914_v39  ;;  %3342 = vmatpush.msra.mxu3 %v11932_v45  ;;  %v11938_v39 = vld [vmem:[%s14061_s3 + $0x290] sm:$0xff] }
 0x531   :  { %15655 = vst [vmem:[#allocation167_spill] sm:$0xff] %v11920_v54  ;;  %3286 = vmatpush.msra.mxu0 %v11938_v39  ;;  %v11944_v54 = vld [vmem:[%s14061_s3 + $0x750] sm:$0xff] }
 0x532   :  { %15656 = vst [vmem:[#allocation142_spill] sm:$0xff] %v11926_v53  ;;  %3303 = vmatpush.msra.mxu1 %v11944_v54  ;;  %v11950_v53 = vld [vmem:[%s14061_s3 + $0x298] sm:$0xff] }
 0x533   :  { %15657 = vst [vmem:[#allocation170_spill] sm:$0xff] %v11932_v45  ;;  %3326 = vmatpush.msra.mxu2 %v11950_v53  ;;  %v11956_v45 = vld [vmem:[%s14061_s3 + $0x758] sm:$0xff] }
 0x534   :  { %15658 = vst [vmem:[#allocation147_spill] sm:$0xff] %v11938_v39  ;;  %3343 = vmatpush.msra.mxu3 %v11956_v45  ;;  %v11962_v39 = vld [vmem:[%s14061_s3 + $0x250] sm:$0xff]  ;;  %v2815_v33 = vpop.f32.mrf.mxu3 }
 0x535   :  { %15659 = vst [vmem:[#allocation148_spill] sm:$0xff] %v11944_v54  ;;  %3287 = vmatpush.msra.mxu0 %v11962_v39  ;;  %v11968_v54 = vld [vmem:[%s14061_s3 + $0x710] sm:$0xff] }
 0x536   :  { %15660 = vst [vmem:[#allocation151_spill] sm:$0xff] %v11950_v53  ;;  %3304 = vmatpush.msra.mxu1 %v11968_v54  ;;  %v11974_v53 = vld [vmem:[%s14061_s3 + $0x258] sm:$0xff] }
 0x537   :  { %15661 = vst [vmem:[#allocation7_spill] sm:$0xff] %v11956_v45  ;;  %3327 = vmatpush.msra.mxu2 %v11974_v53  ;;  %v11980_v45 = vld [vmem:[%s14061_s3 + $0x718] sm:$0xff] }
 0x538   :  { %15662 = vst [vmem:[#allocation15_spill] sm:$0xff] %v11962_v39  ;;  %3344 = vmatpush.msra.mxu3 %v11980_v45  ;;  %v11986_v39 = vld [vmem:[%s14061_s3 + $0x210] sm:$0xff] }
 0x539   :  { %15663 = vst [vmem:[#allocation21_spill] sm:$0xff] %v11968_v54  ;;  %3288 = vmatpush.msra.mxu0 %v11986_v39  ;;  %v11992_v54 = vld [vmem:[%s14061_s3 + $0x6d0] sm:$0xff] }
 0x53a   :  { %15664 = vst [vmem:[#allocation20_spill] sm:$0xff] %v11974_v53  ;;  %3305 = vmatpush.msra.mxu1 %v11992_v54  ;;  %v11998_v53 = vld [vmem:[%s14061_s3 + $0x218] sm:$0xff] }
 0x53b   :  { %15665 = vst [vmem:[#allocation59_spill] sm:$0xff] %v11980_v45  ;;  %3328 = vmatpush.msra.mxu2 %v11998_v53  ;;  %v12004_v45 = vld [vmem:[%s14061_s3 + $0x6d8] sm:$0xff] }
 0x53c   :  { %15666 = vst [vmem:[#allocation60_spill] sm:$0xff] %v11986_v39  ;;  %3345 = vmatpush.msra.mxu3 %v12004_v45  ;;  %v12010_v39 = vld [vmem:[%s14061_s3 + $0x1d0] sm:$0xff] }
 0x53d   :  { %15667 = vst [vmem:[#allocation73_spill] sm:$0xff] %v11992_v54  ;;  %3289 = vmatpush.msra.mxu0 %v12010_v39  ;;  %v12016_v54 = vld [vmem:[%s14061_s3 + $0x690] sm:$0xff] }
 0x53e   :  { %15668 = vst [vmem:[#allocation74_spill] sm:$0xff] %v11998_v53  ;;  %3306 = vmatpush.msra.mxu1 %v12016_v54  ;;  %v12022_v53 = vld [vmem:[%s14061_s3 + $0x1d8] sm:$0xff] }
 0x53f   :  { %15669 = vst [vmem:[#allocation178_spill] sm:$0xff] %v12004_v45  ;;  %3329 = vmatpush.msra.mxu2 %v12022_v53  ;;  %v12028_v45 = vld [vmem:[%s14061_s3 + $0x698] sm:$0xff] }
 0x540   :  { %15670 = vst [vmem:[#allocation179_spill] sm:$0xff] %v12010_v39  ;;  %3346 = vmatpush.msra.mxu3 %v12028_v45  ;;  %v12034_v39 = vld [vmem:[%s14061_s3 + $0x190] sm:$0xff] }
 0x541   :  { %15671 = vst [vmem:[#allocation180_spill] sm:$0xff] %v12016_v54  ;;  %3290 = vmatpush.msra.mxu0 %v12034_v39  ;;  %v12040_v54 = vld [vmem:[%s14061_s3 + $0x650] sm:$0xff] }
 0x542   :  { %15672 = vst [vmem:[#allocation181_spill] sm:$0xff] %v12022_v53  ;;  %3307 = vmatpush.msra.mxu1 %v12040_v54  ;;  %v12046_v53 = vld [vmem:[%s14061_s3 + $0x198] sm:$0xff] }
 0x543   :  { %15673 = vst [vmem:[#allocation182_spill] sm:$0xff] %v12028_v45  ;;  %3330 = vmatpush.msra.mxu2 %v12046_v53  ;;  %v12052_v45 = vld [vmem:[%s14061_s3 + $0x658] sm:$0xff] }
 0x544   :  { %15674 = vst [vmem:[#allocation183_spill] sm:$0xff] %v12034_v39  ;;  %3347 = vmatpush.msra.mxu3 %v12052_v45  ;;  %v12058_v39 = vld [vmem:[%s14061_s3 + $0x150] sm:$0xff] }
 0x545   :  { %15675 = vst [vmem:[#allocation184_spill] sm:$0xff] %v12040_v54  ;;  %3291 = vmatpush.msra.mxu0 %v12058_v39  ;;  %v12064_v54 = vld [vmem:[%s14061_s3 + $0x610] sm:$0xff] }
 0x546   :  { %15676 = vst [vmem:[#allocation185_spill] sm:$0xff] %v12046_v53  ;;  %3308 = vmatpush.msra.mxu1 %v12064_v54  ;;  %v12070_v53 = vld [vmem:[%s14061_s3 + $0x158] sm:$0xff] }
 0x547   :  { %15677 = vst [vmem:[#allocation186_spill] sm:$0xff] %v12052_v45  ;;  %3331 = vmatpush.msra.mxu2 %v12070_v53  ;;  %v12076_v45 = vld [vmem:[%s14061_s3 + $0x618] sm:$0xff] }
 0x548   :  { %15678 = vst [vmem:[#allocation187_spill] sm:$0xff] %v12058_v39  ;;  %3348 = vmatpush.msra.mxu3 %v12076_v45  ;;  %v12082_v39 = vld [vmem:[%s14061_s3 + $0x110] sm:$0xff] }
 0x549   :  { %15679 = vst [vmem:[#allocation188_spill] sm:$0xff] %v12064_v54  ;;  %3292 = vmatpush.msra.mxu0 %v12082_v39  ;;  %v12088_v54 = vld [vmem:[%s14061_s3 + $0x5d0] sm:$0xff] }
 0x54a   :  { %15680 = vst [vmem:[#allocation189_spill] sm:$0xff] %v12070_v53  ;;  %3309 = vmatpush.msra.mxu1 %v12088_v54  ;;  %v12094_v53 = vld [vmem:[%s14061_s3 + $0x118] sm:$0xff] }
 0x54b   :  { %15681 = vst [vmem:[#allocation190_spill] sm:$0xff] %v12076_v45  ;;  %3332 = vmatpush.msra.mxu2 %v12094_v53  ;;  %v12100_v45 = vld [vmem:[%s14061_s3 + $0x5d8] sm:$0xff] }
 0x54c   :  { %15682 = vst [vmem:[#allocation191_spill] sm:$0xff] %v12082_v39  ;;  %3349 = vmatpush.msra.mxu3 %v12100_v45  ;;  %v12106_v39 = vld [vmem:[%s14061_s3 + $0xd0] sm:$0xff] }
 0x54d   :  { %15683 = vst [vmem:[#allocation192_spill] sm:$0xff] %v12088_v54  ;;  %3293 = vmatpush.msra.mxu0 %v12106_v39  ;;  %v12112_v54 = vld [vmem:[%s14061_s3 + $0x590] sm:$0xff] }
 0x54e   :  { %15684 = vst [vmem:[#allocation12_spill] sm:$0xff] %v12094_v53  ;;  %3310 = vmatpush.msra.mxu1 %v12112_v54  ;;  %v12118_v53 = vld [vmem:[%s14061_s3 + $0xd8] sm:$0xff] }
 0x54f   :  { %15685 = vst [vmem:[#allocation5_spill] sm:$0xff] %v12100_v45  ;;  %3333 = vmatpush.msra.mxu2 %v12118_v53  ;;  %v12124_v45 = vld [vmem:[%s14061_s3 + $0x598] sm:$0xff] }
 0x550   :  { %15686 = vst [vmem:[#allocation25_spill] sm:$0xff] %v12106_v39  ;;  %3350 = vmatpush.msra.mxu3 %v12124_v45  ;;  %v12130_v39 = vld [vmem:[%s14061_s3 + $0x90] sm:$0xff] }
 0x551   :  { %15687 = vst [vmem:[#allocation24_spill] sm:$0xff] %v12112_v54  ;;  %3294 = vmatpush.msra.mxu0 %v12130_v39  ;;  %v12136_v54 = vld [vmem:[%s14061_s3 + $0x550] sm:$0xff] }
 0x552   :  { %15688 = vst [vmem:[#allocation107_spill] sm:$0xff] %v12118_v53  ;;  %3311 = vmatpush.msra.mxu1 %v12136_v54  ;;  %v15692_v53 = vld [vmem:[#allocation22_spill] sm:$0xff] }
 0x553   :  { %15689 = vst [vmem:[#allocation108_spill] sm:$0xff] %v12124_v45  ;;  %3334 = vmatpush.msra.mxu2 %v15692_v53  ;;  %v12143_v45 = vld [vmem:[%s14061_s3 + $0x558] sm:$0xff]  ;;  %3295 = vmatpush.msra.mxu0 %v15694_v41  ;;  %v15698_v53 = vld [vmem:[#allocation98_spill] sm:$0xff] }
 0x554   :  { %15690 = vst [vmem:[#allocation121_spill] sm:$0xff] %v12130_v39  ;;  %3351 = vmatpush.msra.mxu3 %v12143_v45  ;;  %v12150_v39 = vld [vmem:[%s14061_s3 + $0x510] sm:$0xff]  ;;  %v15702_v41 = vld [vmem:[#allocation43_spill] sm:$0xff] }
 0x555   :  { %15691 = vst [vmem:[#allocation122_spill] sm:$0xff] %v12136_v54  ;;  %3312 = vmatpush.msra.mxu1 %v12150_v39  ;;  %3335 = vmatpush.msra.mxu2 %v15696_v11  ;;  %v15697_v54 = vld [vmem:[#allocation97_spill] sm:$0xff]  ;;  %v15707_v11 = vld [vmem:[#allocation46_spill] sm:$0xff] }
 0x556   :  { %15693 = vst [vmem:[#allocation194_spill] sm:$0xff] %v12143_v45  ;;  %3352 = vmatpush.msra.mxu3 %v15697_v54  ;;  %3296 = vmatpush.msra.mxu0 %v15698_v53  ;;  %v15701_v45 = vld [vmem:[#allocation76_spill] sm:$0xff]  ;;  %v2775_v54 = vpop.f32.mrf.mxu1  ;;  %v2755_v53 = vpop.f32.mrf.mxu0 }
 0x557   :  { %15695 = vst [vmem:[#allocation195_spill] sm:$0xff] %v12150_v39  ;;  %3313 = vmatpush.msra.mxu1 %v15699_v43  ;;  %3336 = vmatpush.msra.mxu2 %v15700_v15  ;;  %v15706_v39 = vld [vmem:[#allocation45_spill] sm:$0xff]  ;;  %v2795_v43 = vpop.f32.mrf.mxu2  ;;  %v2776_v28 = vadd.f32 %v2775_v54, %v2755_v53 }
 0x558   :  { %3353 = vmatpush.msra.mxu3 %v15701_v45  ;;  %v15708_v45 = vld [vmem:[#allocation8_spill] sm:$0xff]  ;;  %v2816_v4 = vadd.f32 %v2815_v33, %v2795_v43 }
 0x559   :  { %3314 = vmatpush.msra.mxu1 %v15702_v41  ;;  %v534_v41 = vadd.f32 %v15709_v19, %v15708_v45 }
 0x55a   :  { %3354 = vmatpush.msra.mxu3 %v15703_v32  ;;  %v2895_v32 = vpop.f32.mrf.mxu3 }
 0x55b   :  { %3315 = vmatpush.msra.mxu1 %v15704_v0  ;;  %v15710_v0 = vld [vmem:[#allocation9_spill] sm:$0xff] }
 0x55c   :  { %3355 = vmatpush.msra.mxu3 %v15705_v38  ;;  %v452_v38 = vadd.f32 %v15711_v22, %v15710_v0  ;;  %v15716_v22 = vld [vmem:[#allocation11_spill] sm:$0xff] }
 0x55d   :  { %3316 = vmatpush.msra.mxu1 %v15706_v39 }
 0x55e   :  { %3356 = vmatpush.msra.mxu3 %v15707_v11  ;;  %v2855_v35 = vpop.f32.mrf.mxu1  ;;  %v2835_v15 = vpop.f32.mrf.mxu0  ;;  %v3058_v34 = vadd.f32 %v2776_v28, %v452_v38  ;;  %v15712_v11 = vld [vmem:[#allocation173_spill] sm:$0xff] }
 0x55f   :  { %v2856_v6 = vadd.f32 %v2855_v35, %v2835_v15  ;;  %v2875_v16 = vpop.f32.mrf.mxu2  ;;  %v575_v2 = vadd.f32 %v15713_v57, %v15712_v11  ;;  %v15715_v35 = vld [vmem:[#allocation26_spill] sm:$0xff] }
 0x560   :  { %v2896_v39 = vadd.f32 %v2895_v32, %v2875_v16  ;;  %v493_v15 = vadd.f32 %v15715_v35, %v15714_v59  ;;  %v4527_v5 = vmul.f32 -1.442695, %v3058_v34  ;;  %v15717_v16 = vld [vmem:[#allocation131_spill] sm:$0xff] }
 0x561   :  { %v3060_v62 = vadd.f32 %v2856_v6, %v534_v41  ;;  %v616_v28 = vadd.f32 %v15717_v16, %v15716_v22  ;;  %v15721_v22 = vld [vmem:[#allocation145_spill] sm:$0xff] }
 0x562   :  { %v3061_v44 = vadd.f32 %v2896_v39, %v575_v2  ;;  %v3059_v54 = vadd.f32 %v2816_v4, %v493_v15  ;;  %v15719_v4 = vld [vmem:[#allocation132_spill] sm:$0xff] }
 0x563   :  { %v4529_v56 = vmul.f32 -1.442695, %v3060_v62  ;;  %v2975_v62 = vpop.f32.mrf.mxu3 }
 0x564   :  { %v4530_v53 = vmul.f32 -1.442695, %v3061_v44  ;;  %v4528_v32 = vmul.f32 -1.442695, %v3059_v54 }
 0x565   :  { %4710 = vpow2.f32 %v4529_v56  ;;  %v15718_v56 = vld [vmem:[#allocation175_spill] sm:$0xff] }
 0x566   :  { %v2935_v19 = vpop.f32.mrf.mxu1  ;;  %v2915_v6 = vpop.f32.mrf.mxu0  ;;  %4712 = vpow2.f32 %v4527_v5  ;;  %v657_v39 = vadd.f32 %v15719_v4, %v15718_v56 }
 0x567   :  { %v2936_v41 = vadd.f32 %v2935_v19, %v2915_v6  ;;  %4714 = vpow2.f32 %v4530_v53  ;;  %v2955_v2 = vpop.f32.mrf.mxu2 }
 0x568   :  { %v2976_v33 = vadd.f32 %v2975_v62, %v2955_v2  ;;  %4716 = vpow2.f32 %v4528_v32 }
 0x569   :  { %v3062_v57 = vadd.f32 %v2936_v41, %v616_v28 }
 0x56a   :  { %v3063_v15 = vadd.f32 %v2976_v33, %v657_v39 }
 0x56b   :  { %v4711_v38 = vpop.eup %4710  ;;  %v4531_v44 = vmul.f32 -1.442695, %v3062_v57 }
 0x56c   :  { %v4713_v43 = vpop.eup %4712  ;;  %v12175_v34 = vadd.f32 1.0, %v4711_v38  ;;  %v4532_v6 = vmul.f32 -1.442695, %v3063_v15 }
 0x56d   :  { %v4715_v35 = vpop.eup %4714  ;;  %v3084_v5 = vadd.f32 1.0, %v4713_v43 }
 0x56e   :  { %4718 = vrcp.f32 %v12175_v34  ;;  %v4717_v19 = vpop.eup %4716  ;;  %v12180_v54 = vadd.f32 1.0, %v4715_v35  ;;  %v3131_v58 = vand.u32 2147483648, %v12175_v34  ;;  %vm3125_vm0 = vweird.f32 %v12175_v34 }
 0x56f   :  { %4720 = vpow2.f32 %v4531_v44  ;;  %v12182_v53 = vadd.f32 1.0, %v4717_v19  ;;  %v3101_v45 = vand.u32 2147483648, %v3084_v5  ;;  %vm3095_vm2 = vweird.f32 %v3084_v5 }
 0x570   :  { %4722 = vrcp.f32 %v3084_v5  ;;  %vm3140_vm8 = vweird.f32 %v12180_v54 }
 0x571   :  { %4724 = vrcp.f32 %v12180_v54  ;;  %vm3110_vm5 = vweird.f32 %v12182_v53 }
 0x572   :  { %4726 = vpow2.f32 %v4532_v6 }
 0x573   :  { %4728 = vrcp.f32 %v12182_v53 }
 0x574   :  { %v12184_v41 = vpop.eup %4718 }
 0x575   :  { %v4721_v16 = vpop.eup %4720  ;;  %v3121_v32 = vmul.f32 %v12184_v41, %v12175_v34  ;;  %vm3126_vm14 = vweird.f32 %v12184_v41 }
 0x576   :  { %v12187_v28 = vpop.eup %4722  ;;  %v12192_v38 = vadd.f32 1.0, %v4721_v16  ;;  %v2995_v16 = vpop.f32.mrf.mxu0  ;;  %vm12225_vm1 = vmor %vm3125_vm0, %vm3126_vm14 }
 0x577   :  { %v12194_v57 = vpop.eup %4724  ;;  %v3091_v62 = vmul.f32 %v12187_v28, %v3084_v5  ;;  %v3122_v33 = vsub.f32 1.0, %v3121_v32  ;;  %v3015_v32 = vpop.f32.mrf.mxu1  ;;  %vm3096_vm15 = vweird.f32 %v12187_v28 }
 0x578   :  { %v4727_v2 = vpop.eup %4726  ;;  %4730 = vrcp.f32 %v12192_v38  ;;  %v3136_v39 = vmul.f32 %v12194_v57, %v12180_v54  ;;  %v3016_v11 = vadd.f32 %v3015_v32, %v2995_v16  ;;  %v15722_v16 = vld [vmem:[#allocation176_spill] sm:$0xff]  ;;  %v15723_v32 = vld [vmem:[#allocation146_spill] sm:$0xff]  ;;  %vm12241_vm4 = vmor %vm3095_vm2, %vm3096_vm15  ;;  %vm3141_vm6 = vweird.f32 %v12194_v57 }
 0x579   :  { %v12198_v43 = vpop.eup %4728  ;;  %v3092_v4 = vsub.f32 1.0, %v3091_v62  ;;  %v12202_v44 = vadd.f32 1.0, %v4727_v2  ;;  %v3123_v15 = vmul.f32 %v12184_v41, %v3122_v33  ;;  %v15720_v62 = vld [vmem:[#allocation19_spill] sm:$0xff]  ;;  %v3099_v2 = vand.u32 2147483647, %v3084_v5  ;;  %v3055_v63 = vpop.f32.mrf.mxu3  ;;  %vm12258_vm10 = vmor %vm3140_vm8, %vm3141_vm6 }
 0x57a   :  { %v3106_v35 = vmul.f32 %v12198_v43, %v12182_v53  ;;  %v3137_v6 = vsub.f32 1.0, %v3136_v39  ;;  %v698_v59 = vadd.f32 %v15721_v22, %v15720_v62  ;;  %v739_v62 = vadd.f32 %v15723_v32, %v15722_v16 }
 0x57b   :  { %4732 = vrcp.f32 %v12202_v44  ;;  %v3093_v56 = vmul.f32 %v12187_v28, %v3092_v4  ;;  %v3124_v33 = vadd.f32 %v12184_v41, %v3123_v15  ;;  %vm12231_vm3 = vcmp.eq.f32.partialorder %v3099_v2, 8.507059e+37 }
 0x57c   :  { %v3107_v0 = vsub.f32 1.0, %v3106_v35  ;;  %v3064_v61 = vadd.f32 %v3016_v11, %v698_v59  ;;  %v3138_v22 = vmul.f32 %v12194_v57, %v3137_v6  ;;  %v3129_v35 = vand.u32 2147483647, %v12175_v34 }
 0x57d   :  { %v3094_v4 = vadd.f32 %v12187_v28, %v3093_v56  ;;  %v3102_v6 = vor.u32 1.1754944e-38, %v3101_v45  ;;  %v3128_v34 = vsel %vm12225_vm1, %v12184_v41, %v3124_v33  ;;  %v3035_v56 = vpop.f32.mrf.mxu2  ;;  %v3132_v16 = vor.u32 1.1754944e-38, %v3131_v58 }
 0x57e   :  { %v12207_v19 = vpop.eup %4730  ;;  %4734 = vtanh.f32 %v3064_v61  ;;  %v3108_v32 = vmul.f32 %v12198_v43, %v3107_v0  ;;  %v3056_v5 = vadd.f32 %v3055_v63, %v3035_v56  ;;  %vm3130_vm7 = vcmp.eq.f32.partialorder %v3129_v35, 8.507059e+37 }
 0x57f   :  { %v3151_v39 = vmul.f32 %v12207_v19, %v12192_v38  ;;  %v3098_v45 = vsel %vm12241_vm4, %v12187_v28, %v3094_v4  ;;  %v3139_v0 = vadd.f32 %v12194_v57, %v3138_v22  ;;  %v3146_v58 = vand.u32 2147483648, %v12180_v54 }
 0x580   :  { %v3133_v2 = vsel %vm3130_vm7, %v3132_v16, %v3128_v34  ;;  %v3065_v33 = vadd.f32 %v3056_v5, %v739_v62  ;;  %v3109_v63 = vadd.f32 %v12198_v43, %v3108_v32  ;;  %vm3111_vm9 = vweird.f32 %v12198_v43 }
 0x581   :  { %v12229_v59 = vpop.eup %4732  ;;  %v3152_v31 = vsub.f32 1.0, %v3151_v39  ;;  %v3144_v39 = vand.u32 2147483647, %v12180_v54  ;;  %v3103_v4 = vsel %vm12231_vm3, %v3102_v6, %v3098_v45  ;;  %v3116_v62 = vand.u32 2147483648, %v12182_v53  ;;  %vm12273_vm11 = vmor %vm3110_vm5, %vm3111_vm9 }
 0x582   :  { %v3166_v41 = vmul.f32 %v12229_v59, %v12202_v44  ;;  %4736 = vtanh.f32 %v3065_v33  ;;  %v3182_v35 = vmul.f32 %v3133_v2, %v11121_v50  ;;  %v3114_v34 = vand.u32 2147483647, %v12182_v53 }
 0x583   :  { %v3153_v22 = vmul.f32 %v12207_v19, %v3152_v31  ;;  %v3143_v54 = vsel %vm12258_vm10, %v12194_v57, %v3139_v0  ;;  %v3147_v56 = vor.u32 1.1754944e-38, %v3146_v58  ;;  %v3113_v50 = vsel %vm12273_vm11, %v12198_v43, %v3109_v63  ;;  %v12347_v31 = vld [vmem:[%s14061_s3 + $0x320] sm:$0xff] }
 0x584   :  { %v4735_v15 = vpop.eup %4734  ;;  %v3167_v32 = vsub.f32 1.0, %v3166_v41  ;;  %vm3145_vm12 = vcmp.eq.f32.partialorder %v3144_v39, 8.507059e+37  ;;  %vm3156_vm13 = vweird.f32 %v12207_v19  ;;  %v3117_v57 = vor.u32 1.1754944e-38, %v3116_v62  ;;  %v12307_v62 = vld [vmem:[%s14061_s3 + $0x3e0] sm:$0xff] }
 0x585   :  { %v3184_v16 = vmul.f32 %v4735_v15, %v3103_v4  ;;  %v3154_v6 = vadd.f32 %v12207_v19, %v3153_v22  ;;  %v3148_v61 = vsel %vm3145_vm12, %v3147_v56, %v3143_v54  ;;  %v3161_v5 = vand.u32 2147483648, %v12192_v38  ;;  %v12333_v56 = vld [vmem:[%s14061_s3 + $0x360] sm:$0xff] }
 0x586   :  { %vm3115_vm14 = vcmp.eq.f32.partialorder %v3114_v34, 8.507059e+37  ;;  %vm3155_vm15 = vweird.f32 %v12192_v38  ;;  %v3159_v45 = vand.u32 2147483647, %v12192_v38  ;;  %v3168_v0 = vmul.f32 %v12229_v59, %v3167_v32  ;;  %v12325_v34 = vld [vmem:[%s14061_s3 + $0x3a8] sm:$0xff] }
 0x587   :  { %v12277_v11 = vadd.f32 %v3184_v16, %v3182_v35  ;;  %v3118_v43 = vsel %vm3115_vm14, %v3117_v57, %v3113_v50  ;;  %vm3157_vm0 = vmor %vm3155_vm15, %vm3156_vm13  ;;  %v3183_v58 = vmul.f32 %v3148_v61, %v11135_v13  ;;  %v3162_v33 = vor.u32 1.1754944e-38, %v3161_v5  ;;  %v12319_v16 = vld [vmem:[%s14061_s3 + $0x3a0] sm:$0xff]  ;;  %v12339_v32 = vld [vmem:[%s14061_s3 + $0x368] sm:$0xff] }
 0x588   :  { %v4737_v53 = vpop.eup %4736  ;;  %v3158_v2 = vsel %vm3157_vm0, %v12207_v19, %v3154_v6  ;;  %vm3160_vm1 = vcmp.eq.f32.partialorder %v3159_v45, 8.507059e+37  ;;  %v3169_v39 = vadd.f32 %v12229_v59, %v3168_v0  ;;  %vm3171_vm2 = vweird.f32 %v12229_v59  ;;  %v12353_v50 = vld [vmem:[%s14061_s3 + $0x7e0] sm:$0xff]  ;;  %v12359_v6 = vld [vmem:[%s14061_s3 + $0x328] sm:$0xff] }
 0x589   :  { %4738 = vtanh.f32 %v12277_v11  ;;  %v3185_v41 = vmul.f32 %v4737_v53, %v3118_v43  ;;  %v3163_v28 = vsel %vm3160_vm1, %v3162_v33, %v3158_v2  ;;  %v3176_v38 = vand.u32 2147483648, %v12202_v44  ;;  %v12365_v57 = vld [vmem:[%s14061_s3 + $0x7e8] sm:$0xff]  ;;  %v12373_v61 = vld [vmem:[%s14061_s3 + $0x2e0] sm:$0xff] }
 0x58a   :  { %vm3170_vm3 = vweird.f32 %v12202_v44  ;;  %v3174_v13 = vand.u32 2147483647, %v12202_v44  ;;  %v12313_v44 = vld [vmem:[%s14061_s3 + $0x3e8] sm:$0xff]  ;;  %v12379_v5 = vld [vmem:[%s14061_s3 + $0x7a0] sm:$0xff] }
 0x58b   :  { %v12291_v63 = vadd.f32 %v3185_v41, %v3183_v58  ;;  %vm3172_vm4 = vmor %vm3170_vm3, %vm3171_vm2  ;;  %v3177_v4 = vor.u32 1.1754944e-38, %v3176_v38  ;;  %v12385_v53 = vld [vmem:[%s14061_s3 + $0x2e8] sm:$0xff]  ;;  %v12397_v0 = vld [vmem:[%s14061_s3 + $0x2a0] sm:$0xff] }
 0x58c   :  { %v3173_v19 = vsel %vm3172_vm4, %v12229_v59, %v3169_v39  ;;  %vm3175_vm5 = vcmp.eq.f32.partialorder %v3174_v13, 8.507059e+37  ;;  %v12391_v45 = vld [vmem:[%s14061_s3 + $0x7a8] sm:$0xff]  ;;  %v12403_v43 = vld [vmem:[%s14061_s3 + $0x760] sm:$0xff] }
 0x58d   :  { %4740 = vtanh.f32 %v12291_v63  ;;  %v3178_v35 = vsel %vm3175_vm5, %v3177_v4, %v3173_v19  ;;  %v12409_v58 = vld [vmem:[%s14061_s3 + $0x2a8] sm:$0xff]  ;;  %v12421_v2 = vld [vmem:[%s14061_s3 + $0x260] sm:$0xff] }
 0x58e   :  { %v12415_v41 = vld [vmem:[%s14061_s3 + $0x768] sm:$0xff]  ;;  %v12427_v33 = vld [vmem:[%s14061_s3 + $0x720] sm:$0xff] }
 0x58f   :  { %v4739_v15 = vpop.eup %4738  ;;  %v12433_v39 = vld [vmem:[%s14061_s3 + $0x268] sm:$0xff]  ;;  %v12453_v38 = vld [vmem:[%s14061_s3 + $0x6e0] sm:$0xff] }
 0x590   :  { %v12299_v22 = vmul.f32 %v4739_v15, %v3163_v28  ;;  %v12439_v15 = vld [vmem:[%s14061_s3 + $0x728] sm:$0xff]  ;;  %v12447_v28 = vld [vmem:[%s14061_s3 + $0x220] sm:$0xff] }
 0x591   :  { %v12459_v13 = vld [vmem:[%s14061_s3 + $0x228] sm:$0xff]  ;;  %v12471_v4 = vld [vmem:[%s14061_s3 + $0x1e0] sm:$0xff] }
 0x592   :  { %3217 = vmatmul.f32.vlgmr.msrb.gmra.mxu0 %v12299_v22  ;;  %3257 = vmatmul.f32.vlgmr.msrb.gmra.mxu2 %v12299_v22  ;;  %v12465_v19 = vld [vmem:[%s14061_s3 + $0x6e8] sm:$0xff]  ;;  %15736 = vst [vmem:[#allocation198_spill] sm:$0xff] %v12471_v4 }
 0x593   :  { %3361 = vmatpush.msrb.mxu0 %v12307_v62  ;;  %3401 = vmatpush.msrb.mxu2 %v12313_v44  ;;  %v4741_v59 = vpop.eup %4740  ;;  %15735 = vst [vmem:[#allocation197_spill] sm:$0xff] %v12465_v19 }
 0x594   :  { %v12328_v54 = vmul.f32 %v4741_v59, %v3178_v35  ;;  %v12477_v59 = vld [vmem:[%s14061_s3 + $0x6a0] sm:$0xff]  ;;  %v12483_v35 = vld [vmem:[%s14061_s3 + $0x1e8] sm:$0xff] }
 0x595   :  { %3362 = vmatpush.msrb.mxu0 %v12319_v16  ;;  %3402 = vmatpush.msrb.mxu2 %v12325_v34  ;;  %15737 = vst [vmem:[#allocation199_spill] sm:$0xff] %v12477_v59 }
 0x596   :  { %15734 = vst [vmem:[#allocation196_spill] sm:$0xff] %v12328_v54  ;;  %3237 = vmatmul.f32.vlgmr.msrb.gmra.mxu1 %v12328_v54  ;;  %3277 = vmatmul.f32.vlgmr.msrb.gmra.mxu3 %v12328_v54 }
 0x597   :  { %3363 = vmatpush.msrb.mxu0 %v12333_v56  ;;  %3403 = vmatpush.msrb.mxu2 %v12339_v32  ;;  %15738 = vst [vmem:[#allocation200_spill] sm:$0xff] %v12483_v35 }
 0x598   :  { %3381 = vmatpush.msrb.mxu1 %v12353_v50  ;;  %3421 = vmatpush.msrb.mxu3 %v12365_v57 }
 0x599   :  { %3364 = vmatpush.msrb.mxu0 %v12347_v31  ;;  %3404 = vmatpush.msrb.mxu2 %v12359_v6 }
 0x59a   :  { %3297 = vmatmul.f32.vlgmr.msra.gmra.mxu0 %v12299_v22  ;;  %3337 = vmatmul.f32.vlgmr.msra.gmra.mxu2 %v12299_v22 }
 0x59b   :  { %3365 = vmatpush.msrb.mxu0 %v12373_v61  ;;  %3382 = vmatpush.msrb.mxu1 %v12379_v5 }
 0x59c   :  { %3405 = vmatpush.msrb.mxu2 %v12385_v53  ;;  %3422 = vmatpush.msrb.mxu3 %v12391_v45 }
 0x59d   :  { %3366 = vmatpush.msrb.mxu0 %v12397_v0  ;;  %3383 = vmatpush.msrb.mxu1 %v12403_v43 }
 0x59e   :  { %3406 = vmatpush.msrb.mxu2 %v12409_v58  ;;  %3423 = vmatpush.msrb.mxu3 %v12415_v41 }
 0x59f   :  { %3367 = vmatpush.msrb.mxu0 %v12421_v2  ;;  %3384 = vmatpush.msrb.mxu1 %v12427_v33 }
 0x5a0   :  { %3407 = vmatpush.msrb.mxu2 %v12433_v39  ;;  %3424 = vmatpush.msrb.mxu3 %v12439_v15 }
 0x5a1   :  { %3317 = vmatmul.f32.vlgmr.msra.gmra.mxu1 %v12328_v54  ;;  %3357 = vmatmul.f32.vlgmr.msra.gmra.mxu3 %v12328_v54 }
 0x5a2   :  { %3368 = vmatpush.msrb.mxu0 %v12447_v28  ;;  %3385 = vmatpush.msrb.mxu1 %v12453_v38 }
 0x5a3   :  { %3408 = vmatpush.msrb.mxu2 %v12459_v13  ;;  %3425 = vmatpush.msrb.mxu3 %v12465_v19  ;;  %v12489_v19 = vld [vmem:[%s14061_s3 + $0x6a8] sm:$0xff] }
 0x5a4   :  { %3369 = vmatpush.msrb.mxu0 %v12471_v4  ;;  %3386 = vmatpush.msrb.mxu1 %v12477_v59  ;;  %15739 = vst [vmem:[#allocation201_spill] sm:$0xff] %v12489_v19  ;;  %v12495_v4 = vld [vmem:[%s14061_s3 + $0x1a0] sm:$0xff] }
 0x5a5   :  { %3409 = vmatpush.msrb.mxu2 %v12483_v35  ;;  %3426 = vmatpush.msrb.mxu3 %v12489_v19  ;;  %15740 = vst [vmem:[#allocation202_spill] sm:$0xff] %v12495_v4  ;;  %v12501_v59 = vld [vmem:[%s14061_s3 + $0x660] sm:$0xff]  ;;  %v12507_v35 = vld [vmem:[%s14061_s3 + $0x1a8] sm:$0xff] }
 0x5a6   :  { %3370 = vmatpush.msrb.mxu0 %v12495_v4  ;;  %15741 = vst [vmem:[#allocation203_spill] sm:$0xff] %v12501_v59  ;;  %3387 = vmatpush.msrb.mxu1 %v12501_v59  ;;  %v12513_v19 = vld [vmem:[%s14061_s3 + $0x668] sm:$0xff]  ;;  %v12519_v4 = vld [vmem:[%s14061_s3 + $0x160] sm:$0xff] }
 0x5a7   :  { %15742 = vst [vmem:[#allocation204_spill] sm:$0xff] %v12507_v35  ;;  %3410 = vmatpush.msrb.mxu2 %v12507_v35  ;;  %3427 = vmatpush.msrb.mxu3 %v12513_v19  ;;  %v12525_v59 = vld [vmem:[%s14061_s3 + $0x620] sm:$0xff]  ;;  %v12531_v35 = vld [vmem:[%s14061_s3 + $0x168] sm:$0xff] }
 0x5a8   :  { %15743 = vst [vmem:[#allocation205_spill] sm:$0xff] %v12513_v19  ;;  %3371 = vmatpush.msrb.mxu0 %v12519_v4  ;;  %3388 = vmatpush.msrb.mxu1 %v12525_v59  ;;  %v12537_v19 = vld [vmem:[%s14061_s3 + $0x628] sm:$0xff] }
 0x5a9   :  { %15744 = vst [vmem:[#allocation206_spill] sm:$0xff] %v12519_v4  ;;  %3411 = vmatpush.msrb.mxu2 %v12531_v35  ;;  %3428 = vmatpush.msrb.mxu3 %v12537_v19  ;;  %v12543_v4 = vld [vmem:[%s14061_s3 + $0x120] sm:$0xff] }
 0x5aa   :  { %15745 = vst [vmem:[#allocation207_spill] sm:$0xff] %v12525_v59  ;;  %3372 = vmatpush.msrb.mxu0 %v12543_v4  ;;  %v12549_v59 = vld [vmem:[%s14061_s3 + $0x5e0] sm:$0xff] }
 0x5ab   :  { %15746 = vst [vmem:[#allocation208_spill] sm:$0xff] %v12531_v35  ;;  %3389 = vmatpush.msrb.mxu1 %v12549_v59  ;;  %v12555_v35 = vld [vmem:[%s14061_s3 + $0x128] sm:$0xff] }
 0x5ac   :  { %15747 = vst [vmem:[#allocation209_spill] sm:$0xff] %v12537_v19  ;;  %3412 = vmatpush.msrb.mxu2 %v12555_v35  ;;  %v12561_v19 = vld [vmem:[%s14061_s3 + $0x5e8] sm:$0xff] }
 0x5ad   :  { %15748 = vst [vmem:[#allocation210_spill] sm:$0xff] %v12543_v4  ;;  %3429 = vmatpush.msrb.mxu3 %v12561_v19  ;;  %v12567_v4 = vld [vmem:[%s14061_s3 + $0xe0] sm:$0xff] }
 0x5ae   :  { %15749 = vst [vmem:[#allocation211_spill] sm:$0xff] %v12549_v59  ;;  %3373 = vmatpush.msrb.mxu0 %v12567_v4  ;;  %v12573_v59 = vld [vmem:[%s14061_s3 + $0x5a0] sm:$0xff] }
 0x5af   :  { %15750 = vst [vmem:[#allocation212_spill] sm:$0xff] %v12555_v35  ;;  %3390 = vmatpush.msrb.mxu1 %v12573_v59  ;;  %v12579_v35 = vld [vmem:[%s14061_s3 + $0xe8] sm:$0xff] }
 0x5b0   :  { %15751 = vst [vmem:[#allocation213_spill] sm:$0xff] %v12561_v19  ;;  %3413 = vmatpush.msrb.mxu2 %v12579_v35  ;;  %v12585_v19 = vld [vmem:[%s14061_s3 + $0x5a8] sm:$0xff] }
 0x5b1   :  { %15752 = vst [vmem:[#allocation214_spill] sm:$0xff] %v12567_v4  ;;  %3430 = vmatpush.msrb.mxu3 %v12585_v19  ;;  %v12591_v4 = vld [vmem:[%s14061_s3 + $0xa0] sm:$0xff] }
 0x5b2   :  { %15753 = vst [vmem:[#allocation215_spill] sm:$0xff] %v12573_v59  ;;  %3374 = vmatpush.msrb.mxu0 %v12591_v4  ;;  %v12597_v59 = vld [vmem:[%s14061_s3 + $0x560] sm:$0xff] }
 0x5b3   :  { %15754 = vst [vmem:[#allocation216_spill] sm:$0xff] %v12579_v35  ;;  %3391 = vmatpush.msrb.mxu1 %v12597_v59  ;;  %v12603_v35 = vld [vmem:[%s14061_s3 + $0xa8] sm:$0xff] }
 0x5b4   :  { %15755 = vst [vmem:[#allocation217_spill] sm:$0xff] %v12585_v19  ;;  %3414 = vmatpush.msrb.mxu2 %v12603_v35  ;;  %v12609_v19 = vld [vmem:[%s14061_s3 + $0x568] sm:$0xff]  ;;  %3375 = vmatpush.msrb.mxu0 %v11209_v29  ;;  %v12635_v29 = vld [vmem:[%s14061_s3 + $0x4e0] sm:$0xff] }
 0x5b5   :  { %15756 = vst [vmem:[#allocation218_spill] sm:$0xff] %v12597_v59  ;;  %3431 = vmatpush.msrb.mxu3 %v12609_v19  ;;  %v12616_v59 = vld [vmem:[%s14061_s3 + $0x520] sm:$0xff] }
 0x5b6   :  { %15757 = vst [vmem:[#allocation219_spill] sm:$0xff] %v12603_v35  ;;  %3392 = vmatpush.msrb.mxu1 %v12616_v59  ;;  %v12622_v35 = vld [vmem:[%s14061_s3 + $0x68] sm:$0xff]  ;;  %3376 = vmatpush.msrb.mxu0 %v11218_v17  ;;  %v12652_v17 = vld [vmem:[%s14061_s3 + $0x4a0] sm:$0xff] }
 0x5b7   :  { %15758 = vst [vmem:[#allocation220_spill] sm:$0xff] %v12609_v19  ;;  %3415 = vmatpush.msrb.mxu2 %v12622_v35  ;;  %v12628_v19 = vld [vmem:[%s14061_s3 + $0x528] sm:$0xff]  ;;  %3377 = vmatmul.f32.vlgmr.msrb.gmra.mxu0 %v12299_v22 }
 0x5b8   :  { %15759 = vst [vmem:[#allocation221_spill] sm:$0xff] %v12622_v35  ;;  %3432 = vmatpush.msrb.mxu3 %v12628_v19  ;;  %3393 = vmatpush.msrb.mxu1 %v12635_v29  ;;  %v12642_v35 = vld [vmem:[%s14061_s3 + $0x4e8] sm:$0xff] }
 0x5b9   :  { %3416 = vmatpush.msrb.mxu2 %v11225_v52  ;;  %3441 = vmatpush.msra.mxu0 %v11234_v18  ;;  %v12658_v52 = vld [vmem:[%s14061_s3 + $0x4a8] sm:$0xff]  ;;  %v12666_v18 = vld [vmem:[%s14061_s3 + $0x460] sm:$0xff] }
 0x5ba   :  { %3433 = vmatpush.msrb.mxu3 %v12642_v35  ;;  %3417 = vmatmul.f32.vlgmr.msrb.gmra.mxu2 %v12299_v22  ;;  %15760 = vst [vmem:[#allocation222_spill] sm:$0xff] %v12658_v52 }
 0x5bb   :  { %3481 = vmatpush.msra.mxu2 %v11240_v3  ;;  %3394 = vmatpush.msrb.mxu1 %v12652_v17  ;;  %15761 = vst [vmem:[#allocation223_spill] sm:$0xff] %v12666_v18  ;;  %v12672_v3 = vld [vmem:[%s14061_s3 + $0x468] sm:$0xff] }
 0x5bc   :  { %3434 = vmatpush.msrb.mxu3 %v12658_v52  ;;  %3442 = vmatpush.msra.mxu0 %v11248_v36  ;;  %15762 = vst [vmem:[#allocation224_spill] sm:$0xff] %v12672_v3  ;;  %v12680_v36 = vld [vmem:[%s14061_s3 + $0x420] sm:$0xff] }
 0x5bd   :  { %3482 = vmatpush.msra.mxu2 %v11254_v1  ;;  %3395 = vmatpush.msrb.mxu1 %v12666_v18  ;;  %15763 = vst [vmem:[#allocation225_spill] sm:$0xff] %v12680_v36  ;;  %v12686_v1 = vld [vmem:[%s14061_s3 + $0x428] sm:$0xff] }
 0x5be   :  { %3435 = vmatpush.msrb.mxu3 %v12672_v3  ;;  %3443 = vmatpush.msra.mxu0 %v11262_v27  ;;  %15764 = vst [vmem:[#allocation226_spill] sm:$0xff] %v12686_v1  ;;  %v12695_v27 = vld [vmem:[%s14061_s3 + $0x7f0] sm:$0xff] }
 0x5bf   :  { %3483 = vmatpush.msra.mxu2 %v11268_v21  ;;  %3396 = vmatpush.msrb.mxu1 %v12680_v36  ;;  %15765 = vst [vmem:[#allocation227_spill] sm:$0xff] %v12695_v27  ;;  %v12702_v21 = vld [vmem:[%s14061_s3 + $0x7f8] sm:$0xff] }
 0x5c0   :  { %3436 = vmatpush.msrb.mxu3 %v12686_v1  ;;  %3397 = vmatmul.f32.vlgmr.msrb.gmra.mxu1 %v12328_v54  ;;  %15766 = vst [vmem:[#allocation228_spill] sm:$0xff] %v12702_v21 }
 0x5c1   :  { %3437 = vmatmul.f32.vlgmr.msrb.gmra.mxu3 %v12328_v54  ;;  %3444 = vmatpush.msra.mxu0 %v11278_v46  ;;  %v12709_v46 = vld [vmem:[%s14061_s3 + $0x7b0] sm:$0xff] }
 0x5c2   :  { %3461 = vmatpush.msra.mxu1 %v12695_v27  ;;  %3484 = vmatpush.msra.mxu2 %v11285_v55  ;;  %15767 = vst [vmem:[#allocation229_spill] sm:$0xff] %v12709_v46  ;;  %v12716_v55 = vld [vmem:[%s14061_s3 + $0x7b8] sm:$0xff]  ;;  %v15929_v27 = vld [vmem:[#allocation174_spill] sm:$0xff] }
 0x5c3   :  { %3501 = vmatpush.msra.mxu3 %v12702_v21  ;;  %3445 = vmatpush.msra.mxu0 %v11292_v25  ;;  %15768 = vst [vmem:[#allocation38_spill] sm:$0xff] %v12716_v55  ;;  %v12723_v25 = vld [vmem:[%s14061_s3 + $0x770] sm:$0xff] }
 0x5c4   :  { %3462 = vmatpush.msra.mxu1 %v12709_v46  ;;  %3485 = vmatpush.msra.mxu2 %v11299_v23  ;;  %15769 = vst [vmem:[#allocation41_spill] sm:$0xff] %v12723_v25  ;;  %v12730_v23 = vld [vmem:[%s14061_s3 + $0x778] sm:$0xff] }
 0x5c5   :  { %3502 = vmatpush.msra.mxu3 %v12716_v55  ;;  %3446 = vmatpush.msra.mxu0 %v11306_v9  ;;  %15770 = vst [vmem:[#allocation42_spill] sm:$0xff] %v12730_v23  ;;  %v12737_v9 = vld [vmem:[%s14061_s3 + $0x730] sm:$0xff] }
 0x5c6   :  { %3463 = vmatpush.msra.mxu1 %v12723_v25  ;;  %3486 = vmatpush.msra.mxu2 %v11313_v51  ;;  %15771 = vst [vmem:[#allocation230_spill] sm:$0xff] %v12737_v9  ;;  %v12744_v51 = vld [vmem:[%s14061_s3 + $0x738] sm:$0xff] }
 0x5c7   :  { %3503 = vmatpush.msra.mxu3 %v12730_v23  ;;  %3447 = vmatpush.msra.mxu0 %v11320_v48  ;;  %15772 = vst [vmem:[#allocation231_spill] sm:$0xff] %v12744_v51  ;;  %v12751_v48 = vld [vmem:[%s14061_s3 + $0x6f0] sm:$0xff]  ;;  %v15928_v23 = vld [vmem:[#allocation29_spill] sm:$0xff] }
 0x5c8   :  { %3464 = vmatpush.msra.mxu1 %v12737_v9  ;;  %3487 = vmatpush.msra.mxu2 %v11327_v30  ;;  %15773 = vst [vmem:[#allocation47_spill] sm:$0xff] %v12751_v48  ;;  %v12758_v30 = vld [vmem:[%s14061_s3 + $0x6f8] sm:$0xff] }
 0x5c9   :  { %3504 = vmatpush.msra.mxu3 %v12744_v51  ;;  %3448 = vmatpush.msra.mxu0 %v11334_v26  ;;  %15774 = vst [vmem:[#allocation48_spill] sm:$0xff] %v12758_v30  ;;  %v12765_v26 = vld [vmem:[%s14061_s3 + $0x6b0] sm:$0xff] }
 0x5ca   :  { %3465 = vmatpush.msra.mxu1 %v12751_v48  ;;  %3488 = vmatpush.msra.mxu2 %v11341_v49  ;;  %15775 = vst [vmem:[#allocation51_spill] sm:$0xff] %v12765_v26  ;;  %v12772_v49 = vld [vmem:[%s14061_s3 + $0x6b8] sm:$0xff] }
 0x5cb   :  { %3505 = vmatpush.msra.mxu3 %v12758_v30  ;;  %3449 = vmatpush.msra.mxu0 %v11348_v24  ;;  %15776 = vst [vmem:[#allocation52_spill] sm:$0xff] %v12772_v49  ;;  %v12779_v24 = vld [vmem:[%s14061_s3 + $0x670] sm:$0xff] }
 0x5cc   :  { %3466 = vmatpush.msra.mxu1 %v12765_v26  ;;  %3489 = vmatpush.msra.mxu2 %v11355_v14  ;;  %15777 = vst [vmem:[#allocation55_spill] sm:$0xff] %v12779_v24  ;;  %v12786_v14 = vld [vmem:[%s14061_s3 + $0x678] sm:$0xff]  ;;  %v15926_v26 = vld [vmem:[#allocation14_spill] sm:$0xff] }
 0x5cd   :  { %3506 = vmatpush.msra.mxu3 %v12772_v49  ;;  %3450 = vmatpush.msra.mxu0 %v11362_v7  ;;  %15778 = vst [vmem:[#allocation56_spill] sm:$0xff] %v12786_v14  ;;  %v12793_v7 = vld [vmem:[%s14061_s3 + $0x630] sm:$0xff]  ;;  %v15925_v49 = vld [vmem:[#allocation9_spill] sm:$0xff] }
 0x5ce   :  { %3467 = vmatpush.msra.mxu1 %v12779_v24  ;;  %3490 = vmatpush.msra.mxu2 %v11369_v12  ;;  %15779 = vst [vmem:[#allocation32_spill] sm:$0xff] %v12793_v7  ;;  %v12800_v12 = vld [vmem:[%s14061_s3 + $0x638] sm:$0xff]  ;;  %v455_v30 = vadd.f32 %v15926_v26, %v15925_v49 }
 0x5cf   :  { %3507 = vmatpush.msra.mxu3 %v12786_v14  ;;  %3451 = vmatpush.msra.mxu0 %v11376_v40  ;;  %15780 = vst [vmem:[#allocation33_spill] sm:$0xff] %v12800_v12  ;;  %v12807_v40 = vld [vmem:[%s14061_s3 + $0x5f0] sm:$0xff]  ;;  %v15931_v26 = vld [vmem:[#allocation11_spill] sm:$0xff] }
 0x5d0   :  { %3468 = vmatpush.msra.mxu1 %v12793_v7  ;;  %3491 = vmatpush.msra.mxu2 %v11383_v8  ;;  %15781 = vst [vmem:[#allocation61_spill] sm:$0xff] %v12807_v40  ;;  %v12814_v8 = vld [vmem:[%s14061_s3 + $0x5f8] sm:$0xff] }
 0x5d1   :  { %3508 = vmatpush.msra.mxu3 %v12800_v12  ;;  %3452 = vmatpush.msra.mxu0 %v11390_v42  ;;  %15782 = vst [vmem:[#allocation62_spill] sm:$0xff] %v12814_v8  ;;  %v12821_v42 = vld [vmem:[%s14061_s3 + $0x5b0] sm:$0xff]  ;;  %v15814_v12 = vld [vmem:[#allocation67_spill] sm:$0xff] }
 0x5d2   :  { %3469 = vmatpush.msra.mxu1 %v12807_v40  ;;  %3492 = vmatpush.msra.mxu2 %v11397_v47  ;;  %15783 = vst [vmem:[#allocation34_spill] sm:$0xff] %v12821_v42  ;;  %v12828_v47 = vld [vmem:[%s14061_s3 + $0x5b8] sm:$0xff] }
 0x5d3   :  { %3509 = vmatpush.msra.mxu3 %v12814_v8  ;;  %3453 = vmatpush.msra.mxu0 %v11404_v37  ;;  %15784 = vst [vmem:[#allocation35_spill] sm:$0xff] %v12828_v47  ;;  %v12835_v37 = vld [vmem:[%s14061_s3 + $0x570] sm:$0xff]  ;;  %v15811_v8 = vld [vmem:[#allocation64_spill] sm:$0xff]  ;;  %v15812_v40 = vld [vmem:[#allocation103_spill] sm:$0xff] }
 0x5d4   :  { %3470 = vmatpush.msra.mxu1 %v12821_v42  ;;  %3493 = vmatpush.msra.mxu2 %v11411_v60  ;;  %15785 = vst [vmem:[#allocation65_spill] sm:$0xff] %v12835_v37  ;;  %v12842_v60 = vld [vmem:[%s14061_s3 + $0x578] sm:$0xff]  ;;  %v15787_v42 = vld [vmem:[#allocation86_spill] sm:$0xff] }
 0x5d5   :  { %3510 = vmatpush.msra.mxu3 %v12828_v47  ;;  %3454 = vmatpush.msra.mxu0 %v11418_v10  ;;  %15786 = vst [vmem:[#allocation66_spill] sm:$0xff] %v12842_v60  ;;  %v12849_v10 = vld [vmem:[%s14061_s3 + $0x530] sm:$0xff]  ;;  %v15789_v47 = vld [vmem:[#allocation49_spill] sm:$0xff] }
 0x5d6   :  { %3471 = vmatpush.msra.mxu1 %v12835_v37  ;;  %3494 = vmatpush.msra.mxu2 %v11425_v20  ;;  %15788 = vst [vmem:[#allocation36_spill] sm:$0xff] %v12849_v10  ;;  %v12856_v20 = vld [vmem:[%s14061_s3 + $0x538] sm:$0xff]  ;;  %v15791_v37 = vld [vmem:[#allocation50_spill] sm:$0xff] }
 0x5d7   :  { %3511 = vmatpush.msra.mxu3 %v12842_v60  ;;  %3455 = vmatpush.msra.mxu0 %v15787_v42  ;;  %15790 = vst [vmem:[#allocation37_spill] sm:$0xff] %v12856_v20  ;;  %v12863_v42 = vld [vmem:[%s14061_s3 + $0x4f0] sm:$0xff]  ;;  %v15793_v60 = vld [vmem:[#allocation89_spill] sm:$0xff] }
 0x5d8   :  { %3472 = vmatpush.msra.mxu1 %v12849_v10  ;;  %3495 = vmatpush.msra.mxu2 %v15789_v47  ;;  %15792 = vst [vmem:[#allocation69_spill] sm:$0xff] %v12863_v42  ;;  %v12870_v47 = vld [vmem:[%s14061_s3 + $0x4f8] sm:$0xff] }
 0x5d9   :  { %3512 = vmatpush.msra.mxu3 %v12856_v20  ;;  %3456 = vmatpush.msra.mxu0 %v15791_v37  ;;  %15794 = vst [vmem:[#allocation70_spill] sm:$0xff] %v12870_v47  ;;  %v12878_v37 = vld [vmem:[%s14061_s3 + $0x4b0] sm:$0xff]  ;;  %v15810_v10 = vld [vmem:[#allocation63_spill] sm:$0xff] }
 0x5da   :  { %3473 = vmatpush.msra.mxu1 %v12863_v42  ;;  %3496 = vmatpush.msra.mxu2 %v15793_v60  ;;  %15795 = vst [vmem:[#allocation10_spill] sm:$0xff] %v12878_v37  ;;  %v12884_v60 = vld [vmem:[%s14061_s3 + $0x4b8] sm:$0xff]  ;;  %v15797_v42 = vld [vmem:[#allocation90_spill] sm:$0xff] }
 0x5db   :  { %3513 = vmatpush.msra.mxu3 %v12870_v47  ;;  %3457 = vmatmul.f32.vlgmr.msra.gmra.mxu0 %v12299_v22  ;;  %15796 = vst [vmem:[#allocation4_spill] sm:$0xff] %v12884_v60  ;;  %v15798_v47 = vld [vmem:[#allocation53_spill] sm:$0xff]  ;;  %v15801_v20 = vld [vmem:[#allocation54_spill] sm:$0xff] }
 0x5dc   :  { %3497 = vmatmul.f32.vlgmr.msra.gmra.mxu2 %v12299_v22  ;;  %3474 = vmatpush.msra.mxu1 %v12878_v37  ;;  %v12892_v22 = vld [vmem:[%s14061_s3 + $0x470] sm:$0xff]  ;;  %v12898_v37 = vld [vmem:[%s14061_s3 + $0x478] sm:$0xff] }
 0x5dd   :  { %3514 = vmatpush.msra.mxu3 %v12884_v60  ;;  %3664 = vmatpush.msrb.mxu0 %v15797_v42  ;;  %15799 = vst [vmem:[#allocation23_spill] sm:$0xff] %v12892_v22  ;;  %v15802_v60 = vld [vmem:[#allocation93_spill] sm:$0xff]  ;;  %v12906_v42 = vld [vmem:[%s14061_s3 + $0x430] sm:$0xff] }
 0x5de   :  { %3704 = vmatpush.msrb.mxu2 %v15798_v47  ;;  %3475 = vmatpush.msra.mxu1 %v12892_v22  ;;  %15800 = vst [vmem:[#allocation22_spill] sm:$0xff] %v12898_v37  ;;  %v12912_v47 = vld [vmem:[%s14061_s3 + $0x438] sm:$0xff] }
 0x5df   :  { %3515 = vmatpush.msra.mxu3 %v12898_v37  ;;  %3665 = vmatpush.msrb.mxu0 %v15801_v20  ;;  %15803 = vst [vmem:[#allocation83_spill] sm:$0xff] %v12906_v42  ;;  %v15805_v20 = vld [vmem:[#allocation94_spill] sm:$0xff]  ;;  %v15808_v22 = vld [vmem:[#allocation99_spill] sm:$0xff] }
 0x5e0   :  { %3705 = vmatpush.msrb.mxu2 %v15802_v60  ;;  %3476 = vmatpush.msra.mxu1 %v12906_v42  ;;  %15804 = vst [vmem:[#allocation84_spill] sm:$0xff] %v12912_v47  ;;  %v15806_v60 = vld [vmem:[#allocation57_spill] sm:$0xff]  ;;  %v15807_v37 = vld [vmem:[#allocation58_spill] sm:$0xff]  ;;  %v15809_v42 = vld [vmem:[#allocation100_spill] sm:$0xff] }
 0x5e1   :  { %3516 = vmatpush.msra.mxu3 %v12912_v47  ;;  %3477 = vmatmul.f32.vlgmr.msra.gmra.mxu1 %v12328_v54  ;;  %v15813_v47 = vld [vmem:[#allocation104_spill] sm:$0xff] }
 0x5e2   :  { %3517 = vmatmul.f32.vlgmr.msra.gmra.mxu3 %v12328_v54  ;;  %3666 = vmatpush.msrb.mxu0 %v15805_v20  ;;  %v15815_v54 = vld [vmem:[#allocation68_spill] sm:$0xff]  ;;  %v15816_v20 = vld [vmem:[#allocation109_spill] sm:$0xff] }
 0x5e3   :  { %3706 = vmatpush.msrb.mxu2 %v15806_v60  ;;  %3684 = vmatpush.msrb.mxu1 %v15807_v37  ;;  %v15817_v60 = vld [vmem:[#allocation110_spill] sm:$0xff]  ;;  %v15818_v37 = vld [vmem:[#allocation71_spill] sm:$0xff] }
 0x5e4   :  { %3724 = vmatpush.msrb.mxu3 %v15808_v22  ;;  %3667 = vmatpush.msrb.mxu0 %v15809_v42  ;;  %v15819_v22 = vld [vmem:[#allocation72_spill] sm:$0xff]  ;;  %v15820_v42 = vld [vmem:[#allocation113_spill] sm:$0xff] }
 0x5e5   :  { %3707 = vmatpush.msrb.mxu2 %v15810_v10  ;;  %3685 = vmatpush.msrb.mxu1 %v15811_v8  ;;  %v15821_v10 = vld [vmem:[#allocation114_spill] sm:$0xff]  ;;  %v15822_v8 = vld [vmem:[#allocation77_spill] sm:$0xff] }
 0x5e6   :  { %3725 = vmatpush.msrb.mxu3 %v15812_v40  ;;  %3668 = vmatpush.msrb.mxu0 %v15813_v47  ;;  %v15823_v40 = vld [vmem:[#allocation78_spill] sm:$0xff]  ;;  %v15824_v47 = vld [vmem:[#allocation117_spill] sm:$0xff] }
 0x5e7   :  { %3708 = vmatpush.msrb.mxu2 %v15814_v12  ;;  %3686 = vmatpush.msrb.mxu1 %v15815_v54  ;;  %v15825_v12 = vld [vmem:[#allocation118_spill] sm:$0xff]  ;;  %v15826_v54 = vld [vmem:[#allocation119_spill] sm:$0xff] }
 0x5e8   :  { %3726 = vmatpush.msrb.mxu3 %v15816_v20  ;;  %3669 = vmatpush.msrb.mxu0 %v15817_v60  ;;  %v15827_v20 = vld [vmem:[#allocation120_spill] sm:$0xff]  ;;  %v15828_v60 = vld [vmem:[#allocation81_spill] sm:$0xff] }
 0x5e9   :  { %3709 = vmatpush.msrb.mxu2 %v15818_v37  ;;  %3687 = vmatpush.msrb.mxu1 %v15819_v22  ;;  %v15829_v37 = vld [vmem:[#allocation82_spill] sm:$0xff]  ;;  %v15830_v22 = vld [vmem:[#allocation125_spill] sm:$0xff] }
 0x5ea   :  { %3727 = vmatpush.msrb.mxu3 %v15820_v42  ;;  %3670 = vmatpush.msrb.mxu0 %v15821_v10  ;;  %v15831_v42 = vld [vmem:[#allocation126_spill] sm:$0xff]  ;;  %v15832_v10 = vld [vmem:[#allocation87_spill] sm:$0xff] }
 0x5eb   :  { %3710 = vmatpush.msrb.mxu2 %v15822_v8  ;;  %3688 = vmatpush.msrb.mxu1 %v15823_v40  ;;  %v15833_v8 = vld [vmem:[#allocation88_spill] sm:$0xff]  ;;  %v15834_v40 = vld [vmem:[#allocation129_spill] sm:$0xff] }
 0x5ec   :  { %3728 = vmatpush.msrb.mxu3 %v15824_v47  ;;  %3671 = vmatpush.msrb.mxu0 %v15825_v12  ;;  %v15835_v47 = vld [vmem:[#allocation130_spill] sm:$0xff]  ;;  %v15836_v12 = vld [vmem:[#allocation91_spill] sm:$0xff] }
 0x5ed   :  { %3711 = vmatpush.msrb.mxu2 %v15826_v54  ;;  %3689 = vmatpush.msrb.mxu1 %v15827_v20  ;;  %v15837_v54 = vld [vmem:[#allocation92_spill] sm:$0xff]  ;;  %v15838_v20 = vld [vmem:[#allocation135_spill] sm:$0xff] }
 0x5ee   :  { %3729 = vmatpush.msrb.mxu3 %v15828_v60  ;;  %3672 = vmatpush.msrb.mxu0 %v15829_v37  ;;  %v15839_v60 = vld [vmem:[#allocation95_spill] sm:$0xff]  ;;  %v15840_v37 = vld [vmem:[#allocation136_spill] sm:$0xff] }
 0x5ef   :  { %3712 = vmatpush.msrb.mxu2 %v15830_v22  ;;  %3690 = vmatpush.msrb.mxu1 %v15831_v42  ;;  %v15841_v22 = vld [vmem:[#allocation96_spill] sm:$0xff]  ;;  %v15842_v42 = vld [vmem:[#allocation139_spill] sm:$0xff] }
 0x5f0   :  { %3730 = vmatpush.msrb.mxu3 %v15832_v10  ;;  %3673 = vmatpush.msrb.mxu0 %v15833_v8  ;;  %v15843_v10 = vld [vmem:[#allocation101_spill] sm:$0xff]  ;;  %v15844_v8 = vld [vmem:[#allocation140_spill] sm:$0xff] }
 0x5f1   :  { %3713 = vmatpush.msrb.mxu2 %v15834_v40  ;;  %3691 = vmatpush.msrb.mxu1 %v15835_v47  ;;  %v15845_v40 = vld [vmem:[#allocation102_spill] sm:$0xff]  ;;  %v15846_v47 = vld [vmem:[#allocation143_spill] sm:$0xff] }
 0x5f2   :  { %3731 = vmatpush.msrb.mxu3 %v15836_v12  ;;  %3674 = vmatpush.msrb.mxu0 %v15837_v54  ;;  %v15847_v12 = vld [vmem:[#allocation105_spill] sm:$0xff]  ;;  %v15848_v54 = vld [vmem:[#allocation144_spill] sm:$0xff] }
 0x5f3   :  { %3714 = vmatpush.msrb.mxu2 %v15838_v20  ;;  %3692 = vmatpush.msrb.mxu1 %v15839_v60  ;;  %v15849_v20 = vld [vmem:[#allocation106_spill] sm:$0xff]  ;;  %v15850_v60 = vld [vmem:[#allocation149_spill] sm:$0xff] }
 0x5f4   :  { %3732 = vmatpush.msrb.mxu3 %v15840_v37  ;;  %3675 = vmatpush.msrb.mxu0 %v15841_v22  ;;  %v15851_v37 = vld [vmem:[#allocation111_spill] sm:$0xff]  ;;  %v15852_v22 = vld [vmem:[#allocation150_spill] sm:$0xff] }
 0x5f5   :  { %3715 = vmatpush.msrb.mxu2 %v15842_v42  ;;  %3693 = vmatpush.msrb.mxu1 %v15843_v10  ;;  %v15853_v42 = vld [vmem:[#allocation112_spill] sm:$0xff] }
 0x5f6   :  { %3733 = vmatpush.msrb.mxu3 %v15844_v8  ;;  %3676 = vmatpush.msrb.mxu0 %v15845_v40  ;;  %v15854_v10 = vld [vmem:[#allocation152_spill] sm:$0xff]  ;;  %v15855_v8 = vld [vmem:[#allocation115_spill] sm:$0xff]  ;;  %v15856_v40 = vld [vmem:[#allocation153_spill] sm:$0xff] }
 0x5f7   :  { %3716 = vmatpush.msrb.mxu2 %v15846_v47  ;;  %3694 = vmatpush.msrb.mxu1 %v15847_v12  ;;  %v15857_v47 = vld [vmem:[#allocation116_spill] sm:$0xff] }
 0x5f8   :  { %3734 = vmatpush.msrb.mxu3 %v15848_v54  ;;  %3677 = vmatpush.msrb.mxu0 %v15849_v20  ;;  %v15858_v12 = vld [vmem:[#allocation156_spill] sm:$0xff]  ;;  %v15859_v54 = vld [vmem:[#allocation123_spill] sm:$0xff]  ;;  %v15860_v20 = vld [vmem:[#allocation157_spill] sm:$0xff] }
 0x5f9   :  { %3717 = vmatpush.msrb.mxu2 %v15850_v60  ;;  %3695 = vmatpush.msrb.mxu1 %v15851_v37  ;;  %v15861_v60 = vld [vmem:[#allocation124_spill] sm:$0xff]  ;;  %v15862_v37 = vld [vmem:[#allocation158_spill] sm:$0xff] }
 0x5fa   :  { %3735 = vmatpush.msrb.mxu3 %v15852_v22  ;;  %3678 = vmatpush.msrb.mxu0 %v15853_v42  ;;  %v15863_v22 = vld [vmem:[#allocation127_spill] sm:$0xff] }
 0x5fb   :  { %3718 = vmatpush.msrb.mxu2 %v15854_v10  ;;  %3696 = vmatpush.msrb.mxu1 %v15855_v8  ;;  %v15864_v42 = vld [vmem:[#allocation159_spill] sm:$0xff]  ;;  %v15865_v10 = vld [vmem:[#allocation128_spill] sm:$0xff] }
 0x5fc   :  { %3736 = vmatpush.msrb.mxu3 %v15856_v40  ;;  %3679 = vmatpush.msrb.mxu0 %v15857_v47  ;;  %v15866_v8 = vld [vmem:[#allocation160_spill] sm:$0xff]  ;;  %v15867_v40 = vld [vmem:[#allocation133_spill] sm:$0xff] }
 0x5fd   :  { %3719 = vmatpush.msrb.mxu2 %v15858_v12  ;;  %3697 = vmatpush.msrb.mxu1 %v15861_v60  ;;  %v15868_v47 = vld [vmem:[#allocation161_spill] sm:$0xff]  ;;  %v15869_v12 = vld [vmem:[#allocation134_spill] sm:$0xff] }
 0x5fe   :  { %3744 = vmatpush.msra.mxu0 %v15859_v54  ;;  %3737 = vmatpush.msrb.mxu3 %v15862_v37  ;;  %v15870_v54 = vld [vmem:[#allocation164_spill] sm:$0xff]  ;;  %v15872_v60 = vld [vmem:[#allocation165_spill] sm:$0xff]  ;;  %v15873_v37 = vld [vmem:[#allocation138_spill] sm:$0xff] }
 0x5ff   :  { %3784 = vmatpush.msra.mxu2 %v15860_v20  ;;  %3698 = vmatpush.msrb.mxu1 %v15865_v10  ;;  %v15871_v20 = vld [vmem:[#allocation137_spill] sm:$0xff]  ;;  %v15876_v10 = vld [vmem:[#allocation167_spill] sm:$0xff] }
 0x600   :  { %3745 = vmatpush.msra.mxu0 %v15863_v22  ;;  %3738 = vmatpush.msrb.mxu3 %v15866_v8  ;;  %v15874_v22 = vld [vmem:[#allocation166_spill] sm:$0xff] }
 0x601   :  { %3785 = vmatpush.msra.mxu2 %v15864_v42  ;;  %3699 = vmatpush.msrb.mxu1 %v15869_v12  ;;  %v15875_v42 = vld [vmem:[#allocation141_spill] sm:$0xff]  ;;  %v15877_v8 = vld [vmem:[#allocation142_spill] sm:$0xff]  ;;  %v15880_v12 = vld [vmem:[#allocation148_spill] sm:$0xff] }
 0x602   :  { %3746 = vmatpush.msra.mxu0 %v15867_v40  ;;  %3739 = vmatpush.msrb.mxu3 %v15870_v54  ;;  %v15878_v40 = vld [vmem:[#allocation170_spill] sm:$0xff]  ;;  %v15881_v54 = vld [vmem:[#allocation151_spill] sm:$0xff] }
 0x603   :  { %3786 = vmatpush.msra.mxu2 %v15868_v47  ;;  %3764 = vmatpush.msra.mxu1 %v15872_v60  ;;  %v15879_v47 = vld [vmem:[#allocation147_spill] sm:$0xff] }
 0x604   :  { %3747 = vmatpush.msra.mxu0 %v15871_v20  ;;  %3804 = vmatpush.msra.mxu3 %v15874_v22  ;;  %v15882_v20 = vld [vmem:[#allocation7_spill] sm:$0xff]  ;;  %v15885_v22 = vld [vmem:[#allocation20_spill] sm:$0xff] }
 0x605   :  { %3787 = vmatpush.msra.mxu2 %v15873_v37  ;;  %3765 = vmatpush.msra.mxu1 %v15876_v10  ;;  %v15883_v60 = vld [vmem:[#allocation15_spill] sm:$0xff]  ;;  %v15884_v37 = vld [vmem:[#allocation21_spill] sm:$0xff]  ;;  %v15887_v10 = vld [vmem:[#allocation60_spill] sm:$0xff] }
 0x606   :  { %3748 = vmatpush.msra.mxu0 %v15875_v42  ;;  %3805 = vmatpush.msra.mxu3 %v15878_v40  ;;  %v15886_v42 = vld [vmem:[#allocation59_spill] sm:$0xff]  ;;  %v15889_v40 = vld [vmem:[#allocation74_spill] sm:$0xff] }
 0x607   :  { %3788 = vmatpush.msra.mxu2 %v15877_v8  ;;  %3766 = vmatpush.msra.mxu1 %v15880_v12  ;;  %v15888_v8 = vld [vmem:[#allocation73_spill] sm:$0xff]  ;;  %v15891_v12 = vld [vmem:[#allocation179_spill] sm:$0xff] }
 0x608   :  { %3749 = vmatpush.msra.mxu0 %v15879_v47  ;;  %3806 = vmatpush.msra.mxu3 %v15882_v20  ;;  %v15890_v47 = vld [vmem:[#allocation178_spill] sm:$0xff]  ;;  %v15893_v20 = vld [vmem:[#allocation181_spill] sm:$0xff] }
 0x609   :  { %3789 = vmatpush.msra.mxu2 %v15881_v54  ;;  %3767 = vmatpush.msra.mxu1 %v15884_v37  ;;  %v15892_v54 = vld [vmem:[#allocation180_spill] sm:$0xff]  ;;  %v15895_v37 = vld [vmem:[#allocation183_spill] sm:$0xff] }
 0x60a   :  { %3750 = vmatpush.msra.mxu0 %v15883_v60  ;;  %3807 = vmatpush.msra.mxu3 %v15886_v42  ;;  %v15894_v60 = vld [vmem:[#allocation182_spill] sm:$0xff]  ;;  %v15897_v42 = vld [vmem:[#allocation185_spill] sm:$0xff] }
 0x60b   :  { %3790 = vmatpush.msra.mxu2 %v15885_v22  ;;  %3768 = vmatpush.msra.mxu1 %v15888_v8  ;;  %v15896_v22 = vld [vmem:[#allocation184_spill] sm:$0xff]  ;;  %v15899_v8 = vld [vmem:[#allocation187_spill] sm:$0xff] }
 0x60c   :  { %3751 = vmatpush.msra.mxu0 %v15887_v10  ;;  %3808 = vmatpush.msra.mxu3 %v15890_v47  ;;  %v15898_v10 = vld [vmem:[#allocation186_spill] sm:$0xff]  ;;  %v15901_v47 = vld [vmem:[#allocation189_spill] sm:$0xff] }
 0x60d   :  { %3791 = vmatpush.msra.mxu2 %v15889_v40  ;;  %3769 = vmatpush.msra.mxu1 %v15892_v54  ;;  %v15900_v40 = vld [vmem:[#allocation188_spill] sm:$0xff]  ;;  %v15903_v54 = vld [vmem:[#allocation191_spill] sm:$0xff] }
 0x60e   :  { %3752 = vmatpush.msra.mxu0 %v15891_v12  ;;  %3809 = vmatpush.msra.mxu3 %v15894_v60  ;;  %v15902_v12 = vld [vmem:[#allocation190_spill] sm:$0xff]  ;;  %v15905_v60 = vld [vmem:[#allocation12_spill] sm:$0xff] }
 0x60f   :  { %3792 = vmatpush.msra.mxu2 %v15893_v20  ;;  %3770 = vmatpush.msra.mxu1 %v15896_v22  ;;  %v15904_v20 = vld [vmem:[#allocation192_spill] sm:$0xff]  ;;  %v15907_v22 = vld [vmem:[#allocation25_spill] sm:$0xff] }
 0x610   :  { %3753 = vmatpush.msra.mxu0 %v15895_v37  ;;  %3810 = vmatpush.msra.mxu3 %v15898_v10  ;;  %v15906_v37 = vld [vmem:[#allocation5_spill] sm:$0xff]  ;;  %v15909_v10 = vld [vmem:[#allocation107_spill] sm:$0xff] }
 0x611   :  { %3793 = vmatpush.msra.mxu2 %v15897_v42  ;;  %3771 = vmatpush.msra.mxu1 %v15900_v40  ;;  %v15908_v42 = vld [vmem:[#allocation24_spill] sm:$0xff]  ;;  %v15911_v40 = vld [vmem:[#allocation121_spill] sm:$0xff] }
 0x612   :  { %3754 = vmatpush.msra.mxu0 %v15899_v8  ;;  %3811 = vmatpush.msra.mxu3 %v15902_v12  ;;  %v15910_v8 = vld [vmem:[#allocation108_spill] sm:$0xff]  ;;  %v13028_v12 = vld [vmem:[%s14061_s3 + $0x98] sm:$0xff] }
 0x613   :  { %3794 = vmatpush.msra.mxu2 %v15901_v47  ;;  %3772 = vmatpush.msra.mxu1 %v15904_v20  ;;  %v15912_v47 = vld [vmem:[#allocation122_spill] sm:$0xff]  ;;  %15913 = vst [vmem:[#allocation97_spill] sm:$0xff] %v13028_v12 }
 0x614   :  { %3755 = vmatpush.msra.mxu0 %v15903_v54  ;;  %3812 = vmatpush.msra.mxu3 %v15906_v37  ;;  %v15914_v54 = vld [vmem:[#allocation194_spill] sm:$0xff]  ;;  %v13039_v37 = vld [vmem:[%s14061_s3 + $0x58] sm:$0xff] }
 0x615   :  { %3795 = vmatpush.msra.mxu2 %v15905_v60  ;;  %3773 = vmatpush.msra.mxu1 %v15908_v42  ;;  %v5543_v20 = vld [vmem:[%s14061_s3 + $0x50] sm:$0xff]  ;;  %v15915_v60 = vld [vmem:[#allocation195_spill] sm:$0xff]  ;;  %15916 = vst [vmem:[#allocation98_spill] sm:$0xff] %v13039_v37 }
 0x616   :  { %3756 = vmatpush.msra.mxu0 %v15907_v22  ;;  %3813 = vmatpush.msra.mxu3 %v15910_v8  ;;  %v13045_v22 = vld [vmem:[%s14061_s3 + $0x518] sm:$0xff]  ;;  %v5546_v42 = vld [vmem:[%s14061_s3 + $0x10] sm:$0xff] }
 0x617   :  { %3796 = vmatpush.msra.mxu2 %v15909_v10  ;;  %3774 = vmatpush.msra.mxu1 %v15912_v47  ;;  %15917 = vst [vmem:[#allocation40_spill] sm:$0xff] %v13045_v22  ;;  %v5547_v10 = vld [vmem:[%s14061_s3 + $0x4d0] sm:$0xff]  ;;  %v13057_v8 = vld [vmem:[%s14061_s3 + $0x18] sm:$0xff] }
 0x618   :  { %3757 = vmatpush.msra.mxu0 %v15911_v40  ;;  %3814 = vmatpush.msra.mxu3 %v15914_v54  ;;  %15918 = vst [vmem:[#allocation75_spill] sm:$0xff] %v13057_v8  ;;  %v13063_v40 = vld [vmem:[%s14061_s3 + $0x4d8] sm:$0xff]  ;;  %v5550_v47 = vld [vmem:[%s14061_s3 + $0x490] sm:$0xff] }
 0x619   :  { %3797 = vmatpush.msra.mxu2 %v13028_v12  ;;  %3775 = vmatpush.msra.mxu1 %v15915_v60  ;;  %15919 = vst [vmem:[#allocation76_spill] sm:$0xff] %v13063_v40  ;;  %v13072_v54 = vld [vmem:[%s14061_s3 + $0x498] sm:$0xff]  ;;  %v15924_v12 = vld [vmem:[#allocation16_spill] sm:$0xff] }
 0x61a   :  { %3758 = vmatpush.msra.mxu0 %v5543_v20  ;;  %3815 = vmatpush.msra.mxu3 %v13045_v22  ;;  %15920 = vst [vmem:[#allocation43_spill] sm:$0xff] %v13072_v54  ;;  %v5552_v20 = vld [vmem:[%s14061_s3 + $0x450] sm:$0xff]  ;;  %v13081_v60 = vld [vmem:[%s14061_s3 + $0x458] sm:$0xff] }
 0x61b   :  { %3798 = vmatpush.msra.mxu2 %v13039_v37  ;;  %3776 = vmatpush.msra.mxu1 %v5547_v10  ;;  %15921 = vst [vmem:[#allocation44_spill] sm:$0xff] %v13081_v60  ;;  %v13090_v10 = vld [vmem:[%s14061_s3 + $0x418] sm:$0xff] }
 0x61c   :  { %3759 = vmatpush.msra.mxu0 %v5546_v42  ;;  %3816 = vmatpush.msra.mxu3 %v13063_v40  ;;  %v5554_v42 = vld [vmem:[%s14061_s3 + $0x410] sm:$0xff]  ;;  %15922 = vst [vmem:[#allocation79_spill] sm:$0xff] %v13090_v10 }
 0x61d   :  { %3799 = vmatpush.msra.mxu2 %v13057_v8  ;;  %3777 = vmatpush.msra.mxu1 %v5550_v47  ;;  %v3238_v47 = vpop.f32.mrf.mxu1  ;;  %v3258_v8 = vpop.f32.mrf.mxu2 }
 0x61e   :  { %3817 = vmatpush.msra.mxu3 %v13072_v54  ;;  %v3278_v54 = vpop.f32.mrf.mxu3 }
 0x61f   :  { %3778 = vmatpush.msra.mxu1 %v5552_v20  ;;  %v3218_v20 = vpop.f32.mrf.mxu0  ;;  %v3279_v46 = vadd.f32 %v3278_v54, %v3258_v8 }
 0x620   :  { %3818 = vmatpush.msra.mxu3 %v13081_v60  ;;  %v15923_v60 = vld [vmem:[#allocation8_spill] sm:$0xff]  ;;  %v3239_v14 = vadd.f32 %v3238_v47, %v3218_v20 }
 0x621   :  { %3779 = vmatpush.msra.mxu1 %v5554_v42  ;;  %v537_v7 = vadd.f32 %v15924_v12, %v15923_v60 }
 0x622   :  { %3819 = vmatpush.msra.mxu3 %v13090_v10  ;;  %v3521_v9 = vadd.f32 %v3239_v14, %v455_v30  ;;  %v15927_v10 = vld [vmem:[#allocation173_spill] sm:$0xff] }
 0x623   :  { %v578_v25 = vadd.f32 %v15928_v23, %v15927_v10 }
 0x624   :  { %v4533_v1 = vmul.f32 -1.442695, %v3521_v9 }
 0x625   :  { %v3318_v40 = vpop.f32.mrf.mxu1  ;;  %v3338_v48 = vpop.f32.mrf.mxu2 }
 0x626   :  { %v3358_v24 = vpop.f32.mrf.mxu3 }
 0x627   :  { %v3298_v37 = vpop.f32.mrf.mxu0  ;;  %v3359_v51 = vadd.f32 %v3358_v24, %v3338_v48  ;;  %v15932_v48 = vld [vmem:[#allocation154_spill] sm:$0xff] }
 0x628   :  { %v3319_v22 = vadd.f32 %v3318_v40, %v3298_v37  ;;  %v15930_v37 = vld [vmem:[#allocation28_spill] sm:$0xff]  ;;  %v619_v30 = vadd.f32 %v15932_v48, %v15931_v26  ;;  %v15936_v26 = vld [vmem:[#allocation162_spill] sm:$0xff] }
 0x629   :  { %v3524_v21 = vadd.f32 %v3359_v51, %v578_v25  ;;  %v496_v40 = vadd.f32 %v15930_v37, %v15929_v27 }
 0x62a   :  { %v3523_v42 = vadd.f32 %v3319_v22, %v537_v7 }
 0x62b   :  { %v3522_v47 = vadd.f32 %v3279_v46, %v496_v40  ;;  %v4536_v22 = vmul.f32 -1.442695, %v3524_v21  ;;  %v15934_v46 = vld [vmem:[#allocation155_spill] sm:$0xff] }
 0x62c   :  { %v4535_v55 = vmul.f32 -1.442695, %v3523_v42 }
 0x62d   :  { %v4534_v24 = vmul.f32 -1.442695, %v3522_v47 }
 0x62e   :  { %4742 = vpow2.f32 %v4535_v55  ;;  %v15933_v55 = vld [vmem:[#allocation175_spill] sm:$0xff] }
 0x62f   :  { %4744 = vpow2.f32 %v4533_v1  ;;  %v660_v42 = vadd.f32 %v15934_v46, %v15933_v55 }
 0x630   :  { %4746 = vpow2.f32 %v4536_v22 }
 0x631   :  { %4748 = vpow2.f32 %v4534_v24 }
 0x634   :  { %v3378_v7 = vpop.f32.mrf.mxu0  ;;  %v4743_v14 = vpop.eup %4742 }
 0x635   :  { %v4745_v54 = vpop.eup %4744  ;;  %v13103_v9 = vadd.f32 1.0, %v4743_v14 }
 0x636   :  { %v4747_v37 = vpop.eup %4746  ;;  %v3547_v1 = vadd.f32 1.0, %v4745_v54 }
 0x637   :  { %4750 = vrcp.f32 %v13103_v9  ;;  %v13108_v47 = vadd.f32 1.0, %v4747_v37  ;;  %v3594_v36 = vand.u32 2147483648, %v13103_v9  ;;  %vm3588_vm8 = vweird.f32 %v13103_v9 }
 0x638   :  { %v3564_v60 = vand.u32 2147483648, %v3547_v1  ;;  %vm3558_vm10 = vweird.f32 %v3547_v1 }
 0x639   :  { %vm3603_vm0 = vweird.f32 %v13108_v47 }
 0x63d   :  { %v3398_v12 = vpop.f32.mrf.mxu1  ;;  %v3418_v25 = vpop.f32.mrf.mxu2 }
 0x63e   :  { %v3399_v20 = vadd.f32 %v3398_v12, %v3378_v7  ;;  %v4749_v12 = vpop.eup %4748 }
 0x63f   :  { %v13110_v22 = vadd.f32 1.0, %v4749_v12 }
 0x640   :  { %v3525_v23 = vadd.f32 %v3399_v20, %v619_v30  ;;  %v13112_v20 = vpop.eup %4750 }
 0x641   :  { %v3584_v24 = vmul.f32 %v13112_v20, %v13103_v9  ;;  %vm3589_vm6 = vweird.f32 %v13112_v20  ;;  %vm3573_vm13 = vweird.f32 %v13110_v22 }
 0x642   :  { %v4537_v21 = vmul.f32 -1.442695, %v3525_v23  ;;  %vm13153_vm9 = vmor %vm3588_vm8, %vm3589_vm6 }
 0x644   :  { %v3438_v8 = vpop.f32.mrf.mxu3  ;;  %4752 = vpow2.f32 %v4537_v21 }
 0x645   :  { %v3439_v51 = vadd.f32 %v3438_v8, %v3418_v25  ;;  %4754 = vrcp.f32 %v3547_v1 }
 0x646   :  { %4756 = vrcp.f32 %v13108_v47 }
 0x647   :  { %v3526_v40 = vadd.f32 %v3439_v51, %v660_v42  ;;  %v3585_v51 = vsub.f32 1.0, %v3584_v24 }
 0x649   :  { %v4538_v7 = vmul.f32 -1.442695, %v3526_v40  ;;  %v3586_v40 = vmul.f32 %v13112_v20, %v3585_v51 }
 0x64a   :  { %v4753_v48 = vpop.eup %4752 }
 0x64b   :  { %4758 = vpow2.f32 %v4538_v7  ;;  %v13115_v30 = vpop.eup %4754  ;;  %v13120_v14 = vadd.f32 1.0, %v4753_v48  ;;  %v3587_v51 = vadd.f32 %v13112_v20, %v3586_v40 }
 0x64c   :  { %4760 = vrcp.f32 %v13110_v22  ;;  %v13122_v23 = vpop.eup %4756  ;;  %v3554_v8 = vmul.f32 %v13115_v30, %v3547_v1  ;;  %vm3559_vm7 = vweird.f32 %v13115_v30 }
 0x64d   :  { %4762 = vrcp.f32 %v13120_v14  ;;  %v3599_v42 = vmul.f32 %v13122_v23, %v13108_v47  ;;  %vm13169_vm12 = vmor %vm3558_vm10, %vm3559_vm7  ;;  %vm3604_vm14 = vweird.f32 %v13122_v23  ;;  %vm3618_vm7 = vweird.f32 %v13120_v14 }
 0x64e   :  { %v3555_v46 = vsub.f32 1.0, %v3554_v8  ;;  %v15935_v8 = vld [vmem:[#allocation19_spill] sm:$0xff]  ;;  %vm13186_vm2 = vmor %vm3603_vm0, %vm3604_vm14 }
 0x64f   :  { %v3600_v7 = vsub.f32 1.0, %v3599_v42  ;;  %v701_v27 = vadd.f32 %v15936_v26, %v15935_v8 }
 0x650   :  { %v3556_v55 = vmul.f32 %v13115_v30, %v3555_v46 }
 0x651   :  { %v4759_v25 = vpop.eup %4758  ;;  %v3601_v26 = vmul.f32 %v13122_v23, %v3600_v7  ;;  %v3565_v7 = vor.u32 1.1754944e-38, %v3564_v60 }
 0x652   :  { %v13126_v54 = vpop.eup %4760  ;;  %v13130_v21 = vadd.f32 1.0, %v4759_v25  ;;  %v3562_v25 = vand.u32 2147483647, %v3547_v1  ;;  %v3557_v46 = vadd.f32 %v13115_v30, %v3556_v55 }
 0x653   :  { %v3569_v37 = vmul.f32 %v13126_v54, %v13110_v22  ;;  %v13135_v12 = vpop.eup %4762  ;;  %vm3574_vm1 = vweird.f32 %v13126_v54 }
 0x654   :  { %4764 = vrcp.f32 %v13130_v21  ;;  %v3614_v42 = vmul.f32 %v13135_v12, %v13120_v14  ;;  %vm13159_vm11 = vcmp.eq.f32.partialorder %v3562_v25, 8.507059e+37  ;;  %v3561_v60 = vsel %vm13169_vm12, %v13115_v30, %v3557_v46  ;;  %vm13201_vm3 = vmor %vm3573_vm13, %vm3574_vm1 }
 0x655   :  { %v3570_v49 = vsub.f32 1.0, %v3569_v37  ;;  %v3592_v37 = vand.u32 2147483647, %v13103_v9  ;;  %v3591_v9 = vsel %vm13153_vm9, %v13112_v20, %v3587_v51  ;;  %v3566_v46 = vsel %vm13159_vm11, %v3565_v7, %v3561_v60 }
 0x656   :  { %v3615_v52 = vsub.f32 1.0, %v3614_v42  ;;  %v3607_v42 = vand.u32 2147483647, %v13108_v47  ;;  %vm3619_vm5 = vweird.f32 %v13135_v12  ;;  %v3622_v60 = vand.u32 2147483647, %v13120_v14 }
 0x657   :  { %vm3593_vm15 = vcmp.eq.f32.partialorder %v3592_v37, 8.507059e+37  ;;  %vm3620_vm8 = vmor %vm3618_vm7, %vm3619_vm5  ;;  %vm3633_vm11 = vweird.f32 %v13130_v21 }
 0x658   :  { %v3458_v48 = vpop.f32.mrf.mxu0  ;;  %vm3608_vm4 = vcmp.eq.f32.partialorder %v3607_v42, 8.507059e+37  ;;  %vm3623_vm9 = vcmp.eq.f32.partialorder %v3622_v60, 8.507059e+37  ;;  %v15981_v60 = vld [vmem:[#allocation229_spill] sm:$0xff] }
 0x65e   :  { %v3478_v24 = vpop.f32.mrf.mxu1 }
 0x65f   :  { %v3479_v10 = vadd.f32 %v3478_v24, %v3458_v48  ;;  %v15937_v48 = vld [vmem:[#allocation176_spill] sm:$0xff]  ;;  %v15938_v24 = vld [vmem:[#allocation163_spill] sm:$0xff]  ;;  %v3498_v55 = vpop.f32.mrf.mxu2 }
 0x660   :  { %v742_v8 = vadd.f32 %v15938_v24, %v15937_v48  ;;  %v3571_v24 = vmul.f32 %v13126_v54, %v3570_v49  ;;  %v3595_v48 = vor.u32 1.1754944e-38, %v3594_v36  ;;  %v3602_v49 = vadd.f32 %v13122_v23, %v3601_v26 }
 0x661   :  { %v3527_v3 = vadd.f32 %v3479_v10, %v701_v27  ;;  %v13157_v27 = vpop.eup %4764  ;;  %v3609_v36 = vand.u32 2147483648, %v13108_v47  ;;  %v3616_v26 = vmul.f32 %v13135_v12, %v3615_v52  ;;  %v15977_v52 = vld [vmem:[#allocation225_spill] sm:$0xff] }
 0x662   :  { %v3629_v20 = vmul.f32 %v13157_v27, %v13130_v21  ;;  %v3596_v25 = vsel %vm3593_vm15, %v3595_v48, %v3591_v9  ;;  %v3577_v9 = vand.u32 2147483647, %v13110_v22  ;;  %v3606_v47 = vsel %vm13186_vm2, %v13122_v23, %v3602_v49 }
 0x663   :  { %4766 = vtanh.f32 %v3527_v3  ;;  %v3645_v37 = vmul.f32 %v3596_v25, %v12277_v11  ;;  %v3617_v7 = vadd.f32 %v13135_v12, %v3616_v26  ;;  %vm3634_vm10 = vweird.f32 %v13157_v27 }
 0x664   :  { %vm3578_vm6 = vcmp.eq.f32.partialorder %v3577_v9, 8.507059e+37  ;;  %vm3635_vm12 = vmor %vm3633_vm11, %vm3634_vm10  ;;  %v13326_v9 = vld [vmem:[%s14061_s3 + $0x3b8] sm:$0xff] }
 0x665   :  { %v3518_v18 = vpop.f32.mrf.mxu3  ;;  %v3621_v25 = vsel %vm3620_vm8, %v13135_v12, %v3617_v7  ;;  %v5565_v7 = vld [vmem:[%s14061_s3 + $0x330] sm:$0xff] }
 0x666   :  { %v3519_v1 = vadd.f32 %v3518_v18, %v3498_v55  ;;  %v3572_v18 = vadd.f32 %v13126_v54, %v3571_v24  ;;  %v3610_v55 = vor.u32 1.1754944e-38, %v3609_v36  ;;  %v3630_v24 = vsub.f32 1.0, %v3629_v20 }
 0x668   :  { %v3528_v51 = vadd.f32 %v3519_v1, %v742_v8  ;;  %v3579_v8 = vand.u32 2147483648, %v13110_v22  ;;  %v3576_v11 = vsel %vm13201_vm3, %v13126_v54, %v3572_v18  ;;  %v3611_v3 = vsel %vm3608_vm4, %v3610_v55, %v3606_v47  ;;  %v15975_v47 = vld [vmem:[#allocation223_spill] sm:$0xff]  ;;  %v15976_v55 = vld [vmem:[#allocation224_spill] sm:$0xff] }
 0x669   :  { %v4767_v40 = vpop.eup %4766  ;;  %v3624_v1 = vand.u32 2147483648, %v13120_v14  ;;  %v3631_v49 = vmul.f32 %v13157_v27, %v3630_v24  ;;  %v3646_v36 = vmul.f32 %v3611_v3, %v12291_v63  ;;  %v3639_v14 = vand.u32 2147483648, %v13130_v21  ;;  %v13337_v24 = vld [vmem:[%s14061_s3 + $0x378] sm:$0xff] }
 0x66a   :  { %4768 = vtanh.f32 %v3528_v51  ;;  %v3647_v48 = vmul.f32 %v4767_v40, %v3566_v46  ;;  %v3580_v23 = vor.u32 1.1754944e-38, %v3579_v8  ;;  %v3637_v63 = vand.u32 2147483647, %v13130_v21  ;;  %v13351_v3 = vld [vmem:[%s14061_s3 + $0x338] sm:$0xff] }
 0x66b   :  { %v3625_v51 = vor.u32 1.1754944e-38, %v3624_v1  ;;  %v3632_v42 = vadd.f32 %v13157_v27, %v3631_v49  ;;  %v3640_v46 = vor.u32 1.1754944e-38, %v3639_v14  ;;  %v15980_v1 = vld [vmem:[#allocation228_spill] sm:$0xff]  ;;  %v13362_v49 = vld [vmem:[%s14061_s3 + $0x2f8] sm:$0xff] }
 0x66c   :  { %v13205_v10 = vadd.f32 %v3647_v48, %v3645_v37  ;;  %v3581_v54 = vsel %vm3578_vm6, %v3580_v23, %v3576_v11  ;;  %vm3638_vm13 = vcmp.eq.f32.partialorder %v3637_v63, 8.507059e+37  ;;  %v13303_v48 = vld [vmem:[%s14061_s3 + $0x28] sm:$0xff]  ;;  %v15978_v11 = vld [vmem:[#allocation226_spill] sm:$0xff]  ;;  %v15979_v23 = vld [vmem:[#allocation227_spill] sm:$0xff] }
 0x66d   :  { %v3626_v30 = vsel %vm3623_vm9, %v3625_v51, %v3621_v25  ;;  %v3636_v12 = vsel %vm3635_vm12, %v13157_v27, %v3632_v42  ;;  %v15973_v27 = vld [vmem:[#allocation221_spill] sm:$0xff]  ;;  %v13373_v25 = vld [vmem:[%s14061_s3 + $0x2b8] sm:$0xff]  ;;  %v15984_v51 = vld [vmem:[#allocation42_spill] sm:$0xff] }
 0x66e   :  { %4770 = vtanh.f32 %v13205_v10  ;;  %v3641_v37 = vsel %vm3638_vm13, %v3640_v46, %v3636_v12  ;;  %v5571_v42 = vld [vmem:[%s14061_s3 + $0x270] sm:$0xff]  ;;  %v15986_v14 = vld [vmem:[#allocation231_spill] sm:$0xff] }
 0x66f   :  { %v5573_v63 = vld [vmem:[%s14061_s3 + $0x230] sm:$0xff]  ;;  %v15987_v12 = vld [vmem:[#allocation47_spill] sm:$0xff] }
 0x670   :  { %v4769_v22 = vpop.eup %4768  ;;  %v13395_v46 = vld [vmem:[%s14061_s3 + $0x238] sm:$0xff] }
 0x671   :  { %v3648_v20 = vmul.f32 %v4769_v22, %v3581_v54  ;;  %v5567_v22 = vld [vmem:[%s14061_s3 + $0x2f0] sm:$0xff] }
 0x672   :  { %v15982_v54 = vld [vmem:[#allocation38_spill] sm:$0xff] }
 0x673   :  { %v13219_v18 = vadd.f32 %v3648_v20, %v3646_v36  ;;  %v5569_v36 = vld [vmem:[%s14061_s3 + $0x2b0] sm:$0xff]  ;;  %v15983_v20 = vld [vmem:[#allocation41_spill] sm:$0xff] }
 0x674   :  { %v4771_v40 = vpop.eup %4770 }
 0x675   :  { %4772 = vtanh.f32 %v13219_v18  ;;  %v13227_v26 = vmul.f32 %v4771_v40, %v3626_v30  ;;  %v15985_v40 = vld [vmem:[#allocation230_spill] sm:$0xff]  ;;  %v13384_v30 = vld [vmem:[%s14061_s3 + $0x278] sm:$0xff] }
 0x677   :  { %3680 = vmatmul.f32.vlgmr.msrb.gmra.mxu0 %v13227_v26  ;;  %3720 = vmatmul.f32.vlgmr.msrb.gmra.mxu2 %v13227_v26 }
 0x678   :  { %3824 = vmatpush.msrb.mxu0 %v12307_v62  ;;  %3864 = vmatpush.msrb.mxu2 %v12313_v44  ;;  %v15949_v62 = vld [vmem:[#allocation197_spill] sm:$0xff]  ;;  %v15950_v44 = vld [vmem:[#allocation198_spill] sm:$0xff] }
 0x67a   :  { %3825 = vmatpush.msrb.mxu0 %v12319_v16  ;;  %3865 = vmatpush.msrb.mxu2 %v12325_v34  ;;  %v15951_v16 = vld [vmem:[#allocation199_spill] sm:$0xff]  ;;  %v15952_v34 = vld [vmem:[#allocation200_spill] sm:$0xff] }
 0x67b   :  { %v4773_v8 = vpop.eup %4772 }
 0x67c   :  { %v13236_v21 = vmul.f32 %v4773_v8, %v3641_v37  ;;  %3826 = vmatpush.msrb.mxu0 %v12333_v56  ;;  %3866 = vmatpush.msrb.mxu2 %v12339_v32  ;;  %v15953_v56 = vld [vmem:[#allocation201_spill] sm:$0xff]  ;;  %v15954_v32 = vld [vmem:[#allocation202_spill] sm:$0xff]  ;;  %v15988_v8 = vld [vmem:[#allocation48_spill] sm:$0xff] }
 0x67d   :  { %v5575_v37 = vld [vmem:[%s14061_s3 + $0x1f0] sm:$0xff] }
 0x67e   :  { %3700 = vmatmul.f32.vlgmr.msrb.gmra.mxu1 %v13236_v21  ;;  %3740 = vmatmul.f32.vlgmr.msrb.gmra.mxu3 %v13236_v21 }
 0x67f   :  { %3827 = vmatpush.msrb.mxu0 %v12347_v31  ;;  %3844 = vmatpush.msrb.mxu1 %v12353_v50  ;;  %v15955_v31 = vld [vmem:[#allocation203_spill] sm:$0xff]  ;;  %v15956_v50 = vld [vmem:[#allocation204_spill] sm:$0xff] }
 0x680   :  { %3867 = vmatpush.msrb.mxu2 %v12359_v6  ;;  %3884 = vmatpush.msrb.mxu3 %v12365_v57  ;;  %v15957_v6 = vld [vmem:[#allocation205_spill] sm:$0xff]  ;;  %v15958_v57 = vld [vmem:[#allocation206_spill] sm:$0xff] }
 0x681   :  { %3760 = vmatmul.f32.vlgmr.msra.gmra.mxu0 %v13227_v26  ;;  %3800 = vmatmul.f32.vlgmr.msra.gmra.mxu2 %v13227_v26 }
 0x682   :  { %3828 = vmatpush.msrb.mxu0 %v12373_v61  ;;  %3845 = vmatpush.msrb.mxu1 %v12379_v5  ;;  %v15959_v61 = vld [vmem:[#allocation207_spill] sm:$0xff]  ;;  %v15960_v5 = vld [vmem:[#allocation208_spill] sm:$0xff] }
 0x683   :  { %3868 = vmatpush.msrb.mxu2 %v12385_v53  ;;  %3885 = vmatpush.msrb.mxu3 %v12391_v45  ;;  %v15961_v53 = vld [vmem:[#allocation209_spill] sm:$0xff]  ;;  %v15962_v45 = vld [vmem:[#allocation210_spill] sm:$0xff] }
 0x684   :  { %3829 = vmatpush.msrb.mxu0 %v12397_v0  ;;  %3846 = vmatpush.msrb.mxu1 %v12403_v43  ;;  %v15963_v0 = vld [vmem:[#allocation211_spill] sm:$0xff]  ;;  %v15964_v43 = vld [vmem:[#allocation212_spill] sm:$0xff] }
 0x685   :  { %3869 = vmatpush.msrb.mxu2 %v12409_v58  ;;  %3886 = vmatpush.msrb.mxu3 %v12415_v41  ;;  %v15965_v58 = vld [vmem:[#allocation213_spill] sm:$0xff]  ;;  %v15966_v41 = vld [vmem:[#allocation214_spill] sm:$0xff] }
 0x686   :  { %3830 = vmatpush.msrb.mxu0 %v12421_v2  ;;  %3847 = vmatpush.msrb.mxu1 %v12427_v33  ;;  %v15967_v2 = vld [vmem:[#allocation215_spill] sm:$0xff]  ;;  %v15968_v33 = vld [vmem:[#allocation216_spill] sm:$0xff] }
 0x687   :  { %3870 = vmatpush.msrb.mxu2 %v12433_v39  ;;  %3887 = vmatpush.msrb.mxu3 %v12439_v15  ;;  %v15969_v39 = vld [vmem:[#allocation217_spill] sm:$0xff]  ;;  %v15970_v15 = vld [vmem:[#allocation218_spill] sm:$0xff] }
 0x688   :  { %3780 = vmatmul.f32.vlgmr.msra.gmra.mxu1 %v13236_v21  ;;  %3820 = vmatmul.f32.vlgmr.msra.gmra.mxu3 %v13236_v21 }
 0x689   :  { %3831 = vmatpush.msrb.mxu0 %v12447_v28  ;;  %3848 = vmatpush.msrb.mxu1 %v12453_v38  ;;  %v15971_v28 = vld [vmem:[#allocation219_spill] sm:$0xff]  ;;  %v15972_v38 = vld [vmem:[#allocation220_spill] sm:$0xff] }
 0x68a   :  { %3871 = vmatpush.msrb.mxu2 %v12459_v13  ;;  %3888 = vmatpush.msrb.mxu3 %v15949_v62  ;;  %v5556_v13 = vld [vmem:[%s14061_s3 + $0x60] sm:$0xff]  ;;  %v15989_v62 = vld [vmem:[#allocation51_spill] sm:$0xff] }
 0x68b   :  { %3832 = vmatpush.msrb.mxu0 %v15950_v44  ;;  %3849 = vmatpush.msrb.mxu1 %v15951_v16  ;;  %v13406_v44 = vld [vmem:[%s14061_s3 + $0x1f8] sm:$0xff]  ;;  %v15990_v16 = vld [vmem:[#allocation52_spill] sm:$0xff] }
 0x68c   :  { %3872 = vmatpush.msrb.mxu2 %v15952_v34  ;;  %3889 = vmatpush.msrb.mxu3 %v15953_v56  ;;  %v5577_v34 = vld [vmem:[%s14061_s3 + $0x1b0] sm:$0xff]  ;;  %v15991_v56 = vld [vmem:[#allocation55_spill] sm:$0xff] }
 0x68d   :  { %3833 = vmatpush.msrb.mxu0 %v15954_v32  ;;  %3850 = vmatpush.msrb.mxu1 %v15955_v31  ;;  %v13417_v32 = vld [vmem:[%s14061_s3 + $0x1b8] sm:$0xff]  ;;  %v15992_v31 = vld [vmem:[#allocation56_spill] sm:$0xff] }
 0x68e   :  { %3873 = vmatpush.msrb.mxu2 %v15956_v50  ;;  %3890 = vmatpush.msrb.mxu3 %v15957_v6  ;;  %v5579_v50 = vld [vmem:[%s14061_s3 + $0x170] sm:$0xff]  ;;  %v15993_v6 = vld [vmem:[#allocation32_spill] sm:$0xff] }
 0x68f   :  { %3834 = vmatpush.msrb.mxu0 %v15958_v57  ;;  %3851 = vmatpush.msrb.mxu1 %v15959_v61  ;;  %v13428_v57 = vld [vmem:[%s14061_s3 + $0x178] sm:$0xff]  ;;  %v15994_v61 = vld [vmem:[#allocation33_spill] sm:$0xff] }
 0x690   :  { %3874 = vmatpush.msrb.mxu2 %v15960_v5  ;;  %3891 = vmatpush.msrb.mxu3 %v15961_v53  ;;  %v5581_v5 = vld [vmem:[%s14061_s3 + $0x130] sm:$0xff]  ;;  %v15995_v53 = vld [vmem:[#allocation61_spill] sm:$0xff] }
 0x691   :  { %3835 = vmatpush.msrb.mxu0 %v15962_v45  ;;  %3852 = vmatpush.msrb.mxu1 %v15963_v0  ;;  %v13439_v45 = vld [vmem:[%s14061_s3 + $0x138] sm:$0xff]  ;;  %v15996_v0 = vld [vmem:[#allocation62_spill] sm:$0xff] }
 0x692   :  { %3875 = vmatpush.msrb.mxu2 %v15964_v43  ;;  %3892 = vmatpush.msrb.mxu3 %v15965_v58  ;;  %v5583_v43 = vld [vmem:[%s14061_s3 + $0xf0] sm:$0xff] }
 0x693   :  { %3836 = vmatpush.msrb.mxu0 %v15966_v41  ;;  %3853 = vmatpush.msrb.mxu1 %v15967_v2  ;;  %v15997_v58 = vld [vmem:[#allocation34_spill] sm:$0xff]  ;;  %v13450_v41 = vld [vmem:[%s14061_s3 + $0xf8] sm:$0xff] }
 0x694   :  { %3876 = vmatpush.msrb.mxu2 %v15968_v33  ;;  %3893 = vmatpush.msrb.mxu3 %v15969_v39  ;;  %v15998_v2 = vld [vmem:[#allocation35_spill] sm:$0xff]  ;;  %v5585_v33 = vld [vmem:[%s14061_s3 + $0xb0] sm:$0xff]  ;;  %v15999_v39 = vld [vmem:[#allocation65_spill] sm:$0xff] }
 0x695   :  { %3837 = vmatpush.msrb.mxu0 %v12591_v4  ;;  %3854 = vmatpush.msrb.mxu1 %v15970_v15  ;;  %v5557_v4 = vld [vmem:[%s14061_s3 + $0x20] sm:$0xff]  ;;  %v13461_v15 = vld [vmem:[%s14061_s3 + $0xb8] sm:$0xff] }
 0x696   :  { %3877 = vmatpush.msrb.mxu2 %v15971_v28  ;;  %3894 = vmatpush.msrb.mxu3 %v15972_v38  ;;  %v16000_v28 = vld [vmem:[#allocation66_spill] sm:$0xff] }
 0x697   :  { %3838 = vmatpush.msrb.mxu0 %v5556_v13  ;;  %3855 = vmatpush.msrb.mxu1 %v12616_v59  ;;  %v13315_v59 = vld [vmem:[%s14061_s3 + $0x3f8] sm:$0xff]  ;;  %v5587_v38 = vld [vmem:[%s14061_s3 + $0x70] sm:$0xff]  ;;  %v16001_v13 = vld [vmem:[#allocation36_spill] sm:$0xff] }
 0x698   :  { %3878 = vmatpush.msrb.mxu2 %v15973_v27  ;;  %3895 = vmatpush.msrb.mxu3 %v12628_v19  ;;  %v5559_v19 = vld [vmem:[%s14061_s3 + $0x3f0] sm:$0xff]  ;;  %v13472_v27 = vld [vmem:[%s14061_s3 + $0x78] sm:$0xff] }
 0x699   :  { %3839 = vmatpush.msrb.mxu0 %v5557_v4  ;;  %3856 = vmatpush.msrb.mxu1 %v12635_v29  ;;  %v15974_v29 = vld [vmem:[#allocation222_spill] sm:$0xff]  ;;  %v16002_v4 = vld [vmem:[#allocation37_spill] sm:$0xff] }
 0x69a   :  { %3879 = vmatpush.msrb.mxu2 %v13303_v48  ;;  %3896 = vmatpush.msrb.mxu3 %v12642_v35  ;;  %v5561_v35 = vld [vmem:[%s14061_s3 + $0x3b0] sm:$0xff] }
 0x69b   :  { %3840 = vmatmul.f32.vlgmr.msrb.gmra.mxu0 %v13227_v26  ;;  %3880 = vmatmul.f32.vlgmr.msrb.gmra.mxu2 %v13227_v26 }
 0x69c   :  { %3904 = vmatpush.msra.mxu0 %v5559_v19  ;;  %3944 = vmatpush.msra.mxu2 %v13315_v59  ;;  %v5589_v19 = vld [vmem:[%s14061_s3 + $0x30] sm:$0xff] }
 0x69d   :  { %3857 = vmatpush.msrb.mxu1 %v12652_v17  ;;  %3897 = vmatpush.msrb.mxu3 %v15974_v29  ;;  %v5563_v17 = vld [vmem:[%s14061_s3 + $0x370] sm:$0xff]  ;;  %v16003_v29 = vld [vmem:[#allocation69_spill] sm:$0xff] }
 0x69e   :  { %3905 = vmatpush.msra.mxu0 %v5561_v35  ;;  %3945 = vmatpush.msra.mxu2 %v13326_v9  ;;  %v13483_v35 = vld [vmem:[%s14061_s3 + $0x38] sm:$0xff] }
 0x69f   :  { %3858 = vmatpush.msrb.mxu1 %v15975_v47  ;;  %3898 = vmatpush.msrb.mxu3 %v15976_v55  ;;  %v16004_v47 = vld [vmem:[#allocation70_spill] sm:$0xff] }
 0x6a0   :  { %3906 = vmatpush.msra.mxu0 %v5563_v17  ;;  %3946 = vmatpush.msra.mxu2 %v13337_v24  ;;  %v16005_v55 = vld [vmem:[#allocation10_spill] sm:$0xff]  ;;  %v16006_v17 = vld [vmem:[#allocation4_spill] sm:$0xff] }
 0x6a1   :  { %3859 = vmatpush.msrb.mxu1 %v15977_v52  ;;  %3899 = vmatpush.msrb.mxu3 %v15978_v11  ;;  %v5591_v52 = vld [vmem:[%s14061_s3 + $0x3c8] sm:$0xff]  ;;  %v5592_v11 = vld [vmem:[%s14061_s3 + $0x3d8] sm:$0xff] }
 0x6a2   :  { %3860 = vmatmul.f32.vlgmr.msrb.gmra.mxu1 %v13236_v21  ;;  %3900 = vmatmul.f32.vlgmr.msrb.gmra.mxu3 %v13236_v21 }
 0x6a3   :  { %3907 = vmatpush.msra.mxu0 %v5565_v7  ;;  %3924 = vmatpush.msra.mxu1 %v15979_v23  ;;  %v16007_v7 = vld [vmem:[#allocation23_spill] sm:$0xff]  ;;  %v16008_v23 = vld [vmem:[#allocation22_spill] sm:$0xff] }
 0x6a4   :  { %3947 = vmatpush.msra.mxu2 %v13351_v3  ;;  %3964 = vmatpush.msra.mxu3 %v15980_v1  ;;  %v5594_v1 = vld [vmem:[%s14061_s3 + $0x398] sm:$0xff] }
 0x6a5   :  { %3908 = vmatpush.msra.mxu0 %v5567_v22  ;;  %3925 = vmatpush.msra.mxu1 %v15981_v60  ;;  %v16009_v22 = vld [vmem:[#allocation83_spill] sm:$0xff]  ;;  %v16010_v60 = vld [vmem:[#allocation84_spill] sm:$0xff] }
 0x6a6   :  { %3948 = vmatpush.msra.mxu2 %v13362_v49  ;;  %3965 = vmatpush.msra.mxu3 %v15982_v54  ;;  %v5595_v54 = vld [vmem:[%s14061_s3 + $0x348] sm:$0xff] }
 0x6a7   :  { %3909 = vmatpush.msra.mxu0 %v5569_v36  ;;  %3926 = vmatpush.msra.mxu1 %v15983_v20  ;;  %v5596_v36 = vld [vmem:[%s14061_s3 + $0x358] sm:$0xff]  ;;  %v5597_v20 = vld [vmem:[%s14061_s3 + $0x7c8] sm:$0xff] }
 0x6a8   :  { %3949 = vmatpush.msra.mxu2 %v13373_v25  ;;  %3966 = vmatpush.msra.mxu3 %v15984_v51  ;;  %v5598_v51 = vld [vmem:[%s14061_s3 + $0x7d8] sm:$0xff] }
 0x6a9   :  { %3910 = vmatpush.msra.mxu0 %v5571_v42  ;;  %3927 = vmatpush.msra.mxu1 %v15985_v40  ;;  %v5599_v42 = vld [vmem:[%s14061_s3 + $0x308] sm:$0xff]  ;;  %v5600_v40 = vld [vmem:[%s14061_s3 + $0x318] sm:$0xff] }
 0x6aa   :  { %3950 = vmatpush.msra.mxu2 %v13384_v30  ;;  %3967 = vmatpush.msra.mxu3 %v15986_v14  ;;  %v5601_v14 = vld [vmem:[%s14061_s3 + $0x788] sm:$0xff] }
 0x6ab   :  { %3911 = vmatpush.msra.mxu0 %v5573_v63  ;;  %3928 = vmatpush.msra.mxu1 %v15987_v12  ;;  %v5602_v63 = vld [vmem:[%s14061_s3 + $0x798] sm:$0xff]  ;;  %v5603_v12 = vld [vmem:[%s14061_s3 + $0x2c8] sm:$0xff] }
 0x6ac   :  { %3951 = vmatpush.msra.mxu2 %v13395_v46  ;;  %3968 = vmatpush.msra.mxu3 %v15988_v8  ;;  %v5604_v8 = vld [vmem:[%s14061_s3 + $0x2d8] sm:$0xff] }
 0x6ad   :  { %3912 = vmatpush.msra.mxu0 %v5575_v37  ;;  %3929 = vmatpush.msra.mxu1 %v15989_v62  ;;  %v5605_v37 = vld [vmem:[%s14061_s3 + $0x748] sm:$0xff]  ;;  %v5606_v62 = vld [vmem:[%s14061_s3 + $0x758] sm:$0xff] }
 0x6ae   :  { %3952 = vmatpush.msra.mxu2 %v13406_v44  ;;  %3969 = vmatpush.msra.mxu3 %v15990_v16  ;;  %v5607_v16 = vld [vmem:[%s14061_s3 + $0x288] sm:$0xff] }
 0x6af   :  { %3913 = vmatpush.msra.mxu0 %v5577_v34  ;;  %3930 = vmatpush.msra.mxu1 %v15991_v56  ;;  %v5608_v34 = vld [vmem:[%s14061_s3 + $0x298] sm:$0xff]  ;;  %v5609_v56 = vld [vmem:[%s14061_s3 + $0x708] sm:$0xff] }
 0x6b0   :  { %3953 = vmatpush.msra.mxu2 %v13417_v32  ;;  %3970 = vmatpush.msra.mxu3 %v15992_v31  ;;  %v5610_v31 = vld [vmem:[%s14061_s3 + $0x718] sm:$0xff] }
 0x6b1   :  { %3914 = vmatpush.msra.mxu0 %v5579_v50  ;;  %3931 = vmatpush.msra.mxu1 %v15993_v6  ;;  %v5611_v50 = vld [vmem:[%s14061_s3 + $0x248] sm:$0xff]  ;;  %v5612_v6 = vld [vmem:[%s14061_s3 + $0x258] sm:$0xff] }
 0x6b2   :  { %3954 = vmatpush.msra.mxu2 %v13428_v57  ;;  %3971 = vmatpush.msra.mxu3 %v15994_v61  ;;  %v5613_v61 = vld [vmem:[%s14061_s3 + $0x6c8] sm:$0xff] }
 0x6b3   :  { %3915 = vmatpush.msra.mxu0 %v5581_v5  ;;  %3932 = vmatpush.msra.mxu1 %v15995_v53  ;;  %v5614_v5 = vld [vmem:[%s14061_s3 + $0x6d8] sm:$0xff]  ;;  %v5615_v53 = vld [vmem:[%s14061_s3 + $0x208] sm:$0xff] }
 0x6b4   :  { %3955 = vmatpush.msra.mxu2 %v13439_v45  ;;  %3972 = vmatpush.msra.mxu3 %v15996_v0  ;;  %v5616_v0 = vld [vmem:[%s14061_s3 + $0x218] sm:$0xff] }
 0x6b5   :  { %3916 = vmatpush.msra.mxu0 %v5583_v43  ;;  %3933 = vmatpush.msra.mxu1 %v15997_v58  ;;  %v5617_v43 = vld [vmem:[%s14061_s3 + $0x688] sm:$0xff]  ;;  %v5618_v58 = vld [vmem:[%s14061_s3 + $0x698] sm:$0xff] }
 0x6b6   :  { %3956 = vmatpush.msra.mxu2 %v13450_v41  ;;  %3973 = vmatpush.msra.mxu3 %v15998_v2  ;;  %v5619_v2 = vld [vmem:[%s14061_s3 + $0x1c8] sm:$0xff] }
 0x6b7   :  { %3917 = vmatpush.msra.mxu0 %v5585_v33  ;;  %3934 = vmatpush.msra.mxu1 %v15999_v39  ;;  %v5620_v33 = vld [vmem:[%s14061_s3 + $0x1d8] sm:$0xff]  ;;  %v5621_v39 = vld [vmem:[%s14061_s3 + $0x648] sm:$0xff] }
 0x6b8   :  { %3957 = vmatpush.msra.mxu2 %v13461_v15  ;;  %3974 = vmatpush.msra.mxu3 %v16000_v28  ;;  %v5622_v28 = vld [vmem:[%s14061_s3 + $0x658] sm:$0xff] }
 0x6b9   :  { %3918 = vmatpush.msra.mxu0 %v5587_v38  ;;  %3935 = vmatpush.msra.mxu1 %v16001_v13  ;;  %v5623_v38 = vld [vmem:[%s14061_s3 + $0x188] sm:$0xff]  ;;  %v5624_v13 = vld [vmem:[%s14061_s3 + $0x198] sm:$0xff] }
 0x6ba   :  { %3958 = vmatpush.msra.mxu2 %v13472_v27  ;;  %3975 = vmatpush.msra.mxu3 %v16002_v4  ;;  %v5625_v4 = vld [vmem:[%s14061_s3 + $0x608] sm:$0xff] }
 0x6bb   :  { %3919 = vmatpush.msra.mxu0 %v5589_v19  ;;  %3936 = vmatpush.msra.mxu1 %v16003_v29  ;;  %v5626_v19 = vld [vmem:[%s14061_s3 + $0x618] sm:$0xff]  ;;  %v5627_v29 = vld [vmem:[%s14061_s3 + $0x148] sm:$0xff] }
 0x6bc   :  { %3959 = vmatpush.msra.mxu2 %v13483_v35  ;;  %3976 = vmatpush.msra.mxu3 %v16004_v47  ;;  %v5628_v47 = vld [vmem:[%s14061_s3 + $0x158] sm:$0xff] }
 0x6bd   :  { %3920 = vmatmul.f32.vlgmr.msra.gmra.mxu0 %v13227_v26  ;;  %3960 = vmatmul.f32.vlgmr.msra.gmra.mxu2 %v13227_v26  ;;  %v5593_v26 = vld [vmem:[%s14061_s3 + $0x388] sm:$0xff] }
 0x6be   :  { %3937 = vmatpush.msra.mxu1 %v16005_v55  ;;  %3977 = vmatpush.msra.mxu3 %v16006_v17  ;;  %v5629_v55 = vld [vmem:[%s14061_s3 + $0x5c8] sm:$0xff]  ;;  %v5630_v17 = vld [vmem:[%s14061_s3 + $0x5d8] sm:$0xff] }
 0x6bf   :  { %4119 = vmatpush.msrb.mxu0 %v5591_v52  ;;  %4159 = vmatpush.msrb.mxu2 %v5592_v11  ;;  %v5631_v52 = vld [vmem:[%s14061_s3 + $0x108] sm:$0xff]  ;;  %v5632_v11 = vld [vmem:[%s14061_s3 + $0x118] sm:$0xff] }
 0x6c0   :  { %3938 = vmatpush.msra.mxu1 %v16007_v7  ;;  %3978 = vmatpush.msra.mxu3 %v16008_v23  ;;  %v5633_v7 = vld [vmem:[%s14061_s3 + $0x588] sm:$0xff]  ;;  %v5634_v23 = vld [vmem:[%s14061_s3 + $0x598] sm:$0xff] }
 0x6c1   :  { %4120 = vmatpush.msrb.mxu0 %v5593_v26  ;;  %4160 = vmatpush.msrb.mxu2 %v5594_v1  ;;  %v5635_v26 = vld [vmem:[%s14061_s3 + $0xc8] sm:$0xff]  ;;  %v5636_v1 = vld [vmem:[%s14061_s3 + $0xd8] sm:$0xff] }
 0x6c2   :  { %3939 = vmatpush.msra.mxu1 %v16009_v22  ;;  %3979 = vmatpush.msra.mxu3 %v16010_v60  ;;  %v5637_v22 = vld [vmem:[%s14061_s3 + $0x548] sm:$0xff]  ;;  %v5638_v60 = vld [vmem:[%s14061_s3 + $0x558] sm:$0xff] }
 0x6c3   :  { %3940 = vmatmul.f32.vlgmr.msra.gmra.mxu1 %v13236_v21  ;;  %3980 = vmatmul.f32.vlgmr.msra.gmra.mxu3 %v13236_v21 }
 0x6c4   :  { %4121 = vmatpush.msrb.mxu0 %v5595_v54  ;;  %4161 = vmatpush.msrb.mxu2 %v5596_v36  ;;  %v5639_v54 = vld [vmem:[%s14061_s3 + $0x88] sm:$0xff] }
 0x6c5   :  { %4139 = vmatpush.msrb.mxu1 %v5597_v20  ;;  %4179 = vmatpush.msrb.mxu3 %v5598_v51  ;;  %v16011_v36 = vld [vmem:[#allocation97_spill] sm:$0xff]  ;;  %v16012_v51 = vld [vmem:[#allocation40_spill] sm:$0xff] }
 0x6c6   :  { %4122 = vmatpush.msrb.mxu0 %v5599_v42  ;;  %4162 = vmatpush.msrb.mxu2 %v5600_v40  ;;  %v5640_v20 = vld [vmem:[%s14061_s3 + $0x508] sm:$0xff]  ;;  %v16013_v40 = vld [vmem:[#allocation98_spill] sm:$0xff] }
 0x6c7   :  { %4140 = vmatpush.msrb.mxu1 %v5601_v14  ;;  %4180 = vmatpush.msrb.mxu3 %v5602_v63  ;;  %v5641_v42 = vld [vmem:[%s14061_s3 + $0x48] sm:$0xff]  ;;  %v16014_v63 = vld [vmem:[#allocation76_spill] sm:$0xff] }
 0x6c8   :  { %4123 = vmatpush.msrb.mxu0 %v5603_v12  ;;  %4163 = vmatpush.msrb.mxu2 %v5604_v8  ;;  %v5642_v14 = vld [vmem:[%s14061_s3 + $0x4c8] sm:$0xff]  ;;  %v16015_v8 = vld [vmem:[#allocation75_spill] sm:$0xff] }
 0x6c9   :  { %4141 = vmatpush.msrb.mxu1 %v5605_v37  ;;  %4181 = vmatpush.msrb.mxu3 %v5606_v62  ;;  %v5643_v12 = vld [vmem:[%s14061_s3 + $0x8] sm:$0xff] }
 0x6ca   :  { %4124 = vmatpush.msrb.mxu0 %v5607_v16  ;;  %4164 = vmatpush.msrb.mxu2 %v5608_v34  ;;  %v5644_v37 = vld [vmem:[%s14061_s3 + $0x3e8] sm:$0xff]  ;;  %v16016_v16 = vld [vmem:[#allocation43_spill] sm:$0xff] }
 0x6cb   :  { %4142 = vmatpush.msrb.mxu1 %v5609_v56  ;;  %4182 = vmatpush.msrb.mxu3 %v5610_v31  ;;  %v5645_v62 = vld [vmem:[%s14061_s3 + $0x488] sm:$0xff] }
 0x6cc   :  { %4125 = vmatpush.msrb.mxu0 %v5611_v50  ;;  %4165 = vmatpush.msrb.mxu2 %v5612_v6  ;;  %v5646_v34 = vld [vmem:[%s14061_s3 + $0x3a8] sm:$0xff] }
 0x6cd   :  { %4143 = vmatpush.msrb.mxu1 %v5613_v61  ;;  %4183 = vmatpush.msrb.mxu3 %v5614_v5  ;;  %v5647_v56 = vld [vmem:[%s14061_s3 + $0x448] sm:$0xff] }
 0x6ce   :  { %4126 = vmatpush.msrb.mxu0 %v5615_v53  ;;  %4166 = vmatpush.msrb.mxu2 %v5616_v0  ;;  %v5648_v31 = vld [vmem:[%s14061_s3 + $0x368] sm:$0xff] }
 0x6cf   :  { %4144 = vmatpush.msrb.mxu1 %v5617_v43  ;;  %4184 = vmatpush.msrb.mxu3 %v5618_v58  ;;  %v5649_v50 = vld [vmem:[%s14061_s3 + $0x408] sm:$0xff] }
 0x6d0   :  { %4127 = vmatpush.msrb.mxu0 %v5619_v2  ;;  %4167 = vmatpush.msrb.mxu2 %v5620_v33  ;;  %v5650_v6 = vld [vmem:[%s14061_s3 + $0x328] sm:$0xff] }
 0x6d1   :  { %4145 = vmatpush.msrb.mxu1 %v5621_v39  ;;  %4185 = vmatpush.msrb.mxu3 %v5622_v28  ;;  %v5651_v61 = vld [vmem:[%s14061_s3 + $0x7e8] sm:$0xff] }
 0x6d2   :  { %4128 = vmatpush.msrb.mxu0 %v5623_v38  ;;  %4168 = vmatpush.msrb.mxu2 %v5624_v13  ;;  %v5653_v5 = vld [vmem:[%s14061_s3 + $0x2e8] sm:$0xff] }
 0x6d3   :  { %4146 = vmatpush.msrb.mxu1 %v5625_v4  ;;  %4186 = vmatpush.msrb.mxu3 %v5626_v19  ;;  %v5654_v53 = vld [vmem:[%s14061_s3 + $0x7a8] sm:$0xff] }
 0x6d4   :  { %4129 = vmatpush.msrb.mxu0 %v5627_v29  ;;  %4169 = vmatpush.msrb.mxu2 %v5628_v47  ;;  %v5656_v0 = vld [vmem:[%s14061_s3 + $0x2a8] sm:$0xff] }
 0x6d5   :  { %4147 = vmatpush.msrb.mxu1 %v5629_v55  ;;  %4187 = vmatpush.msrb.mxu3 %v5630_v17  ;;  %v5657_v43 = vld [vmem:[%s14061_s3 + $0x768] sm:$0xff] }
 0x6d6   :  { %4130 = vmatpush.msrb.mxu0 %v5631_v52  ;;  %4170 = vmatpush.msrb.mxu2 %v5632_v11  ;;  %v5659_v58 = vld [vmem:[%s14061_s3 + $0x268] sm:$0xff] }
 0x6d7   :  { %4148 = vmatpush.msrb.mxu1 %v5633_v7  ;;  %4188 = vmatpush.msrb.mxu3 %v5634_v23  ;;  %v5660_v2 = vld [vmem:[%s14061_s3 + $0x728] sm:$0xff] }
 0x6d8   :  { %4131 = vmatpush.msrb.mxu0 %v5635_v26  ;;  %4171 = vmatpush.msrb.mxu2 %v5636_v1  ;;  %v5662_v33 = vld [vmem:[%s14061_s3 + $0x228] sm:$0xff] }
 0x6d9   :  { %4149 = vmatpush.msrb.mxu1 %v5637_v22  ;;  %4189 = vmatpush.msrb.mxu3 %v5638_v60  ;;  %v5663_v39 = vld [vmem:[%s14061_s3 + $0x6e8] sm:$0xff]  ;;  %v5687_v22 = vld [vmem:[%s14061_s3 + $0x4f8] sm:$0xff] }
 0x6da   :  { %4132 = vmatpush.msrb.mxu0 %v5639_v54  ;;  %4172 = vmatpush.msrb.mxu2 %v16011_v36  ;;  %v5665_v28 = vld [vmem:[%s14061_s3 + $0x1e8] sm:$0xff]  ;;  %v5693_v36 = vld [vmem:[%s14061_s3 + $0x438] sm:$0xff] }
 0x6db   :  { %4150 = vmatpush.msrb.mxu1 %v5640_v20  ;;  %4190 = vmatpush.msrb.mxu3 %v16012_v51  ;;  %v5666_v38 = vld [vmem:[%s14061_s3 + $0x6a8] sm:$0xff] }
 0x6dc   :  { %4133 = vmatpush.msrb.mxu0 %v5641_v42  ;;  %4173 = vmatpush.msrb.mxu2 %v16013_v40  ;;  %v5668_v13 = vld [vmem:[%s14061_s3 + $0x1a8] sm:$0xff] }
 0x6dd   :  { %4151 = vmatpush.msrb.mxu1 %v5642_v14  ;;  %4191 = vmatpush.msrb.mxu3 %v16014_v63  ;;  %v5669_v4 = vld [vmem:[%s14061_s3 + $0x668] sm:$0xff] }
 0x6de   :  { %4134 = vmatpush.msrb.mxu0 %v5643_v12  ;;  %4174 = vmatpush.msrb.mxu2 %v16015_v8  ;;  %v5671_v19 = vld [vmem:[%s14061_s3 + $0x168] sm:$0xff]  ;;  %v16019_v8 = vld [vmem:[#allocation8_spill] sm:$0xff] }
 0x6df   :  { %4152 = vmatpush.msrb.mxu1 %v5645_v62  ;;  %4192 = vmatpush.msrb.mxu3 %v16016_v16  ;;  %v5672_v29 = vld [vmem:[%s14061_s3 + $0x628] sm:$0xff] }
 0x6e0   :  { %4199 = vmatpush.msra.mxu0 %v5644_v37  ;;  %4239 = vmatpush.msra.mxu2 %v13315_v59  ;;  %v16017_v59 = vld [vmem:[#allocation44_spill] sm:$0xff]  ;;  %v5674_v47 = vld [vmem:[%s14061_s3 + $0x128] sm:$0xff]  ;;  %v16020_v37 = vld [vmem:[#allocation18_spill] sm:$0xff] }
 0x6e1   :  { %4153 = vmatpush.msrb.mxu1 %v5647_v56  ;;  %4193 = vmatpush.msrb.mxu3 %v16017_v59  ;;  %v5675_v55 = vld [vmem:[%s14061_s3 + $0x5e8] sm:$0xff]  ;;  %v540_v62 = vadd.f32 %v16020_v37, %v16019_v8 }
 0x6e2   :  { %4200 = vmatpush.msra.mxu0 %v5646_v34  ;;  %4240 = vmatpush.msra.mxu2 %v13326_v9  ;;  %v16018_v9 = vld [vmem:[#allocation79_spill] sm:$0xff]  ;;  %v5677_v17 = vld [vmem:[%s14061_s3 + $0xe8] sm:$0xff] }
 0x6e3   :  { %4154 = vmatpush.msrb.mxu1 %v5649_v50  ;;  %4194 = vmatpush.msrb.mxu3 %v16018_v9  ;;  %v5678_v52 = vld [vmem:[%s14061_s3 + $0x5a8] sm:$0xff] }
 0x6e4   :  { %4201 = vmatpush.msra.mxu0 %v5648_v31  ;;  %4241 = vmatpush.msra.mxu2 %v13337_v24  ;;  %v5652_v24 = vld [vmem:[%s14061_s3 + $0x7f8] sm:$0xff]  ;;  %v5680_v11 = vld [vmem:[%s14061_s3 + $0xa8] sm:$0xff] }
 0x6e5   :  { %4219 = vmatpush.msra.mxu1 %v5651_v61  ;;  %4259 = vmatpush.msra.mxu3 %v5652_v24  ;;  %v5681_v7 = vld [vmem:[%s14061_s3 + $0x568] sm:$0xff] }
 0x6e6   :  { %4202 = vmatpush.msra.mxu0 %v5650_v6  ;;  %4242 = vmatpush.msra.mxu2 %v13351_v3  ;;  %v5655_v3 = vld [vmem:[%s14061_s3 + $0x7b8] sm:$0xff]  ;;  %v5683_v23 = vld [vmem:[%s14061_s3 + $0x68] sm:$0xff] }
 0x6e7   :  { %4220 = vmatpush.msra.mxu1 %v5654_v53  ;;  %4260 = vmatpush.msra.mxu3 %v5655_v3  ;;  %v5684_v26 = vld [vmem:[%s14061_s3 + $0x528] sm:$0xff] }
 0x6e8   :  { %4203 = vmatpush.msra.mxu0 %v5653_v5  ;;  %4243 = vmatpush.msra.mxu2 %v13362_v49  ;;  %v5658_v49 = vld [vmem:[%s14061_s3 + $0x778] sm:$0xff]  ;;  %v5686_v1 = vld [vmem:[%s14061_s3 + $0x4e8] sm:$0xff] }
 0x6e9   :  { %4221 = vmatpush.msra.mxu1 %v5657_v43  ;;  %4261 = vmatpush.msra.mxu3 %v5658_v49  ;;  %v5690_v60 = vld [vmem:[%s14061_s3 + $0x468] sm:$0xff]  ;;  %v16024_v5 = vld [vmem:[#allocation31_spill] sm:$0xff]  ;;  %v16025_v49 = vld [vmem:[#allocation174_spill] sm:$0xff] }
 0x6ea   :  { %4204 = vmatpush.msra.mxu0 %v5656_v0  ;;  %4244 = vmatpush.msra.mxu2 %v13373_v25  ;;  %v5661_v25 = vld [vmem:[%s14061_s3 + $0x738] sm:$0xff]  ;;  %v5692_v54 = vld [vmem:[%s14061_s3 + $0x428] sm:$0xff] }
 0x6eb   :  { %4222 = vmatpush.msra.mxu1 %v5660_v2  ;;  %4262 = vmatpush.msra.mxu3 %v5661_v25  ;;  %v16021_v59 = vld [vmem:[#allocation9_spill] sm:$0xff] }
 0x6ec   :  { %4205 = vmatpush.msra.mxu0 %v5659_v58  ;;  %4245 = vmatpush.msra.mxu2 %v13384_v30  ;;  %v5664_v30 = vld [vmem:[%s14061_s3 + $0x6f8] sm:$0xff]  ;;  %v16022_v31 = vld [vmem:[#allocation17_spill] sm:$0xff]  ;;  %v16026_v58 = vld [vmem:[#allocation30_spill] sm:$0xff] }
 0x6ed   :  { %4223 = vmatpush.msra.mxu1 %v5663_v39  ;;  %4263 = vmatpush.msra.mxu3 %v5664_v30  ;;  %v458_v50 = vadd.f32 %v16022_v31, %v16021_v59  ;;  %v16023_v24 = vld [vmem:[#allocation173_spill] sm:$0xff]  ;;  %v499_v2 = vadd.f32 %v16026_v58, %v16025_v49 }
 0x6ee   :  { %4206 = vmatpush.msra.mxu0 %v5662_v33  ;;  %4246 = vmatpush.msra.mxu2 %v13395_v46  ;;  %v5667_v46 = vld [vmem:[%s14061_s3 + $0x6b8] sm:$0xff]  ;;  %v581_v53 = vadd.f32 %v16024_v5, %v16023_v24 }
 0x6ef   :  { %4224 = vmatpush.msra.mxu1 %v5666_v38  ;;  %4264 = vmatpush.msra.mxu3 %v5667_v46  ;;  %v16027_v46 = vld [vmem:[#allocation11_spill] sm:$0xff] }
 0x6f0   :  { %4207 = vmatpush.msra.mxu0 %v5665_v28  ;;  %4247 = vmatpush.msra.mxu2 %v13406_v44  ;;  %v5670_v44 = vld [vmem:[%s14061_s3 + $0x678] sm:$0xff] }
 0x6f1   :  { %4225 = vmatpush.msra.mxu1 %v5669_v4  ;;  %4265 = vmatpush.msra.mxu3 %v5670_v44 }
 0x6f2   :  { %4208 = vmatpush.msra.mxu0 %v5668_v13  ;;  %4248 = vmatpush.msra.mxu2 %v13417_v32  ;;  %v5673_v32 = vld [vmem:[%s14061_s3 + $0x638] sm:$0xff]  ;;  %v16028_v13 = vld [vmem:[#allocation168_spill] sm:$0xff] }
 0x6f3   :  { %4226 = vmatpush.msra.mxu1 %v5672_v29  ;;  %4266 = vmatpush.msra.mxu3 %v5673_v32  ;;  %v622_v4 = vadd.f32 %v16028_v13, %v16027_v46 }
 0x6f4   :  { %4209 = vmatpush.msra.mxu0 %v5671_v19  ;;  %4249 = vmatpush.msra.mxu2 %v13428_v57  ;;  %v5676_v57 = vld [vmem:[%s14061_s3 + $0x5f8] sm:$0xff]  ;;  %v3681_v51 = vpop.f32.mrf.mxu0 }
 0x6f5   :  { %4227 = vmatpush.msra.mxu1 %v5675_v55  ;;  %4267 = vmatpush.msra.mxu3 %v5676_v57 }
 0x6f6   :  { %4210 = vmatpush.msra.mxu0 %v5674_v47  ;;  %4250 = vmatpush.msra.mxu2 %v13439_v45  ;;  %v5679_v45 = vld [vmem:[%s14061_s3 + $0x5b8] sm:$0xff] }
 0x6f7   :  { %4228 = vmatpush.msra.mxu1 %v5678_v52  ;;  %4268 = vmatpush.msra.mxu3 %v5679_v45  ;;  %v16029_v52 = vld [vmem:[#allocation175_spill] sm:$0xff]  ;;  %v16030_v45 = vld [vmem:[#allocation169_spill] sm:$0xff] }
 0x6f8   :  { %4211 = vmatpush.msra.mxu0 %v5677_v17  ;;  %4251 = vmatpush.msra.mxu2 %v13450_v41  ;;  %v5682_v41 = vld [vmem:[%s14061_s3 + $0x578] sm:$0xff] }
 0x6f9   :  { %4229 = vmatpush.msra.mxu1 %v5681_v7  ;;  %4269 = vmatpush.msra.mxu3 %v5682_v41 }
 0x6fa   :  { %4212 = vmatpush.msra.mxu0 %v5680_v11  ;;  %4252 = vmatpush.msra.mxu2 %v13461_v15  ;;  %v5685_v15 = vld [vmem:[%s14061_s3 + $0x538] sm:$0xff]  ;;  %v3721_v40 = vpop.f32.mrf.mxu2  ;;  %v663_v11 = vadd.f32 %v16030_v45, %v16029_v52 }
 0x6fb   :  { %4230 = vmatpush.msra.mxu1 %v5684_v26  ;;  %4270 = vmatpush.msra.mxu3 %v5685_v15  ;;  %v3701_v20 = vpop.f32.mrf.mxu1 }
 0x6fc   :  { %4213 = vmatpush.msra.mxu0 %v5683_v23  ;;  %4253 = vmatpush.msra.mxu2 %v13472_v27  ;;  %v5688_v27 = vld [vmem:[%s14061_s3 + $0x4a8] sm:$0xff]  ;;  %v3702_v16 = vadd.f32 %v3701_v20, %v3681_v51 }
 0x6fd   :  { %4231 = vmatpush.msra.mxu1 %v5686_v1  ;;  %4271 = vmatpush.msra.mxu3 %v5687_v22 }
 0x6fe   :  { %4214 = vmatpush.msra.mxu0 %v13303_v48  ;;  %4254 = vmatpush.msra.mxu2 %v13483_v35  ;;  %v5689_v48 = vld [vmem:[%s14061_s3 + $0x4b8] sm:$0xff]  ;;  %v3761_v63 = vpop.f32.mrf.mxu0  ;;  %v3984_v61 = vadd.f32 %v3702_v16, %v458_v50 }
 0x6ff   :  { %4232 = vmatpush.msra.mxu1 %v5688_v27  ;;  %4272 = vmatpush.msra.mxu3 %v5689_v48  ;;  %v5691_v35 = vld [vmem:[%s14061_s3 + $0x478] sm:$0xff] }
 0x700   :  { %v4539_v25 = vmul.f32 -1.442695, %v3984_v61  ;;  %v16031_v50 = vld [vmem:[#allocation19_spill] sm:$0xff] }
 0x701   :  { %4233 = vmatpush.msra.mxu1 %v5690_v60  ;;  %4273 = vmatpush.msra.mxu3 %v5691_v35  ;;  %v3741_v42 = vpop.f32.mrf.mxu3 }
 0x702   :  { %v3742_v0 = vadd.f32 %v3741_v42, %v3721_v40 }
 0x703   :  { %4234 = vmatpush.msra.mxu1 %v5692_v54  ;;  %4274 = vmatpush.msra.mxu3 %v5693_v36 }
 0x704   :  { %v3801_v9 = vpop.f32.mrf.mxu2  ;;  %v3985_v39 = vadd.f32 %v3742_v0, %v499_v2 }
 0x705   :  { %v3781_v14 = vpop.f32.mrf.mxu1 }
 0x706   :  { %v3782_v12 = vadd.f32 %v3781_v14, %v3761_v63  ;;  %v4540_v44 = vmul.f32 -1.442695, %v3985_v39 }
 0x708   :  { %v3986_v56 = vadd.f32 %v3782_v12, %v540_v62 }
 0x70a   :  { %v4541_v3 = vmul.f32 -1.442695, %v3986_v56 }
 0x70b   :  { %v3821_v34 = vpop.f32.mrf.mxu3 }
 0x70c   :  { %v3822_v6 = vadd.f32 %v3821_v34, %v3801_v9  ;;  %4774 = vpow2.f32 %v4541_v3  ;;  %v16032_v9 = vld [vmem:[#allocation171_spill] sm:$0xff] }
 0x70d   :  { %4776 = vpow2.f32 %v4539_v25 }
 0x70e   :  { %v3987_v43 = vadd.f32 %v3822_v6, %v581_v53  ;;  %v704_v6 = vadd.f32 %v16032_v9, %v16031_v50 }
 0x710   :  { %v4542_v28 = vmul.f32 -1.442695, %v3987_v43 }
 0x712   :  { %v4775_v19 = vpop.eup %4774  ;;  %4778 = vpow2.f32 %v4542_v28  ;;  %v16034_v28 = vld [vmem:[#allocation172_spill] sm:$0xff] }
 0x713   :  { %v4777_v57 = vpop.eup %4776  ;;  %4780 = vpow2.f32 %v4540_v44  ;;  %v13841_v17 = vadd.f32 1.0, %v4775_v19 }
 0x714   :  { %v4010_v23 = vadd.f32 1.0, %v4777_v57 }
 0x715   :  { %4782 = vrcp.f32 %v13841_v17  ;;  %v4057_v43 = vand.u32 2147483648, %v13841_v17  ;;  %vm4051_vm0 = vweird.f32 %v13841_v17  ;;  %v4055_v39 = vand.u32 2147483647, %v13841_v17 }
 0x716   :  { %v4025_v5 = vand.u32 2147483647, %v4010_v23  ;;  %v4027_v3 = vand.u32 2147483648, %v4010_v23  ;;  %vm4021_vm2 = vweird.f32 %v4010_v23 }
 0x717   :  { %vm4056_vm7 = vcmp.eq.f32.partialorder %v4055_v39, 8.507059e+37 }
 0x718   :  { %v3841_v30 = vpop.f32.mrf.mxu0  ;;  %v4779_v41 = vpop.eup %4778  ;;  %vm13897_vm3 = vcmp.eq.f32.partialorder %v4025_v5, 8.507059e+37  ;;  %v4028_v44 = vor.u32 1.1754944e-38, %v4027_v3 }
 0x719   :  { %v4781_v15 = vpop.eup %4780  ;;  %v13846_v1 = vadd.f32 1.0, %v4779_v41 }
 0x71a   :  { %v13848_v27 = vadd.f32 1.0, %v4781_v15 }
 0x71b   :  { %v13850_v48 = vpop.eup %4782  ;;  %v4072_v41 = vand.u32 2147483648, %v13846_v1  ;;  %vm4066_vm8 = vweird.f32 %v13846_v1 }
 0x71c   :  { %v4047_v54 = vmul.f32 %v13850_v48, %v13841_v17  ;;  %vm4052_vm14 = vweird.f32 %v13850_v48  ;;  %vm4036_vm5 = vweird.f32 %v13848_v27  ;;  %v4358_v17 = vld [vmem:[%s14063_s4 + $0x18] sm:$0xff] }
 0x71d   :  { %vm13891_vm1 = vmor %vm4051_vm0, %vm4052_vm14 }
 0x71e   :  { %v3881_v47 = vpop.f32.mrf.mxu2  ;;  %v4048_v40 = vsub.f32 1.0, %v4047_v54 }
 0x71f   :  { %v3861_v33 = vpop.f32.mrf.mxu1 }
 0x720   :  { %v3862_v38 = vadd.f32 %v3861_v33, %v3841_v30  ;;  %v4049_v62 = vmul.f32 %v13850_v48, %v4048_v40  ;;  %v16033_v30 = vld [vmem:[#allocation176_spill] sm:$0xff] }
 0x722   :  { %v3988_v29 = vadd.f32 %v3862_v38, %v622_v4  ;;  %v4050_v0 = vadd.f32 %v13850_v48, %v4049_v62  ;;  %v745_v38 = vadd.f32 %v16034_v28, %v16033_v30  ;;  %v4368_v28 = vld [vmem:[%s14063_s4 + $0x68] sm:$0xff]  ;;  %v4367_v4 = vld [vmem:[%s14063_s4 + $0x60] sm:$0xff] }
 0x724   :  { %v4543_v7 = vmul.f32 -1.442695, %v3988_v29  ;;  %v4054_v19 = vsel %vm13891_vm1, %v13850_v48, %v4050_v0  ;;  %v4070_v48 = vand.u32 2147483647, %v13846_v1 }
 0x725   :  { %v3901_v32 = vpop.f32.mrf.mxu3 }
 0x726   :  { %v3902_v55 = vadd.f32 %v3901_v32, %v3881_v47  ;;  %4784 = vpow2.f32 %v4543_v7  ;;  %vm4071_vm12 = vcmp.eq.f32.partialorder %v4070_v48, 8.507059e+37 }
 0x727   :  { %4786 = vrcp.f32 %v4010_v23 }
 0x728   :  { %v3989_v26 = vadd.f32 %v3902_v55, %v663_v11  ;;  %4788 = vrcp.f32 %v13846_v1  ;;  %v4058_v55 = vor.u32 1.1754944e-38, %v4057_v43 }
 0x72a   :  { %v4544_v22 = vmul.f32 -1.442695, %v3989_v26  ;;  %v4059_v26 = vsel %vm4056_vm7, %v4058_v55, %v4054_v19  ;;  %v4364_v19 = vld [vmem:[%s14063_s4 + $0x48] sm:$0xff] }
 0x72b   :  { %v4108_v40 = vmul.f32 %v4059_v26, %v13205_v10  ;;  %v4360_v55 = vld [vmem:[%s14063_s4 + $0x28] sm:$0xff] }
 0x72c   :  { %v4785_v60 = vpop.eup %4784  ;;  %4790 = vpow2.f32 %v4544_v22  ;;  %v16045_v26 = vld [vmem:[#allocation193_spill] sm:$0xff] }
 0x72d   :  { %v13853_v35 = vpop.eup %4786  ;;  %4792 = vrcp.f32 %v13848_v27  ;;  %v13858_v36 = vadd.f32 1.0, %v4785_v60 }
 0x72e   :  { %v13860_v20 = vpop.eup %4788  ;;  %v4017_v51 = vmul.f32 %v13853_v35, %v4010_v23  ;;  %vm4022_vm15 = vweird.f32 %v13853_v35 }
 0x72f   :  { %4794 = vrcp.f32 %v13858_v36  ;;  %v4062_v12 = vmul.f32 %v13860_v20, %v13846_v1  ;;  %vm13907_vm4 = vmor %vm4021_vm2, %vm4022_vm15  ;;  %vm4067_vm6 = vweird.f32 %v13860_v20  ;;  %v4087_v50 = vand.u32 2147483648, %v13858_v36 }
 0x730   :  { %v4018_v63 = vsub.f32 1.0, %v4017_v51  ;;  %vm13924_vm10 = vmor %vm4066_vm8, %vm4067_vm6  ;;  %vm4081_vm15 = vweird.f32 %v13858_v36 }
 0x731   :  { %v4063_v34 = vsub.f32 1.0, %v4062_v12  ;;  %v4040_v12 = vand.u32 2147483647, %v13848_v27  ;;  %v4088_v3 = vor.u32 1.1754944e-38, %v4087_v50 }
 0x732   :  { %v4791_v42 = vpop.eup %4790  ;;  %v4019_v31 = vmul.f32 %v13853_v35, %v4018_v63 }
 0x733   :  { %v13864_v14 = vpop.eup %4792  ;;  %v13868_v8 = vadd.f32 1.0, %v4791_v42  ;;  %v4064_v25 = vmul.f32 %v13860_v20, %v4063_v34  ;;  %v4042_v42 = vand.u32 2147483648, %v13848_v27  ;;  %vm4041_vm14 = vcmp.eq.f32.partialorder %v4040_v12, 8.507059e+37 }
 0x734   :  { %v4032_v37 = vmul.f32 %v13864_v14, %v13848_v27  ;;  %v4020_v33 = vadd.f32 %v13853_v35, %v4019_v31  ;;  %vm4037_vm9 = vweird.f32 %v13864_v14 }
 0x735   :  { %v13873_v16 = vpop.eup %4794  ;;  %4796 = vrcp.f32 %v13868_v8  ;;  %v4065_v7 = vadd.f32 %v13860_v20, %v4064_v25  ;;  %vm4038_vm11 = vmor %vm4036_vm5, %vm4037_vm9  ;;  %v4369_v25 = vld [vmem:[%s14063_s4 + $0x70] sm:$0xff] }
 0x736   :  { %v4033_v53 = vsub.f32 1.0, %v4032_v37  ;;  %v4077_v58 = vmul.f32 %v13873_v16, %v13858_v36  ;;  %v4024_v11 = vsel %vm13907_vm4, %v13853_v35, %v4020_v33  ;;  %v4073_v37 = vor.u32 1.1754944e-38, %v4072_v41  ;;  %v16043_v41 = vld [vmem:[#allocation177_spill] sm:$0xff] }
 0x737   :  { %v4029_v51 = vsel %vm13897_vm3, %v4028_v44, %v4024_v11  ;;  %v4069_v1 = vsel %vm13924_vm10, %v13860_v20, %v4065_v7  ;;  %vm4082_vm13 = vweird.f32 %v13873_v16  ;;  %vm4096_vm3 = vweird.f32 %v13868_v8  ;;  %v4365_v44 = vld [vmem:[%s14063_s4 + $0x50] sm:$0xff]  ;;  %v4356_v11 = vld [vmem:[%s14063_s4 + $0x8] sm:$0xff]  ;;  %v4355_v7 = vld [vmem:[%s14063_s4] sm:$0xff] }
 0x738   :  { %v4034_v47 = vmul.f32 %v13864_v14, %v4033_v53  ;;  %v4078_v57 = vsub.f32 1.0, %v4077_v58  ;;  %v4074_v31 = vsel %vm4071_vm12, %v4073_v37, %v4069_v1  ;;  %vm4083_vm0 = vmor %vm4081_vm15, %vm4082_vm13  ;;  %v4102_v58 = vand.u32 2147483648, %v13868_v8 }
 0x73a   :  { %v3921_v56 = vpop.f32.mrf.mxu0  ;;  %v4035_v22 = vadd.f32 %v13864_v14, %v4034_v47  ;;  %v4079_v54 = vmul.f32 %v13873_v16, %v4078_v57  ;;  %v4103_v39 = vor.u32 1.1754944e-38, %v4102_v58  ;;  %v4361_v47 = vld [vmem:[%s14063_s4 + $0x30] sm:$0xff]  ;;  %v4359_v57 = vld [vmem:[%s14063_s4 + $0x20] sm:$0xff] }
 0x73b   :  { %v13895_v13 = vpop.eup %4796 }
 0x73c   :  { %v4092_v23 = vmul.f32 %v13895_v13, %v13868_v8  ;;  %v4080_v10 = vadd.f32 %v13873_v16, %v4079_v54  ;;  %vm4097_vm2 = vweird.f32 %v13895_v13 }
 0x73d   :  { %vm4098_vm4 = vmor %vm4096_vm3, %vm4097_vm2 }
 0x73e   :  { %v4093_v62 = vsub.f32 1.0, %v4092_v23  ;;  %v4084_v5 = vsel %vm4083_vm0, %v13873_v16, %v4080_v10  ;;  %v4370_v16 = vld [vmem:[%s14063_s4 + $0x78] sm:$0xff] }
 0x73f   :  { %v16044_v23 = vld [vmem:[#allocation39_spill] sm:$0xff] }
 0x740   :  { %v3941_v59 = vpop.f32.mrf.mxu1  ;;  %v3961_v29 = vpop.f32.mrf.mxu2  ;;  %v4094_v27 = vmul.f32 %v13895_v13, %v4093_v62 }
 0x741   :  { %v3942_v61 = vadd.f32 %v3941_v59, %v3921_v56  ;;  %v4039_v56 = vsel %vm4038_vm11, %v13864_v14, %v4035_v22  ;;  %v4043_v59 = vor.u32 1.1754944e-38, %v4042_v42  ;;  %v4109_v14 = vmul.f32 %v4074_v31, %v13219_v18  ;;  %v16047_v22 = vld [vmem:[#allocation196_spill] sm:$0xff] }
 0x742   :  { %v4095_v0 = vadd.f32 %v13895_v13, %v4094_v27 }
 0x743   :  { %v3990_v2 = vadd.f32 %v3942_v61, %v704_v6  ;;  %v4044_v9 = vsel %vm4041_vm14, %v4043_v59, %v4039_v56  ;;  %v4085_v6 = vand.u32 2147483647, %v13858_v36 }
 0x744   :  { %v4099_v33 = vsel %vm4098_vm4, %v13895_v13, %v4095_v0  ;;  %v4366_v13 = vld [vmem:[%s14063_s4 + $0x58] sm:$0xff] }
 0x745   :  { %4798 = vtanh.f32 %v3990_v2  ;;  %vm4086_vm1 = vcmp.eq.f32.partialorder %v4085_v6, 8.507059e+37  ;;  %v4100_v2 = vand.u32 2147483647, %v13868_v8 }
 0x746   :  { %v3981_v32 = vpop.f32.mrf.mxu3  ;;  %v4089_v36 = vsel %vm4086_vm1, %v4088_v3, %v4084_v5 }
 0x747   :  { %v3982_v45 = vadd.f32 %v3981_v32, %v3961_v29  ;;  %vm4101_vm5 = vcmp.eq.f32.partialorder %v4100_v2, 8.507059e+37  ;;  %v4363_v29 = vld [vmem:[%s14063_s4 + $0x40] sm:$0xff]  ;;  %v4362_v32 = vld [vmem:[%s14063_s4 + $0x38] sm:$0xff] }
 0x748   :  { %v4104_v46 = vsel %vm4101_vm5, %v4103_v39, %v4099_v33 }
 0x749   :  { %v3991_v15 = vadd.f32 %v3982_v45, %v745_v38  ;;  %v4357_v45 = vld [vmem:[%s14063_s4 + $0x10] sm:$0xff] }
 0x74b   :  { %v4799_v60 = vpop.eup %4798  ;;  %4800 = vtanh.f32 %v3991_v15  ;;  %v16046_v15 = vld [vmem:[#allocation85_spill] sm:$0xff] }
 0x74c   :  { %v4110_v63 = vmul.f32 %v4799_v60, %v4029_v51 }
 0x74e   :  { %v4112_v34 = vadd.f32 %v4110_v63, %v4108_v40 }
 0x750   :  { %4802 = vtanh.f32 %v4112_v34 }
 0x751   :  { %v4801_v20 = vpop.eup %4800 }
 0x752   :  { %v4111_v61 = vmul.f32 %v4801_v20, %v4044_v9 }
 0x754   :  { %v13948_v53 = vadd.f32 %v4111_v61, %v4109_v14 }
 0x756   :  { %v4803_v43 = vpop.eup %4802  ;;  %4804 = vtanh.f32 %v13948_v53 }
 0x757   :  { %v4116_v18 = vmul.f32 %v4803_v43, %v4089_v36 }
 0x759   :  { %4135 = vmatmul.f32.vlgmr.msrb.gmra.mxu0 %v4116_v18  ;;  %4175 = vmatmul.f32.vlgmr.msrb.gmra.mxu2 %v4116_v18 }
 0x75a   :  { %4375 = vmatpush.msrb.mxu0 %v4370_v16 }
 0x75c   :  { %v4805_v38 = vpop.eup %4804  ;;  %4376 = vmatpush.msrb.mxu0 %v4369_v25 }
 0x75d   :  { %v4117_v8 = vmul.f32 %v4805_v38, %v4104_v46 }
 0x75e   :  { %4377 = vmatpush.msrb.mxu0 %v4368_v28 }
 0x75f   :  { %4155 = vmatmul.f32.vlgmr.msrb.gmra.mxu1 %v4117_v8  ;;  %4195 = vmatmul.f32.vlgmr.msrb.gmra.mxu3 %v4117_v8 }
 0x760   :  { %4378 = vmatpush.msrb.mxu0 %v4367_v4 }
 0x761   :  { %4215 = vmatmul.f32.vlgmr.msra.gmra.mxu0 %v4116_v18  ;;  %4255 = vmatmul.f32.vlgmr.msra.gmra.mxu2 %v4116_v18 }
 0x762   :  { %4379 = vmatpush.msrb.mxu0 %v4366_v13 }
 0x764   :  { %4380 = vmatpush.msrb.mxu0 %v4365_v44 }
 0x766   :  { %4381 = vmatpush.msrb.mxu0 %v4364_v19 }
 0x767   :  { %4235 = vmatmul.f32.vlgmr.msra.gmra.mxu1 %v4117_v8  ;;  %4275 = vmatmul.f32.vlgmr.msra.gmra.mxu3 %v4117_v8 }
 0x768   :  { %4382 = vmatpush.msrb.mxu0 %v4363_v29 }
 0x76a   :  { %4383 = vmatpush.msrb.mxu0 %v4362_v32 }
 0x76c   :  { %4384 = vmatpush.msrb.mxu0 %v4361_v47 }
 0x76e   :  { %4385 = vmatpush.msrb.mxu0 %v4360_v55 }
 0x770   :  { %4386 = vmatpush.msrb.mxu0 %v4359_v57 }
 0x772   :  { %4387 = vmatpush.msrb.mxu0 %v4358_v17 }
 0x774   :  { %4388 = vmatpush.msrb.mxu0 %v4357_v45 }
 0x776   :  { %4389 = vmatpush.msrb.mxu0 %v4356_v11 }
 0x778   :  { %4390 = vmatpush.msrb.mxu0 %v4355_v7 }
 0x779   :  { %4391 = vmatmul.f32.vlgmr.msrb.gmra.mxu0 %v16043_v41 }
 0x781   :  { %4394 = vmatmul.f32.gmra.mxu0 %v16044_v23 }
 0x789   :  { %4397 = vmatmul.f32.gmra.mxu0 %v16045_v26 }
 0x791   :  { %4400 = vmatmul.f32.gmra.mxu0 %v16046_v15 }
 0x799   :  { %4403 = vmatmul.f32.gmra.mxu0 %v16047_v22 }
 0x7a1   :  { %4406 = vmatmul.f32.gmra.mxu0 %v13236_v21 }
 0x7a9   :  { %4409 = vmatmul.f32.gmra.mxu0 %v4117_v8 }
 0x7d6   :  { %v4136_v48 = vpop.f32.mrf.mxu0 }
 0x7dc   :  { %v4156_v60 = vpop.f32.mrf.mxu1  ;;  %v4176_v42 = vpop.f32.mrf.mxu2 }
 0x7dd   :  { %v4157_v35 = vadd.f32 %v4156_v60, %v4136_v48 }
 0x7de   :  { %v4216_v12 = vpop.f32.mrf.mxu0 }
 0x7df   :  { %v4279_v54 = vadd.f32 %v4157_v35, %v16025_v49 }
 0x7e1   :  { %v4545_v51 = vmul.f32 -1.442695, %v4279_v54 }
 0x7e2   :  { %v4196_v40 = vpop.f32.mrf.mxu3 }
 0x7e3   :  { %4806 = vpow2.f32 %v4545_v51  ;;  %v4197_v63 = vadd.f32 %v4196_v40, %v4176_v42 }
 0x7e4   :  { %v4236_v1 = vpop.f32.mrf.mxu1  ;;  %v4256_v14 = vpop.f32.mrf.mxu2 }
 0x7e5   :  { %v4280_v37 = vadd.f32 %v4197_v63, %v16023_v24  ;;  %v4237_v62 = vadd.f32 %v4236_v1, %v4216_v12  ;;  %v14017_v24 = vld [vmem:[%s14064_s5] ss:$0 sm:$0xff] }
 0x7e7   :  { %v4546_v34 = vmul.f32 -1.442695, %v4280_v37  ;;  %v4281_v56 = vadd.f32 %v4237_v62, %v16029_v52 }
 0x7e9   :  { %v4807_v21 = vpop.eup %4806  ;;  %4808 = vpow2.f32 %v4546_v34  ;;  %v4547_v59 = vmul.f32 -1.442695, %v4281_v56 }
 0x7ea   :  { %v4292_v31 = vadd.f32 1.0, %v4807_v21  ;;  %v4276_v20 = vpop.f32.mrf.mxu3 }
 0x7eb   :  { %4810 = vpow2.f32 %v4547_v59  ;;  %v4277_v52 = vadd.f32 %v4276_v20, %v4256_v14 }
 0x7ec   :  { %4812 = vrcp.f32 %v4292_v31  ;;  %v4306_v2 = vand.u32 2147483648, %v4292_v31  ;;  %vm4300_vm7 = vweird.f32 %v4292_v31  ;;  %v4304_v33 = vand.u32 2147483647, %v4292_v31 }
 0x7ed   :  { %v4282_v58 = vadd.f32 %v4277_v52, %v16033_v30 }
 0x7ee   :  { %v4307_v4 = vor.u32 1.1754944e-38, %v4306_v2  ;;  %vm4305_vm11 = vcmp.eq.f32.partialorder %v4304_v33, 8.507059e+37 }
 0x7ef   :  { %v4809_v49 = vpop.eup %4808 }
 0x7f0   :  { %v4293_v10 = vadd.f32 1.0, %v4809_v49 }
 0x7f1   :  { %v4811_v50 = vpop.eup %4810 }
 0x7f2   :  { %v4813_v27 = vpop.eup %4812  ;;  %4814 = vrcp.f32 %v4293_v10  ;;  %v4294_v9 = vadd.f32 1.0, %v4811_v50  ;;  %v4321_v28 = vand.u32 2147483648, %v4293_v10  ;;  %v4319_v8 = vand.u32 2147483647, %v4293_v10 }
 0x7f3   :  { %v4296_v6 = vmul.f32 %v4813_v27, %v4292_v31  ;;  %vm4301_vm6 = vweird.f32 %v4813_v27  ;;  %vm4315_vm10 = vweird.f32 %v4293_v10 }
 0x7f4   :  { %4816 = vrcp.f32 %v4294_v9  ;;  %vm14024_vm8 = vmor %vm4300_vm7, %vm4301_vm6  ;;  %v4322_v32 = vor.u32 1.1754944e-38, %v4321_v28  ;;  %vm4320_vm13 = vcmp.eq.f32.partialorder %v4319_v8, 8.507059e+37  ;;  %v4336_v22 = vand.u32 2147483648, %v4294_v9 }
 0x7f5   :  { %v4297_v61 = vsub.f32 1.0, %v4296_v6  ;;  %4818 = vtanh.f32 %v4282_v58  ;;  %vm4330_vm15 = vweird.f32 %v4294_v9  ;;  %v4334_v48 = vand.u32 2147483647, %v4294_v9 }
 0x7f6   :  { %v4392_v5 = vpop.f32.mrf.mxu0  ;;  %v4337_v35 = vor.u32 1.1754944e-38, %v4336_v22 }
 0x7f7   :  { %v4298_v3 = vmul.f32 %v4813_v27, %v4297_v61  ;;  %v4393_v0 = vadd.f32 %v14017_v24, %v4392_v5  ;;  %vm4335_vm1 = vcmp.eq.f32.partialorder %v4334_v48, 8.507059e+37 }
 0x7f8   :  { %v4815_v43 = vpop.eup %4814 }
 0x7f9   :  { %v4311_v36 = vmul.f32 %v4815_v43, %v4293_v10  ;;  %v4299_v18 = vadd.f32 %v4813_v27, %v4298_v3  ;;  %4416 = vst [vmem:[%s14065_s6] sm:$0xff] %v4393_v0  ;;  %vm4316_vm9 = vweird.f32 %v4815_v43 }
 0x7fa   :  { %v4817_v16 = vpop.eup %4816  ;;  %vm4317_vm12 = vmor %vm4315_vm10, %vm4316_vm9 }
 0x7fb   :  { %v4312_v25 = vsub.f32 1.0, %v4311_v36  ;;  %v4326_v39 = vmul.f32 %v4817_v16, %v4294_v9  ;;  %v4303_v46 = vsel %vm14024_vm8, %v4813_v27, %v4299_v18  ;;  %v4819_v57 = vpop.eup %4818  ;;  %vm4331_vm14 = vweird.f32 %v4817_v16 }
 0x7fc   :  { %v4308_v47 = vsel %vm4305_vm11, %v4307_v4, %v4303_v46  ;;  %vm4332_vm0 = vmor %vm4330_vm15, %vm4331_vm14 }
 0x7fd   :  { %v4313_v30 = vmul.f32 %v4815_v43, %v4312_v25  ;;  %v4327_v44 = vsub.f32 1.0, %v4326_v39  ;;  %v4342_v11 = vmul.f32 %v4819_v57, %v4308_v47 }
 0x7fe   :  { %v4395_v13 = vpop.f32.mrf.mxu0 }
 0x7ff   :  { %v4396_v19 = vadd.f32 %v14017_v24, %v4395_v13  ;;  %v4314_v29 = vadd.f32 %v4815_v43, %v4313_v30  ;;  %v4328_v45 = vmul.f32 %v4817_v16, %v4327_v44 }
 0x801   :  { %4417 = vst [vmem:[%s14065_s6 + $0x8] sm:$0xff] %v4396_v19  ;;  %v4318_v55 = vsel %vm4317_vm12, %v4815_v43, %v4314_v29  ;;  %v4329_v26 = vadd.f32 %v4817_v16, %v4328_v45 }
 0x802   :  { %v4323_v17 = vsel %vm4320_vm13, %v4322_v32, %v4318_v55 }
 0x803   :  { %v4341_v7 = vmul.f32 %v4323_v17, %v13948_v53  ;;  %v4333_v60 = vsel %vm4332_vm0, %v4817_v16, %v4329_v26 }
 0x804   :  { %v4338_v53 = vsel %vm4335_vm1, %v4337_v35, %v4333_v60 }
 0x805   :  { %v4343_v41 = vadd.f32 %v4342_v11, %v4341_v7 }
 0x806   :  { %v4398_v23 = vpop.f32.mrf.mxu0 }
 0x807   :  { %v4399_v15 = vadd.f32 %v14017_v24, %v4398_v23  ;;  %4820 = vtanh.f32 %v4343_v41 }
 0x809   :  { %4418 = vst [vmem:[%s14065_s6 + $0x10] sm:$0xff] %v4399_v15 }
 0x80d   :  { %v4821_v54 = vpop.eup %4820 }
 0x80e   :  { %v4401_v51 = vpop.f32.mrf.mxu0  ;;  %v4345_v42 = vmul.f32 %v4821_v54, %v4338_v53 }
 0x80f   :  { %v4402_v40 = vadd.f32 %v14017_v24, %v4401_v51 }
 0x810   :  { %4412 = vmatmul.f32.gmra.mxu0 %v4345_v42 }
 0x811   :  { %4419 = vst [vmem:[%s14065_s6 + $0x18] sm:$0xff] %v4402_v40 }
 0x816   :  { %v4404_v63 = vpop.f32.mrf.mxu0 }
 0x817   :  { %v4405_v12 = vadd.f32 %v14017_v24, %v4404_v63 }
 0x819   :  { %4420 = vst [vmem:[%s14065_s6 + $0x20] sm:$0xff] %v4405_v12 }
 0x81e   :  { %v4407_v1 = vpop.f32.mrf.mxu0 }
 0x81f   :  { %v4408_v37 = vadd.f32 %v14017_v24, %v4407_v1 }
 0x821   :  { %4421 = vst [vmem:[%s14065_s6 + $0x28] sm:$0xff] %v4408_v37 }
 0x826   :  { %v4410_v62 = vpop.f32.mrf.mxu0 }
 0x827   :  { %v4411_v34 = vadd.f32 %v14017_v24, %v4410_v62 }
 0x829   :  { %4422 = vst [vmem:[%s14065_s6 + $0x30] sm:$0xff] %v4411_v34 }
 0x88d   :  { %v4413_v56 = vpop.f32.mrf.mxu0 }
 0x88e   :  { %v4414_v21 = vadd.f32 %v14017_v24, %v4413_v56 }
 0x890   :  { %4423 = vst [vmem:[%s14065_s6 + $0x38] sm:$0xff] %v4414_v21 }

</bundles_post_ra>
